<compile_context>
chip_gen: v6e
topology: v6e:2x2x1
jax: 0.10.0
libtpu: 0.0.40
codegen_flags: <defaults>
</compile_context>

<pallas_src>
import functools

import jax
import jax.numpy as jnp
from jax.experimental import pallas as pl
from jax.experimental.pallas import tpu as pltpu


# --------------------------------------------------------------------------------------
# Fused decoder kernel: one grid step == one image (batch element).
# --------------------------------------------------------------------------------------
def _decoder_kernel(num_heads, num_layers,
                    feats_ref, pos_ref, mask_ref, embeds_ref,
                    attn_w_ref, attn_b_ref, w1_ref, w2_ref, ffn_b_ref, ln_ref,
                    out_ref):
    f32 = jnp.float32
    feats = feats_ref[0]                       # [L, D]  features of this image
    pos = pos_ref[0]                           # [L, D]
    active = mask_ref[0]                       # [1, L]  1.0 = active feature
    embeds = embeds_ref[...]                   # [S, D]  learned slot embeddings

    S, D = embeds.shape
    H = num_heads
    hd = D // H
    F = w1_ref.shape[2]
    scale = float(hd) ** -0.5

    neg_bias = (1.0 - active) * (-1e9)         # additive key-padding mask   [1, L]
    kv_keys = feats + pos                      # cross-attn key source (layer-invariant)

    def layer_norm(x, w_row, b_row):
        w = ln_ref[w_row]                      # [1, D]
        b = ln_ref[b_row]
        mu = jnp.mean(x, axis=-1, keepdims=True)
        xc = x - mu
        var = jnp.mean(xc * xc, axis=-1, keepdims=True)
        return xc * jax.lax.rsqrt(var + 1e-5) * w + b

    def mha(q_in, k_in, v_in, W, bvec, bias, share_qk):
        # W: [D, 4D] = [Wq^T | Wk^T | Wv^T | Wo^T];  bvec: [1, 4D]
        Sq = q_in.shape[0]
        Lk = k_in.shape[0]
        w_in, w_out = W[:, :3 * D], W[:, 3 * D:]
        b_in, b_out = bvec[:, :3 * D], bvec[:, 3 * D:]

        # Fused input projection: a single MXU pass for q, k and v.
        if share_qk:
            x = jnp.concatenate([q_in, v_in], axis=0)                      # [Sq+Lv, D]
            proj = jnp.dot(x, w_in, preferred_element_type=f32)
            q = proj[:Sq, 0:D] + b_in[:, 0:D]
            k = proj[:Sq, D:2 * D] + b_in[:, D:2 * D]
            v = proj[Sq:, 2 * D:3 * D] + b_in[:, 2 * D:3 * D]
        else:
            x = jnp.concatenate([q_in, k_in, v_in], axis=0)                # [Sq+2Lk, D]
            proj = jnp.dot(x, w_in, preferred_element_type=f32)
            q = proj[:Sq, 0:D] + b_in[:, 0:D]
            k = proj[Sq:Sq + Lk, D:2 * D] + b_in[:, D:2 * D]
            v = proj[Sq + Lk:, 2 * D:3 * D] + b_in[:, 2 * D:3 * D]

        heads = []
        for h in range(H):
            cs = slice(h * hd, (h + 1) * hd)
            qh = q[:, cs] * scale                                          # [Sq, hd]
            kh = k[:, cs]                                                  # [Lk, hd]
            vh = v[:, cs]
            sc = jax.lax.dot_general(qh, kh, (((1,), (1,)), ((), ())),
                                     preferred_element_type=f32)           # [Sq, Lk]
            if bias is not None:
                sc = sc + bias
            m = jnp.max(sc, axis=-1, keepdims=True)
            e = jnp.exp(sc - m)
            p = e * pl.reciprocal(jnp.sum(e, axis=-1, keepdims=True), approx=True)
            heads.append(jnp.dot(p, vh, preferred_element_type=f32))       # [Sq, hd]
        ctx = jnp.concatenate(heads, axis=1)                               # [Sq, D]
        return jnp.dot(ctx, w_out, preferred_element_type=f32) + b_out

    slots = jnp.zeros((S, D), f32)             # GlobalDecoder starts from zero slots

    for l in range(num_layers):
        # --- self-attention (q = k = slots + slot_embeds, v = slots) ---
        qk_in = slots + embeds
        d = mha(qk_in, qk_in, slots, attn_w_ref[l, 0], attn_b_ref[l, 0],
                None, share_qk=True)
        slots = layer_norm(slots + d, 6 * l + 0, 6 * l + 1)

        # --- cross-attention to image features (masked by feature_masks) ---
        q_in = slots + embeds
        d = mha(q_in, kv_keys, feats, attn_w_ref[l, 1], attn_b_ref[l, 1],
                neg_bias, share_qk=False)
        slots = layer_norm(slots + d, 6 * l + 2, 6 * l + 3)

        # --- feed-forward (relu MLP), dropout = identity ---
        h1 = jnp.dot(slots, w1_ref[l], preferred_element_type=f32) + ffn_b_ref[l][:, :F]
        h1 = jnp.maximum(h1, 0.0)
        d = jnp.dot(h1, w2_ref[l], preferred_element_type=f32) + ffn_b_ref[l][:, F:]
        slots = layer_norm(slots + d, 6 * l + 4, 6 * l + 5)

        # GlobalDecoder.norm applied to this layer's (carried, un-normalized) slots
        out_ref[0, l] = layer_norm(slots, 6 * num_layers, 6 * num_layers + 1)


# --------------------------------------------------------------------------------------
# Wrapper: layout plumbing + single pallas_call + output assembly (matches torch forward)
# --------------------------------------------------------------------------------------
def global_decoder_forward(params, features, feature_masks, pos_encodings, *,
                           num_heads, return_all):
    L, B, D = features.shape
    num_layers = params['attn_w'].shape[0]
    slot_embeds = params['slot_embeds']
    S = slot_embeds.shape[0]

    feats_b = jnp.transpose(features, (1, 0, 2))            # [B, L, D]
    pos_b = jnp.transpose(pos_encodings, (1, 0, 2))          # [B, L, D]
    mask_b = feature_masks.reshape(B, 1, L).astype(jnp.float32)

    kernel = functools.partial(_decoder_kernel, num_heads, num_layers)
    full = lambda a: pl.BlockSpec(a.shape, lambda b: (0,) * a.ndim)

    ins = (feats_b, pos_b, mask_b, slot_embeds,
           params['attn_w'], params['attn_b'],
           params['ffn_w1'], params['ffn_w2'], params['ffn_b'], params['ln'])
    in_specs = [
        pl.BlockSpec((1, L, D), lambda b: (b, 0, 0)),
        pl.BlockSpec((1, L, D), lambda b: (b, 0, 0)),
        pl.BlockSpec((1, 1, L), lambda b: (b, 0, 0)),
        full(slot_embeds),
        full(params['attn_w']), full(params['attn_b']),
        full(params['ffn_w1']), full(params['ffn_w2']), full(params['ffn_b']),
        full(params['ln']),
    ]

    out = pl.pallas_call(
        kernel,
        grid=(B,),
        in_specs=in_specs,
        out_specs=pl.BlockSpec((1, num_layers, S, D), lambda b: (b, 0, 0, 0)),
        out_shape=jax.ShapeDtypeStruct((B, num_layers, S, D), jnp.float32),
        compiler_params=pltpu.CompilerParams(dimension_semantics=("parallel",)),
    )(*ins)

    # slots_list is reversed in the reference -> prediction set 0 == deepest layer.
    per_set = out[:, ::-1] if return_all else out[:, -1:]    # [B, P, S, D]
    P = per_set.shape[1]
    slots_out = jnp.transpose(per_set, (1, 0, 2, 3)).reshape(P, B * S, D)
    batch_ids = jnp.arange(B * S, dtype=jnp.int32) // S
    batch_ids = jnp.broadcast_to(batch_ids[None, :], (P, B * S))
    return {'slots': slots_out, 'batch_ids': batch_ids}


# --------------------------------------------------------------------------------------
# Deterministic parameter slabs (xavier-uniform weights, zero biases, default LayerNorm)
# --------------------------------------------------------------------------------------
def init_params(key, feat_dim, num_layers, num_slots, ffn_dim):
    D, F = feat_dim, ffn_dim
    k_in, k_out, k_f1, k_f2, k_emb = jax.random.split(key, 5)
    xav = lambda fi, fo: (6.0 / (fi + fo)) ** 0.5

    # Attention weight slab [num_layers, 2(self,cross), D, 4D] = [Wq^T|Wk^T|Wv^T|Wo^T]
    a_in, a_out = xav(D, 3 * D), xav(D, D)
    w_in = jax.random.uniform(k_in, (num_layers, 2, D, 3 * D), jnp.float32, -a_in, a_in)
    w_out = jax.random.uniform(k_out, (num_layers, 2, D, D), jnp.float32, -a_out, a_out)
    attn_w = jnp.concatenate([w_in, w_out], axis=-1)
    attn_b = jnp.zeros((num_layers, 2, 1, 4 * D), jnp.float32)      # constant_(0)

    a1, a2 = xav(D, F), xav(F, D)
    ffn_w1 = jax.random.uniform(k_f1, (num_layers, D, F), jnp.float32, -a1, a1)
    ffn_w2 = jax.random.uniform(k_f2, (num_layers, F, D), jnp.float32, -a2, a2)
    ffn_b = jnp.zeros((num_layers, 1, F + D), jnp.float32)

    # LayerNorm slab: rows 6l..6l+5 = (w,b) for norm1..norm3 of layer l; last two rows
    # are the final GlobalDecoder.norm. Even rows = weights (1.0), odd rows = biases (0).
    ln = jnp.zeros((6 * num_layers + 2, 1, D), jnp.float32)
    ln = ln.at[0::2].set(1.0)

    slot_embeds = jax.random.normal(k_emb, (num_slots, D), jnp.float32)  # nn.Embedding default

    return dict(attn_w=attn_w, attn_b=attn_b, ffn_w1=ffn_w1, ffn_w2=ffn_w2,
                ffn_b=ffn_b, ln=ln, slot_embeds=slot_embeds)


if __name__ == "__main__":
    key = jax.random.PRNGKey(0)
    k_feat, k_pos, k_par = jax.random.split(key, 3)

    B, fH, fW, D = 2, 16, 16, 32
    num_heads, num_layers, num_slots, ffn_dim = 4, 2, 8, 64
    L = fH * fW
    return_all = True

    features = jax.random.normal(k_feat, (L, B, D), jnp.float32)
    pos_encodings = jax.random.normal(k_pos, (L, B, D), jnp.float32)
    feature_masks = jnp.ones((B, fH, fW), dtype=bool).at[:, fH - 2:, :].set(False)

    params = init_params(k_par, D, num_layers, num_slots, ffn_dim)

    fwd = jax.jit(functools.partial(global_decoder_forward,
                                    num_heads=num_heads, return_all=return_all))
    out = fwd(params, features, feature_masks, pos_encodings)
    out = jax.block_until_ready(out)

    slots = out['slots']
    batch_ids = out['batch_ids']
    num_pred_sets = num_layers if return_all else 1
    assert slots.shape == (num_pred_sets, B * num_slots, D)
    assert batch_ids.shape == (num_pred_sets, B * num_slots)
    assert bool(jnp.all(jnp.isfinite(slots)))
    print("KERNEL_OK")
</pallas_src>

<mosaic_0001>
module attributes {stable_mosaic.version = 11 : i64} {
  func.func @_decoder_kernel(%arg0: i32, %arg1: memref<1x256x32xf32, #tpu.memory_space<vmem>>, %arg2: memref<1x256x32xf32, #tpu.memory_space<vmem>>, %arg3: memref<1x1x256xf32, #tpu.memory_space<vmem>>, %arg4: memref<8x32xf32, #tpu.memory_space<vmem>>, %arg5: memref<2x2x32x128xf32, #tpu.memory_space<vmem>>, %arg6: memref<2x2x1x128xf32, #tpu.memory_space<vmem>>, %arg7: memref<2x32x64xf32, #tpu.memory_space<vmem>>, %arg8: memref<2x64x32xf32, #tpu.memory_space<vmem>>, %arg9: memref<2x1x96xf32, #tpu.memory_space<vmem>>, %arg10: memref<14x1x32xf32, #tpu.memory_space<vmem>>, %arg11: memref<1x2x8x32xf32, #tpu.memory_space<vmem>>) attributes {dimension_semantics = [#tpu.dimension_semantics<parallel>], iteration_bounds = array<i64: 2>, scalar_prefetch = 0 : i64, scratch_operands = 0 : i64, tpu.core_type = #tpu.core_type<tc>, window_params = [{transform_indices = @transform_0, window_bounds = array<i64: 1, 256, 32>}, {transform_indices = @transform_1, window_bounds = array<i64: 1, 256, 32>}, {transform_indices = @transform_2, window_bounds = array<i64: 1, 1, 256>}, {pipeline_mode = #tpu.pipeline_mode<synchronous>, transform_indices = @transform_3, window_bounds = array<i64: 8, 32>}, {pipeline_mode = #tpu.pipeline_mode<synchronous>, transform_indices = @transform_4, window_bounds = array<i64: 2, 2, 32, 128>}, {pipeline_mode = #tpu.pipeline_mode<synchronous>, transform_indices = @transform_5, window_bounds = array<i64: 2, 2, 1, 128>}, {pipeline_mode = #tpu.pipeline_mode<synchronous>, transform_indices = @transform_6, window_bounds = array<i64: 2, 32, 64>}, {pipeline_mode = #tpu.pipeline_mode<synchronous>, transform_indices = @transform_7, window_bounds = array<i64: 2, 64, 32>}, {pipeline_mode = #tpu.pipeline_mode<synchronous>, transform_indices = @transform_8, window_bounds = array<i64: 2, 1, 96>}, {pipeline_mode = #tpu.pipeline_mode<synchronous>, transform_indices = @transform_9, window_bounds = array<i64: 14, 1, 32>}, {transform_indices = @transform_10, window_bounds = array<i64: 1, 2, 8, 32>}]} {
    %c0 = arith.constant 0 : index
    %c0_0 = arith.constant 0 : index
    %c0_1 = arith.constant 0 : index
    %0 = vector.load %arg1[%c0, %c0_0, %c0_1] : memref<1x256x32xf32, #tpu.memory_space<vmem>>, vector<1x256x32xf32>
    %1 = vector.shape_cast %0 : vector<1x256x32xf32> to vector<256x32xf32>
    %c0_2 = arith.constant 0 : index
    %c0_3 = arith.constant 0 : index
    %c0_4 = arith.constant 0 : index
    %2 = vector.load %arg2[%c0_2, %c0_3, %c0_4] : memref<1x256x32xf32, #tpu.memory_space<vmem>>, vector<1x256x32xf32>
    %3 = vector.shape_cast %2 : vector<1x256x32xf32> to vector<256x32xf32>
    %c0_5 = arith.constant 0 : index
    %c0_6 = arith.constant 0 : index
    %c0_7 = arith.constant 0 : index
    %4 = vector.load %arg3[%c0_5, %c0_6, %c0_7] : memref<1x1x256xf32, #tpu.memory_space<vmem>>, vector<1x1x256xf32>
    %5 = vector.shape_cast %4 : vector<1x1x256xf32> to vector<1x256xf32>
    %c0_8 = arith.constant 0 : index
    %c0_9 = arith.constant 0 : index
    %6 = vector.load %arg4[%c0_8, %c0_9] : memref<8x32xf32, #tpu.memory_space<vmem>>, vector<8x32xf32>
    %cst = arith.constant 1.000000e+00 : f32
    %7 = vector.broadcast %cst : f32 to vector<1x256xf32>
    %8 = arith.subf %7, %5 : vector<1x256xf32>
    %cst_10 = arith.constant -1.000000e+09 : f32
    %9 = vector.broadcast %cst_10 : f32 to vector<1x256xf32>
    %10 = arith.mulf %8, %9 : vector<1x256xf32>
    %11 = arith.addf %1, %3 : vector<256x32xf32>
    %cst_11 = arith.constant 0.000000e+00 : f32
    %12 = vector.broadcast %cst_11 : f32 to vector<8x32xf32>
    %13 = arith.addf %12, %6 : vector<8x32xf32>
    %c0_12 = arith.constant 0 : index
    %c0_13 = arith.constant 0 : index
    %c0_14 = arith.constant 0 : index
    %c0_15 = arith.constant 0 : index
    %14 = vector.load %arg5[%c0_12, %c0_13, %c0_14, %c0_15] : memref<2x2x32x128xf32, #tpu.memory_space<vmem>>, vector<1x1x32x128xf32>
    %15 = vector.shape_cast %14 : vector<1x1x32x128xf32> to vector<32x128xf32>
    %c0_16 = arith.constant 0 : index
    %c0_17 = arith.constant 0 : index
    %c0_18 = arith.constant 0 : index
    %c0_19 = arith.constant 0 : index
    %16 = vector.load %arg6[%c0_16, %c0_17, %c0_18, %c0_19] : memref<2x2x1x128xf32, #tpu.memory_space<vmem>>, vector<1x1x1x128xf32>
    %17 = vector.shape_cast %16 : vector<1x1x1x128xf32> to vector<1x128xf32>
    %18 = vector.extract_strided_slice %15 {offsets = [0, 0], sizes = [32, 96], strides = [1, 1]} : vector<32x128xf32> to vector<32x96xf32>
    %19 = vector.extract_strided_slice %15 {offsets = [0, 96], sizes = [32, 32], strides = [1, 1]} : vector<32x128xf32> to vector<32x32xf32>
    %20 = vector.extract_strided_slice %17 {offsets = [0, 0], sizes = [1, 96], strides = [1, 1]} : vector<1x128xf32> to vector<1x96xf32>
    %21 = vector.extract_strided_slice %17 {offsets = [0, 96], sizes = [1, 32], strides = [1, 1]} : vector<1x128xf32> to vector<1x32xf32>
    %22 = tpu.concatenate %13, %12 in 0 : vector<8x32xf32>, vector<8x32xf32> -> vector<16x32xf32>
    %cst_20 = arith.constant dense<0.000000e+00> : vector<16x96xf32>
    %23 = tpu.matmul %22, %18, %cst_20 {dimension_numbers = #tpu.dot_dimension_numbers<[1], [0], [0], [1], [0, 0, 1, 1], [], []>} : vector<16x32xf32>, vector<32x96xf32>, vector<16x96xf32> -> vector<16x96xf32>
    %24 = vector.extract_strided_slice %23 {offsets = [0, 0], sizes = [8, 32], strides = [1, 1]} : vector<16x96xf32> to vector<8x32xf32>
    %25 = vector.extract_strided_slice %20 {offsets = [0, 0], sizes = [1, 32], strides = [1, 1]} : vector<1x96xf32> to vector<1x32xf32>
    %26 = vector.broadcast %25 : vector<1x32xf32> to vector<8x32xf32>
    %27 = arith.addf %24, %26 : vector<8x32xf32>
    %28 = vector.extract_strided_slice %23 {offsets = [0, 32], sizes = [8, 32], strides = [1, 1]} : vector<16x96xf32> to vector<8x32xf32>
    %29 = vector.extract_strided_slice %20 {offsets = [0, 32], sizes = [1, 32], strides = [1, 1]} : vector<1x96xf32> to vector<1x32xf32>
    %30 = vector.broadcast %29 : vector<1x32xf32> to vector<8x32xf32>
    %31 = arith.addf %28, %30 : vector<8x32xf32>
    %32 = vector.extract_strided_slice %23 {offsets = [8, 64], sizes = [8, 32], strides = [1, 1]} : vector<16x96xf32> to vector<8x32xf32>
    %33 = vector.extract_strided_slice %20 {offsets = [0, 64], sizes = [1, 32], strides = [1, 1]} : vector<1x96xf32> to vector<1x32xf32>
    %34 = vector.broadcast %33 : vector<1x32xf32> to vector<8x32xf32>
    %35 = arith.addf %32, %34 : vector<8x32xf32>
    %36 = vector.extract_strided_slice %27 {offsets = [0, 0], sizes = [8, 8], strides = [1, 1]} : vector<8x32xf32> to vector<8x8xf32>
    %cst_21 = arith.constant 0.353553385 : f32
    %37 = vector.broadcast %cst_21 : f32 to vector<8x8xf32>
    %38 = arith.mulf %36, %37 : vector<8x8xf32>
    %39 = vector.extract_strided_slice %31 {offsets = [0, 0], sizes = [8, 8], strides = [1, 1]} : vector<8x32xf32> to vector<8x8xf32>
    %40 = vector.extract_strided_slice %35 {offsets = [0, 0], sizes = [8, 8], strides = [1, 1]} : vector<8x32xf32> to vector<8x8xf32>
    %cst_22 = arith.constant dense<0.000000e+00> : vector<8x8xf32>
    %41 = tpu.matmul %38, %39, %cst_22 {dimension_numbers = #tpu.dot_dimension_numbers<[1], [1], [0], [0], [0, 0, 1, 0], [], []>} : vector<8x8xf32>, vector<8x8xf32>, vector<8x8xf32> -> vector<8x8xf32>
    %cst_23 = arith.constant dense<0xFF800000> : vector<8xf32>
    %42 = vector.multi_reduction <maximumf>, %41, %cst_23 [1] : vector<8x8xf32> to vector<8xf32>
    %43 = vector.shape_cast %42 : vector<8xf32> to vector<8x1xf32>
    %44 = vector.broadcast %43 : vector<8x1xf32> to vector<8x8xf32>
    %45 = arith.subf %41, %44 : vector<8x8xf32>
    %46 = math.exp %45 : vector<8x8xf32>
    %cst_24 = arith.constant dense<0.000000e+00> : vector<8xf32>
    %47 = vector.multi_reduction <add>, %46, %cst_24 [1] : vector<8x8xf32> to vector<8xf32>
    %48 = vector.shape_cast %47 : vector<8xf32> to vector<8x1xf32>
    %49 = tpu.reciprocal %48 {approx = true} : vector<8x1xf32> -> vector<8x1xf32>
    %50 = vector.broadcast %49 : vector<8x1xf32> to vector<8x8xf32>
    %51 = arith.mulf %46, %50 : vector<8x8xf32>
    %cst_25 = arith.constant dense<0.000000e+00> : vector<8x8xf32>
    %52 = tpu.matmul %51, %40, %cst_25 {dimension_numbers = #tpu.dot_dimension_numbers<[1], [0], [0], [1], [0, 0, 1, 1], [], []>} : vector<8x8xf32>, vector<8x8xf32>, vector<8x8xf32> -> vector<8x8xf32>
    %53 = vector.extract_strided_slice %27 {offsets = [0, 8], sizes = [8, 8], strides = [1, 1]} : vector<8x32xf32> to vector<8x8xf32>
    %cst_26 = arith.constant 0.353553385 : f32
    %54 = vector.broadcast %cst_26 : f32 to vector<8x8xf32>
    %55 = arith.mulf %53, %54 : vector<8x8xf32>
    %56 = vector.extract_strided_slice %31 {offsets = [0, 8], sizes = [8, 8], strides = [1, 1]} : vector<8x32xf32> to vector<8x8xf32>
    %57 = vector.extract_strided_slice %35 {offsets = [0, 8], sizes = [8, 8], strides = [1, 1]} : vector<8x32xf32> to vector<8x8xf32>
    %cst_27 = arith.constant dense<0.000000e+00> : vector<8x8xf32>
    %58 = tpu.matmul %55, %56, %cst_27 {dimension_numbers = #tpu.dot_dimension_numbers<[1], [1], [0], [0], [0, 0, 1, 0], [], []>} : vector<8x8xf32>, vector<8x8xf32>, vector<8x8xf32> -> vector<8x8xf32>
    %cst_28 = arith.constant dense<0xFF800000> : vector<8xf32>
    %59 = vector.multi_reduction <maximumf>, %58, %cst_28 [1] : vector<8x8xf32> to vector<8xf32>
    %60 = vector.shape_cast %59 : vector<8xf32> to vector<8x1xf32>
    %61 = vector.broadcast %60 : vector<8x1xf32> to vector<8x8xf32>
    %62 = arith.subf %58, %61 : vector<8x8xf32>
    %63 = math.exp %62 : vector<8x8xf32>
    %cst_29 = arith.constant dense<0.000000e+00> : vector<8xf32>
    %64 = vector.multi_reduction <add>, %63, %cst_29 [1] : vector<8x8xf32> to vector<8xf32>
    %65 = vector.shape_cast %64 : vector<8xf32> to vector<8x1xf32>
    %66 = tpu.reciprocal %65 {approx = true} : vector<8x1xf32> -> vector<8x1xf32>
    %67 = vector.broadcast %66 : vector<8x1xf32> to vector<8x8xf32>
    %68 = arith.mulf %63, %67 : vector<8x8xf32>
    %cst_30 = arith.constant dense<0.000000e+00> : vector<8x8xf32>
    %69 = tpu.matmul %68, %57, %cst_30 {dimension_numbers = #tpu.dot_dimension_numbers<[1], [0], [0], [1], [0, 0, 1, 1], [], []>} : vector<8x8xf32>, vector<8x8xf32>, vector<8x8xf32> -> vector<8x8xf32>
    %70 = vector.extract_strided_slice %27 {offsets = [0, 16], sizes = [8, 8], strides = [1, 1]} : vector<8x32xf32> to vector<8x8xf32>
    %cst_31 = arith.constant 0.353553385 : f32
    %71 = vector.broadcast %cst_31 : f32 to vector<8x8xf32>
    %72 = arith.mulf %70, %71 : vector<8x8xf32>
    %73 = vector.extract_strided_slice %31 {offsets = [0, 16], sizes = [8, 8], strides = [1, 1]} : vector<8x32xf32> to vector<8x8xf32>
    %74 = vector.extract_strided_slice %35 {offsets = [0, 16], sizes = [8, 8], strides = [1, 1]} : vector<8x32xf32> to vector<8x8xf32>
    %cst_32 = arith.constant dense<0.000000e+00> : vector<8x8xf32>
    %75 = tpu.matmul %72, %73, %cst_32 {dimension_numbers = #tpu.dot_dimension_numbers<[1], [1], [0], [0], [0, 0, 1, 0], [], []>} : vector<8x8xf32>, vector<8x8xf32>, vector<8x8xf32> -> vector<8x8xf32>
    %cst_33 = arith.constant dense<0xFF800000> : vector<8xf32>
    %76 = vector.multi_reduction <maximumf>, %75, %cst_33 [1] : vector<8x8xf32> to vector<8xf32>
    %77 = vector.shape_cast %76 : vector<8xf32> to vector<8x1xf32>
    %78 = vector.broadcast %77 : vector<8x1xf32> to vector<8x8xf32>
    %79 = arith.subf %75, %78 : vector<8x8xf32>
    %80 = math.exp %79 : vector<8x8xf32>
    %cst_34 = arith.constant dense<0.000000e+00> : vector<8xf32>
    %81 = vector.multi_reduction <add>, %80, %cst_34 [1] : vector<8x8xf32> to vector<8xf32>
    %82 = vector.shape_cast %81 : vector<8xf32> to vector<8x1xf32>
    %83 = tpu.reciprocal %82 {approx = true} : vector<8x1xf32> -> vector<8x1xf32>
    %84 = vector.broadcast %83 : vector<8x1xf32> to vector<8x8xf32>
    %85 = arith.mulf %80, %84 : vector<8x8xf32>
    %cst_35 = arith.constant dense<0.000000e+00> : vector<8x8xf32>
    %86 = tpu.matmul %85, %74, %cst_35 {dimension_numbers = #tpu.dot_dimension_numbers<[1], [0], [0], [1], [0, 0, 1, 1], [], []>} : vector<8x8xf32>, vector<8x8xf32>, vector<8x8xf32> -> vector<8x8xf32>
    %87 = vector.extract_strided_slice %27 {offsets = [0, 24], sizes = [8, 8], strides = [1, 1]} : vector<8x32xf32> to vector<8x8xf32>
    %cst_36 = arith.constant 0.353553385 : f32
    %88 = vector.broadcast %cst_36 : f32 to vector<8x8xf32>
    %89 = arith.mulf %87, %88 : vector<8x8xf32>
    %90 = vector.extract_strided_slice %31 {offsets = [0, 24], sizes = [8, 8], strides = [1, 1]} : vector<8x32xf32> to vector<8x8xf32>
    %91 = vector.extract_strided_slice %35 {offsets = [0, 24], sizes = [8, 8], strides = [1, 1]} : vector<8x32xf32> to vector<8x8xf32>
    %cst_37 = arith.constant dense<0.000000e+00> : vector<8x8xf32>
    %92 = tpu.matmul %89, %90, %cst_37 {dimension_numbers = #tpu.dot_dimension_numbers<[1], [1], [0], [0], [0, 0, 1, 0], [], []>} : vector<8x8xf32>, vector<8x8xf32>, vector<8x8xf32> -> vector<8x8xf32>
    %cst_38 = arith.constant dense<0xFF800000> : vector<8xf32>
    %93 = vector.multi_reduction <maximumf>, %92, %cst_38 [1] : vector<8x8xf32> to vector<8xf32>
    %94 = vector.shape_cast %93 : vector<8xf32> to vector<8x1xf32>
    %95 = vector.broadcast %94 : vector<8x1xf32> to vector<8x8xf32>
    %96 = arith.subf %92, %95 : vector<8x8xf32>
    %97 = math.exp %96 : vector<8x8xf32>
    %cst_39 = arith.constant dense<0.000000e+00> : vector<8xf32>
    %98 = vector.multi_reduction <add>, %97, %cst_39 [1] : vector<8x8xf32> to vector<8xf32>
    %99 = vector.shape_cast %98 : vector<8xf32> to vector<8x1xf32>
    %100 = tpu.reciprocal %99 {approx = true} : vector<8x1xf32> -> vector<8x1xf32>
    %101 = vector.broadcast %100 : vector<8x1xf32> to vector<8x8xf32>
    %102 = arith.mulf %97, %101 : vector<8x8xf32>
    %cst_40 = arith.constant dense<0.000000e+00> : vector<8x8xf32>
    %103 = tpu.matmul %102, %91, %cst_40 {dimension_numbers = #tpu.dot_dimension_numbers<[1], [0], [0], [1], [0, 0, 1, 1], [], []>} : vector<8x8xf32>, vector<8x8xf32>, vector<8x8xf32> -> vector<8x8xf32>
    %104 = tpu.concatenate %52, %69, %86, %103 in 1 : vector<8x8xf32>, vector<8x8xf32>, vector<8x8xf32>, vector<8x8xf32> -> vector<8x32xf32>
    %cst_41 = arith.constant dense<0.000000e+00> : vector<8x32xf32>
    %105 = tpu.matmul %104, %19, %cst_41 {dimension_numbers = #tpu.dot_dimension_numbers<[1], [0], [0], [1], [0, 0, 1, 1], [], []>} : vector<8x32xf32>, vector<32x32xf32>, vector<8x32xf32> -> vector<8x32xf32>
    %106 = vector.broadcast %21 : vector<1x32xf32> to vector<8x32xf32>
    %107 = arith.addf %105, %106 : vector<8x32xf32>
    %108 = arith.addf %12, %107 : vector<8x32xf32>
    %c0_42 = arith.constant 0 : index
    %c0_43 = arith.constant 0 : index
    %c0_44 = arith.constant 0 : index
    %109 = vector.load %arg10[%c0_42, %c0_43, %c0_44] : memref<14x1x32xf32, #tpu.memory_space<vmem>>, vector<1x1x32xf32>
    %110 = vector.shape_cast %109 : vector<1x1x32xf32> to vector<1x32xf32>
    %c1 = arith.constant 1 : index
    %c0_45 = arith.constant 0 : index
    %c0_46 = arith.constant 0 : index
    %111 = vector.load %arg10[%c1, %c0_45, %c0_46] : memref<14x1x32xf32, #tpu.memory_space<vmem>>, vector<1x1x32xf32>
    %112 = vector.shape_cast %111 : vector<1x1x32xf32> to vector<1x32xf32>
    %cst_47 = arith.constant dense<0.000000e+00> : vector<8xf32>
    %113 = vector.multi_reduction <add>, %108, %cst_47 [1] : vector<8x32xf32> to vector<8xf32>
    %114 = vector.shape_cast %113 : vector<8xf32> to vector<8x1xf32>
    %cst_48 = arith.constant 3.200000e+01 : f32
    %115 = vector.broadcast %cst_48 : f32 to vector<8x1xf32>
    %116 = arith.divf %114, %115 : vector<8x1xf32>
    %117 = vector.broadcast %116 : vector<8x1xf32> to vector<8x32xf32>
    %118 = arith.subf %108, %117 : vector<8x32xf32>
    %119 = arith.mulf %118, %118 : vector<8x32xf32>
    %cst_49 = arith.constant dense<0.000000e+00> : vector<8xf32>
    %120 = vector.multi_reduction <add>, %119, %cst_49 [1] : vector<8x32xf32> to vector<8xf32>
    %121 = vector.shape_cast %120 : vector<8xf32> to vector<8x1xf32>
    %cst_50 = arith.constant 3.200000e+01 : f32
    %122 = vector.broadcast %cst_50 : f32 to vector<8x1xf32>
    %123 = arith.divf %121, %122 : vector<8x1xf32>
    %cst_51 = arith.constant 9.99999974E-6 : f32
    %124 = vector.broadcast %cst_51 : f32 to vector<8x1xf32>
    %125 = arith.addf %123, %124 : vector<8x1xf32>
    %126 = math.rsqrt %125 : vector<8x1xf32>
    %127 = vector.broadcast %126 : vector<8x1xf32> to vector<8x32xf32>
    %128 = arith.mulf %118, %127 : vector<8x32xf32>
    %129 = vector.broadcast %110 : vector<1x32xf32> to vector<8x32xf32>
    %130 = arith.mulf %128, %129 : vector<8x32xf32>
    %131 = vector.broadcast %112 : vector<1x32xf32> to vector<8x32xf32>
    %132 = arith.addf %130, %131 : vector<8x32xf32>
    %133 = arith.addf %132, %6 : vector<8x32xf32>
    %c0_52 = arith.constant 0 : index
    %c1_53 = arith.constant 1 : index
    %c0_54 = arith.constant 0 : index
    %c0_55 = arith.constant 0 : index
    %134 = vector.load %arg5[%c0_52, %c1_53, %c0_54, %c0_55] : memref<2x2x32x128xf32, #tpu.memory_space<vmem>>, vector<1x1x32x128xf32>
    %135 = vector.shape_cast %134 : vector<1x1x32x128xf32> to vector<32x128xf32>
    %c0_56 = arith.constant 0 : index
    %c1_57 = arith.constant 1 : index
    %c0_58 = arith.constant 0 : index
    %c0_59 = arith.constant 0 : index
    %136 = vector.load %arg6[%c0_56, %c1_57, %c0_58, %c0_59] : memref<2x2x1x128xf32, #tpu.memory_space<vmem>>, vector<1x1x1x128xf32>
    %137 = vector.shape_cast %136 : vector<1x1x1x128xf32> to vector<1x128xf32>
    %138 = vector.extract_strided_slice %135 {offsets = [0, 0], sizes = [32, 96], strides = [1, 1]} : vector<32x128xf32> to vector<32x96xf32>
    %139 = vector.extract_strided_slice %135 {offsets = [0, 96], sizes = [32, 32], strides = [1, 1]} : vector<32x128xf32> to vector<32x32xf32>
    %140 = vector.extract_strided_slice %137 {offsets = [0, 0], sizes = [1, 96], strides = [1, 1]} : vector<1x128xf32> to vector<1x96xf32>
    %141 = vector.extract_strided_slice %137 {offsets = [0, 96], sizes = [1, 32], strides = [1, 1]} : vector<1x128xf32> to vector<1x32xf32>
    %142 = tpu.concatenate %133, %11, %1 in 0 : vector<8x32xf32>, vector<256x32xf32>, vector<256x32xf32> -> vector<520x32xf32>
    %cst_60 = arith.constant dense<0.000000e+00> : vector<520x96xf32>
    %143 = tpu.matmul %142, %138, %cst_60 {dimension_numbers = #tpu.dot_dimension_numbers<[1], [0], [0], [1], [0, 0, 1, 1], [], []>} : vector<520x32xf32>, vector<32x96xf32>, vector<520x96xf32> -> vector<520x96xf32>
    %144 = vector.extract_strided_slice %143 {offsets = [0, 0], sizes = [8, 32], strides = [1, 1]} : vector<520x96xf32> to vector<8x32xf32>
    %145 = vector.extract_strided_slice %140 {offsets = [0, 0], sizes = [1, 32], strides = [1, 1]} : vector<1x96xf32> to vector<1x32xf32>
    %146 = vector.broadcast %145 : vector<1x32xf32> to vector<8x32xf32>
    %147 = arith.addf %144, %146 : vector<8x32xf32>
    %148 = vector.extract_strided_slice %143 {offsets = [8, 32], sizes = [256, 32], strides = [1, 1]} : vector<520x96xf32> to vector<256x32xf32>
    %149 = vector.extract_strided_slice %140 {offsets = [0, 32], sizes = [1, 32], strides = [1, 1]} : vector<1x96xf32> to vector<1x32xf32>
    %150 = vector.broadcast %149 : vector<1x32xf32> to vector<256x32xf32>
    %151 = arith.addf %148, %150 : vector<256x32xf32>
    %152 = vector.extract_strided_slice %143 {offsets = [264, 64], sizes = [256, 32], strides = [1, 1]} : vector<520x96xf32> to vector<256x32xf32>
    %153 = vector.extract_strided_slice %140 {offsets = [0, 64], sizes = [1, 32], strides = [1, 1]} : vector<1x96xf32> to vector<1x32xf32>
    %154 = vector.broadcast %153 : vector<1x32xf32> to vector<256x32xf32>
    %155 = arith.addf %152, %154 : vector<256x32xf32>
    %156 = vector.extract_strided_slice %147 {offsets = [0, 0], sizes = [8, 8], strides = [1, 1]} : vector<8x32xf32> to vector<8x8xf32>
    %cst_61 = arith.constant 0.353553385 : f32
    %157 = vector.broadcast %cst_61 : f32 to vector<8x8xf32>
    %158 = arith.mulf %156, %157 : vector<8x8xf32>
    %159 = vector.extract_strided_slice %151 {offsets = [0, 0], sizes = [256, 8], strides = [1, 1]} : vector<256x32xf32> to vector<256x8xf32>
    %160 = vector.extract_strided_slice %155 {offsets = [0, 0], sizes = [256, 8], strides = [1, 1]} : vector<256x32xf32> to vector<256x8xf32>
    %cst_62 = arith.constant dense<0.000000e+00> : vector<8x256xf32>
    %161 = tpu.matmul %158, %159, %cst_62 {dimension_numbers = #tpu.dot_dimension_numbers<[1], [1], [0], [0], [0, 0, 1, 0], [], []>} : vector<8x8xf32>, vector<256x8xf32>, vector<8x256xf32> -> vector<8x256xf32>
    %162 = vector.broadcast %10 : vector<1x256xf32> to vector<8x256xf32>
    %163 = arith.addf %161, %162 : vector<8x256xf32>
    %cst_63 = arith.constant dense<0xFF800000> : vector<8xf32>
    %164 = vector.multi_reduction <maximumf>, %163, %cst_63 [1] : vector<8x256xf32> to vector<8xf32>
    %165 = vector.shape_cast %164 : vector<8xf32> to vector<8x1xf32>
    %166 = vector.broadcast %165 : vector<8x1xf32> to vector<8x256xf32>
    %167 = arith.subf %163, %166 : vector<8x256xf32>
    %168 = math.exp %167 : vector<8x256xf32>
    %cst_64 = arith.constant dense<0.000000e+00> : vector<8xf32>
    %169 = vector.multi_reduction <add>, %168, %cst_64 [1] : vector<8x256xf32> to vector<8xf32>
    %170 = vector.shape_cast %169 : vector<8xf32> to vector<8x1xf32>
    %171 = tpu.reciprocal %170 {approx = true} : vector<8x1xf32> -> vector<8x1xf32>
    %172 = vector.broadcast %171 : vector<8x1xf32> to vector<8x256xf32>
    %173 = arith.mulf %168, %172 : vector<8x256xf32>
    %cst_65 = arith.constant dense<0.000000e+00> : vector<8x8xf32>
    %174 = tpu.matmul %173, %160, %cst_65 {dimension_numbers = #tpu.dot_dimension_numbers<[1], [0], [0], [1], [0, 0, 1, 1], [], []>} : vector<8x256xf32>, vector<256x8xf32>, vector<8x8xf32> -> vector<8x8xf32>
    %175 = vector.extract_strided_slice %147 {offsets = [0, 8], sizes = [8, 8], strides = [1, 1]} : vector<8x32xf32> to vector<8x8xf32>
    %cst_66 = arith.constant 0.353553385 : f32
    %176 = vector.broadcast %cst_66 : f32 to vector<8x8xf32>
    %177 = arith.mulf %175, %176 : vector<8x8xf32>
    %178 = vector.extract_strided_slice %151 {offsets = [0, 8], sizes = [256, 8], strides = [1, 1]} : vector<256x32xf32> to vector<256x8xf32>
    %179 = vector.extract_strided_slice %155 {offsets = [0, 8], sizes = [256, 8], strides = [1, 1]} : vector<256x32xf32> to vector<256x8xf32>
    %cst_67 = arith.constant dense<0.000000e+00> : vector<8x256xf32>
    %180 = tpu.matmul %177, %178, %cst_67 {dimension_numbers = #tpu.dot_dimension_numbers<[1], [1], [0], [0], [0, 0, 1, 0], [], []>} : vector<8x8xf32>, vector<256x8xf32>, vector<8x256xf32> -> vector<8x256xf32>
    %181 = vector.broadcast %10 : vector<1x256xf32> to vector<8x256xf32>
    %182 = arith.addf %180, %181 : vector<8x256xf32>
    %cst_68 = arith.constant dense<0xFF800000> : vector<8xf32>
    %183 = vector.multi_reduction <maximumf>, %182, %cst_68 [1] : vector<8x256xf32> to vector<8xf32>
    %184 = vector.shape_cast %183 : vector<8xf32> to vector<8x1xf32>
    %185 = vector.broadcast %184 : vector<8x1xf32> to vector<8x256xf32>
    %186 = arith.subf %182, %185 : vector<8x256xf32>
    %187 = math.exp %186 : vector<8x256xf32>
    %cst_69 = arith.constant dense<0.000000e+00> : vector<8xf32>
    %188 = vector.multi_reduction <add>, %187, %cst_69 [1] : vector<8x256xf32> to vector<8xf32>
    %189 = vector.shape_cast %188 : vector<8xf32> to vector<8x1xf32>
    %190 = tpu.reciprocal %189 {approx = true} : vector<8x1xf32> -> vector<8x1xf32>
    %191 = vector.broadcast %190 : vector<8x1xf32> to vector<8x256xf32>
    %192 = arith.mulf %187, %191 : vector<8x256xf32>
    %cst_70 = arith.constant dense<0.000000e+00> : vector<8x8xf32>
    %193 = tpu.matmul %192, %179, %cst_70 {dimension_numbers = #tpu.dot_dimension_numbers<[1], [0], [0], [1], [0, 0, 1, 1], [], []>} : vector<8x256xf32>, vector<256x8xf32>, vector<8x8xf32> -> vector<8x8xf32>
    %194 = vector.extract_strided_slice %147 {offsets = [0, 16], sizes = [8, 8], strides = [1, 1]} : vector<8x32xf32> to vector<8x8xf32>
    %cst_71 = arith.constant 0.353553385 : f32
    %195 = vector.broadcast %cst_71 : f32 to vector<8x8xf32>
    %196 = arith.mulf %194, %195 : vector<8x8xf32>
    %197 = vector.extract_strided_slice %151 {offsets = [0, 16], sizes = [256, 8], strides = [1, 1]} : vector<256x32xf32> to vector<256x8xf32>
    %198 = vector.extract_strided_slice %155 {offsets = [0, 16], sizes = [256, 8], strides = [1, 1]} : vector<256x32xf32> to vector<256x8xf32>
    %cst_72 = arith.constant dense<0.000000e+00> : vector<8x256xf32>
    %199 = tpu.matmul %196, %197, %cst_72 {dimension_numbers = #tpu.dot_dimension_numbers<[1], [1], [0], [0], [0, 0, 1, 0], [], []>} : vector<8x8xf32>, vector<256x8xf32>, vector<8x256xf32> -> vector<8x256xf32>
    %200 = vector.broadcast %10 : vector<1x256xf32> to vector<8x256xf32>
    %201 = arith.addf %199, %200 : vector<8x256xf32>
    %cst_73 = arith.constant dense<0xFF800000> : vector<8xf32>
    %202 = vector.multi_reduction <maximumf>, %201, %cst_73 [1] : vector<8x256xf32> to vector<8xf32>
    %203 = vector.shape_cast %202 : vector<8xf32> to vector<8x1xf32>
    %204 = vector.broadcast %203 : vector<8x1xf32> to vector<8x256xf32>
    %205 = arith.subf %201, %204 : vector<8x256xf32>
    %206 = math.exp %205 : vector<8x256xf32>
    %cst_74 = arith.constant dense<0.000000e+00> : vector<8xf32>
    %207 = vector.multi_reduction <add>, %206, %cst_74 [1] : vector<8x256xf32> to vector<8xf32>
    %208 = vector.shape_cast %207 : vector<8xf32> to vector<8x1xf32>
    %209 = tpu.reciprocal %208 {approx = true} : vector<8x1xf32> -> vector<8x1xf32>
    %210 = vector.broadcast %209 : vector<8x1xf32> to vector<8x256xf32>
    %211 = arith.mulf %206, %210 : vector<8x256xf32>
    %cst_75 = arith.constant dense<0.000000e+00> : vector<8x8xf32>
    %212 = tpu.matmul %211, %198, %cst_75 {dimension_numbers = #tpu.dot_dimension_numbers<[1], [0], [0], [1], [0, 0, 1, 1], [], []>} : vector<8x256xf32>, vector<256x8xf32>, vector<8x8xf32> -> vector<8x8xf32>
    %213 = vector.extract_strided_slice %147 {offsets = [0, 24], sizes = [8, 8], strides = [1, 1]} : vector<8x32xf32> to vector<8x8xf32>
    %cst_76 = arith.constant 0.353553385 : f32
    %214 = vector.broadcast %cst_76 : f32 to vector<8x8xf32>
    %215 = arith.mulf %213, %214 : vector<8x8xf32>
    %216 = vector.extract_strided_slice %151 {offsets = [0, 24], sizes = [256, 8], strides = [1, 1]} : vector<256x32xf32> to vector<256x8xf32>
    %217 = vector.extract_strided_slice %155 {offsets = [0, 24], sizes = [256, 8], strides = [1, 1]} : vector<256x32xf32> to vector<256x8xf32>
    %cst_77 = arith.constant dense<0.000000e+00> : vector<8x256xf32>
    %218 = tpu.matmul %215, %216, %cst_77 {dimension_numbers = #tpu.dot_dimension_numbers<[1], [1], [0], [0], [0, 0, 1, 0], [], []>} : vector<8x8xf32>, vector<256x8xf32>, vector<8x256xf32> -> vector<8x256xf32>
    %219 = vector.broadcast %10 : vector<1x256xf32> to vector<8x256xf32>
    %220 = arith.addf %218, %219 : vector<8x256xf32>
    %cst_78 = arith.constant dense<0xFF800000> : vector<8xf32>
    %221 = vector.multi_reduction <maximumf>, %220, %cst_78 [1] : vector<8x256xf32> to vector<8xf32>
    %222 = vector.shape_cast %221 : vector<8xf32> to vector<8x1xf32>
    %223 = vector.broadcast %222 : vector<8x1xf32> to vector<8x256xf32>
    %224 = arith.subf %220, %223 : vector<8x256xf32>
    %225 = math.exp %224 : vector<8x256xf32>
    %cst_79 = arith.constant dense<0.000000e+00> : vector<8xf32>
    %226 = vector.multi_reduction <add>, %225, %cst_79 [1] : vector<8x256xf32> to vector<8xf32>
    %227 = vector.shape_cast %226 : vector<8xf32> to vector<8x1xf32>
    %228 = tpu.reciprocal %227 {approx = true} : vector<8x1xf32> -> vector<8x1xf32>
    %229 = vector.broadcast %228 : vector<8x1xf32> to vector<8x256xf32>
    %230 = arith.mulf %225, %229 : vector<8x256xf32>
    %cst_80 = arith.constant dense<0.000000e+00> : vector<8x8xf32>
    %231 = tpu.matmul %230, %217, %cst_80 {dimension_numbers = #tpu.dot_dimension_numbers<[1], [0], [0], [1], [0, 0, 1, 1], [], []>} : vector<8x256xf32>, vector<256x8xf32>, vector<8x8xf32> -> vector<8x8xf32>
    %232 = tpu.concatenate %174, %193, %212, %231 in 1 : vector<8x8xf32>, vector<8x8xf32>, vector<8x8xf32>, vector<8x8xf32> -> vector<8x32xf32>
    %cst_81 = arith.constant dense<0.000000e+00> : vector<8x32xf32>
    %233 = tpu.matmul %232, %139, %cst_81 {dimension_numbers = #tpu.dot_dimension_numbers<[1], [0], [0], [1], [0, 0, 1, 1], [], []>} : vector<8x32xf32>, vector<32x32xf32>, vector<8x32xf32> -> vector<8x32xf32>
    %234 = vector.broadcast %141 : vector<1x32xf32> to vector<8x32xf32>
    %235 = arith.addf %233, %234 : vector<8x32xf32>
    %236 = arith.addf %132, %235 : vector<8x32xf32>
    %c2 = arith.constant 2 : index
    %c0_82 = arith.constant 0 : index
    %c0_83 = arith.constant 0 : index
    %237 = vector.load %arg10[%c2, %c0_82, %c0_83] : memref<14x1x32xf32, #tpu.memory_space<vmem>>, vector<1x1x32xf32>
    %238 = vector.shape_cast %237 : vector<1x1x32xf32> to vector<1x32xf32>
    %c3 = arith.constant 3 : index
    %c0_84 = arith.constant 0 : index
    %c0_85 = arith.constant 0 : index
    %239 = vector.load %arg10[%c3, %c0_84, %c0_85] : memref<14x1x32xf32, #tpu.memory_space<vmem>>, vector<1x1x32xf32>
    %240 = vector.shape_cast %239 : vector<1x1x32xf32> to vector<1x32xf32>
    %cst_86 = arith.constant dense<0.000000e+00> : vector<8xf32>
    %241 = vector.multi_reduction <add>, %236, %cst_86 [1] : vector<8x32xf32> to vector<8xf32>
    %242 = vector.shape_cast %241 : vector<8xf32> to vector<8x1xf32>
    %cst_87 = arith.constant 3.200000e+01 : f32
    %243 = vector.broadcast %cst_87 : f32 to vector<8x1xf32>
    %244 = arith.divf %242, %243 : vector<8x1xf32>
    %245 = vector.broadcast %244 : vector<8x1xf32> to vector<8x32xf32>
    %246 = arith.subf %236, %245 : vector<8x32xf32>
    %247 = arith.mulf %246, %246 : vector<8x32xf32>
    %cst_88 = arith.constant dense<0.000000e+00> : vector<8xf32>
    %248 = vector.multi_reduction <add>, %247, %cst_88 [1] : vector<8x32xf32> to vector<8xf32>
    %249 = vector.shape_cast %248 : vector<8xf32> to vector<8x1xf32>
    %cst_89 = arith.constant 3.200000e+01 : f32
    %250 = vector.broadcast %cst_89 : f32 to vector<8x1xf32>
    %251 = arith.divf %249, %250 : vector<8x1xf32>
    %cst_90 = arith.constant 9.99999974E-6 : f32
    %252 = vector.broadcast %cst_90 : f32 to vector<8x1xf32>
    %253 = arith.addf %251, %252 : vector<8x1xf32>
    %254 = math.rsqrt %253 : vector<8x1xf32>
    %255 = vector.broadcast %254 : vector<8x1xf32> to vector<8x32xf32>
    %256 = arith.mulf %246, %255 : vector<8x32xf32>
    %257 = vector.broadcast %238 : vector<1x32xf32> to vector<8x32xf32>
    %258 = arith.mulf %256, %257 : vector<8x32xf32>
    %259 = vector.broadcast %240 : vector<1x32xf32> to vector<8x32xf32>
    %260 = arith.addf %258, %259 : vector<8x32xf32>
    %c0_91 = arith.constant 0 : index
    %c0_92 = arith.constant 0 : index
    %c0_93 = arith.constant 0 : index
    %261 = vector.load %arg7[%c0_91, %c0_92, %c0_93] : memref<2x32x64xf32, #tpu.memory_space<vmem>>, vector<1x32x64xf32>
    %262 = vector.shape_cast %261 : vector<1x32x64xf32> to vector<32x64xf32>
    %cst_94 = arith.constant dense<0.000000e+00> : vector<8x64xf32>
    %263 = tpu.matmul %260, %262, %cst_94 {dimension_numbers = #tpu.dot_dimension_numbers<[1], [0], [0], [1], [0, 0, 1, 1], [], []>} : vector<8x32xf32>, vector<32x64xf32>, vector<8x64xf32> -> vector<8x64xf32>
    %c0_95 = arith.constant 0 : index
    %c0_96 = arith.constant 0 : index
    %c0_97 = arith.constant 0 : index
    %264 = vector.load %arg9[%c0_95, %c0_96, %c0_97] : memref<2x1x96xf32, #tpu.memory_space<vmem>>, vector<1x1x96xf32>
    %265 = vector.shape_cast %264 : vector<1x1x96xf32> to vector<1x96xf32>
    %266 = vector.extract_strided_slice %265 {offsets = [0, 0], sizes = [1, 64], strides = [1, 1]} : vector<1x96xf32> to vector<1x64xf32>
    %267 = vector.broadcast %266 : vector<1x64xf32> to vector<8x64xf32>
    %268 = arith.addf %263, %267 : vector<8x64xf32>
    %cst_98 = arith.constant 0.000000e+00 : f32
    %269 = vector.broadcast %cst_98 : f32 to vector<8x64xf32>
    %270 = arith.maximumf %268, %269 : vector<8x64xf32>
    %c0_99 = arith.constant 0 : index
    %c0_100 = arith.constant 0 : index
    %c0_101 = arith.constant 0 : index
    %271 = vector.load %arg8[%c0_99, %c0_100, %c0_101] : memref<2x64x32xf32, #tpu.memory_space<vmem>>, vector<1x64x32xf32>
    %272 = vector.shape_cast %271 : vector<1x64x32xf32> to vector<64x32xf32>
    %cst_102 = arith.constant dense<0.000000e+00> : vector<8x32xf32>
    %273 = tpu.matmul %270, %272, %cst_102 {dimension_numbers = #tpu.dot_dimension_numbers<[1], [0], [0], [1], [0, 0, 1, 1], [], []>} : vector<8x64xf32>, vector<64x32xf32>, vector<8x32xf32> -> vector<8x32xf32>
    %c0_103 = arith.constant 0 : index
    %c0_104 = arith.constant 0 : index
    %c0_105 = arith.constant 0 : index
    %274 = vector.load %arg9[%c0_103, %c0_104, %c0_105] : memref<2x1x96xf32, #tpu.memory_space<vmem>>, vector<1x1x96xf32>
    %275 = vector.shape_cast %274 : vector<1x1x96xf32> to vector<1x96xf32>
    %276 = vector.extract_strided_slice %275 {offsets = [0, 64], sizes = [1, 32], strides = [1, 1]} : vector<1x96xf32> to vector<1x32xf32>
    %277 = vector.broadcast %276 : vector<1x32xf32> to vector<8x32xf32>
    %278 = arith.addf %273, %277 : vector<8x32xf32>
    %279 = arith.addf %260, %278 : vector<8x32xf32>
    %c4 = arith.constant 4 : index
    %c0_106 = arith.constant 0 : index
    %c0_107 = arith.constant 0 : index
    %280 = vector.load %arg10[%c4, %c0_106, %c0_107] : memref<14x1x32xf32, #tpu.memory_space<vmem>>, vector<1x1x32xf32>
    %281 = vector.shape_cast %280 : vector<1x1x32xf32> to vector<1x32xf32>
    %c5 = arith.constant 5 : index
    %c0_108 = arith.constant 0 : index
    %c0_109 = arith.constant 0 : index
    %282 = vector.load %arg10[%c5, %c0_108, %c0_109] : memref<14x1x32xf32, #tpu.memory_space<vmem>>, vector<1x1x32xf32>
    %283 = vector.shape_cast %282 : vector<1x1x32xf32> to vector<1x32xf32>
    %cst_110 = arith.constant dense<0.000000e+00> : vector<8xf32>
    %284 = vector.multi_reduction <add>, %279, %cst_110 [1] : vector<8x32xf32> to vector<8xf32>
    %285 = vector.shape_cast %284 : vector<8xf32> to vector<8x1xf32>
    %cst_111 = arith.constant 3.200000e+01 : f32
    %286 = vector.broadcast %cst_111 : f32 to vector<8x1xf32>
    %287 = arith.divf %285, %286 : vector<8x1xf32>
    %288 = vector.broadcast %287 : vector<8x1xf32> to vector<8x32xf32>
    %289 = arith.subf %279, %288 : vector<8x32xf32>
    %290 = arith.mulf %289, %289 : vector<8x32xf32>
    %cst_112 = arith.constant dense<0.000000e+00> : vector<8xf32>
    %291 = vector.multi_reduction <add>, %290, %cst_112 [1] : vector<8x32xf32> to vector<8xf32>
    %292 = vector.shape_cast %291 : vector<8xf32> to vector<8x1xf32>
    %cst_113 = arith.constant 3.200000e+01 : f32
    %293 = vector.broadcast %cst_113 : f32 to vector<8x1xf32>
    %294 = arith.divf %292, %293 : vector<8x1xf32>
    %cst_114 = arith.constant 9.99999974E-6 : f32
    %295 = vector.broadcast %cst_114 : f32 to vector<8x1xf32>
    %296 = arith.addf %294, %295 : vector<8x1xf32>
    %297 = math.rsqrt %296 : vector<8x1xf32>
    %298 = vector.broadcast %297 : vector<8x1xf32> to vector<8x32xf32>
    %299 = arith.mulf %289, %298 : vector<8x32xf32>
    %300 = vector.broadcast %281 : vector<1x32xf32> to vector<8x32xf32>
    %301 = arith.mulf %299, %300 : vector<8x32xf32>
    %302 = vector.broadcast %283 : vector<1x32xf32> to vector<8x32xf32>
    %303 = arith.addf %301, %302 : vector<8x32xf32>
    %c12 = arith.constant 12 : index
    %c0_115 = arith.constant 0 : index
    %c0_116 = arith.constant 0 : index
    %304 = vector.load %arg10[%c12, %c0_115, %c0_116] : memref<14x1x32xf32, #tpu.memory_space<vmem>>, vector<1x1x32xf32>
    %305 = vector.shape_cast %304 : vector<1x1x32xf32> to vector<1x32xf32>
    %c13 = arith.constant 13 : index
    %c0_117 = arith.constant 0 : index
    %c0_118 = arith.constant 0 : index
    %306 = vector.load %arg10[%c13, %c0_117, %c0_118] : memref<14x1x32xf32, #tpu.memory_space<vmem>>, vector<1x1x32xf32>
    %307 = vector.shape_cast %306 : vector<1x1x32xf32> to vector<1x32xf32>
    %cst_119 = arith.constant dense<0.000000e+00> : vector<8xf32>
    %308 = vector.multi_reduction <add>, %303, %cst_119 [1] : vector<8x32xf32> to vector<8xf32>
    %309 = vector.shape_cast %308 : vector<8xf32> to vector<8x1xf32>
    %cst_120 = arith.constant 3.200000e+01 : f32
    %310 = vector.broadcast %cst_120 : f32 to vector<8x1xf32>
    %311 = arith.divf %309, %310 : vector<8x1xf32>
    %312 = vector.broadcast %311 : vector<8x1xf32> to vector<8x32xf32>
    %313 = arith.subf %303, %312 : vector<8x32xf32>
    %314 = arith.mulf %313, %313 : vector<8x32xf32>
    %cst_121 = arith.constant dense<0.000000e+00> : vector<8xf32>
    %315 = vector.multi_reduction <add>, %314, %cst_121 [1] : vector<8x32xf32> to vector<8xf32>
    %316 = vector.shape_cast %315 : vector<8xf32> to vector<8x1xf32>
    %cst_122 = arith.constant 3.200000e+01 : f32
    %317 = vector.broadcast %cst_122 : f32 to vector<8x1xf32>
    %318 = arith.divf %316, %317 : vector<8x1xf32>
    %cst_123 = arith.constant 9.99999974E-6 : f32
    %319 = vector.broadcast %cst_123 : f32 to vector<8x1xf32>
    %320 = arith.addf %318, %319 : vector<8x1xf32>
    %321 = math.rsqrt %320 : vector<8x1xf32>
    %322 = vector.broadcast %321 : vector<8x1xf32> to vector<8x32xf32>
    %323 = arith.mulf %313, %322 : vector<8x32xf32>
    %324 = vector.broadcast %305 : vector<1x32xf32> to vector<8x32xf32>
    %325 = arith.mulf %323, %324 : vector<8x32xf32>
    %326 = vector.broadcast %307 : vector<1x32xf32> to vector<8x32xf32>
    %327 = arith.addf %325, %326 : vector<8x32xf32>
    %c0_124 = arith.constant 0 : index
    %c0_125 = arith.constant 0 : index
    %c0_126 = arith.constant 0 : index
    %c0_127 = arith.constant 0 : index
    %328 = vector.load %arg11[%c0_124, %c0_125, %c0_126, %c0_127] : memref<1x2x8x32xf32, #tpu.memory_space<vmem>>, vector<1x1x8x32xf32>
    %329 = vector.shape_cast %328 : vector<1x1x8x32xf32> to vector<8x32xf32>
    %330 = vector.shape_cast %327 : vector<8x32xf32> to vector<1x1x8x32xf32>
    tpu.vector_store %arg11[%c0_124, %c0_125, %c0_126, %c0_127], %330 {strides = array<i32>} : memref<1x2x8x32xf32, #tpu.memory_space<vmem>>, vector<1x1x8x32xf32>,
    %331 = arith.addf %303, %6 : vector<8x32xf32>
    %c1_128 = arith.constant 1 : index
    %c0_129 = arith.constant 0 : index
    %c0_130 = arith.constant 0 : index
    %c0_131 = arith.constant 0 : index
    %332 = vector.load %arg5[%c1_128, %c0_129, %c0_130, %c0_131] : memref<2x2x32x128xf32, #tpu.memory_space<vmem>>, vector<1x1x32x128xf32>
    %333 = vector.shape_cast %332 : vector<1x1x32x128xf32> to vector<32x128xf32>
    %c1_132 = arith.constant 1 : index
    %c0_133 = arith.constant 0 : index
    %c0_134 = arith.constant 0 : index
    %c0_135 = arith.constant 0 : index
    %334 = vector.load %arg6[%c1_132, %c0_133, %c0_134, %c0_135] : memref<2x2x1x128xf32, #tpu.memory_space<vmem>>, vector<1x1x1x128xf32>
    %335 = vector.shape_cast %334 : vector<1x1x1x128xf32> to vector<1x128xf32>
    %336 = vector.extract_strided_slice %333 {offsets = [0, 0], sizes = [32, 96], strides = [1, 1]} : vector<32x128xf32> to vector<32x96xf32>
    %337 = vector.extract_strided_slice %333 {offsets = [0, 96], sizes = [32, 32], strides = [1, 1]} : vector<32x128xf32> to vector<32x32xf32>
    %338 = vector.extract_strided_slice %335 {offsets = [0, 0], sizes = [1, 96], strides = [1, 1]} : vector<1x128xf32> to vector<1x96xf32>
    %339 = vector.extract_strided_slice %335 {offsets = [0, 96], sizes = [1, 32], strides = [1, 1]} : vector<1x128xf32> to vector<1x32xf32>
    %340 = tpu.concatenate %331, %303 in 0 : vector<8x32xf32>, vector<8x32xf32> -> vector<16x32xf32>
    %cst_136 = arith.constant dense<0.000000e+00> : vector<16x96xf32>
    %341 = tpu.matmul %340, %336, %cst_136 {dimension_numbers = #tpu.dot_dimension_numbers<[1], [0], [0], [1], [0, 0, 1, 1], [], []>} : vector<16x32xf32>, vector<32x96xf32>, vector<16x96xf32> -> vector<16x96xf32>
    %342 = vector.extract_strided_slice %341 {offsets = [0, 0], sizes = [8, 32], strides = [1, 1]} : vector<16x96xf32> to vector<8x32xf32>
    %343 = vector.extract_strided_slice %338 {offsets = [0, 0], sizes = [1, 32], strides = [1, 1]} : vector<1x96xf32> to vector<1x32xf32>
    %344 = vector.broadcast %343 : vector<1x32xf32> to vector<8x32xf32>
    %345 = arith.addf %342, %344 : vector<8x32xf32>
    %346 = vector.extract_strided_slice %341 {offsets = [0, 32], sizes = [8, 32], strides = [1, 1]} : vector<16x96xf32> to vector<8x32xf32>
    %347 = vector.extract_strided_slice %338 {offsets = [0, 32], sizes = [1, 32], strides = [1, 1]} : vector<1x96xf32> to vector<1x32xf32>
    %348 = vector.broadcast %347 : vector<1x32xf32> to vector<8x32xf32>
    %349 = arith.addf %346, %348 : vector<8x32xf32>
    %350 = vector.extract_strided_slice %341 {offsets = [8, 64], sizes = [8, 32], strides = [1, 1]} : vector<16x96xf32> to vector<8x32xf32>
    %351 = vector.extract_strided_slice %338 {offsets = [0, 64], sizes = [1, 32], strides = [1, 1]} : vector<1x96xf32> to vector<1x32xf32>
    %352 = vector.broadcast %351 : vector<1x32xf32> to vector<8x32xf32>
    %353 = arith.addf %350, %352 : vector<8x32xf32>
    %354 = vector.extract_strided_slice %345 {offsets = [0, 0], sizes = [8, 8], strides = [1, 1]} : vector<8x32xf32> to vector<8x8xf32>
    %cst_137 = arith.constant 0.353553385 : f32
    %355 = vector.broadcast %cst_137 : f32 to vector<8x8xf32>
    %356 = arith.mulf %354, %355 : vector<8x8xf32>
    %357 = vector.extract_strided_slice %349 {offsets = [0, 0], sizes = [8, 8], strides = [1, 1]} : vector<8x32xf32> to vector<8x8xf32>
    %358 = vector.extract_strided_slice %353 {offsets = [0, 0], sizes = [8, 8], strides = [1, 1]} : vector<8x32xf32> to vector<8x8xf32>
    %cst_138 = arith.constant dense<0.000000e+00> : vector<8x8xf32>
    %359 = tpu.matmul %356, %357, %cst_138 {dimension_numbers = #tpu.dot_dimension_numbers<[1], [1], [0], [0], [0, 0, 1, 0], [], []>} : vector<8x8xf32>, vector<8x8xf32>, vector<8x8xf32> -> vector<8x8xf32>
    %cst_139 = arith.constant dense<0xFF800000> : vector<8xf32>
    %360 = vector.multi_reduction <maximumf>, %359, %cst_139 [1] : vector<8x8xf32> to vector<8xf32>
    %361 = vector.shape_cast %360 : vector<8xf32> to vector<8x1xf32>
    %362 = vector.broadcast %361 : vector<8x1xf32> to vector<8x8xf32>
    %363 = arith.subf %359, %362 : vector<8x8xf32>
    %364 = math.exp %363 : vector<8x8xf32>
    %cst_140 = arith.constant dense<0.000000e+00> : vector<8xf32>
    %365 = vector.multi_reduction <add>, %364, %cst_140 [1] : vector<8x8xf32> to vector<8xf32>
    %366 = vector.shape_cast %365 : vector<8xf32> to vector<8x1xf32>
    %367 = tpu.reciprocal %366 {approx = true} : vector<8x1xf32> -> vector<8x1xf32>
    %368 = vector.broadcast %367 : vector<8x1xf32> to vector<8x8xf32>
    %369 = arith.mulf %364, %368 : vector<8x8xf32>
    %cst_141 = arith.constant dense<0.000000e+00> : vector<8x8xf32>
    %370 = tpu.matmul %369, %358, %cst_141 {dimension_numbers = #tpu.dot_dimension_numbers<[1], [0], [0], [1], [0, 0, 1, 1], [], []>} : vector<8x8xf32>, vector<8x8xf32>, vector<8x8xf32> -> vector<8x8xf32>
    %371 = vector.extract_strided_slice %345 {offsets = [0, 8], sizes = [8, 8], strides = [1, 1]} : vector<8x32xf32> to vector<8x8xf32>
    %cst_142 = arith.constant 0.353553385 : f32
    %372 = vector.broadcast %cst_142 : f32 to vector<8x8xf32>
    %373 = arith.mulf %371, %372 : vector<8x8xf32>
    %374 = vector.extract_strided_slice %349 {offsets = [0, 8], sizes = [8, 8], strides = [1, 1]} : vector<8x32xf32> to vector<8x8xf32>
    %375 = vector.extract_strided_slice %353 {offsets = [0, 8], sizes = [8, 8], strides = [1, 1]} : vector<8x32xf32> to vector<8x8xf32>
    %cst_143 = arith.constant dense<0.000000e+00> : vector<8x8xf32>
    %376 = tpu.matmul %373, %374, %cst_143 {dimension_numbers = #tpu.dot_dimension_numbers<[1], [1], [0], [0], [0, 0, 1, 0], [], []>} : vector<8x8xf32>, vector<8x8xf32>, vector<8x8xf32> -> vector<8x8xf32>
    %cst_144 = arith.constant dense<0xFF800000> : vector<8xf32>
    %377 = vector.multi_reduction <maximumf>, %376, %cst_144 [1] : vector<8x8xf32> to vector<8xf32>
    %378 = vector.shape_cast %377 : vector<8xf32> to vector<8x1xf32>
    %379 = vector.broadcast %378 : vector<8x1xf32> to vector<8x8xf32>
    %380 = arith.subf %376, %379 : vector<8x8xf32>
    %381 = math.exp %380 : vector<8x8xf32>
    %cst_145 = arith.constant dense<0.000000e+00> : vector<8xf32>
    %382 = vector.multi_reduction <add>, %381, %cst_145 [1] : vector<8x8xf32> to vector<8xf32>
    %383 = vector.shape_cast %382 : vector<8xf32> to vector<8x1xf32>
    %384 = tpu.reciprocal %383 {approx = true} : vector<8x1xf32> -> vector<8x1xf32>
    %385 = vector.broadcast %384 : vector<8x1xf32> to vector<8x8xf32>
    %386 = arith.mulf %381, %385 : vector<8x8xf32>
    %cst_146 = arith.constant dense<0.000000e+00> : vector<8x8xf32>
    %387 = tpu.matmul %386, %375, %cst_146 {dimension_numbers = #tpu.dot_dimension_numbers<[1], [0], [0], [1], [0, 0, 1, 1], [], []>} : vector<8x8xf32>, vector<8x8xf32>, vector<8x8xf32> -> vector<8x8xf32>
    %388 = vector.extract_strided_slice %345 {offsets = [0, 16], sizes = [8, 8], strides = [1, 1]} : vector<8x32xf32> to vector<8x8xf32>
    %cst_147 = arith.constant 0.353553385 : f32
    %389 = vector.broadcast %cst_147 : f32 to vector<8x8xf32>
    %390 = arith.mulf %388, %389 : vector<8x8xf32>
    %391 = vector.extract_strided_slice %349 {offsets = [0, 16], sizes = [8, 8], strides = [1, 1]} : vector<8x32xf32> to vector<8x8xf32>
    %392 = vector.extract_strided_slice %353 {offsets = [0, 16], sizes = [8, 8], strides = [1, 1]} : vector<8x32xf32> to vector<8x8xf32>
    %cst_148 = arith.constant dense<0.000000e+00> : vector<8x8xf32>
    %393 = tpu.matmul %390, %391, %cst_148 {dimension_numbers = #tpu.dot_dimension_numbers<[1], [1], [0], [0], [0, 0, 1, 0], [], []>} : vector<8x8xf32>, vector<8x8xf32>, vector<8x8xf32> -> vector<8x8xf32>
    %cst_149 = arith.constant dense<0xFF800000> : vector<8xf32>
    %394 = vector.multi_reduction <maximumf>, %393, %cst_149 [1] : vector<8x8xf32> to vector<8xf32>
    %395 = vector.shape_cast %394 : vector<8xf32> to vector<8x1xf32>
    %396 = vector.broadcast %395 : vector<8x1xf32> to vector<8x8xf32>
    %397 = arith.subf %393, %396 : vector<8x8xf32>
    %398 = math.exp %397 : vector<8x8xf32>
    %cst_150 = arith.constant dense<0.000000e+00> : vector<8xf32>
    %399 = vector.multi_reduction <add>, %398, %cst_150 [1] : vector<8x8xf32> to vector<8xf32>
    %400 = vector.shape_cast %399 : vector<8xf32> to vector<8x1xf32>
    %401 = tpu.reciprocal %400 {approx = true} : vector<8x1xf32> -> vector<8x1xf32>
    %402 = vector.broadcast %401 : vector<8x1xf32> to vector<8x8xf32>
    %403 = arith.mulf %398, %402 : vector<8x8xf32>
    %cst_151 = arith.constant dense<0.000000e+00> : vector<8x8xf32>
    %404 = tpu.matmul %403, %392, %cst_151 {dimension_numbers = #tpu.dot_dimension_numbers<[1], [0], [0], [1], [0, 0, 1, 1], [], []>} : vector<8x8xf32>, vector<8x8xf32>, vector<8x8xf32> -> vector<8x8xf32>
    %405 = vector.extract_strided_slice %345 {offsets = [0, 24], sizes = [8, 8], strides = [1, 1]} : vector<8x32xf32> to vector<8x8xf32>
    %cst_152 = arith.constant 0.353553385 : f32
    %406 = vector.broadcast %cst_152 : f32 to vector<8x8xf32>
    %407 = arith.mulf %405, %406 : vector<8x8xf32>
    %408 = vector.extract_strided_slice %349 {offsets = [0, 24], sizes = [8, 8], strides = [1, 1]} : vector<8x32xf32> to vector<8x8xf32>
    %409 = vector.extract_strided_slice %353 {offsets = [0, 24], sizes = [8, 8], strides = [1, 1]} : vector<8x32xf32> to vector<8x8xf32>
    %cst_153 = arith.constant dense<0.000000e+00> : vector<8x8xf32>
    %410 = tpu.matmul %407, %408, %cst_153 {dimension_numbers = #tpu.dot_dimension_numbers<[1], [1], [0], [0], [0, 0, 1, 0], [], []>} : vector<8x8xf32>, vector<8x8xf32>, vector<8x8xf32> -> vector<8x8xf32>
    %cst_154 = arith.constant dense<0xFF800000> : vector<8xf32>
    %411 = vector.multi_reduction <maximumf>, %410, %cst_154 [1] : vector<8x8xf32> to vector<8xf32>
    %412 = vector.shape_cast %411 : vector<8xf32> to vector<8x1xf32>
    %413 = vector.broadcast %412 : vector<8x1xf32> to vector<8x8xf32>
    %414 = arith.subf %410, %413 : vector<8x8xf32>
    %415 = math.exp %414 : vector<8x8xf32>
    %cst_155 = arith.constant dense<0.000000e+00> : vector<8xf32>
    %416 = vector.multi_reduction <add>, %415, %cst_155 [1] : vector<8x8xf32> to vector<8xf32>
    %417 = vector.shape_cast %416 : vector<8xf32> to vector<8x1xf32>
    %418 = tpu.reciprocal %417 {approx = true} : vector<8x1xf32> -> vector<8x1xf32>
    %419 = vector.broadcast %418 : vector<8x1xf32> to vector<8x8xf32>
    %420 = arith.mulf %415, %419 : vector<8x8xf32>
    %cst_156 = arith.constant dense<0.000000e+00> : vector<8x8xf32>
    %421 = tpu.matmul %420, %409, %cst_156 {dimension_numbers = #tpu.dot_dimension_numbers<[1], [0], [0], [1], [0, 0, 1, 1], [], []>} : vector<8x8xf32>, vector<8x8xf32>, vector<8x8xf32> -> vector<8x8xf32>
    %422 = tpu.concatenate %370, %387, %404, %421 in 1 : vector<8x8xf32>, vector<8x8xf32>, vector<8x8xf32>, vector<8x8xf32> -> vector<8x32xf32>
    %cst_157 = arith.constant dense<0.000000e+00> : vector<8x32xf32>
    %423 = tpu.matmul %422, %337, %cst_157 {dimension_numbers = #tpu.dot_dimension_numbers<[1], [0], [0], [1], [0, 0, 1, 1], [], []>} : vector<8x32xf32>, vector<32x32xf32>, vector<8x32xf32> -> vector<8x32xf32>
    %424 = vector.broadcast %339 : vector<1x32xf32> to vector<8x32xf32>
    %425 = arith.addf %423, %424 : vector<8x32xf32>
    %426 = arith.addf %303, %425 : vector<8x32xf32>
    %c6 = arith.constant 6 : index
    %c0_158 = arith.constant 0 : index
    %c0_159 = arith.constant 0 : index
    %427 = vector.load %arg10[%c6, %c0_158, %c0_159] : memref<14x1x32xf32, #tpu.memory_space<vmem>>, vector<1x1x32xf32>
    %428 = vector.shape_cast %427 : vector<1x1x32xf32> to vector<1x32xf32>
    %c7 = arith.constant 7 : index
    %c0_160 = arith.constant 0 : index
    %c0_161 = arith.constant 0 : index
    %429 = vector.load %arg10[%c7, %c0_160, %c0_161] : memref<14x1x32xf32, #tpu.memory_space<vmem>>, vector<1x1x32xf32>
    %430 = vector.shape_cast %429 : vector<1x1x32xf32> to vector<1x32xf32>
    %cst_162 = arith.constant dense<0.000000e+00> : vector<8xf32>
    %431 = vector.multi_reduction <add>, %426, %cst_162 [1] : vector<8x32xf32> to vector<8xf32>
    %432 = vector.shape_cast %431 : vector<8xf32> to vector<8x1xf32>
    %cst_163 = arith.constant 3.200000e+01 : f32
    %433 = vector.broadcast %cst_163 : f32 to vector<8x1xf32>
    %434 = arith.divf %432, %433 : vector<8x1xf32>
    %435 = vector.broadcast %434 : vector<8x1xf32> to vector<8x32xf32>
    %436 = arith.subf %426, %435 : vector<8x32xf32>
    %437 = arith.mulf %436, %436 : vector<8x32xf32>
    %cst_164 = arith.constant dense<0.000000e+00> : vector<8xf32>
    %438 = vector.multi_reduction <add>, %437, %cst_164 [1] : vector<8x32xf32> to vector<8xf32>
    %439 = vector.shape_cast %438 : vector<8xf32> to vector<8x1xf32>
    %cst_165 = arith.constant 3.200000e+01 : f32
    %440 = vector.broadcast %cst_165 : f32 to vector<8x1xf32>
    %441 = arith.divf %439, %440 : vector<8x1xf32>
    %cst_166 = arith.constant 9.99999974E-6 : f32
    %442 = vector.broadcast %cst_166 : f32 to vector<8x1xf32>
    %443 = arith.addf %441, %442 : vector<8x1xf32>
    %444 = math.rsqrt %443 : vector<8x1xf32>
    %445 = vector.broadcast %444 : vector<8x1xf32> to vector<8x32xf32>
    %446 = arith.mulf %436, %445 : vector<8x32xf32>
    %447 = vector.broadcast %428 : vector<1x32xf32> to vector<8x32xf32>
    %448 = arith.mulf %446, %447 : vector<8x32xf32>
    %449 = vector.broadcast %430 : vector<1x32xf32> to vector<8x32xf32>
    %450 = arith.addf %448, %449 : vector<8x32xf32>
    %451 = arith.addf %450, %6 : vector<8x32xf32>
    %c1_167 = arith.constant 1 : index
    %c1_168 = arith.constant 1 : index
    %c0_169 = arith.constant 0 : index
    %c0_170 = arith.constant 0 : index
    %452 = vector.load %arg5[%c1_167, %c1_168, %c0_169, %c0_170] : memref<2x2x32x128xf32, #tpu.memory_space<vmem>>, vector<1x1x32x128xf32>
    %453 = vector.shape_cast %452 : vector<1x1x32x128xf32> to vector<32x128xf32>
    %c1_171 = arith.constant 1 : index
    %c1_172 = arith.constant 1 : index
    %c0_173 = arith.constant 0 : index
    %c0_174 = arith.constant 0 : index
    %454 = vector.load %arg6[%c1_171, %c1_172, %c0_173, %c0_174] : memref<2x2x1x128xf32, #tpu.memory_space<vmem>>, vector<1x1x1x128xf32>
    %455 = vector.shape_cast %454 : vector<1x1x1x128xf32> to vector<1x128xf32>
    %456 = vector.extract_strided_slice %453 {offsets = [0, 0], sizes = [32, 96], strides = [1, 1]} : vector<32x128xf32> to vector<32x96xf32>
    %457 = vector.extract_strided_slice %453 {offsets = [0, 96], sizes = [32, 32], strides = [1, 1]} : vector<32x128xf32> to vector<32x32xf32>
    %458 = vector.extract_strided_slice %455 {offsets = [0, 0], sizes = [1, 96], strides = [1, 1]} : vector<1x128xf32> to vector<1x96xf32>
    %459 = vector.extract_strided_slice %455 {offsets = [0, 96], sizes = [1, 32], strides = [1, 1]} : vector<1x128xf32> to vector<1x32xf32>
    %460 = tpu.concatenate %451, %11, %1 in 0 : vector<8x32xf32>, vector<256x32xf32>, vector<256x32xf32> -> vector<520x32xf32>
    %cst_175 = arith.constant dense<0.000000e+00> : vector<520x96xf32>
    %461 = tpu.matmul %460, %456, %cst_175 {dimension_numbers = #tpu.dot_dimension_numbers<[1], [0], [0], [1], [0, 0, 1, 1], [], []>} : vector<520x32xf32>, vector<32x96xf32>, vector<520x96xf32> -> vector<520x96xf32>
    %462 = vector.extract_strided_slice %461 {offsets = [0, 0], sizes = [8, 32], strides = [1, 1]} : vector<520x96xf32> to vector<8x32xf32>
    %463 = vector.extract_strided_slice %458 {offsets = [0, 0], sizes = [1, 32], strides = [1, 1]} : vector<1x96xf32> to vector<1x32xf32>
    %464 = vector.broadcast %463 : vector<1x32xf32> to vector<8x32xf32>
    %465 = arith.addf %462, %464 : vector<8x32xf32>
    %466 = vector.extract_strided_slice %461 {offsets = [8, 32], sizes = [256, 32], strides = [1, 1]} : vector<520x96xf32> to vector<256x32xf32>
    %467 = vector.extract_strided_slice %458 {offsets = [0, 32], sizes = [1, 32], strides = [1, 1]} : vector<1x96xf32> to vector<1x32xf32>
    %468 = vector.broadcast %467 : vector<1x32xf32> to vector<256x32xf32>
    %469 = arith.addf %466, %468 : vector<256x32xf32>
    %470 = vector.extract_strided_slice %461 {offsets = [264, 64], sizes = [256, 32], strides = [1, 1]} : vector<520x96xf32> to vector<256x32xf32>
    %471 = vector.extract_strided_slice %458 {offsets = [0, 64], sizes = [1, 32], strides = [1, 1]} : vector<1x96xf32> to vector<1x32xf32>
    %472 = vector.broadcast %471 : vector<1x32xf32> to vector<256x32xf32>
    %473 = arith.addf %470, %472 : vector<256x32xf32>
    %474 = vector.extract_strided_slice %465 {offsets = [0, 0], sizes = [8, 8], strides = [1, 1]} : vector<8x32xf32> to vector<8x8xf32>
    %cst_176 = arith.constant 0.353553385 : f32
    %475 = vector.broadcast %cst_176 : f32 to vector<8x8xf32>
    %476 = arith.mulf %474, %475 : vector<8x8xf32>
    %477 = vector.extract_strided_slice %469 {offsets = [0, 0], sizes = [256, 8], strides = [1, 1]} : vector<256x32xf32> to vector<256x8xf32>
    %478 = vector.extract_strided_slice %473 {offsets = [0, 0], sizes = [256, 8], strides = [1, 1]} : vector<256x32xf32> to vector<256x8xf32>
    %cst_177 = arith.constant dense<0.000000e+00> : vector<8x256xf32>
    %479 = tpu.matmul %476, %477, %cst_177 {dimension_numbers = #tpu.dot_dimension_numbers<[1], [1], [0], [0], [0, 0, 1, 0], [], []>} : vector<8x8xf32>, vector<256x8xf32>, vector<8x256xf32> -> vector<8x256xf32>
    %480 = vector.broadcast %10 : vector<1x256xf32> to vector<8x256xf32>
    %481 = arith.addf %479, %480 : vector<8x256xf32>
    %cst_178 = arith.constant dense<0xFF800000> : vector<8xf32>
    %482 = vector.multi_reduction <maximumf>, %481, %cst_178 [1] : vector<8x256xf32> to vector<8xf32>
    %483 = vector.shape_cast %482 : vector<8xf32> to vector<8x1xf32>
    %484 = vector.broadcast %483 : vector<8x1xf32> to vector<8x256xf32>
    %485 = arith.subf %481, %484 : vector<8x256xf32>
    %486 = math.exp %485 : vector<8x256xf32>
    %cst_179 = arith.constant dense<0.000000e+00> : vector<8xf32>
    %487 = vector.multi_reduction <add>, %486, %cst_179 [1] : vector<8x256xf32> to vector<8xf32>
    %488 = vector.shape_cast %487 : vector<8xf32> to vector<8x1xf32>
    %489 = tpu.reciprocal %488 {approx = true} : vector<8x1xf32> -> vector<8x1xf32>
    %490 = vector.broadcast %489 : vector<8x1xf32> to vector<8x256xf32>
    %491 = arith.mulf %486, %490 : vector<8x256xf32>
    %cst_180 = arith.constant dense<0.000000e+00> : vector<8x8xf32>
    %492 = tpu.matmul %491, %478, %cst_180 {dimension_numbers = #tpu.dot_dimension_numbers<[1], [0], [0], [1], [0, 0, 1, 1], [], []>} : vector<8x256xf32>, vector<256x8xf32>, vector<8x8xf32> -> vector<8x8xf32>
    %493 = vector.extract_strided_slice %465 {offsets = [0, 8], sizes = [8, 8], strides = [1, 1]} : vector<8x32xf32> to vector<8x8xf32>
    %cst_181 = arith.constant 0.353553385 : f32
    %494 = vector.broadcast %cst_181 : f32 to vector<8x8xf32>
    %495 = arith.mulf %493, %494 : vector<8x8xf32>
    %496 = vector.extract_strided_slice %469 {offsets = [0, 8], sizes = [256, 8], strides = [1, 1]} : vector<256x32xf32> to vector<256x8xf32>
    %497 = vector.extract_strided_slice %473 {offsets = [0, 8], sizes = [256, 8], strides = [1, 1]} : vector<256x32xf32> to vector<256x8xf32>
    %cst_182 = arith.constant dense<0.000000e+00> : vector<8x256xf32>
    %498 = tpu.matmul %495, %496, %cst_182 {dimension_numbers = #tpu.dot_dimension_numbers<[1], [1], [0], [0], [0, 0, 1, 0], [], []>} : vector<8x8xf32>, vector<256x8xf32>, vector<8x256xf32> -> vector<8x256xf32>
    %499 = vector.broadcast %10 : vector<1x256xf32> to vector<8x256xf32>
    %500 = arith.addf %498, %499 : vector<8x256xf32>
    %cst_183 = arith.constant dense<0xFF800000> : vector<8xf32>
    %501 = vector.multi_reduction <maximumf>, %500, %cst_183 [1] : vector<8x256xf32> to vector<8xf32>
    %502 = vector.shape_cast %501 : vector<8xf32> to vector<8x1xf32>
    %503 = vector.broadcast %502 : vector<8x1xf32> to vector<8x256xf32>
    %504 = arith.subf %500, %503 : vector<8x256xf32>
    %505 = math.exp %504 : vector<8x256xf32>
    %cst_184 = arith.constant dense<0.000000e+00> : vector<8xf32>
    %506 = vector.multi_reduction <add>, %505, %cst_184 [1] : vector<8x256xf32> to vector<8xf32>
    %507 = vector.shape_cast %506 : vector<8xf32> to vector<8x1xf32>
    %508 = tpu.reciprocal %507 {approx = true} : vector<8x1xf32> -> vector<8x1xf32>
    %509 = vector.broadcast %508 : vector<8x1xf32> to vector<8x256xf32>
    %510 = arith.mulf %505, %509 : vector<8x256xf32>
    %cst_185 = arith.constant dense<0.000000e+00> : vector<8x8xf32>
    %511 = tpu.matmul %510, %497, %cst_185 {dimension_numbers = #tpu.dot_dimension_numbers<[1], [0], [0], [1], [0, 0, 1, 1], [], []>} : vector<8x256xf32>, vector<256x8xf32>, vector<8x8xf32> -> vector<8x8xf32>
    %512 = vector.extract_strided_slice %465 {offsets = [0, 16], sizes = [8, 8], strides = [1, 1]} : vector<8x32xf32> to vector<8x8xf32>
    %cst_186 = arith.constant 0.353553385 : f32
    %513 = vector.broadcast %cst_186 : f32 to vector<8x8xf32>
    %514 = arith.mulf %512, %513 : vector<8x8xf32>
    %515 = vector.extract_strided_slice %469 {offsets = [0, 16], sizes = [256, 8], strides = [1, 1]} : vector<256x32xf32> to vector<256x8xf32>
    %516 = vector.extract_strided_slice %473 {offsets = [0, 16], sizes = [256, 8], strides = [1, 1]} : vector<256x32xf32> to vector<256x8xf32>
    %cst_187 = arith.constant dense<0.000000e+00> : vector<8x256xf32>
    %517 = tpu.matmul %514, %515, %cst_187 {dimension_numbers = #tpu.dot_dimension_numbers<[1], [1], [0], [0], [0, 0, 1, 0], [], []>} : vector<8x8xf32>, vector<256x8xf32>, vector<8x256xf32> -> vector<8x256xf32>
    %518 = vector.broadcast %10 : vector<1x256xf32> to vector<8x256xf32>
    %519 = arith.addf %517, %518 : vector<8x256xf32>
    %cst_188 = arith.constant dense<0xFF800000> : vector<8xf32>
    %520 = vector.multi_reduction <maximumf>, %519, %cst_188 [1] : vector<8x256xf32> to vector<8xf32>
    %521 = vector.shape_cast %520 : vector<8xf32> to vector<8x1xf32>
    %522 = vector.broadcast %521 : vector<8x1xf32> to vector<8x256xf32>
    %523 = arith.subf %519, %522 : vector<8x256xf32>
    %524 = math.exp %523 : vector<8x256xf32>
    %cst_189 = arith.constant dense<0.000000e+00> : vector<8xf32>
    %525 = vector.multi_reduction <add>, %524, %cst_189 [1] : vector<8x256xf32> to vector<8xf32>
    %526 = vector.shape_cast %525 : vector<8xf32> to vector<8x1xf32>
    %527 = tpu.reciprocal %526 {approx = true} : vector<8x1xf32> -> vector<8x1xf32>
    %528 = vector.broadcast %527 : vector<8x1xf32> to vector<8x256xf32>
    %529 = arith.mulf %524, %528 : vector<8x256xf32>
    %cst_190 = arith.constant dense<0.000000e+00> : vector<8x8xf32>
    %530 = tpu.matmul %529, %516, %cst_190 {dimension_numbers = #tpu.dot_dimension_numbers<[1], [0], [0], [1], [0, 0, 1, 1], [], []>} : vector<8x256xf32>, vector<256x8xf32>, vector<8x8xf32> -> vector<8x8xf32>
    %531 = vector.extract_strided_slice %465 {offsets = [0, 24], sizes = [8, 8], strides = [1, 1]} : vector<8x32xf32> to vector<8x8xf32>
    %cst_191 = arith.constant 0.353553385 : f32
    %532 = vector.broadcast %cst_191 : f32 to vector<8x8xf32>
    %533 = arith.mulf %531, %532 : vector<8x8xf32>
    %534 = vector.extract_strided_slice %469 {offsets = [0, 24], sizes = [256, 8], strides = [1, 1]} : vector<256x32xf32> to vector<256x8xf32>
    %535 = vector.extract_strided_slice %473 {offsets = [0, 24], sizes = [256, 8], strides = [1, 1]} : vector<256x32xf32> to vector<256x8xf32>
    %cst_192 = arith.constant dense<0.000000e+00> : vector<8x256xf32>
    %536 = tpu.matmul %533, %534, %cst_192 {dimension_numbers = #tpu.dot_dimension_numbers<[1], [1], [0], [0], [0, 0, 1, 0], [], []>} : vector<8x8xf32>, vector<256x8xf32>, vector<8x256xf32> -> vector<8x256xf32>
    %537 = vector.broadcast %10 : vector<1x256xf32> to vector<8x256xf32>
    %538 = arith.addf %536, %537 : vector<8x256xf32>
    %cst_193 = arith.constant dense<0xFF800000> : vector<8xf32>
    %539 = vector.multi_reduction <maximumf>, %538, %cst_193 [1] : vector<8x256xf32> to vector<8xf32>
    %540 = vector.shape_cast %539 : vector<8xf32> to vector<8x1xf32>
    %541 = vector.broadcast %540 : vector<8x1xf32> to vector<8x256xf32>
    %542 = arith.subf %538, %541 : vector<8x256xf32>
    %543 = math.exp %542 : vector<8x256xf32>
    %cst_194 = arith.constant dense<0.000000e+00> : vector<8xf32>
    %544 = vector.multi_reduction <add>, %543, %cst_194 [1] : vector<8x256xf32> to vector<8xf32>
    %545 = vector.shape_cast %544 : vector<8xf32> to vector<8x1xf32>
    %546 = tpu.reciprocal %545 {approx = true} : vector<8x1xf32> -> vector<8x1xf32>
    %547 = vector.broadcast %546 : vector<8x1xf32> to vector<8x256xf32>
    %548 = arith.mulf %543, %547 : vector<8x256xf32>
    %cst_195 = arith.constant dense<0.000000e+00> : vector<8x8xf32>
    %549 = tpu.matmul %548, %535, %cst_195 {dimension_numbers = #tpu.dot_dimension_numbers<[1], [0], [0], [1], [0, 0, 1, 1], [], []>} : vector<8x256xf32>, vector<256x8xf32>, vector<8x8xf32> -> vector<8x8xf32>
    %550 = tpu.concatenate %492, %511, %530, %549 in 1 : vector<8x8xf32>, vector<8x8xf32>, vector<8x8xf32>, vector<8x8xf32> -> vector<8x32xf32>
    %cst_196 = arith.constant dense<0.000000e+00> : vector<8x32xf32>
    %551 = tpu.matmul %550, %457, %cst_196 {dimension_numbers = #tpu.dot_dimension_numbers<[1], [0], [0], [1], [0, 0, 1, 1], [], []>} : vector<8x32xf32>, vector<32x32xf32>, vector<8x32xf32> -> vector<8x32xf32>
    %552 = vector.broadcast %459 : vector<1x32xf32> to vector<8x32xf32>
    %553 = arith.addf %551, %552 : vector<8x32xf32>
    %554 = arith.addf %450, %553 : vector<8x32xf32>
    %c8 = arith.constant 8 : index
    %c0_197 = arith.constant 0 : index
    %c0_198 = arith.constant 0 : index
    %555 = vector.load %arg10[%c8, %c0_197, %c0_198] : memref<14x1x32xf32, #tpu.memory_space<vmem>>, vector<1x1x32xf32>
    %556 = vector.shape_cast %555 : vector<1x1x32xf32> to vector<1x32xf32>
    %c9 = arith.constant 9 : index
    %c0_199 = arith.constant 0 : index
    %c0_200 = arith.constant 0 : index
    %557 = vector.load %arg10[%c9, %c0_199, %c0_200] : memref<14x1x32xf32, #tpu.memory_space<vmem>>, vector<1x1x32xf32>
    %558 = vector.shape_cast %557 : vector<1x1x32xf32> to vector<1x32xf32>
    %cst_201 = arith.constant dense<0.000000e+00> : vector<8xf32>
    %559 = vector.multi_reduction <add>, %554, %cst_201 [1] : vector<8x32xf32> to vector<8xf32>
    %560 = vector.shape_cast %559 : vector<8xf32> to vector<8x1xf32>
    %cst_202 = arith.constant 3.200000e+01 : f32
    %561 = vector.broadcast %cst_202 : f32 to vector<8x1xf32>
    %562 = arith.divf %560, %561 : vector<8x1xf32>
    %563 = vector.broadcast %562 : vector<8x1xf32> to vector<8x32xf32>
    %564 = arith.subf %554, %563 : vector<8x32xf32>
    %565 = arith.mulf %564, %564 : vector<8x32xf32>
    %cst_203 = arith.constant dense<0.000000e+00> : vector<8xf32>
    %566 = vector.multi_reduction <add>, %565, %cst_203 [1] : vector<8x32xf32> to vector<8xf32>
    %567 = vector.shape_cast %566 : vector<8xf32> to vector<8x1xf32>
    %cst_204 = arith.constant 3.200000e+01 : f32
    %568 = vector.broadcast %cst_204 : f32 to vector<8x1xf32>
    %569 = arith.divf %567, %568 : vector<8x1xf32>
    %cst_205 = arith.constant 9.99999974E-6 : f32
    %570 = vector.broadcast %cst_205 : f32 to vector<8x1xf32>
    %571 = arith.addf %569, %570 : vector<8x1xf32>
    %572 = math.rsqrt %571 : vector<8x1xf32>
    %573 = vector.broadcast %572 : vector<8x1xf32> to vector<8x32xf32>
    %574 = arith.mulf %564, %573 : vector<8x32xf32>
    %575 = vector.broadcast %556 : vector<1x32xf32> to vector<8x32xf32>
    %576 = arith.mulf %574, %575 : vector<8x32xf32>
    %577 = vector.broadcast %558 : vector<1x32xf32> to vector<8x32xf32>
    %578 = arith.addf %576, %577 : vector<8x32xf32>
    %c1_206 = arith.constant 1 : index
    %c0_207 = arith.constant 0 : index
    %c0_208 = arith.constant 0 : index
    %579 = vector.load %arg7[%c1_206, %c0_207, %c0_208] : memref<2x32x64xf32, #tpu.memory_space<vmem>>, vector<1x32x64xf32>
    %580 = vector.shape_cast %579 : vector<1x32x64xf32> to vector<32x64xf32>
    %cst_209 = arith.constant dense<0.000000e+00> : vector<8x64xf32>
    %581 = tpu.matmul %578, %580, %cst_209 {dimension_numbers = #tpu.dot_dimension_numbers<[1], [0], [0], [1], [0, 0, 1, 1], [], []>} : vector<8x32xf32>, vector<32x64xf32>, vector<8x64xf32> -> vector<8x64xf32>
    %c1_210 = arith.constant 1 : index
    %c0_211 = arith.constant 0 : index
    %c0_212 = arith.constant 0 : index
    %582 = vector.load %arg9[%c1_210, %c0_211, %c0_212] : memref<2x1x96xf32, #tpu.memory_space<vmem>>, vector<1x1x96xf32>
    %583 = vector.shape_cast %582 : vector<1x1x96xf32> to vector<1x96xf32>
    %584 = vector.extract_strided_slice %583 {offsets = [0, 0], sizes = [1, 64], strides = [1, 1]} : vector<1x96xf32> to vector<1x64xf32>
    %585 = vector.broadcast %584 : vector<1x64xf32> to vector<8x64xf32>
    %586 = arith.addf %581, %585 : vector<8x64xf32>
    %cst_213 = arith.constant 0.000000e+00 : f32
    %587 = vector.broadcast %cst_213 : f32 to vector<8x64xf32>
    %588 = arith.maximumf %586, %587 : vector<8x64xf32>
    %c1_214 = arith.constant 1 : index
    %c0_215 = arith.constant 0 : index
    %c0_216 = arith.constant 0 : index
    %589 = vector.load %arg8[%c1_214, %c0_215, %c0_216] : memref<2x64x32xf32, #tpu.memory_space<vmem>>, vector<1x64x32xf32>
    %590 = vector.shape_cast %589 : vector<1x64x32xf32> to vector<64x32xf32>
    %cst_217 = arith.constant dense<0.000000e+00> : vector<8x32xf32>
    %591 = tpu.matmul %588, %590, %cst_217 {dimension_numbers = #tpu.dot_dimension_numbers<[1], [0], [0], [1], [0, 0, 1, 1], [], []>} : vector<8x64xf32>, vector<64x32xf32>, vector<8x32xf32> -> vector<8x32xf32>
    %c1_218 = arith.constant 1 : index
    %c0_219 = arith.constant 0 : index
    %c0_220 = arith.constant 0 : index
    %592 = vector.load %arg9[%c1_218, %c0_219, %c0_220] : memref<2x1x96xf32, #tpu.memory_space<vmem>>, vector<1x1x96xf32>
    %593 = vector.shape_cast %592 : vector<1x1x96xf32> to vector<1x96xf32>
    %594 = vector.extract_strided_slice %593 {offsets = [0, 64], sizes = [1, 32], strides = [1, 1]} : vector<1x96xf32> to vector<1x32xf32>
    %595 = vector.broadcast %594 : vector<1x32xf32> to vector<8x32xf32>
    %596 = arith.addf %591, %595 : vector<8x32xf32>
    %597 = arith.addf %578, %596 : vector<8x32xf32>
    %c10 = arith.constant 10 : index
    %c0_221 = arith.constant 0 : index
    %c0_222 = arith.constant 0 : index
    %598 = vector.load %arg10[%c10, %c0_221, %c0_222] : memref<14x1x32xf32, #tpu.memory_space<vmem>>, vector<1x1x32xf32>
    %599 = vector.shape_cast %598 : vector<1x1x32xf32> to vector<1x32xf32>
    %c11 = arith.constant 11 : index
    %c0_223 = arith.constant 0 : index
    %c0_224 = arith.constant 0 : index
    %600 = vector.load %arg10[%c11, %c0_223, %c0_224] : memref<14x1x32xf32, #tpu.memory_space<vmem>>, vector<1x1x32xf32>
    %601 = vector.shape_cast %600 : vector<1x1x32xf32> to vector<1x32xf32>
    %cst_225 = arith.constant dense<0.000000e+00> : vector<8xf32>
    %602 = vector.multi_reduction <add>, %597, %cst_225 [1] : vector<8x32xf32> to vector<8xf32>
    %603 = vector.shape_cast %602 : vector<8xf32> to vector<8x1xf32>
    %cst_226 = arith.constant 3.200000e+01 : f32
    %604 = vector.broadcast %cst_226 : f32 to vector<8x1xf32>
    %605 = arith.divf %603, %604 : vector<8x1xf32>
    %606 = vector.broadcast %605 : vector<8x1xf32> to vector<8x32xf32>
    %607 = arith.subf %597, %606 : vector<8x32xf32>
    %608 = arith.mulf %607, %607 : vector<8x32xf32>
    %cst_227 = arith.constant dense<0.000000e+00> : vector<8xf32>
    %609 = vector.multi_reduction <add>, %608, %cst_227 [1] : vector<8x32xf32> to vector<8xf32>
    %610 = vector.shape_cast %609 : vector<8xf32> to vector<8x1xf32>
    %cst_228 = arith.constant 3.200000e+01 : f32
    %611 = vector.broadcast %cst_228 : f32 to vector<8x1xf32>
    %612 = arith.divf %610, %611 : vector<8x1xf32>
    %cst_229 = arith.constant 9.99999974E-6 : f32
    %613 = vector.broadcast %cst_229 : f32 to vector<8x1xf32>
    %614 = arith.addf %612, %613 : vector<8x1xf32>
    %615 = math.rsqrt %614 : vector<8x1xf32>
    %616 = vector.broadcast %615 : vector<8x1xf32> to vector<8x32xf32>
    %617 = arith.mulf %607, %616 : vector<8x32xf32>
    %618 = vector.broadcast %599 : vector<1x32xf32> to vector<8x32xf32>
    %619 = arith.mulf %617, %618 : vector<8x32xf32>
    %620 = vector.broadcast %601 : vector<1x32xf32> to vector<8x32xf32>
    %621 = arith.addf %619, %620 : vector<8x32xf32>
    %c12_230 = arith.constant 12 : index
    %c0_231 = arith.constant 0 : index
    %c0_232 = arith.constant 0 : index
    %622 = vector.load %arg10[%c12_230, %c0_231, %c0_232] : memref<14x1x32xf32, #tpu.memory_space<vmem>>, vector<1x1x32xf32>
    %623 = vector.shape_cast %622 : vector<1x1x32xf32> to vector<1x32xf32>
    %c13_233 = arith.constant 13 : index
    %c0_234 = arith.constant 0 : index
    %c0_235 = arith.constant 0 : index
    %624 = vector.load %arg10[%c13_233, %c0_234, %c0_235] : memref<14x1x32xf32, #tpu.memory_space<vmem>>, vector<1x1x32xf32>
    %625 = vector.shape_cast %624 : vector<1x1x32xf32> to vector<1x32xf32>
    %cst_236 = arith.constant dense<0.000000e+00> : vector<8xf32>
    %626 = vector.multi_reduction <add>, %621, %cst_236 [1] : vector<8x32xf32> to vector<8xf32>
    %627 = vector.shape_cast %626 : vector<8xf32> to vector<8x1xf32>
    %cst_237 = arith.constant 3.200000e+01 : f32
    %628 = vector.broadcast %cst_237 : f32 to vector<8x1xf32>
    %629 = arith.divf %627, %628 : vector<8x1xf32>
    %630 = vector.broadcast %629 : vector<8x1xf32> to vector<8x32xf32>
    %631 = arith.subf %621, %630 : vector<8x32xf32>
    %632 = arith.mulf %631, %631 : vector<8x32xf32>
    %cst_238 = arith.constant dense<0.000000e+00> : vector<8xf32>
    %633 = vector.multi_reduction <add>, %632, %cst_238 [1] : vector<8x32xf32> to vector<8xf32>
    %634 = vector.shape_cast %633 : vector<8xf32> to vector<8x1xf32>
    %cst_239 = arith.constant 3.200000e+01 : f32
    %635 = vector.broadcast %cst_239 : f32 to vector<8x1xf32>
    %636 = arith.divf %634, %635 : vector<8x1xf32>
    %cst_240 = arith.constant 9.99999974E-6 : f32
    %637 = vector.broadcast %cst_240 : f32 to vector<8x1xf32>
    %638 = arith.addf %636, %637 : vector<8x1xf32>
    %639 = math.rsqrt %638 : vector<8x1xf32>
    %640 = vector.broadcast %639 : vector<8x1xf32> to vector<8x32xf32>
    %641 = arith.mulf %631, %640 : vector<8x32xf32>
    %642 = vector.broadcast %623 : vector<1x32xf32> to vector<8x32xf32>
    %643 = arith.mulf %641, %642 : vector<8x32xf32>
    %644 = vector.broadcast %625 : vector<1x32xf32> to vector<8x32xf32>
    %645 = arith.addf %643, %644 : vector<8x32xf32>
    %c0_241 = arith.constant 0 : index
    %c1_242 = arith.constant 1 : index
    %c0_243 = arith.constant 0 : index
    %c0_244 = arith.constant 0 : index
    %646 = vector.load %arg11[%c0_241, %c1_242, %c0_243, %c0_244] : memref<1x2x8x32xf32, #tpu.memory_space<vmem>>, vector<1x1x8x32xf32>
    %647 = vector.shape_cast %646 : vector<1x1x8x32xf32> to vector<8x32xf32>
    %648 = vector.shape_cast %645 : vector<8x32xf32> to vector<1x1x8x32xf32>
    tpu.vector_store %arg11[%c0_241, %c1_242, %c0_243, %c0_244], %648 {strides = array<i32>} : memref<1x2x8x32xf32, #tpu.memory_space<vmem>>, vector<1x1x8x32xf32>,
    return
  }
  func.func @transform_0(%arg0: i32) -> (i32, i32, i32) {
    %c0_i32 = arith.constant 0 : i32
    %c0_i32_0 = arith.constant 0 : i32
    %c0_i32_1 = arith.constant 0 : i32
    return %arg0, %c0_i32, %c0_i32_0 : i32, i32, i32
  }
  func.func @transform_1(%arg0: i32) -> (i32, i32, i32) {
    %c0_i32 = arith.constant 0 : i32
    %c0_i32_0 = arith.constant 0 : i32
    %c0_i32_1 = arith.constant 0 : i32
    return %arg0, %c0_i32, %c0_i32_0 : i32, i32, i32
  }
  func.func @transform_2(%arg0: i32) -> (i32, i32, i32) {
    %c0_i32 = arith.constant 0 : i32
    %c0_i32_0 = arith.constant 0 : i32
    %c0_i32_1 = arith.constant 0 : i32
    return %arg0, %c0_i32, %c0_i32_0 : i32, i32, i32
  }
  func.func @transform_3(%arg0: i32) -> (i32, i32) {
    %c0_i32 = arith.constant 0 : i32
    %c0_i32_0 = arith.constant 0 : i32
    %c0_i32_1 = arith.constant 0 : i32
    return %c0_i32, %c0_i32_0 : i32, i32
  }
  func.func @transform_4(%arg0: i32) -> (i32, i32, i32, i32) {
    %c0_i32 = arith.constant 0 : i32
    %c0_i32_0 = arith.constant 0 : i32
    %c0_i32_1 = arith.constant 0 : i32
    %c0_i32_2 = arith.constant 0 : i32
    %c0_i32_3 = arith.constant 0 : i32
    return %c0_i32, %c0_i32_0, %c0_i32_1, %c0_i32_2 : i32, i32, i32, i32
  }
  func.func @transform_5(%arg0: i32) -> (i32, i32, i32, i32) {
    %c0_i32 = arith.constant 0 : i32
    %c0_i32_0 = arith.constant 0 : i32
    %c0_i32_1 = arith.constant 0 : i32
    %c0_i32_2 = arith.constant 0 : i32
    %c0_i32_3 = arith.constant 0 : i32
    return %c0_i32, %c0_i32_0, %c0_i32_1, %c0_i32_2 : i32, i32, i32, i32
  }
  func.func @transform_6(%arg0: i32) -> (i32, i32, i32) {
    %c0_i32 = arith.constant 0 : i32
    %c0_i32_0 = arith.constant 0 : i32
    %c0_i32_1 = arith.constant 0 : i32
    %c0_i32_2 = arith.constant 0 : i32
    return %c0_i32, %c0_i32_0, %c0_i32_1 : i32, i32, i32
  }
  func.func @transform_7(%arg0: i32) -> (i32, i32, i32) {
    %c0_i32 = arith.constant 0 : i32
    %c0_i32_0 = arith.constant 0 : i32
    %c0_i32_1 = arith.constant 0 : i32
    %c0_i32_2 = arith.constant 0 : i32
    return %c0_i32, %c0_i32_0, %c0_i32_1 : i32, i32, i32
  }
  func.func @transform_8(%arg0: i32) -> (i32, i32, i32) {
    %c0_i32 = arith.constant 0 : i32
    %c0_i32_0 = arith.constant 0 : i32
    %c0_i32_1 = arith.constant 0 : i32
    %c0_i32_2 = arith.constant 0 : i32
    return %c0_i32, %c0_i32_0, %c0_i32_1 : i32, i32, i32
  }
  func.func @transform_9(%arg0: i32) -> (i32, i32, i32) {
    %c0_i32 = arith.constant 0 : i32
    %c0_i32_0 = arith.constant 0 : i32
    %c0_i32_1 = arith.constant 0 : i32
    %c0_i32_2 = arith.constant 0 : i32
    return %c0_i32, %c0_i32_0, %c0_i32_1 : i32, i32, i32
  }
  func.func @transform_10(%arg0: i32) -> (i32, i32, i32, i32) {
    %c0_i32 = arith.constant 0 : i32
    %c0_i32_0 = arith.constant 0 : i32
    %c0_i32_1 = arith.constant 0 : i32
    %c0_i32_2 = arith.constant 0 : i32
    return %arg0, %c0_i32, %c0_i32_0, %c0_i32_1 : i32, i32, i32, i32
  }
}

</mosaic_0001>

<bundles_post_ra>
// kernel: global_decoder_forward.1
= control target key start
LH: loop header
LB: loop body
LE: loop exit
PB: predicated region body
PF: predicated region fallthrough
CT: control target
= control target key end

     0   :  { %s9618_s13 = smov 0   ;;  %s13212_s0 = inlined_call_operand.vmem [shape: f32[2,256,32], index: 0, kind: input, shape index: {}]   ;;  %s13213_s1 = inlined_call_operand.vmem [shape: f32[2,256,32], index: 1, kind: input, shape index: {}]   ;;  %s13214_s2 = inlined_call_operand.vmem [shape: f32[2,1,256], index: 2, kind: input, shape index: {}]   ;;  %s13215_s3 = inlined_call_operand.vmem [shape: f32[8,32], index: 3, kind: input, shape index: {}]   ;;  %s13216_s4 = inlined_call_operand.vmem [shape: f32[2,2,32,128], index: 4, kind: input, shape index: {}]   ;;  %s13217_s5 = inlined_call_operand.vmem [shape: f32[2,2,1,128], index: 5, kind: input, shape index: {}]   ;;  %s13218_s6 = inlined_call_operand.vmem [shape: f32[2,32,64], index: 6, kind: input, shape index: {}]   ;;  %s13219_s7 = inlined_call_operand.vmem [shape: f32[2,64,32], index: 7, kind: input, shape index: {}]   ;;  %s13220_s8 = inlined_call_operand.vmem [shape: f32[2,1,96], index: 8, kind: input, shape index: {}]   ;;  %s13221_s9 = inlined_call_operand.vmem [shape: f32[14,1,32], index: 9, kind: input, shape index: {}]   ;;  %s13222_s10 = inlined_call_operand.vmem [shape: f32[2,2,8,32], index: 10, kind: output, shape index: {}]  }
   0x1   :  { %13415 = sst [smem:[#allocation68_spill]] %s13212_s0 }
   0x2   :  { %13416 = sst [smem:[#allocation69_spill]] %s13213_s1 }
   0x3   :  { %13417 = sst [smem:[#allocation70_spill]] %s13214_s2 }
   0x4   :  { %13418 = sst [smem:[#allocation71_spill]] %s13215_s3 }
   0x5 LB: > { %s7468_s14 = sadd.s32 4294967295, %s9544_s13   ;;  %p7472_p0 = scmp.ge.s32.totalorder %s9544_s13, 1  ;;  %s9544_s13 = sphi %s9618_s13, %s20_s13  }
   0x6   : > { %p331_p1 = scmp.lt.s32.totalorder %s9544_s13, 3 }
   0x8   : > { %p332_p2 = pnand %p7472_p0, %p331_p1 }
   0xa   : > { %335 = sbr.rel (%p332_p2) target bundleno = 11723 (0x2dcb), region = 60 }
   0xf   : > { %v9629_v0 = vld [vmem:[%s13216_s4 + $0x18] sm:$0xff]  ;;  %v9634_v1 = vld [vmem:[%s13216_s4 + $0x10] sm:$0xff]  ;;  %vm503_vm0 = vcmask 261120   ;;  %s13419_s3 = sld [smem:[#allocation71_spill]]  ;;  %v13241_v3 = vmov 0.0   ;;  %v9647_v4 = vld [vmem:[%s13216_s4 + $0x8] sm:$0xff] }
  0x10   : > { %8762 = vmatprep.subr.mxu0 %v9629_v0  ;;  %8773 = vmatprep.subr.mxu1 %v13241_v3  ;;  %v9656_v5 = vld [vmem:[%s13216_s4] sm:$0xff]  ;;  %vm9547_vm1 = vmmov 0   ;;  %s13347_s27 = smov 64   ;;  %s13343_s28 = smov 96   ;;  %vm597_vm2 = vcmask 64512   ;;  %vm1269_vm3 = vcmask 130048  }
  0x11   : > { %8763 = vmatpush3.msra.mxu0 %v9629_v0  ;;  %8775 = vmatprep.mubr.msk.f32.mxu1 %vm9547_vm1, %v13241_v3  ;;  %v9671_v6 = vld [vmem:[%s13217_s5] ss:$0 sm:$0xff]  ;;  %s13345_s29 = smov 88   ;;  %s13339_s30 = smov 120   ;;  %vm1271_vm4 = vcmask 195584   ;;  %vm3907_vm5 = vcmask 523264  }
  0x12   : > { %8764 = vmatprep.subr.mxu0 %v9634_v1  ;;  %s13341_s11 = smov 80   ;;  %s13337_s12 = smov 72  }
  0x13   : > { %8765 = vmatpush3.msra.mxu0 %v9634_v1  ;;  %s13335_s15 = smov 112   ;;  %s13233_s16 = smov 104  }
  0x14   : > { %8766 = vmatprep.subr.mxu0 %v9647_v4  ;;  %s13333_s17 = smov 56   ;;  %s13235_s18 = smov 48  }
  0x15   : > { %v9640_v2 = vld [vmem:[%s13419_s3] sm:$0xff]  ;;  %8767 = vmatpush3.msra.mxu0 %v9647_v4  ;;  %s13231_s19 = smov 40   ;;  %s13229_s20 = smov 32  }
  0x16   : > { %8770 = vmatprep.mubr.msk.f32.mxu0 %vm503_vm0, %v9640_v2  ;;  %8768 = vmatprep.subr.mxu0 %v9656_v5  ;;  %s13227_s21 = smov 8   ;;  %s13225_s22 = smov 16  }
  0x17   : > { %8769 = vmatpush3.msra.mxu0 %v9656_v5  ;;  %s13223_s23 = smov 24   ;;  %p378_p3 = scmp.lt.s32.totalorder %s7468_s14, 1 }
  0x18   : > { %8771 = vmatmul.mubr.f32.vlgmr.msra.gmra.mxu0 %v13241_v3  ;;  %8793 = vmatprep.subr.mxu0 %v13241_v3  ;;  %s13420_s0 = sld [smem:[#allocation68_spill]]  ;;  %s13520_s24 = smov 48  }
  0x19   : > { %8795 = vmatprep.mubr.msk.f32.mxu0 %vm9547_vm1, %v13241_v3  ;;  %s13673_s14 = smov (!%p378_p3, %s7468_s14), 1  ;;  %s13421_s1 = sld [smem:[#allocation69_spill]] }
  0x1a   : > { %s13485_s2 = sld [smem:[#allocation70_spill]]  ;;  %s13530_s25 = smov 104  }
  0xd8   : > { %v8772_v7 = vpop.f32.mrf.mxu0 }
  0xd9   : > { %v9674_v8 = vadd.f32 %v8772_v7, %v9671_v6 }
  0xda   : > { %v576_v9 = vpop.f32.mrf.mxu0 }
  0xdb   : > { %v591_v10 = vadd.f32 %v9671_v6, %v576_v9  ;;  %685 = vrot.lane.b32.xlu1 %v9674_v8, %s13347_s27 }
  0xdd   : > { %595 = vrot.lane.b32.xlu0 %v591_v10, %s13343_s28  ;;  %v593_v11 = vmul.f32 0.35355338, %v591_v10 }
  0xdf   : > { %763 = vrot.lane.b32.xlu1 %v591_v10, %s13345_s29 }
  0xe3   : > { %761 = vrot.lane.b32.xlu1 %v593_v11, %s13339_s30 }
  0xe7   : > { %928 = vrot.lane.b32.xlu1 %v591_v10, %s13341_s11 }
 0x14d   : > { %v686_v12 = vpop.permute.xlu1 %685 }
 0x14f   : > { %v596_v13 = vpop.permute.xlu0 %595 }
 0x150   : > { %8774 = vmatpush3.xpose.msk.msra.mxu1 %vm597_vm2, %v596_v13 }
 0x151   : > { %v764_v14 = vpop.permute.xlu1 %763  ;;  %8778 = vmatprep.subr.mxu1 %v13241_v3 }
 0x153   : > { %8776 = vmatmul.mubr.msk.f32.vlgmr.msra.gmra.mxu1 %vm597_vm2, %v593_v11 }
 0x154   : > { %8779 = vmatpush3.msra.mxu1 %v686_v12  ;;  %8780 = vmatprep.mubr.msk.f32.mxu1 %vm9547_vm1, %v13241_v3 }
 0x155   : > { %v762_v15 = vpop.permute.xlu1 %761  ;;  %8783 = vmatprep.subr.mxu1 %v13241_v3 }
 0x159   : > { %v929_v16 = vpop.permute.xlu1 %928 }
 0x15a   : > { %8794 = vmatpush3.xpose.msk.msra.mxu0 %vm597_vm2, %v929_v16 }
 0x15b   : > { %8803 = vmatprep.subr.mxu0 %v13241_v3 }
 0x213   : > { %v669_v17 = vpop.f32.mrf.mxu1 }
 0x214   : > { %v673_v18 = vsel %vm597_vm2, %v669_v17, -inf }
 0x215   : > { %674 = vmax.xlane.f32.xlu0 %v673_v18  ;;  %v8777_v19 = vpop.f32.mrf.mxu1 }
 0x22b   : > { %1093 = vrot.lane.b32.xlu0 %v591_v10, %s13337_s12 }
 0x29e   : > { %v675_v20 = vpop.xlane.xlu0 %674 }
 0x29f   : > { %v676_v21 = vsub.f32 %v669_v17, %v675_v20 }
 0x2a1   : > { %v677_v22 = vmul.f32 1.442695, %v676_v21 }
 0x2a2   : > { %v1094_v27 = vpop.permute.xlu0 %1093 }
 0x2a3   : > { %9399 = vpow2.f32 %v677_v22 }
 0x2b0   : > { %v9400_v23 = vpop.eup %9399 }
 0x2b1   : > { %v679_v24 = vsel %vm597_vm2, %v9400_v23, 0.0 }
 0x2b2   : > { %680 = vadd.xlane.f32.xlu1 %v679_v24 }
 0x2c3   : > { %926 = vrot.lane.b32.xlu1 %v593_v11, %s13335_s15 }
 0x2c7   : > { %1091 = vrot.lane.b32.xlu1 %v593_v11, %s13233_s16  ;;  %s13553_s16 = smov 80  }
 0x33b   : > { %v681_v25 = vpop.xlane.xlu1 %680 }
 0x33c   : > { %9401 = vrcp.f32 %v681_v25 }
 0x33f   : > { %v927_v26 = vpop.permute.xlu1 %926 }
 0x340   : > { %8796 = vmatmul.mubr.msk.f32.vlgmr.msra.gmra.mxu0 %vm597_vm2, %v927_v26 }
 0x341   : > { %8804 = vmatpush3.xpose.msk.msra.mxu0 %vm597_vm2, %v1094_v27  ;;  %8805 = vmatprep.mubr.msk.f32.mxu0 %vm9547_vm1, %v13241_v3 }
 0x342   : > { %8813 = vmatprep.subr.mxu0 %v13241_v3 }
 0x343   : > { %v1092_v28 = vpop.permute.xlu1 %1091 }
 0x344   : > { %8806 = vmatmul.mubr.msk.f32.vlgmr.msra.gmra.mxu0 %vm597_vm2, %v1092_v28 }
 0x345   : > { %8821 = vmatprep.mubr.msk.f32.mxu0 %vm9547_vm1, %v13241_v3 }
 0x349   : > { %v9402_v29 = vpop.eup %9401 }
 0x34a   : > { %v683_v30 = vmul.f32 %v9402_v29, %v9400_v23 }
 0x34c   : > { %8781 = vmatmul.mubr.msk.f32.vlgmr.msra.gmra.mxu1 %vm597_vm2, %v683_v30 }
 0x34d   : > { %8784 = vmatpush3.xpose.msk.msra.mxu1 %vm597_vm2, %v764_v14  ;;  %8785 = vmatprep.mubr.msk.f32.mxu1 %vm9547_vm1, %v13241_v3 }
 0x34e   : > { %8788 = vmatprep.subr.mxu1 %v13241_v3 }
 0x350   : > { %8786 = vmatmul.mubr.msk.f32.vlgmr.msra.gmra.mxu1 %vm597_vm2, %v762_v15 }
 0x351   : > { %8790 = vmatprep.mubr.msk.f32.mxu1 %vm9547_vm1, %v13241_v3 }
 0x400   : > { %v1000_v31 = vpop.f32.mrf.mxu0 }
 0x401   : > { %v1004_v32 = vsel %vm597_vm2, %v1000_v31, -inf }
 0x402   : > { %1005 = vmax.xlane.f32.xlu0 %v1004_v32  ;;  %v8797_v33 = vpop.f32.mrf.mxu0 }
 0x403   : > { %v7501_v33 = vld [vmem:[%s13216_s4 + $0x38] sm:$0xff] }
 0x404   : > { %v1165_v34 = vpop.f32.mrf.mxu0 }
 0x405   : > { %v1169_v41 = vsel %vm597_vm2, %v1165_v34, -inf }
 0x406   : > { %v8807_v35 = vpop.f32.mrf.mxu0 }
 0x407   : > { %v7499_v35 = vld [vmem:[%s13216_s4 + $0x28] sm:$0xff] }
 0x40c   : > { %v9713_v36 = vpop.f32.mrf.mxu1 }
 0x40e   : > { %v8782_v37 = vpop.f32.mrf.mxu1 }
 0x410   : > { %v835_v38 = vpop.f32.mrf.mxu1 }
 0x411   : > { %v839_v39 = vsel %vm597_vm2, %v835_v38, -inf }
 0x412   : > { %840 = vmax.xlane.f32.xlu1 %v839_v39  ;;  %v8787_v40 = vpop.f32.mrf.mxu1 }
 0x416   : > { %1170 = vmax.xlane.f32.xlu1 %v1169_v41  ;;  %v7496_v41 = vld [vmem:[%s13221_s9] ss:$0 sm:$0xff] }
 0x48b   : > { %v1006_v42 = vpop.xlane.xlu0 %1005 }
 0x48c   : > { %v1007_v43 = vsub.f32 %v1000_v31, %v1006_v42 }
 0x48e   : > { %v1008_v44 = vmul.f32 1.442695, %v1007_v43  ;;  %v7497_v43 = vld [vmem:[%s13221_s9 + $0x1] ss:$0 sm:$0xff] }
 0x490   : > { %9403 = vpow2.f32 %v1008_v44 }
 0x49b   : > { %v841_v45 = vpop.xlane.xlu1 %840 }
 0x49c   : > { %v842_v53 = vsub.f32 %v835_v38, %v841_v45 }
 0x49d   : > { %v9404_v46 = vpop.eup %9403 }
 0x49e   : > { %v1010_v47 = vsel %vm597_vm2, %v9404_v46, 0.0  ;;  %v843_v54 = vmul.f32 1.442695, %v842_v53 }
 0x49f   : > { %1011 = vadd.xlane.f32.xlu1 %v1010_v47  ;;  %v1171_v48 = vpop.xlane.xlu1 %1170 }
 0x4a0   : > { %v1172_v49 = vsub.f32 %v1165_v34, %v1171_v48  ;;  %v7500_v34 = vld [vmem:[%s13216_s4 + $0x30] sm:$0xff] }
 0x4a2   : > { %v1173_v50 = vmul.f32 1.442695, %v1172_v49 }
 0x4a4   : > { %9405 = vpow2.f32 %v1173_v50 }
 0x4a5   : > { %9407 = vpow2.f32 %v843_v54 }
 0x4b0   : > { %850 = vrot.lane.b32.xlu1 %v9674_v8, %s13333_s17 }
 0x4b1   : > { %v9406_v51 = vpop.eup %9405 }
 0x4b2   : > { %v1175_v52 = vsel %vm597_vm2, %v9406_v51, 0.0  ;;  %v9408_v55 = vpop.eup %9407 }
 0x4b3   : > { %1176 = vadd.xlane.f32.xlu0 %v1175_v52  ;;  %v845_v56 = vsel %vm597_vm2, %v9408_v55, 0.0 }
 0x4c9   : > { %1015 = vrot.lane.b32.xlu0 %v9674_v8, %s13235_s18  ;;  %s13547_s18 = smov 24  }
 0x4cd   : > { %1281 = vrot.lane.b32.xlu0 %v9634_v1, %s13229_s20 }
 0x4d1   : > { %1279 = vrot.lane.b32.xlu0 %v9647_v4, %s13229_s20 }
 0x4d4   : > { %846 = vadd.xlane.f32.xlu1 %v845_v56 }
 0x4e5   : > { %1180 = vrot.lane.b32.xlu1 %v9674_v8, %s13231_s19  ;;  %s7977_s19 = sshll.u32 %s13673_s14, 8 }
 0x4e6   : > { %s9792_s26 = scalar_lea.vmem %s13420_s0, %s7977_s19 }
 0x4e7   : > { %v9814_v50 = vld [vmem:[%s9792_s26 + $0x8] sm:$0xff] }
 0x4e9   : > { %1283 = vrot.lane.b32.xlu1 %v9629_v0, %s13229_s20 }
 0x528   : > { %v1012_v57 = vpop.xlane.xlu1 %1011 }
 0x52c   : > { %v851_v58 = vpop.permute.xlu1 %850 }
 0x52d   : > { %8789 = vmatpush3.msra.mxu1 %v851_v58  ;;  %v9847_v58 = vld [vmem:[%s9792_s26 + $0x20] sm:$0xff] }
 0x52e   : > { %8798 = vmatprep.subr.mxu1 %v13241_v3 }
 0x53c   : > { %v1177_v60 = vpop.xlane.xlu0 %1176 }
 0x540   : > { %v1016_v0 = vpop.permute.xlu0 %1015 }
 0x544   : > { %v1282_v10 = vpop.permute.xlu0 %1281 }
 0x548   : > { %v1280_v11 = vpop.permute.xlu0 %1279 }
 0x55d   : > { %v847_v59 = vpop.xlane.xlu1 %846 }
 0x55e   : > { %9409 = vrcp.f32 %v847_v59 }
 0x55f   : > { %9411 = vrcp.f32 %v1012_v57 }
 0x560   : > { %9413 = vrcp.f32 %v1177_v60 }
 0x561   : > { %v1181_v7 = vpop.permute.xlu1 %1180 }
 0x565   : > { %v1284_v9 = vpop.permute.xlu1 %1283 }
 0x566   : > { %8814 = vmatpush3.msra.mxu0 %v1284_v9 }
 0x567   : > { %8815 = vmatprep.subr.mxu0 %v13241_v3 }
 0x568   : > { %8816 = vmatpush3.msra.mxu0 %v1282_v10  ;;  %v9891_v10 = vld [vmem:[%s9792_s26 + $0x40] sm:$0xff] }
 0x569   : > { %8817 = vmatprep.subr.mxu0 %v13241_v3 }
 0x56a   : > { %8818 = vmatpush3.msra.mxu0 %v1280_v11 }
 0x56b   : > { %v9410_v61 = vpop.eup %9409  ;;  %8819 = vmatprep.subr.mxu0 %v13241_v3 }
 0x56c   : > { %v849_v62 = vmul.f32 %v9410_v61, %v9408_v55  ;;  %v9412_v63 = vpop.eup %9411  ;;  %v9836_v55 = vld [vmem:[%s9792_s26 + $0x18] sm:$0xff]  ;;  %v9858_v61 = vld [vmem:[%s9792_s26 + $0x28] sm:$0xff] }
 0x56d   : > { %v1014_v1 = vmul.f32 %v9412_v63, %v9404_v46  ;;  %v9414_v4 = vpop.eup %9413  ;;  %v9802_v46 = vld [vmem:[%s9792_s26] sm:$0xff] }
 0x56e   : > { %8791 = vmatmul.mubr.msk.f32.vlgmr.msra.gmra.mxu1 %vm597_vm2, %v849_v62  ;;  %v1179_v8 = vmul.f32 %v9414_v4, %v9406_v51 }
 0x56f   : > { %8799 = vmatpush3.msra.mxu1 %v1016_v0  ;;  %8800 = vmatprep.mubr.msk.f32.mxu1 %vm9547_vm1, %v13241_v3  ;;  %v9869_v0 = vld [vmem:[%s9792_s26 + $0x30] sm:$0xff] }
 0x570   : > { %8808 = vmatprep.subr.mxu1 %v13241_v3 }
 0x572   : > { %8801 = vmatmul.mubr.msk.f32.vlgmr.msra.gmra.mxu1 %vm597_vm2, %v1014_v1 }
 0x573   : > { %8809 = vmatpush3.msra.mxu1 %v1181_v7  ;;  %8810 = vmatprep.mubr.msk.f32.mxu1 %vm9547_vm1, %v13241_v3  ;;  %v9880_v7 = vld [vmem:[%s9792_s26 + $0x38] sm:$0xff] }
 0x574   : > { %8824 = vmatprep.subr.mxu1 %v13241_v3 }
 0x576   : > { %8811 = vmatmul.mubr.msk.f32.vlgmr.msra.gmra.mxu1 %vm597_vm2, %v1179_v8 }
 0x577   : > { %8832 = vmatprep.mubr.msk.f32.mxu1 %vm9547_vm1, %v13241_v3  ;;  %8825 = vmatpush3.msra.mxu1 %v7501_v33 }
 0x578   : > { %8826 = vmatprep.subr.mxu1 %v13241_v3 }
 0x579   : > { %8827 = vmatpush3.msra.mxu1 %v7500_v34 }
 0x57a   : > { %8828 = vmatprep.subr.mxu1 %v13241_v3 }
 0x57b   : > { %8829 = vmatpush3.msra.mxu1 %v7499_v35  ;;  %v9990_v35 = vld [vmem:[%s9792_s26 + $0x88] sm:$0xff] }
 0x57c   : > { %8830 = vmatprep.subr.mxu1 %v13241_v3 }
 0x62e   : > { %v922_v12 = vpop.f32.mrf.mxu1 }
 0x62f   : > { %1257 = vrot.lane.b32.xlu1 %v922_v12, %s13227_s21  ;;  %s9797_s21 = scalar_lea.vmem %s13421_s1, %s7977_s19  ;;  %s13542_s19 = smov 8  }
 0x630   : > { %v8792_v13 = vpop.f32.mrf.mxu1  ;;  %v429_v47 = vld [vmem:[%s9797_s21] sm:$0xff]  ;;  %v430_v51 = vld [vmem:[%s9797_s21 + $0x8] sm:$0xff]  ;;  %v431_v53 = vld [vmem:[%s9797_s21 + $0x10] sm:$0xff] }
 0x631   : > { %v9809_v49 = vadd.f32 %v429_v47, %v9802_v46  ;;  %v9820_v52 = vadd.f32 %v430_v51, %v9814_v50  ;;  %v432_v56 = vld [vmem:[%s9797_s21 + $0x18] sm:$0xff]  ;;  %v433_v59 = vld [vmem:[%s9797_s21 + $0x20] sm:$0xff]  ;;  %v434_v62 = vld [vmem:[%s9797_s21 + $0x28] sm:$0xff] }
 0x632   : > { %v1087_v14 = vpop.f32.mrf.mxu1  ;;  %v9842_v57 = vadd.f32 %v432_v56, %v9836_v55  ;;  %v9853_v60 = vadd.f32 %v433_v59, %v9847_v58  ;;  %v9864_v63 = vadd.f32 %v434_v62, %v9858_v61  ;;  %v435_v1 = vld [vmem:[%s9797_s21 + $0x30] sm:$0xff]  ;;  %v436_v8 = vld [vmem:[%s9797_s21 + $0x38] sm:$0xff]  ;;  %v437_v11 = vld [vmem:[%s9797_s21 + $0x40] sm:$0xff] }
 0x633   : > { %1261 = vrot.lane.b32.xlu1 %v1087_v14, %s13225_s22  ;;  %13423 = vst [vmem:[#allocation3_spill] sm:$0xff] %v9809_v49  ;;  %13424 = vst [vmem:[#allocation4_spill] sm:$0xff] %v9820_v52  ;;  %v9875_v4 = vadd.f32 %v435_v1, %v9869_v0  ;;  %v9886_v9 = vadd.f32 %v436_v8, %v9880_v7  ;;  %v9897_v12 = vadd.f32 %v437_v11, %v9891_v10  ;;  %v9902_v13 = vld [vmem:[%s9792_s26 + $0x48] sm:$0xff]  ;;  %v445_v33 = vld [vmem:[%s9797_s21 + $0x80] sm:$0xff]  ;;  %s7477_s22 = sshll.u32 %s13673_s14, 1 }
 0x634   : > { %v8802_v15 = vpop.f32.mrf.mxu1  ;;  %13426 = vst [vmem:[#allocation6_spill] sm:$0xff] %v9842_v57  ;;  %13427 = vst [vmem:[#allocation7_spill] sm:$0xff] %v9853_v60  ;;  %v438_v14 = vld [vmem:[%s9797_s21 + $0x48] sm:$0xff]  ;;  %v449_v47 = vld [vmem:[%s9797_s21 + $0xa0] sm:$0xff] }
 0x635   : > { %13428 = vst [vmem:[#allocation8_spill] sm:$0xff] %v9864_v63  ;;  %13429 = vst [vmem:[#allocation9_spill] sm:$0xff] %v9875_v4  ;;  %v9908_v15 = vadd.f32 %v438_v14, %v9902_v13  ;;  %v10034_v51 = vld [vmem:[%s9792_s26 + $0xa8] sm:$0xff]  ;;  %v10045_v59 = vld [vmem:[%s9792_s26 + $0xb0] sm:$0xff] }
 0x636   : > { %v1252_v16 = vpop.f32.mrf.mxu1  ;;  %13430 = vst [vmem:[#allocation10_spill] sm:$0xff] %v9886_v9  ;;  %13431 = vst [vmem:[#allocation11_spill] sm:$0xff] %v9897_v12  ;;  %v451_v62 = vld [vmem:[%s9797_s21 + $0xb0] sm:$0xff]  ;;  %v10056_v8 = vld [vmem:[%s9792_s26 + $0xb8] sm:$0xff] }
 0x637   : > { %1277 = vrot.lane.b32.xlu1 %v9656_v5, %s13229_s20  ;;  %1265 = vrot.lane.b32.xlu0 %v1252_v16, %s13223_s23  ;;  %13432 = vst [vmem:[#allocation12_spill] sm:$0xff] %v9908_v15  ;;  %v9913_v16 = vld [vmem:[%s9792_s26 + $0x50] sm:$0xff]  ;;  %v10051_v1 = vadd.f32 %v451_v62, %v10045_v59  ;;  %v452_v11 = vld [vmem:[%s9797_s21 + $0xb8] sm:$0xff]  ;;  %s391_s23 = scalar_lea.vmem %s13485_s2, %s7477_s22  ;;  %s13541_s22 = smov 32  }
 0x638   : > { %v8812_v17 = vpop.f32.mrf.mxu1  ;;  %v10062_v14 = vadd.f32 %v452_v11, %v10056_v8  ;;  %v10111_v62 = vld [vmem:[%s9792_s26 + $0xe0] sm:$0xff] }
 0x639   : > { %v439_v17 = vld [vmem:[%s9797_s21 + $0x50] sm:$0xff]  ;;  %13445 = vst [vmem:[#allocation25_spill] sm:$0xff] %v10051_v1  ;;  %v457_v11 = vld [vmem:[%s9797_s21 + $0xe0] sm:$0xff] }
 0x63a   : > { %13446 = vst [vmem:[#allocation26_spill] sm:$0xff] %v10062_v14 }
 0x63b   : > { %1289 = vrot.lane.b32.xlu0 %v9671_v6, %s13229_s20  ;;  %s13546_s20 = smov 16  }
 0x6a1   : > { %v1258_v18 = vpop.permute.xlu1 %1257 }
 0x6a2   : > { %v1268_v20 = vsel %vm597_vm2, %v9713_v36, %v1258_v18  ;;  %v7498_v36 = vld [vmem:[%s13216_s4 + $0x20] sm:$0xff]  ;;  %v9919_v18 = vadd.f32 %v439_v17, %v9913_v16 }
 0x6a3   : > { %8831 = vmatpush3.msra.mxu1 %v7498_v36  ;;  %v446_v36 = vld [vmem:[%s9797_s21 + $0x88] sm:$0xff]  ;;  %v10067_v17 = vld [vmem:[%s9792_s26 + $0xc0] sm:$0xff] }
 0x6a4   : > { %13433 = vst [vmem:[#allocation13_spill] sm:$0xff] %v9919_v18 }
 0x6a5   : > { %v1262_v19 = vpop.permute.xlu1 %1261 }
 0x6a6   : > { %v1270_v21 = vsel %vm1269_vm3, %v1268_v20, %v1262_v19  ;;  %v9924_v19 = vld [vmem:[%s9792_s26 + $0x58] sm:$0xff] }
 0x6a7   : > { %v440_v20 = vld [vmem:[%s9797_s21 + $0x58] sm:$0xff] }
 0x6a9   : > { %v1278_v22 = vpop.permute.xlu1 %1277  ;;  %v1266_v23 = vpop.permute.xlu0 %1265 }
 0x6aa   : > { %v1272_v5 = vsel %vm1271_vm4, %v1270_v21, %v1266_v23  ;;  %8820 = vmatpush3.msra.mxu0 %v1278_v22  ;;  %v9930_v21 = vadd.f32 %v440_v20, %v9924_v19  ;;  %v9935_v22 = vld [vmem:[%s9792_s26 + $0x60] sm:$0xff] }
 0x6ab   : > { %8822 = vmatmul.mubr.msk.f32.vlgmr.msra.gmra.mxu0 %vm503_vm0, %v1272_v5  ;;  %v441_v23 = vld [vmem:[%s9797_s21 + $0x60] sm:$0xff] }
 0x6ac   : > { %13434 = vst [vmem:[#allocation14_spill] sm:$0xff] %v9930_v21  ;;  %v9941_v5 = vadd.f32 %v441_v23, %v9935_v22  ;;  %v453_v20 = vld [vmem:[%s9797_s21 + $0xc0] sm:$0xff] }
 0x6ad   : > { %v1290_v24 = vpop.permute.xlu0 %1289  ;;  %v10073_v23 = vadd.f32 %v453_v20, %v10067_v17  ;;  %v10117_v20 = vadd.f32 %v457_v11, %v10111_v62 }
 0x6ae   : > { %13435 = vst [vmem:[#allocation15_spill] sm:$0xff] %v9941_v5 }
 0x6af   : > { %13447 = vst [vmem:[#allocation27_spill] sm:$0xff] %v10073_v23  ;;  %13451 = vst [vmem:[#allocation31_spill] sm:$0xff] %v10117_v20 }
 0x76b   : > { %v1361_v25 = vpop.f32.mrf.mxu0 }
 0x76c   : > { %v1362_v26 = vadd.f32 %v1361_v25, %v1290_v24  ;;  %v9946_v24 = vld [vmem:[%s9792_s26 + $0x68] sm:$0xff] }
 0x76d   : > { %v8823_v6 = vpop.f32.mrf.mxu0  ;;  %v442_v25 = vld [vmem:[%s9797_s21 + $0x68] sm:$0xff] }
 0x76e   : > { %v1369_v27 = vsel %vm503_vm0, %v1362_v26, 0.0  ;;  %v9957_v6 = vld [vmem:[%s9792_s26 + $0x70] sm:$0xff] }
 0x76f   : > { %1370 = vadd.xlane.f32.xlu1 %v1369_v27  ;;  %v443_v27 = vld [vmem:[%s9797_s21 + $0x70] sm:$0xff] }
 0x7f8   : > { %v1371_v28 = vpop.xlane.xlu1 %1370 }
 0x7f9   : > { %v1373_v29 = vmul.f32 0.03125, %v1371_v28  ;;  %v9963_v28 = vadd.f32 %v443_v27, %v9957_v6  ;;  %v454_v27 = vld [vmem:[%s9797_s21 + $0xc8] sm:$0xff] }
 0x7fb   : > { %v1374_v30 = vsub.f32 %v1362_v26, %v1373_v29  ;;  %v9952_v26 = vadd.f32 %v442_v25, %v9946_v24  ;;  %13437 = vst [vmem:[#allocation17_spill] sm:$0xff] %v9963_v28  ;;  %v9968_v29 = vld [vmem:[%s9792_s26 + $0x78] sm:$0xff]  ;;  %v10078_v25 = vld [vmem:[%s9792_s26 + $0xc8] sm:$0xff] }
 0x7fd   : > { %v1375_v31 = vmul.f32 %v1374_v30, %v1374_v30  ;;  %13436 = vst [vmem:[#allocation16_spill] sm:$0xff] %v9952_v26 }
 0x7ff   : > { %v1376_v32 = vsel %vm503_vm0, %v1375_v31, 0.0 }
 0x800   : > { %1377 = vadd.xlane.f32.xlu0 %v1376_v32  ;;  %v9979_v32 = vld [vmem:[%s9792_s26 + $0x80] sm:$0xff] }
 0x801   : > { %v9985_v34 = vadd.f32 %v445_v33, %v9979_v32  ;;  %v10089_v33 = vld [vmem:[%s9792_s26 + $0xd0] sm:$0xff] }
 0x803   : > { %13439 = vst [vmem:[#allocation19_spill] sm:$0xff] %v9985_v34 }
 0x889   : > { %v1378_v37 = vpop.xlane.xlu0 %1377 }
 0x88a   : > { %v1379_v38 = vmul.f32 0.03125, %v1378_v37  ;;  %v9996_v37 = vadd.f32 %v446_v36, %v9990_v35  ;;  %v455_v36 = vld [vmem:[%s9797_s21 + $0xd0] sm:$0xff] }
 0x88c   : > { %v1380_v39 = vadd.f32 1e-05, %v1379_v38  ;;  %13440 = vst [vmem:[#allocation20_spill] sm:$0xff] %v9996_v37  ;;  %v10001_v38 = vld [vmem:[%s9792_s26 + $0x90] sm:$0xff] }
 0x88e   : > { %9415 = vrsqrt.f32 %v1380_v39  ;;  %v447_v39 = vld [vmem:[%s9797_s21 + $0x90] sm:$0xff] }
 0x89b   : > { %v9416_v40 = vpop.eup %9415 }
 0x89c   : > { %v1382_v42 = vmul.f32 %v9416_v40, %v1374_v30  ;;  %v444_v30 = vld [vmem:[%s9797_s21 + $0x78] sm:$0xff]  ;;  %v10007_v40 = vadd.f32 %v447_v39, %v10001_v38  ;;  %v10095_v39 = vadd.f32 %v455_v36, %v10089_v33  ;;  %v458_v36 = vld [vmem:[%s9797_s21 + $0xe8] sm:$0xff] }
 0x89d   : > { %v9974_v31 = vadd.f32 %v444_v30, %v9968_v29  ;;  %v10084_v30 = vadd.f32 %v454_v27, %v10078_v25  ;;  %v10122_v27 = vld [vmem:[%s9792_s26 + $0xe8] sm:$0xff] }
 0x89e   : > { %v1389_v44 = vmul.f32 %v7496_v41, %v1382_v42  ;;  %13441 = vst [vmem:[#allocation21_spill] sm:$0xff] %v10007_v40  ;;  %v10012_v41 = vld [vmem:[%s9792_s26 + $0x98] sm:$0xff]  ;;  %13449 = vst [vmem:[#allocation29_spill] sm:$0xff] %v10095_v39 }
 0x89f   : > { %13438 = vst [vmem:[#allocation18_spill] sm:$0xff] %v9974_v31  ;;  %v448_v42 = vld [vmem:[%s9797_s21 + $0x98] sm:$0xff]  ;;  %13448 = vst [vmem:[#allocation28_spill] sm:$0xff] %v10084_v30 }
 0x8a0   : > { %v9799_v45 = vadd.f32 %v7497_v43, %v1389_v44  ;;  %v10018_v43 = vadd.f32 %v448_v42, %v10012_v41  ;;  %v10023_v44 = vld [vmem:[%s9792_s26 + $0xa0] sm:$0xff]  ;;  %v10100_v42 = vld [vmem:[%s9792_s26 + $0xd8] sm:$0xff] }
 0x8a2   : > { %13422 = vst [vmem:[#allocation2_spill] sm:$0xff] %v9799_v45  ;;  %v1397_v48 = vadd.f32 %v9799_v45, %v9640_v2  ;;  %v9825_v2 = vld [vmem:[%s9792_s26 + $0x10] sm:$0xff]  ;;  %13442 = vst [vmem:[#allocation22_spill] sm:$0xff] %v10018_v43 }
 0x8a3   : > { %v9831_v54 = vadd.f32 %v431_v53, %v9825_v2  ;;  %v450_v53 = vld [vmem:[%s9797_s21 + $0xa8] sm:$0xff] }
 0x8a4   : > { %8833 = vmatmul.mubr.msk.f32.vlgmr.msra.gmra.mxu1 %vm503_vm0, %v1397_v48  ;;  %v10029_v48 = vadd.f32 %v449_v47, %v10023_v44  ;;  %v10040_v56 = vadd.f32 %v450_v53, %v10034_v51  ;;  %v456_v47 = vld [vmem:[%s9797_s21 + $0xd8] sm:$0xff] }
 0x8a5   : > { %8835 = vmatprep.mubr.msk.f32.mxu1 %vm9547_vm1, %v13241_v3  ;;  %13425 = vst [vmem:[#allocation5_spill] sm:$0xff] %v9831_v54  ;;  %v10106_v53 = vadd.f32 %v456_v47, %v10100_v42  ;;  %v10128_v47 = vadd.f32 %v458_v36, %v10122_v27 }
 0x8a6   : > { %13443 = vst [vmem:[#allocation23_spill] sm:$0xff] %v10029_v48  ;;  %13444 = vst [vmem:[#allocation24_spill] sm:$0xff] %v10040_v56 }
 0x8a7   : > { %13450 = vst [vmem:[#allocation30_spill] sm:$0xff] %v10106_v53  ;;  %13452 = vst [vmem:[#allocation32_spill] sm:$0xff] %v10128_v47 }
 0x8a8   : > { %8836 = vmatmul.mubr.msk.f32.gmra.mxu1 %vm503_vm0, %v9809_v49 }
 0x8a9   : > { %8838 = vmatprep.mubr.msk.f32.mxu1 %vm9547_vm1, %v13241_v3 }
 0x8ac   : > { %8839 = vmatmul.mubr.msk.f32.gmra.mxu1 %vm503_vm0, %v9820_v52 }
 0x8ad   : > { %8841 = vmatprep.mubr.msk.f32.mxu1 %vm9547_vm1, %v13241_v3 }
 0x8b0   : > { %8842 = vmatmul.mubr.msk.f32.gmra.mxu1 %vm503_vm0, %v9831_v54 }
 0x8b1   : > { %8844 = vmatprep.mubr.msk.f32.mxu1 %vm9547_vm1, %v13241_v3 }
 0x8b4   : > { %8845 = vmatmul.mubr.msk.f32.gmra.mxu1 %vm503_vm0, %v9842_v57 }
 0x8b5   : > { %8847 = vmatprep.mubr.msk.f32.mxu1 %vm9547_vm1, %v13241_v3 }
 0x8b8   : > { %8848 = vmatmul.mubr.msk.f32.gmra.mxu1 %vm503_vm0, %v9853_v60 }
 0x8b9   : > { %8850 = vmatprep.mubr.msk.f32.mxu1 %vm9547_vm1, %v13241_v3 }
 0x8bc   : > { %8851 = vmatmul.mubr.msk.f32.gmra.mxu1 %vm503_vm0, %v9864_v63 }
 0x8bd   : > { %8853 = vmatprep.mubr.msk.f32.mxu1 %vm9547_vm1, %v13241_v3 }
 0x8c0   : > { %8854 = vmatmul.mubr.msk.f32.gmra.mxu1 %vm503_vm0, %v9875_v4 }
 0x8c1   : > { %8856 = vmatprep.mubr.msk.f32.mxu1 %vm9547_vm1, %v13241_v3 }
 0x8c4   : > { %8857 = vmatmul.mubr.msk.f32.gmra.mxu1 %vm503_vm0, %v9886_v9 }
 0x8c5   : > { %8859 = vmatprep.mubr.msk.f32.mxu1 %vm9547_vm1, %v13241_v3 }
 0x8c8   : > { %8860 = vmatmul.mubr.msk.f32.gmra.mxu1 %vm503_vm0, %v9897_v12 }
 0x8c9   : > { %8862 = vmatprep.mubr.msk.f32.mxu1 %vm9547_vm1, %v13241_v3 }
 0x8cc   : > { %8863 = vmatmul.mubr.msk.f32.gmra.mxu1 %vm503_vm0, %v9908_v15 }
 0x8cd   : > { %8865 = vmatprep.mubr.msk.f32.mxu1 %vm9547_vm1, %v13241_v3 }
 0x8d0   : > { %8866 = vmatmul.mubr.msk.f32.gmra.mxu1 %vm503_vm0, %v9919_v18 }
 0x8d1   : > { %8868 = vmatprep.mubr.msk.f32.mxu1 %vm9547_vm1, %v13241_v3 }
 0x8d4   : > { %8869 = vmatmul.mubr.msk.f32.gmra.mxu1 %vm503_vm0, %v9930_v21 }
 0x8d5   : > { %8871 = vmatprep.mubr.msk.f32.mxu1 %vm9547_vm1, %v13241_v3 }
 0x8d8   : > { %8872 = vmatmul.mubr.msk.f32.gmra.mxu1 %vm503_vm0, %v9941_v5 }
 0x8d9   : > { %8874 = vmatprep.mubr.msk.f32.mxu1 %vm9547_vm1, %v13241_v3 }
 0x8dc   : > { %8875 = vmatmul.mubr.msk.f32.gmra.mxu1 %vm503_vm0, %v9952_v26 }
 0x8dd   : > { %8877 = vmatprep.mubr.msk.f32.mxu1 %vm9547_vm1, %v13241_v3 }
 0x8e0   : > { %8878 = vmatmul.mubr.msk.f32.gmra.mxu1 %vm503_vm0, %v9963_v28 }
 0x8e1   : > { %8880 = vmatprep.mubr.msk.f32.mxu1 %vm9547_vm1, %v13241_v3 }
 0x8e4   : > { %8881 = vmatmul.mubr.msk.f32.gmra.mxu1 %vm503_vm0, %v9974_v31 }
 0x8e5   : > { %8883 = vmatprep.mubr.msk.f32.mxu1 %vm9547_vm1, %v13241_v3 }
 0x8e8   : > { %8884 = vmatmul.mubr.msk.f32.gmra.mxu1 %vm503_vm0, %v9985_v34 }
 0x8e9   : > { %8886 = vmatprep.mubr.msk.f32.mxu1 %vm9547_vm1, %v13241_v3 }
 0x8ec   : > { %8887 = vmatmul.mubr.msk.f32.gmra.mxu1 %vm503_vm0, %v9996_v37 }
 0x8ed   : > { %8889 = vmatprep.mubr.msk.f32.mxu1 %vm9547_vm1, %v13241_v3 }
 0x8f0   : > { %8890 = vmatmul.mubr.msk.f32.gmra.mxu1 %vm503_vm0, %v10007_v40 }
 0x8f1   : > { %8892 = vmatprep.mubr.msk.f32.mxu1 %vm9547_vm1, %v13241_v3 }
 0x8f4   : > { %8893 = vmatmul.mubr.msk.f32.gmra.mxu1 %vm503_vm0, %v10018_v43 }
 0x8f5   : > { %8895 = vmatprep.mubr.msk.f32.mxu1 %vm9547_vm1, %v13241_v3 }
 0x8f8   : > { %8896 = vmatmul.mubr.msk.f32.gmra.mxu1 %vm503_vm0, %v10029_v48 }
 0x8f9   : > { %8898 = vmatprep.mubr.msk.f32.mxu1 %vm9547_vm1, %v13241_v3 }
 0x8fc   : > { %8899 = vmatmul.mubr.msk.f32.gmra.mxu1 %vm503_vm0, %v10040_v56 }
 0x8fd   : > { %8901 = vmatprep.mubr.msk.f32.mxu1 %vm9547_vm1, %v13241_v3 }
 0x900   : > { %8902 = vmatmul.mubr.msk.f32.gmra.mxu1 %vm503_vm0, %v10051_v1 }
 0x901   : > { %8904 = vmatprep.mubr.msk.f32.mxu1 %vm9547_vm1, %v13241_v3 }
 0x904   : > { %8905 = vmatmul.mubr.msk.f32.gmra.mxu1 %vm503_vm0, %v10062_v14 }
 0x905   : > { %8907 = vmatprep.mubr.msk.f32.mxu1 %vm9547_vm1, %v13241_v3 }
 0x908   : > { %8908 = vmatmul.mubr.msk.f32.gmra.mxu1 %vm503_vm0, %v10073_v23 }
 0x909   : > { %8910 = vmatprep.mubr.msk.f32.mxu1 %vm9547_vm1, %v13241_v3 }
 0x90c   : > { %8911 = vmatmul.mubr.msk.f32.gmra.mxu1 %vm503_vm0, %v10084_v30  ;;  %v10144_v30 = vld [vmem:[%s9792_s26 + $0xf8] sm:$0xff] }
 0x90d   : > { %8913 = vmatprep.mubr.msk.f32.mxu1 %vm9547_vm1, %v13241_v3 }
 0x910   : > { %8914 = vmatmul.mubr.msk.f32.gmra.mxu1 %vm503_vm0, %v10095_v39  ;;  %v10133_v39 = vld [vmem:[%s9792_s26 + $0xf0] sm:$0xff] }
 0x911   : > { %8916 = vmatprep.mubr.msk.f32.mxu1 %vm9547_vm1, %v13241_v3 }
 0x914   : > { %8917 = vmatmul.mubr.msk.f32.gmra.mxu1 %vm503_vm0, %v10106_v53  ;;  %v459_v53 = vld [vmem:[%s9797_s21 + $0xf0] sm:$0xff] }
 0x915   : > { %8919 = vmatprep.mubr.msk.f32.mxu1 %vm9547_vm1, %v13241_v3  ;;  %v10139_v11 = vadd.f32 %v459_v53, %v10133_v39 }
 0x917   : > { %13453 = vst [vmem:[#allocation33_spill] sm:$0xff] %v10139_v11 }
 0x918   : > { %8920 = vmatmul.mubr.msk.f32.gmra.mxu1 %vm503_vm0, %v10117_v20  ;;  %v460_v20 = vld [vmem:[%s9797_s21 + $0xf8] sm:$0xff]  ;;  %s13538_s21 = smov 40  }
 0x919   : > { %8922 = vmatprep.mubr.msk.f32.mxu1 %vm9547_vm1, %v13241_v3  ;;  %v10150_v36 = vadd.f32 %v460_v20, %v10144_v30 }
 0x91b   : > { %13454 = vst [vmem:[#allocation34_spill] sm:$0xff] %v10150_v36 }
 0x91c   : > { %8923 = vmatmul.mubr.msk.f32.gmra.mxu1 %vm503_vm0, %v10128_v47 }
 0x91d   : > { %8925 = vmatprep.mubr.msk.f32.mxu1 %vm9547_vm1, %v13241_v3 }
 0x920   : > { %8926 = vmatmul.mubr.msk.f32.gmra.mxu1 %vm503_vm0, %v10139_v11 }
 0x921   : > { %8928 = vmatprep.mubr.msk.f32.mxu1 %vm9547_vm1, %v13241_v3 }
 0x924   : > { %8929 = vmatmul.mubr.msk.f32.gmra.mxu1 %vm503_vm0, %v10150_v36 }
 0x925   : > { %8931 = vmatprep.mubr.msk.f32.mxu1 %vm9547_vm1, %v13241_v3 }
 0x928   : > { %8932 = vmatmul.mubr.msk.f32.gmra.mxu1 %vm503_vm0, %v9802_v46  ;;  %v10221_v46 = vld [vmem:[%s13217_s5 + $0x1] ss:$0 sm:$0xff] }
 0x929   : > { %8934 = vmatprep.mubr.msk.f32.mxu1 %vm9547_vm1, %v13241_v3 }
 0x92c   : > { %8935 = vmatmul.mubr.msk.f32.gmra.mxu1 %vm503_vm0, %v9814_v50 }
 0x92d   : > { %8937 = vmatprep.mubr.msk.f32.mxu1 %vm9547_vm1, %v13241_v3 }
 0x930   : > { %8938 = vmatmul.mubr.msk.f32.gmra.mxu1 %vm503_vm0, %v9825_v2 }
 0x931   : > { %8940 = vmatprep.mubr.msk.f32.mxu1 %vm9547_vm1, %v13241_v3 }
 0x934   : > { %8941 = vmatmul.mubr.msk.f32.gmra.mxu1 %vm503_vm0, %v9836_v55 }
 0x935   : > { %8943 = vmatprep.mubr.msk.f32.mxu1 %vm9547_vm1, %v13241_v3 }
 0x938   : > { %8944 = vmatmul.mubr.msk.f32.gmra.mxu1 %vm503_vm0, %v9847_v58 }
 0x939   : > { %8946 = vmatprep.mubr.msk.f32.mxu1 %vm9547_vm1, %v13241_v3 }
 0x93c   : > { %8947 = vmatmul.mubr.msk.f32.gmra.mxu1 %vm503_vm0, %v9858_v61 }
 0x93d   : > { %8949 = vmatprep.mubr.msk.f32.mxu1 %vm9547_vm1, %v13241_v3 }
 0x940   : > { %8950 = vmatmul.mubr.msk.f32.gmra.mxu1 %vm503_vm0, %v9869_v0 }
 0x941   : > { %8952 = vmatprep.mubr.msk.f32.mxu1 %vm9547_vm1, %v13241_v3 }
 0x944   : > { %8953 = vmatmul.mubr.msk.f32.gmra.mxu1 %vm503_vm0, %v9880_v7 }
 0x945   : > { %8955 = vmatprep.mubr.msk.f32.mxu1 %vm9547_vm1, %v13241_v3 }
 0x948   : > { %8956 = vmatmul.mubr.msk.f32.gmra.mxu1 %vm503_vm0, %v9891_v10 }
 0x949   : > { %8958 = vmatprep.mubr.msk.f32.mxu1 %vm9547_vm1, %v13241_v3 }
 0x94c   : > { %8959 = vmatmul.mubr.msk.f32.gmra.mxu1 %vm503_vm0, %v9902_v13 }
 0x94d   : > { %8961 = vmatprep.mubr.msk.f32.mxu1 %vm9547_vm1, %v13241_v3 }
 0x950   : > { %8962 = vmatmul.mubr.msk.f32.gmra.mxu1 %vm503_vm0, %v9913_v16 }
 0x951   : > { %8964 = vmatprep.mubr.msk.f32.mxu1 %vm9547_vm1, %v13241_v3 }
 0x954   : > { %8965 = vmatmul.mubr.msk.f32.gmra.mxu1 %vm503_vm0, %v9924_v19 }
 0x955   : > { %8967 = vmatprep.mubr.msk.f32.mxu1 %vm9547_vm1, %v13241_v3 }
 0x958   : > { %8968 = vmatmul.mubr.msk.f32.gmra.mxu1 %vm503_vm0, %v9935_v22 }
 0x959   : > { %8970 = vmatprep.mubr.msk.f32.mxu1 %vm9547_vm1, %v13241_v3 }
 0x95c   : > { %8971 = vmatmul.mubr.msk.f32.gmra.mxu1 %vm503_vm0, %v9946_v24 }
 0x95d   : > { %8973 = vmatprep.mubr.msk.f32.mxu1 %vm9547_vm1, %v13241_v3 }
 0x960   : > { %8974 = vmatmul.mubr.msk.f32.gmra.mxu1 %vm503_vm0, %v9957_v6 }
 0x961   : > { %8976 = vmatprep.mubr.msk.f32.mxu1 %vm9547_vm1, %v13241_v3 }
 0x964   : > { %v1666_v50 = vpop.f32.mrf.mxu1  ;;  %8977 = vmatmul.mubr.msk.f32.gmra.mxu1 %vm503_vm0, %v9968_v29 }
 0x965   : > { %v1996_v2 = vadd.f32 %v10221_v46, %v1666_v50  ;;  %8979 = vmatprep.mubr.msk.f32.mxu1 %vm9547_vm1, %v13241_v3 }
 0x966   : > { %v8834_v55 = vpop.f32.mrf.mxu1 }
 0x967   : > { %v10228_v58 = vmul.f32 0.35355338, %v1996_v2 }
 0x968   : > { %v10230_v61 = vpop.f32.mrf.mxu1  ;;  %8980 = vmatmul.mubr.msk.f32.gmra.mxu1 %vm503_vm0, %v9979_v32 }
 0x969   : > { %8108 = vmatprep.mubr.msk.f32.mxu0 %vm597_vm2, %v10228_v58  ;;  %8982 = vmatprep.mubr.msk.f32.mxu1 %vm9547_vm1, %v13241_v3 }
 0x96a   : > { %v8837_v0 = vpop.f32.mrf.mxu1 }
 0x96c   : > { %v10238_v7 = vpop.f32.mrf.mxu1  ;;  %8983 = vmatmul.mubr.msk.f32.gmra.mxu1 %vm503_vm0, %v9990_v35 }
 0x96d   : > { %8985 = vmatprep.mubr.msk.f32.mxu1 %vm9547_vm1, %v13241_v3 }
 0x96e   : > { %v8840_v10 = vpop.f32.mrf.mxu1 }
 0x970   : > { %v10244_v13 = vpop.f32.mrf.mxu1  ;;  %8986 = vmatmul.mubr.msk.f32.gmra.mxu1 %vm503_vm0, %v10001_v38 }
 0x971   : > { %8988 = vmatprep.mubr.msk.f32.mxu1 %vm9547_vm1, %v13241_v3 }
 0x972   : > { %v8843_v16 = vpop.f32.mrf.mxu1 }
 0x974   : > { %v10250_v19 = vpop.f32.mrf.mxu1  ;;  %8989 = vmatmul.mubr.msk.f32.gmra.mxu1 %vm503_vm0, %v10012_v41 }
 0x975   : > { %8991 = vmatprep.mubr.msk.f32.mxu1 %vm9547_vm1, %v13241_v3 }
 0x976   : > { %v8846_v22 = vpop.f32.mrf.mxu1 }
 0x978   : > { %v10256_v24 = vpop.f32.mrf.mxu1  ;;  %8992 = vmatmul.mubr.msk.f32.gmra.mxu1 %vm503_vm0, %v10023_v44 }
 0x979   : > { %8994 = vmatprep.mubr.msk.f32.mxu1 %vm9547_vm1, %v13241_v3 }
 0x97a   : > { %v8849_v6 = vpop.f32.mrf.mxu1 }
 0x97c   : > { %v10262_v29 = vpop.f32.mrf.mxu1  ;;  %8995 = vmatmul.mubr.msk.f32.gmra.mxu1 %vm503_vm0, %v10034_v51 }
 0x97d   : > { %8997 = vmatprep.mubr.msk.f32.mxu1 %vm9547_vm1, %v13241_v3 }
 0x97e   : > { %v8852_v32 = vpop.f32.mrf.mxu1 }
 0x980   : > { %v10268_v35 = vpop.f32.mrf.mxu1  ;;  %8998 = vmatmul.mubr.msk.f32.gmra.mxu1 %vm503_vm0, %v10045_v59 }
 0x981   : > { %9000 = vmatprep.mubr.msk.f32.mxu1 %vm9547_vm1, %v13241_v3 }
 0x982   : > { %v8855_v38 = vpop.f32.mrf.mxu1 }
 0x984   : > { %v10274_v41 = vpop.f32.mrf.mxu1  ;;  %9001 = vmatmul.mubr.msk.f32.gmra.mxu1 %vm503_vm0, %v10056_v8 }
 0x985   : > { %9003 = vmatprep.mubr.msk.f32.mxu1 %vm9547_vm1, %v13241_v3  ;;  %v10441_v40 = vadd.f32 %v10221_v46, %v10274_v41 }
 0x986   : > { %v8858_v44 = vpop.f32.mrf.mxu1 }
 0x987   : > { %13461 = vst [vmem:[#allocation41_spill] sm:$0xff] %v10441_v40 }
 0x988   : > { %v10280_v51 = vpop.f32.mrf.mxu1  ;;  %9004 = vmatmul.mubr.msk.f32.gmra.mxu1 %vm503_vm0, %v10067_v17 }
 0x989   : > { %9006 = vmatprep.mubr.msk.f32.mxu1 %vm9547_vm1, %v13241_v3  ;;  %v10428_v43 = vadd.f32 %v10221_v46, %v10280_v51 }
 0x98a   : > { %v8861_v59 = vpop.f32.mrf.mxu1 }
 0x98b   : > { %13460 = vst [vmem:[#allocation40_spill] sm:$0xff] %v10428_v43 }
 0x98c   : > { %v10286_v53 = vpop.f32.mrf.mxu1  ;;  %9007 = vmatmul.mubr.msk.f32.gmra.mxu1 %vm503_vm0, %v10078_v25 }
 0x98d   : > { %9009 = vmatprep.mubr.msk.f32.mxu1 %vm9547_vm1, %v13241_v3 }
 0x98e   : > { %v8864_v8 = vpop.f32.mrf.mxu1 }
 0x990   : > { %v10292_v20 = vpop.f32.mrf.mxu1  ;;  %9010 = vmatmul.mubr.msk.f32.gmra.mxu1 %vm503_vm0, %v10089_v33 }
 0x991   : > { %9012 = vmatprep.mubr.msk.f32.mxu1 %vm9547_vm1, %v13241_v3 }
 0x992   : > { %v8867_v17 = vpop.f32.mrf.mxu1 }
 0x994   : > { %v10298_v50 = vpop.f32.mrf.mxu1  ;;  %9013 = vmatmul.mubr.msk.f32.gmra.mxu1 %vm503_vm0, %v10100_v42 }
 0x995   : > { %9015 = vmatprep.mubr.msk.f32.mxu1 %vm9547_vm1, %v13241_v3 }
 0x996   : > { %v8870_v25 = vpop.f32.mrf.mxu1 }
 0x998   : > { %v10304_v2 = vpop.f32.mrf.mxu1  ;;  %9016 = vmatmul.mubr.msk.f32.gmra.mxu1 %vm503_vm0, %v10111_v62 }
 0x999   : > { %9018 = vmatprep.mubr.msk.f32.mxu1 %vm9547_vm1, %v13241_v3 }
 0x99a   : > { %v8873_v33 = vpop.f32.mrf.mxu1 }
 0x99c   : > { %v1736_v55 = vpop.f32.mrf.mxu1  ;;  %9019 = vmatmul.mubr.msk.f32.gmra.mxu1 %vm503_vm0, %v10122_v27 }
 0x99d   : > { %9021 = vmatprep.mubr.msk.f32.mxu1 %vm9547_vm1, %v13241_v3 }
 0x99e   : > { %v8876_v42 = vpop.f32.mrf.mxu1 }
 0x9a0   : > { %v1741_v0 = vpop.f32.mrf.mxu1  ;;  %9022 = vmatmul.mubr.msk.f32.gmra.mxu1 %vm503_vm0, %v10133_v39 }
 0x9a1   : > { %9024 = vmatprep.mubr.msk.f32.mxu1 %vm9547_vm1, %v13241_v3 }
 0x9a2   : > { %v8879_v62 = vpop.f32.mrf.mxu1 }
 0x9a4   : > { %v1746_v10 = vpop.f32.mrf.mxu1  ;;  %9025 = vmatmul.mubr.msk.f32.gmra.mxu1 %vm503_vm0, %v10144_v30 }
 0x9a5   : > { %v10321_v16 = vadd.f32 %v10221_v46, %v1746_v10 }
 0x9a6   : > { %v8882_v27 = vpop.f32.mrf.mxu1 }
 0x9a7   : > { %2135 = vrot.lane.b32.xlu1 %v10321_v16, %s13343_s28 }
 0x9a8   : > { %v10325_v22 = vpop.f32.mrf.mxu1 }
 0x9aa   : > { %v8885_v6 = vpop.f32.mrf.mxu1 }
 0x9ac   : > { %v10327_v32 = vpop.f32.mrf.mxu1 }
 0x9ae   : > { %v8888_v39 = vpop.f32.mrf.mxu1 }
 0x9b0   : > { %v10329_v38 = vpop.f32.mrf.mxu1 }
 0x9b2   : > { %v8891_v44 = vpop.f32.mrf.mxu1 }
 0x9b4   : > { %v10331_v59 = vpop.f32.mrf.mxu1 }
 0x9b6   : > { %v8894_v8 = vpop.f32.mrf.mxu1 }
 0x9b8   : > { %v10333_v30 = vpop.f32.mrf.mxu1 }
 0x9b9   : > { %v10459_v41 = vadd.f32 %v10221_v46, %v10333_v30 }
 0x9ba   : > { %v8897_v17 = vpop.f32.mrf.mxu1 }
 0x9bc   : > { %v10335_v25 = vpop.f32.mrf.mxu1 }
 0x9bd   : > { %v10445_v51 = vadd.f32 %v10221_v46, %v10335_v25 }
 0x9be   : > { %v8900_v33 = vpop.f32.mrf.mxu1 }
 0x9c0   : > { %v1781_v42 = vpop.f32.mrf.mxu1 }
 0x9c2   : > { %v8903_v62 = vpop.f32.mrf.mxu1 }
 0x9c4   : > { %v1786_v10 = vpop.f32.mrf.mxu1 }
 0x9c6   : > { %v8906_v27 = vpop.f32.mrf.mxu1 }
 0x9c8   : > { %v1791_v6 = vpop.f32.mrf.mxu1 }
 0x9ca   : > { %v8909_v3 = vpop.f32.mrf.mxu1 }
 0x9cc   : > { %v1796_v36 = vpop.f32.mrf.mxu1 }
 0x9ce   : > { %v8912_v39 = vpop.f32.mrf.mxu1 }
 0x9d0   : > { %v1801_v11 = vpop.f32.mrf.mxu1 }
 0x9d2   : > { %v8915_v47 = vpop.f32.mrf.mxu1 }
 0x9d4   : > { %v1806_v44 = vpop.f32.mrf.mxu1 }
 0x9d5   : > { %v10366_v39 = vadd.f32 %v10221_v46, %v1806_v44 }
 0x9d6   : > { %v8918_v23 = vpop.f32.mrf.mxu1 }
 0x9d8   : > { %v1811_v14 = vpop.f32.mrf.mxu1 }
 0x9d9   : > { %v10356_v27 = vadd.f32 %v10221_v46, %v1811_v14 }
 0x9da   : > { %v8921_v8 = vpop.f32.mrf.mxu1 }
 0x9dc   : > { %v1816_v1 = vpop.f32.mrf.mxu1 }
 0x9dd   : > { %v10343_v3 = vadd.f32 %v10221_v46, %v1816_v1  ;;  %v10363_v1 = vadd.f32 %v10221_v46, %v1736_v55 }
 0x9de   : > { %v8924_v56 = vpop.f32.mrf.mxu1 }
 0x9df   : > { %v10353_v56 = vadd.f32 %v10221_v46, %v1741_v0  ;;  %13455 = vst [vmem:[#allocation35_spill] sm:$0xff] %v10363_v1  ;;  %v10376_v0 = vadd.f32 %v10221_v46, %v10304_v2 }
 0x9e0   : > { %v1821_v17 = vpop.f32.mrf.mxu1 }
 0x9e1   : > { %v10338_v48 = vadd.f32 %v10221_v46, %v1821_v17  ;;  %13456 = vst [vmem:[#allocation36_spill] sm:$0xff] %v10376_v0  ;;  %v10379_v17 = vadd.f32 %v10221_v46, %v1801_v11 }
 0x9e2   : > { %v8927_v33 = vpop.f32.mrf.mxu1 }
 0x9e3   : > { %2165 = vrot.lane.b32.xlu1 %v10338_v48, %s13343_s28  ;;  %v10389_v33 = vadd.f32 %v10221_v46, %v10298_v50 }
 0x9e4   : > { %v1826_v62 = vpop.f32.mrf.mxu1 }
 0x9e5   : > { %v10346_v47 = vadd.f32 %v10221_v46, %v1826_v62  ;;  %13457 = vst [vmem:[#allocation37_spill] sm:$0xff] %v10389_v33  ;;  %v10392_v62 = vadd.f32 %v10221_v46, %v1796_v36 }
 0x9e6   : > { %v8930_v23 = vpop.f32.mrf.mxu1 }
 0x9e7   : > { %2163 = vrot.lane.b32.xlu1 %v10343_v3, %s13343_s28  ;;  %2167 = vrot.lane.b32.xlu0 %v10346_v47, %s13343_s28  ;;  %v10402_v23 = vadd.f32 %v10221_v46, %v10292_v20 }
 0x9e8   : > { %v10368_v8 = vpop.f32.mrf.mxu1 }
 0x9e9   : > { %13458 = vst [vmem:[#allocation38_spill] sm:$0xff] %v10402_v23 }
 0x9ea   : > { %v8933_v14 = vpop.f32.mrf.mxu1 }
 0x9eb   : > { %2161 = vrot.lane.b32.xlu1 %v10356_v27, %s13343_s28  ;;  %2133 = vrot.lane.b32.xlu0 %v10353_v56, %s13343_s28  ;;  %v10405_v14 = vadd.f32 %v10221_v46, %v1791_v6 }
 0x9ec   : > { %v10381_v55 = vpop.f32.mrf.mxu1 }
 0x9ee   : > { %v8936_v44 = vpop.f32.mrf.mxu1 }
 0x9ef   : > { %2159 = vrot.lane.b32.xlu1 %v10366_v39, %s13343_s28  ;;  %2131 = vrot.lane.b32.xlu0 %v10363_v1, %s13343_s28  ;;  %v10415_v44 = vadd.f32 %v10221_v46, %v10286_v53 }
 0x9f0   : > { %v10394_v2 = vpop.f32.mrf.mxu1 }
 0x9f1   : > { %13459 = vst [vmem:[#allocation39_spill] sm:$0xff] %v10415_v44 }
 0x9f2   : > { %v8939_v11 = vpop.f32.mrf.mxu1 }
 0x9f3   : > { %2157 = vrot.lane.b32.xlu1 %v10379_v17, %s13343_s28  ;;  %2129 = vrot.lane.b32.xlu0 %v10376_v0, %s13343_s28  ;;  %v10418_v11 = vadd.f32 %v10221_v46, %v1786_v10 }
 0x9f4   : > { %v10407_v50 = vpop.f32.mrf.mxu1 }
 0x9f6   : > { %v8942_v36 = vpop.f32.mrf.mxu1 }
 0x9f7   : > { %2155 = vrot.lane.b32.xlu1 %v10392_v62, %s13343_s28  ;;  %2127 = vrot.lane.b32.xlu0 %v10389_v33, %s13343_s28  ;;  %v10431_v36 = vadd.f32 %v10221_v46, %v1781_v42 }
 0x9f8   : > { %v10420_v20 = vpop.f32.mrf.mxu1 }
 0x9fa   : > { %v8945_v6 = vpop.f32.mrf.mxu1 }
 0x9fb   : > { %2153 = vrot.lane.b32.xlu1 %v10405_v14, %s13343_s28  ;;  %2125 = vrot.lane.b32.xlu0 %v10402_v23, %s13343_s28 }
 0x9fc   : > { %v10433_v53 = vpop.f32.mrf.mxu1 }
 0x9fe   : > { %v8948_v10 = vpop.f32.mrf.mxu1 }
 0x9ff   : > { %2151 = vrot.lane.b32.xlu1 %v10418_v11, %s13343_s28  ;;  %2123 = vrot.lane.b32.xlu0 %v10415_v44, %s13343_s28  ;;  %v10455_v10 = vadd.f32 %v10221_v46, %v10268_v35  ;;  %v10473_v35 = vadd.f32 %v10221_v46, %v10331_v59 }
 0xa00   : > { %v10447_v6 = vpop.f32.mrf.mxu1 }
 0xa01   : > { %13462 = vst [vmem:[#allocation42_spill] sm:$0xff] %v10455_v10 }
 0xa02   : > { %v8951_v42 = vpop.f32.mrf.mxu1 }
 0xa03   : > { %2149 = vrot.lane.b32.xlu1 %v10431_v36, %s13343_s28  ;;  %2121 = vrot.lane.b32.xlu0 %v10428_v43, %s13343_s28  ;;  %v10469_v42 = vadd.f32 %v10221_v46, %v10262_v29  ;;  %v10487_v29 = vadd.f32 %v10221_v46, %v10329_v38 }
 0xa04   : > { %v10461_v37 = vpop.f32.mrf.mxu1 }
 0xa05   : > { %13463 = vst [vmem:[#allocation43_spill] sm:$0xff] %v10469_v42 }
 0xa06   : > { %v8954_v25 = vpop.f32.mrf.mxu1 }
 0xa07   : > { %2147 = vrot.lane.b32.xlu1 %v10445_v51, %s13343_s28  ;;  %2119 = vrot.lane.b32.xlu0 %v10441_v40, %s13343_s28  ;;  %v10483_v25 = vadd.f32 %v10221_v46, %v10256_v24  ;;  %v10501_v24 = vadd.f32 %v10221_v46, %v10327_v32 }
 0xa08   : > { %v10475_v34 = vpop.f32.mrf.mxu1 }
 0xa09   : > { %13464 = vst [vmem:[#allocation44_spill] sm:$0xff] %v10483_v25 }
 0xa0a   : > { %v8957_v30 = vpop.f32.mrf.mxu1 }
 0xa0b   : > { %2145 = vrot.lane.b32.xlu1 %v10459_v41, %s13343_s28  ;;  %2117 = vrot.lane.b32.xlu0 %v10455_v10, %s13343_s28  ;;  %v10497_v30 = vadd.f32 %v10221_v46, %v10250_v19  ;;  %v10515_v19 = vadd.f32 %v10221_v46, %v10325_v22  ;;  %v10533_v22 = vadd.f32 %v10221_v46, %v10230_v61 }
 0xa0c   : > { %v10489_v31 = vpop.f32.mrf.mxu1 }
 0xa0d   : > { %13465 = vst [vmem:[#allocation45_spill] sm:$0xff] %v10497_v30  ;;  %13468 = vst [vmem:[#allocation48_spill] sm:$0xff] %v10533_v22 }
 0xa0e   : > { %v8960_v59 = vpop.f32.mrf.mxu1 }
 0xa0f   : > { %2143 = vrot.lane.b32.xlu1 %v10473_v35, %s13343_s28  ;;  %2115 = vrot.lane.b32.xlu0 %v10469_v42, %s13343_s28  ;;  %v10511_v59 = vadd.f32 %v10221_v46, %v10244_v13 }
 0xa10   : > { %v10503_v28 = vpop.f32.mrf.mxu1 }
 0xa11   : > { %13466 = vst [vmem:[#allocation46_spill] sm:$0xff] %v10511_v59 }
 0xa12   : > { %v8963_v38 = vpop.f32.mrf.mxu1 }
 0xa13   : > { %2141 = vrot.lane.b32.xlu1 %v10487_v29, %s13343_s28  ;;  %2113 = vrot.lane.b32.xlu0 %v10483_v25, %s13343_s28  ;;  %v10525_v38 = vadd.f32 %v10221_v46, %v10238_v7 }
 0xa14   : > { %v10517_v26 = vpop.f32.mrf.mxu1 }
 0xa15   : > { %13467 = vst [vmem:[#allocation47_spill] sm:$0xff] %v10525_v38 }
 0xa16   : > { %v8966_v32 = vpop.f32.mrf.mxu1 }
 0xa17   : > { %2139 = vrot.lane.b32.xlu1 %v10501_v24, %s13343_s28  ;;  %2111 = vrot.lane.b32.xlu0 %v10497_v30, %s13343_s28 }
 0xa18   : > { %v10527_v5 = vpop.f32.mrf.mxu1 }
 0xa1a   : > { %v8969_v13 = vpop.f32.mrf.mxu1 }
 0xa1b   : > { %2137 = vrot.lane.b32.xlu1 %v10515_v19, %s13343_s28  ;;  %2109 = vrot.lane.b32.xlu0 %v10511_v59, %s13343_s28  ;;  %v2136_v59 = vpop.permute.xlu1 %2135 }
 0xa1c   : > { %v10535_v21 = vpop.f32.mrf.mxu1 }
 0xa1e   : > { %v8972_v32 = vpop.f32.mrf.mxu1 }
 0xa1f   : > { %2107 = vrot.lane.b32.xlu0 %v10525_v38, %s13343_s28 }
 0xa20   : > { %v10539_v18 = vpop.f32.mrf.mxu1 }
 0xa22   : > { %v8975_v7 = vpop.f32.mrf.mxu1 }
 0xa23   : > { %2105 = vrot.lane.b32.xlu0 %v10533_v22, %s13343_s28  ;;  %s13557_s28 = smov 56  }
 0xa24   : > { %v1906_v15 = vpop.f32.mrf.mxu1 }
 0xa25   : > { %v10584_v0 = vadd.f32 %v10221_v46, %v1906_v15 }
 0xa26   : > { %v8978_v12 = vpop.f32.mrf.mxu1 }
 0xa27   : > { %13470 = vst [vmem:[#allocation50_spill] sm:$0xff] %v10584_v0 }
 0xa28   : > { %v10541_v9 = vpop.f32.mrf.mxu1 }
 0xa2a   : > { %v8981_v4 = vpop.f32.mrf.mxu1 }
 0xa2c   : > { %v10543_v63 = vpop.f32.mrf.mxu1 }
 0xa2e   : > { %v8984_v13 = vpop.f32.mrf.mxu1 }
 0xa30   : > { %v10545_v60 = vpop.f32.mrf.mxu1 }
 0xa32   : > { %v8987_v61 = vpop.f32.mrf.mxu1 }
 0xa34   : > { %v10547_v57 = vpop.f32.mrf.mxu1 }
 0xa36   : > { %v8990_v54 = vpop.f32.mrf.mxu1 }
 0xa38   : > { %v10549_v52 = vpop.f32.mrf.mxu1 }
 0xa3a   : > { %v8993_v32 = vpop.f32.mrf.mxu1 }
 0xa3c   : > { %v10551_v49 = vpop.f32.mrf.mxu1 }
 0xa3e   : > { %v8996_v7 = vpop.f32.mrf.mxu1 }
 0xa40   : > { %v10553_v45 = vpop.f32.mrf.mxu1 }
 0xa42   : > { %v8999_v12 = vpop.f32.mrf.mxu1 }
 0xa44   : > { %v10555_v22 = vpop.f32.mrf.mxu1 }
 0xa46   : > { %v9002_v4 = vpop.f32.mrf.mxu1 }
 0xa48   : > { %v10557_v38 = vpop.f32.mrf.mxu1 }
 0xa4a   : > { %v9005_v13 = vpop.f32.mrf.mxu1 }
 0xa4c   : > { %v10559_v61 = vpop.f32.mrf.mxu1 }
 0xa4e   : > { %v9008_v30 = vpop.f32.mrf.mxu1 }
 0xa50   : > { %v10561_v25 = vpop.f32.mrf.mxu1 }
 0xa52   : > { %v9011_v32 = vpop.f32.mrf.mxu1 }
 0xa54   : > { %v10564_v7 = vpop.f32.mrf.mxu1 }
 0xa55   : > { %v2166_v54 = vpop.permute.xlu1 %2165 }
 0xa56   : > { %v9014_v12 = vpop.f32.mrf.mxu1 }
 0xa58   : > { %v10568_v40 = vpop.f32.mrf.mxu1 }
 0xa59   : > { %v2164_v42 = vpop.permute.xlu1 %2163  ;;  %v2168_v10 = vpop.permute.xlu0 %2167 }
 0xa5a   : > { %8076 = vmatprep.subr.msk.mxu0 %vm597_vm2, %v2168_v10  ;;  %v9017_v30 = vpop.f32.mrf.mxu1 }
 0xa5b   : > { %8077 = vmatpush3.xpose.msk.msra.mxu0 %vm597_vm2, %v2136_v59 }
 0xa5c   : > { %8078 = vmatprep.subr.msk.mxu0 %vm597_vm2, %v2166_v54  ;;  %v10572_v44 = vpop.f32.mrf.mxu1 }
 0xa5d   : > { %v2162_v4 = vpop.permute.xlu1 %2161  ;;  %v2134_v13 = vpop.permute.xlu0 %2133 }
 0xa5e   : > { %v9020_v10 = vpop.f32.mrf.mxu1 }
 0xa5f   : > { %8079 = vmatpush3.xpose.msk.msra.mxu0 %vm597_vm2, %v2134_v13 }
 0xa60   : > { %8080 = vmatprep.subr.msk.mxu0 %vm597_vm2, %v2164_v42  ;;  %v1981_v12 = vpop.f32.mrf.mxu1 }
 0xa61   : > { %v2160_v32 = vpop.permute.xlu1 %2159  ;;  %v2132_v43 = vpop.permute.xlu0 %2131 }
 0xa62   : > { %v9023_v13 = vpop.f32.mrf.mxu1 }
 0xa63   : > { %8081 = vmatpush3.xpose.msk.msra.mxu0 %vm597_vm2, %v2132_v43  ;;  %v10591_v13 = vadd.f32 %v10221_v46, %v1981_v12 }
 0xa64   : > { %8082 = vmatprep.subr.msk.mxu0 %vm597_vm2, %v2162_v4  ;;  %v1986_v30 = vpop.f32.mrf.mxu1 }
 0xa65   : > { %v2158_v59 = vpop.permute.xlu1 %2157  ;;  %v2130_v54 = vpop.permute.xlu0 %2129  ;;  %v10580_v33 = vadd.f32 %v10221_v46, %v1986_v30  ;;  %13471 = vst [vmem:[#allocation51_spill] sm:$0xff] %v10591_v13  ;;  %v10607_v30 = vadd.f32 %v10221_v46, %v10535_v21 }
 0xa66   : > { %v9026_v43 = vpop.f32.mrf.mxu1 }
 0xa67   : > { %8083 = vmatpush3.xpose.msk.msra.mxu0 %vm597_vm2, %v2130_v54  ;;  %13469 = vst [vmem:[#allocation49_spill] sm:$0xff] %v10580_v33  ;;  %2416 = vrot.lane.b32.xlu0 %v10580_v33, %s13347_s27  ;;  %13473 = vst [vmem:[#allocation53_spill] sm:$0xff] %v10607_v30 }
 0xa68   : > { %8084 = vmatprep.subr.msk.mxu0 %vm597_vm2, %v2160_v32 }
 0xa69   : > { %v2156_v23 = vpop.permute.xlu1 %2155  ;;  %v2128_v42 = vpop.permute.xlu0 %2127 }
 0xa6b   : > { %8085 = vmatpush3.xpose.msk.msra.mxu0 %vm597_vm2, %v2128_v42  ;;  %2384 = vrot.lane.b32.xlu0 %v10584_v0, %s13347_s27  ;;  %v10599_v42 = vadd.f32 %v10221_v46, %v10539_v18 }
 0xa6c   : > { %8086 = vmatprep.subr.msk.mxu0 %vm597_vm2, %v2158_v59 }
 0xa6d   : > { %v2154_v4 = vpop.permute.xlu1 %2153  ;;  %v2126_v10 = vpop.permute.xlu0 %2125  ;;  %13472 = vst [vmem:[#allocation52_spill] sm:$0xff] %v10599_v42 }
 0xa6f   : > { %8087 = vmatpush3.xpose.msk.msra.mxu0 %vm597_vm2, %v2126_v10  ;;  %2414 = vrot.lane.b32.xlu0 %v10591_v13, %s13347_s27 }
 0xa70   : > { %8088 = vmatprep.subr.msk.mxu0 %vm597_vm2, %v2156_v23 }
 0xa71   : > { %v2152_v32 = vpop.permute.xlu1 %2151  ;;  %v2124_v54 = vpop.permute.xlu0 %2123 }
 0xa73   : > { %8089 = vmatpush3.xpose.msk.msra.mxu0 %vm597_vm2, %v2124_v54  ;;  %2382 = vrot.lane.b32.xlu0 %v10599_v42, %s13347_s27  ;;  %v10631_v54 = vadd.f32 %v10221_v46, %v10475_v34  ;;  %v10647_v34 = vadd.f32 %v10221_v46, %v10447_v6  ;;  %v10663_v6 = vadd.f32 %v10221_v46, %v10420_v20 }
 0xa74   : > { %8090 = vmatprep.subr.msk.mxu0 %vm597_vm2, %v2154_v4  ;;  %v10615_v4 = vadd.f32 %v10221_v46, %v10503_v28  ;;  %v10678_v20 = vadd.f32 %v10221_v46, %v10394_v2 }
 0xa75   : > { %v2150_v15 = vpop.permute.xlu1 %2149  ;;  %v2122_v59 = vpop.permute.xlu0 %2121  ;;  %13476 = vst [vmem:[#allocation56_spill] sm:$0xff] %v10631_v54  ;;  %13478 = vst [vmem:[#allocation58_spill] sm:$0xff] %v10647_v34 }
 0xa76   : > { %13474 = vst [vmem:[#allocation54_spill] sm:$0xff] %v10615_v4  ;;  %13480 = vst [vmem:[#allocation60_spill] sm:$0xff] %v10663_v6 }
 0xa77   : > { %8091 = vmatpush3.xpose.msk.msra.mxu0 %vm597_vm2, %v2122_v59  ;;  %2380 = vrot.lane.b32.xlu0 %v10607_v30, %s13347_s27  ;;  %v10639_v59 = vadd.f32 %v10221_v46, %v10461_v37  ;;  %v10655_v37 = vadd.f32 %v10221_v46, %v10433_v53  ;;  %v10670_v53 = vadd.f32 %v10221_v46, %v10407_v50 }
 0xa78   : > { %8092 = vmatprep.subr.msk.mxu0 %vm597_vm2, %v2152_v32  ;;  %v10623_v32 = vadd.f32 %v10221_v46, %v10489_v31  ;;  %13482 = vst [vmem:[#allocation62_spill] sm:$0xff] %v10678_v20  ;;  %v10690_v50 = vadd.f32 %v10221_v46, %v10368_v8  ;;  %v2063_v8 = vlaneseq }
 0xa79   : > { %v2148_v23 = vpop.permute.xlu1 %2147  ;;  %v2120_v12 = vpop.permute.xlu0 %2119  ;;  %13477 = vst [vmem:[#allocation57_spill] sm:$0xff] %v10639_v59  ;;  %13479 = vst [vmem:[#allocation59_spill] sm:$0xff] %v10655_v37 }
 0xa7a   : > { %13475 = vst [vmem:[#allocation55_spill] sm:$0xff] %v10623_v32  ;;  %13481 = vst [vmem:[#allocation61_spill] sm:$0xff] %v10670_v53 }
 0xa7b   : > { %8093 = vmatpush3.xpose.msk.msra.mxu0 %vm597_vm2, %v2120_v12  ;;  %2374 = vrot.lane.b32.xlu0 %v10615_v4, %s13347_s27  ;;  %13484 = vst [vmem:[#allocation64_spill] sm:$0xff] %v10690_v50 }
 0xa7c   : > { %8094 = vmatprep.subr.msk.mxu0 %vm597_vm2, %v2150_v15 }
 0xa7d   : > { %v2146_v18 = vpop.permute.xlu1 %2145  ;;  %v2118_v43 = vpop.permute.xlu0 %2117 }
 0xa7f   : > { %8095 = vmatpush3.xpose.msk.msra.mxu0 %vm597_vm2, %v2118_v43  ;;  %2372 = vrot.lane.b32.xlu0 %v10623_v32, %s13347_s27 }
 0xa80   : > { %8096 = vmatprep.subr.msk.mxu0 %vm597_vm2, %v2148_v23 }
 0xa81   : > { %v2144_v21 = vpop.permute.xlu1 %2143  ;;  %v2116_v10 = vpop.permute.xlu0 %2115 }
 0xa83   : > { %8097 = vmatpush3.xpose.msk.msra.mxu0 %vm597_vm2, %v2116_v10  ;;  %2370 = vrot.lane.b32.xlu0 %v10631_v54, %s13347_s27  ;;  %v10684_v10 = vadd.f32 %v10221_v46, %v10381_v55 }
 0xa84   : > { %8098 = vmatprep.subr.msk.mxu0 %vm597_vm2, %v2146_v18 }
 0xa85   : > { %v2114_v28 = vpop.permute.xlu0 %2113  ;;  %v2142_v15 = vpop.permute.xlu1 %2141  ;;  %13483 = vst [vmem:[#allocation63_spill] sm:$0xff] %v10684_v10 }
 0xa87   : > { %8099 = vmatpush3.xpose.msk.msra.mxu0 %vm597_vm2, %v2114_v28  ;;  %2368 = vrot.lane.b32.xlu0 %v10639_v59, %s13347_s27 }
 0xa88   : > { %8100 = vmatprep.subr.msk.mxu0 %vm597_vm2, %v2144_v21 }
 0xa89   : > { %v2112_v31 = vpop.permute.xlu0 %2111  ;;  %v2140_v23 = vpop.permute.xlu1 %2139 }
 0xa8b   : > { %8101 = vmatpush3.xpose.msk.msra.mxu0 %vm597_vm2, %v2112_v31  ;;  %2366 = vrot.lane.b32.xlu0 %v10647_v34, %s13347_s27  ;;  %v461_v31 = vld [vmem:[%s391_s23] sm:$0x3]  ;;  %s13552_s23 = smov 96  }
 0xa8c   : > { %8102 = vmatprep.subr.msk.mxu0 %vm597_vm2, %v2142_v15 }
 0xa8d   : > { %v2110_v12 = vpop.permute.xlu0 %2109  ;;  %v2138_v43 = vpop.permute.xlu1 %2137 }
 0xa8f   : > { %8103 = vmatpush3.xpose.msk.msra.mxu0 %vm597_vm2, %v2110_v12  ;;  %2364 = vrot.lane.b32.xlu0 %v10655_v37, %s13347_s27  ;;  %v2064_v12 = vshrl.u32 %v2063_v8, 7  ;;  %v10712_v8 = vadd.f32 %v10221_v46, %v10568_v40  ;;  %v10732_v40 = vadd.f32 %v10221_v46, %v10517_v26  ;;  %v10750_v26 = vadd.f32 %v10221_v46, %v10557_v38 }
 0xa90   : > { %8104 = vmatprep.subr.msk.mxu0 %vm597_vm2, %v2140_v23  ;;  %v463_v23 = vsub.f32 1.0, %v461_v31  ;;  %v10720_v31 = vadd.f32 %v10221_v46, %v10527_v5  ;;  %v10742_v5 = vadd.f32 %v10221_v46, %v10559_v61  ;;  %v10762_v61 = vadd.f32 %v10221_v46, %v10553_v45 }
 0xa91   : > { %v2108_v18 = vpop.permute.xlu0 %2107  ;;  %v10768_v38 = vadd.f32 %v10221_v46, %v10551_v49  ;;  %v10780_v45 = vadd.f32 %v10221_v46, %v10547_v57  ;;  %v10786_v49 = vadd.f32 %v10221_v46, %v10545_v60  ;;  %v10798_v57 = vadd.f32 %v10221_v46, %v10541_v9 }
 0xa92   : > { %13486 = vst [vmem:[#allocation65_spill] sm:$0xff] %v10742_v5 }
 0xa93   : > { %8105 = vmatpush3.xpose.msk.msra.mxu0 %vm597_vm2, %v2108_v18  ;;  %2362 = vrot.lane.b32.xlu0 %v10663_v6, %s13347_s27  ;;  %v464_v18 = vmul.f32 -1e+09, %v463_v23 }
 0xa94   : > { %8106 = vmatprep.subr.msk.mxu0 %vm597_vm2, %v2138_v43  ;;  %v2065_v43 = vsub.s32 0, %v2064_v12 }
 0xa95   : > { %v2106_v21 = vpop.permute.xlu0 %2105 }
 0xa97   : > { %8107 = vmatpush3.xpose.msk.msra.mxu0 %vm597_vm2, %v2106_v21  ;;  %2360 = vrot.lane.b32.xlu0 %v10670_v53, %s13347_s27  ;;  %v2069_v21 = vsub.s32 1, %v2064_v12  ;;  %v10708_v53 = vadd.f32 %v10221_v46, %v10572_v44  ;;  %v10736_v44 = vadd.f32 %v10221_v46, %v10561_v25  ;;  %v10756_v25 = vadd.f32 %v10221_v46, %v10555_v22 }
 0xa98   : > { %v10774_v22 = vadd.f32 %v10221_v46, %v10549_v52  ;;  %v10792_v52 = vadd.f32 %v10221_v46, %v10543_v63 }
 0xa9a   : > { %8109 = vmatmul.mubr.msk.f32.vlgmr.msra.gmra.mxu0 %vm597_vm2, %v10228_v58 }
 0xa9b   : > { %2358 = vrot.lane.b32.xlu0 %v10678_v20, %s13347_s27 }
 0xa9f   : > { %2356 = vrot.lane.b32.xlu0 %v10684_v10, %s13347_s27 }
 0xaa3   : > { %2354 = vrot.lane.b32.xlu0 %v10690_v50, %s13347_s27  ;;  %v10700_v50 = vrot.slane %v464_v18, %v2065_v43 }
 0xad9   : > { %v2417_v2 = vpop.permute.xlu0 %2416 }
 0xada   : > { %8110 = vmatprep.subr.mxu0 %v2417_v2  ;;  %v10702_v2 = vrot.slane %v464_v18, %v2069_v21 }
 0xadd   : > { %v2385_v28 = vpop.permute.xlu0 %2384 }
 0xade   : > { %8111 = vmatpush3.msra.mxu0 %v2385_v28 }
 0xae1   : > { %v2415_v15 = vpop.permute.xlu0 %2414 }
 0xae2   : > { %8112 = vmatprep.subr.mxu0 %v2415_v15 }
 0xae5   : > { %v2383_v55 = vpop.permute.xlu0 %2382 }
 0xae6   : > { %8113 = vmatpush3.msra.mxu0 %v2383_v55 }
 0xae9   : > { %v2381_v60 = vpop.permute.xlu0 %2380 }
 0xaed   : > { %v2375_v18 = vpop.permute.xlu0 %2374 }
 0xaf1   : > { %v2373_v21 = vpop.permute.xlu0 %2372 }
 0xb5a   : > { %v2302_v28 = vpop.f32.mrf.mxu0 }
 0xb5b   : > { %v2303_v55 = vadd.f32 %v2302_v28, %v10700_v50 }
 0xb5c   : > { %v2304_v15 = vpop.f32.mrf.mxu0 }
 0xb5d   : > { %v2305_v10 = vadd.f32 %v2304_v15, %v10702_v2  ;;  %v2371_v15 = vpop.permute.xlu0 %2370 }
 0xb5f   : > { %v2307_v20 = vmax.f32 %v2303_v55, %v2305_v10 }
 0xb61   : > { %2308 = vmax.xlane.f32.xlu1 %v2307_v20  ;;  %v10724_v20 = vadd.f32 %v10221_v46, %v10564_v7 }
 0xb72   : > { %2412 = vrot.lane.b32.xlu1 %v10708_v53, %s13347_s27 }
 0xb76   : > { %2410 = vrot.lane.b32.xlu1 %v10712_v8, %s13347_s27 }
 0xb7a   : > { %2378 = vrot.lane.b32.xlu1 %v10720_v31, %s13347_s27 }
 0xb7e   : > { %2408 = vrot.lane.b32.xlu1 %v10724_v20, %s13347_s27 }
 0xb82   : > { %2376 = vrot.lane.b32.xlu1 %v10732_v40, %s13347_s27 }
 0xb86   : > { %2406 = vrot.lane.b32.xlu1 %v10736_v44, %s13347_s27 }
 0xb8a   : > { %2404 = vrot.lane.b32.xlu1 %v10742_v5, %s13347_s27 }
 0xb8e   : > { %2402 = vrot.lane.b32.xlu1 %v10750_v26, %s13347_s27 }
 0xb92   : > { %2400 = vrot.lane.b32.xlu1 %v10756_v25, %s13347_s27 }
 0xb96   : > { %2398 = vrot.lane.b32.xlu1 %v10762_v61, %s13347_s27 }
 0xb9a   : > { %2396 = vrot.lane.b32.xlu1 %v10768_v38, %s13347_s27 }
 0xb9e   : > { %2394 = vrot.lane.b32.xlu1 %v10774_v22, %s13347_s27 }
 0xba2   : > { %2392 = vrot.lane.b32.xlu1 %v10780_v45, %s13347_s27 }
 0xba6   : > { %2390 = vrot.lane.b32.xlu1 %v10786_v49, %s13347_s27 }
 0xbaa   : > { %2388 = vrot.lane.b32.xlu1 %v10792_v52, %s13347_s27 }
 0xbae   : > { %2386 = vrot.lane.b32.xlu1 %v10798_v57, %s13347_s27 }
 0xbb2   : > { %2584 = vrot.lane.b32.xlu1 %v10346_v47, %s13345_s29 }
 0xbb6   : > { %2582 = vrot.lane.b32.xlu1 %v10338_v48, %s13345_s29 }
 0xbba   : > { %2580 = vrot.lane.b32.xlu1 %v10343_v3, %s13345_s29 }
 0xbbe   : > { %2578 = vrot.lane.b32.xlu1 %v10356_v27, %s13345_s29 }
 0xbc2   : > { %2576 = vrot.lane.b32.xlu1 %v10366_v39, %s13345_s29 }
 0xbc6   : > { %2574 = vrot.lane.b32.xlu1 %v10379_v17, %s13345_s29 }
 0xbca   : > { %2572 = vrot.lane.b32.xlu1 %v10392_v62, %s13345_s29 }
 0xbce   : > { %2570 = vrot.lane.b32.xlu1 %v10405_v14, %s13345_s29 }
 0xbd2   : > { %2568 = vrot.lane.b32.xlu1 %v10418_v11, %s13345_s29 }
 0xbd6   : > { %2566 = vrot.lane.b32.xlu1 %v10431_v36, %s13345_s29 }
 0xbda   : > { %2564 = vrot.lane.b32.xlu1 %v10445_v51, %s13345_s29 }
 0xbde   : > { %2562 = vrot.lane.b32.xlu1 %v10459_v41, %s13345_s29 }
 0xbe2   : > { %2560 = vrot.lane.b32.xlu1 %v10473_v35, %s13345_s29 }
 0xbe6   : > { %2558 = vrot.lane.b32.xlu1 %v10487_v29, %s13345_s29 }
 0xbea   : > { %v2309_v63 = vpop.xlane.xlu1 %2308  ;;  %2556 = vrot.lane.b32.xlu1 %v10501_v24, %s13345_s29 }
 0xbeb   : > { %v2310_v9 = vsub.f32 %v2303_v55, %v2309_v63  ;;  %v2311_v46 = vsub.f32 %v2305_v10, %v2309_v63 }
 0xbed   : > { %v2312_v7 = vmul.f32 1.442695, %v2310_v9  ;;  %v2314_v23 = vmul.f32 1.442695, %v2311_v46  ;;  %v2369_v46 = vpop.permute.xlu0 %2368 }
 0xbee   : > { %2554 = vrot.lane.b32.xlu1 %v10515_v19, %s13345_s29  ;;  %v2413_v12 = vpop.permute.xlu1 %2412 }
 0xbef   : > { %9417 = vpow2.f32 %v2312_v7  ;;  %8114 = vmatprep.subr.mxu0 %v2413_v12 }
 0xbf0   : > { %9419 = vpow2.f32 %v2314_v23  ;;  %8115 = vmatpush3.msra.mxu0 %v2381_v60 }
 0xbf1   : > { %v2367_v12 = vpop.permute.xlu0 %2366 }
 0xbf2   : > { %2520 = vrot.lane.b32.xlu1 %v10228_v58, %s13339_s30  ;;  %v2411_v43 = vpop.permute.xlu1 %2410  ;;  %s13556_s30 = smov 112  }
 0xbf3   : > { %8116 = vmatprep.subr.mxu0 %v2411_v43 }
 0xbf6   : > { %v2379_v28 = vpop.permute.xlu1 %2378  ;;  %2800 = vrot.lane.b32.xlu1 %v10580_v33, %s13333_s17 }
 0xbf7   : > { %8117 = vmatpush3.msra.mxu0 %v2379_v28  ;;  %v2365_v28 = vpop.permute.xlu0 %2364 }
 0xbfa   : > { %v2409_v10 = vpop.permute.xlu1 %2408  ;;  %2768 = vrot.lane.b32.xlu1 %v10584_v0, %s13333_s17  ;;  %v13502_v0 = vld [vmem:[#allocation47_spill] sm:$0xff] }
 0xbfb   : > { %8118 = vmatprep.subr.mxu0 %v2409_v10 }
 0xbfc   : > { %v10840_v55 = vpop.eup %9417 }
 0xbfd   : > { %v10842_v60 = vpop.eup %9419 }
 0xbfe   : > { %v2377_v63 = vpop.permute.xlu1 %2376  ;;  %2798 = vrot.lane.b32.xlu1 %v10591_v13, %s13333_s17  ;;  %v2316_v9 = vadd.f32 %v10842_v60, %v10840_v55 }
 0xbff   : > { %8119 = vmatpush3.msra.mxu0 %v2377_v63  ;;  %v2363_v63 = vpop.permute.xlu0 %2362 }
 0xc00   : > { %2317 = vadd.xlane.f32.xlu0 %v2316_v9 }
 0xc02   : > { %v2407_v7 = vpop.permute.xlu1 %2406  ;;  %2766 = vrot.lane.b32.xlu1 %v10599_v42, %s13333_s17 }
 0xc03   : > { %8120 = vmatprep.subr.mxu0 %v2407_v7 }
 0xc04   : > { %8121 = vmatpush3.msra.mxu0 %v2375_v18 }
 0xc06   : > { %v2405_v23 = vpop.permute.xlu1 %2404  ;;  %2764 = vrot.lane.b32.xlu1 %v10607_v30, %s13333_s17  ;;  %v13501_v30 = vld [vmem:[#allocation46_spill] sm:$0xff] }
 0xc07   : > { %8122 = vmatprep.subr.mxu0 %v2405_v23  ;;  %v13487_v23 = vld [vmem:[#allocation36_spill] sm:$0xff] }
 0xc08   : > { %8123 = vmatpush3.msra.mxu0 %v2373_v21 }
 0xc0a   : > { %v2403_v43 = vpop.permute.xlu1 %2402  ;;  %2758 = vrot.lane.b32.xlu1 %v10615_v4, %s13333_s17 }
 0xc0b   : > { %8124 = vmatprep.subr.mxu0 %v2403_v43 }
 0xc0c   : > { %8125 = vmatpush3.msra.mxu0 %v2371_v15  ;;  %v2361_v15 = vpop.permute.xlu0 %2360 }
 0xc0e   : > { %v2401_v10 = vpop.permute.xlu1 %2400  ;;  %2756 = vrot.lane.b32.xlu1 %v10623_v32, %s13333_s17  ;;  %v13500_v32 = vld [vmem:[#allocation45_spill] sm:$0xff] }
 0xc0f   : > { %8126 = vmatprep.subr.mxu0 %v2401_v10 }
 0xc10   : > { %8127 = vmatpush3.msra.mxu0 %v2369_v46  ;;  %v2359_v7 = vpop.permute.xlu0 %2358 }
 0xc12   : > { %v2399_v18 = vpop.permute.xlu1 %2398  ;;  %2754 = vrot.lane.b32.xlu1 %v10631_v54, %s13333_s17  ;;  %v13499_v54 = vld [vmem:[#allocation44_spill] sm:$0xff] }
 0xc13   : > { %8128 = vmatprep.subr.mxu0 %v2399_v18  ;;  %v13489_v18 = vld [vmem:[#allocation61_spill] sm:$0xff] }
 0xc14   : > { %8129 = vmatpush3.msra.mxu0 %v2367_v12  ;;  %v2357_v43 = vpop.permute.xlu0 %2356 }
 0xc16   : > { %2552 = vrot.lane.b32.xlu0 %v10321_v16, %s13345_s29  ;;  %v2397_v21 = vpop.permute.xlu1 %2396  ;;  %2752 = vrot.lane.b32.xlu1 %v10639_v59, %s13333_s17  ;;  %v13496_v59 = vld [vmem:[#allocation41_spill] sm:$0xff] }
 0xc17   : > { %8130 = vmatprep.subr.mxu0 %v2397_v21 }
 0xc18   : > { %8131 = vmatpush3.msra.mxu0 %v2365_v28  ;;  %v13488_v28 = vld [vmem:[#allocation37_spill] sm:$0xff] }
 0xc1a   : > { %2550 = vrot.lane.b32.xlu0 %v10353_v56, %s13345_s29  ;;  %v2395_v9 = vpop.permute.xlu1 %2394  ;;  %2750 = vrot.lane.b32.xlu1 %v10647_v34, %s13333_s17 }
 0xc1b   : > { %8132 = vmatprep.subr.mxu0 %v2395_v9  ;;  %v2355_v9 = vpop.permute.xlu0 %2354 }
 0xc1c   : > { %8133 = vmatpush3.msra.mxu0 %v2363_v63  ;;  %v13490_v63 = vld [vmem:[#allocation38_spill] sm:$0xff] }
 0xc1e   : > { %2548 = vrot.lane.b32.xlu0 %v10363_v1, %s13345_s29  ;;  %v2393_v46 = vpop.permute.xlu1 %2392  ;;  %2748 = vrot.lane.b32.xlu1 %v10655_v37, %s13333_s17 }
 0xc1f   : > { %8134 = vmatprep.subr.mxu0 %v2393_v46  ;;  %v13492_v46 = vld [vmem:[#allocation39_spill] sm:$0xff] }
 0xc20   : > { %8135 = vmatpush3.msra.mxu0 %v2361_v15  ;;  %v13491_v15 = vld [vmem:[#allocation62_spill] sm:$0xff] }
 0xc22   : > { %2546 = vrot.lane.b32.xlu0 %v13487_v23, %s13345_s29  ;;  %v2391_v12 = vpop.permute.xlu1 %2390  ;;  %2746 = vrot.lane.b32.xlu1 %v10663_v6, %s13333_s17 }
 0xc23   : > { %8136 = vmatprep.subr.mxu0 %v2391_v12  ;;  %v13493_v12 = vld [vmem:[#allocation63_spill] sm:$0xff] }
 0xc24   : > { %8137 = vmatpush3.msra.mxu0 %v2359_v7 }
 0xc26   : > { %2544 = vrot.lane.b32.xlu0 %v13488_v28, %s13345_s29  ;;  %v2389_v10 = vpop.permute.xlu1 %2388  ;;  %2744 = vrot.lane.b32.xlu1 %v13489_v18, %s13333_s17 }
 0xc27   : > { %8138 = vmatprep.subr.mxu0 %v2389_v10  ;;  %v13495_v10 = vld [vmem:[#allocation64_spill] sm:$0xff] }
 0xc28   : > { %8139 = vmatpush3.msra.mxu0 %v2357_v43  ;;  %v13494_v43 = vld [vmem:[#allocation40_spill] sm:$0xff] }
 0xc2a   : > { %2542 = vrot.lane.b32.xlu0 %v13490_v63, %s13345_s29  ;;  %v2387_v21 = vpop.permute.xlu1 %2386  ;;  %2742 = vrot.lane.b32.xlu1 %v13491_v15, %s13333_s17 }
 0xc2b   : > { %8140 = vmatprep.subr.mxu0 %v2387_v21  ;;  %v13497_v21 = vld [vmem:[#allocation42_spill] sm:$0xff] }
 0xc2c   : > { %8141 = vmatpush3.msra.mxu0 %v2355_v9  ;;  %v13498_v9 = vld [vmem:[#allocation43_spill] sm:$0xff] }
 0xc2e   : > { %2540 = vrot.lane.b32.xlu0 %v13492_v46, %s13345_s29  ;;  %v2585_v7 = vpop.permute.xlu1 %2584  ;;  %2740 = vrot.lane.b32.xlu1 %v13493_v12, %s13333_s17 }
 0xc2f   : > { %8145 = vmatprep.subr.msk.mxu0 %vm597_vm2, %v2585_v7 }
 0xc32   : > { %2538 = vrot.lane.b32.xlu0 %v13494_v43, %s13345_s29  ;;  %2738 = vrot.lane.b32.xlu1 %v13495_v10, %s13333_s17  ;;  %v2583_v7 = vpop.permute.xlu1 %2582  ;;  %v13503_v10 = vld [vmem:[#allocation48_spill] sm:$0xff] }
 0xc36   : > { %2536 = vrot.lane.b32.xlu0 %v13496_v59, %s13345_s29  ;;  %2936 = vrot.lane.b32.xlu1 %v10321_v16, %s13341_s11  ;;  %v2581_v4 = vpop.permute.xlu1 %2580 }
 0xc3a   : > { %2534 = vrot.lane.b32.xlu0 %v13497_v21, %s13345_s29  ;;  %2934 = vrot.lane.b32.xlu1 %v10353_v56, %s13341_s11  ;;  %v2579_v42 = vpop.permute.xlu1 %2578 }
 0xc3e   : > { %2532 = vrot.lane.b32.xlu0 %v13498_v9, %s13345_s29  ;;  %v2577_v12 = vpop.permute.xlu1 %2576 }
 0xc42   : > { %2530 = vrot.lane.b32.xlu0 %v13499_v54, %s13345_s29  ;;  %v2575_v15 = vpop.permute.xlu1 %2574 }
 0xc46   : > { %2528 = vrot.lane.b32.xlu0 %v13500_v32, %s13345_s29  ;;  %v2573_v18 = vpop.permute.xlu1 %2572 }
 0xc4a   : > { %2526 = vrot.lane.b32.xlu0 %v13501_v30, %s13345_s29  ;;  %v2571_v6 = vpop.permute.xlu1 %2570 }
 0xc4e   : > { %2524 = vrot.lane.b32.xlu0 %v13502_v0, %s13345_s29  ;;  %v2569_v37 = vpop.permute.xlu1 %2568 }
 0xc52   : > { %2522 = vrot.lane.b32.xlu0 %v13503_v10, %s13345_s29  ;;  %v2567_v34 = vpop.permute.xlu1 %2566 }
 0xc56   : > { %v2565_v13 = vpop.permute.xlu1 %2564 }
 0xc5a   : > { %v2563_v33 = vpop.permute.xlu1 %2562 }
 0xc5e   : > { %v2561_v32 = vpop.permute.xlu1 %2560 }
 0xc62   : > { %v2559_v54 = vpop.permute.xlu1 %2558 }
 0xc66   : > { %v2557_v21 = vpop.permute.xlu1 %2556 }
 0xc6a   : > { %v2555_v43 = vpop.permute.xlu1 %2554 }
 0xc6e   : > { %v2521_v23 = vpop.permute.xlu1 %2520 }
 0xc89   : > { %v2318_v9 = vpop.xlane.xlu0 %2317 }
 0xc8a   : > { %9421 = vrcp.f32 %v2318_v9 }
 0xc8d   : > { %v2553_v30 = vpop.permute.xlu0 %2552 }
 0xc91   : > { %v2551_v59 = vpop.permute.xlu0 %2550 }
 0xc95   : > { %v2549_v0 = vpop.permute.xlu0 %2548 }
 0xc97   : > { %v9422_v46 = vpop.eup %9421 }
 0xc98   : > { %v2321_v10 = vmul.f32 %v9422_v46, %v10842_v60  ;;  %v2320_v63 = vmul.f32 %v9422_v46, %v10840_v55 }
 0xc99   : > { %v2547_v28 = vpop.permute.xlu0 %2546 }
 0xc9a   : > { %2514 = vmatprep.mubr.f32.mxu0 %v2321_v10 }
 0xc9b   : > { %2515 = vmatmul.mubr.f32.vlgmr.msra.gmra.mxu0 %v2320_v63 }
 0xc9c   : > { %8146 = vmatpush3.xpose.msk.msra.mxu0 %vm597_vm2, %v2553_v30  ;;  %8177 = vmatprep.mubr.msk.f32.mxu0 %vm597_vm2, %v2521_v23 }
 0xc9d   : > { %8147 = vmatprep.subr.msk.mxu0 %vm597_vm2, %v2583_v7  ;;  %v2545_v9 = vpop.permute.xlu0 %2544 }
 0xca0   : > { %8148 = vmatpush3.xpose.msk.msra.mxu0 %vm597_vm2, %v2551_v59  ;;  %v2801_v59 = vpop.permute.xlu1 %2800 }
 0xca1   : > { %8149 = vmatprep.subr.msk.mxu0 %vm597_vm2, %v2581_v4  ;;  %v2543_v1 = vpop.permute.xlu0 %2542 }
 0xca4   : > { %8150 = vmatpush3.xpose.msk.msra.mxu0 %vm597_vm2, %v2549_v0 }
 0xca5   : > { %8151 = vmatprep.subr.msk.mxu0 %vm597_vm2, %v2579_v42  ;;  %v2541_v55 = vpop.permute.xlu0 %2540 }
 0xca8   : > { %8152 = vmatpush3.xpose.msk.msra.mxu0 %vm597_vm2, %v2547_v28 }
 0xca9   : > { %8153 = vmatprep.subr.msk.mxu0 %vm597_vm2, %v2577_v12  ;;  %v2539_v30 = vpop.permute.xlu0 %2538 }
 0xcac   : > { %8154 = vmatpush3.xpose.msk.msra.mxu0 %vm597_vm2, %v2545_v9 }
 0xcad   : > { %8155 = vmatprep.subr.msk.mxu0 %vm597_vm2, %v2575_v15  ;;  %v2537_v60 = vpop.permute.xlu0 %2536 }
 0xcb0   : > { %8156 = vmatpush3.xpose.msk.msra.mxu0 %vm597_vm2, %v2543_v1 }
 0xcb1   : > { %8157 = vmatprep.subr.msk.mxu0 %vm597_vm2, %v2573_v18  ;;  %v2535_v4 = vpop.permute.xlu0 %2534 }
 0xcb4   : > { %8158 = vmatpush3.xpose.msk.msra.mxu0 %vm597_vm2, %v2541_v55 }
 0xcb5   : > { %8159 = vmatprep.subr.msk.mxu0 %vm597_vm2, %v2571_v6  ;;  %v2533_v0 = vpop.permute.xlu0 %2532 }
 0xcb8   : > { %8160 = vmatpush3.xpose.msk.msra.mxu0 %vm597_vm2, %v2539_v30 }
 0xcb9   : > { %8161 = vmatprep.subr.msk.mxu0 %vm597_vm2, %v2569_v37  ;;  %v2531_v42 = vpop.permute.xlu0 %2530 }
 0xcbc   : > { %8162 = vmatpush3.xpose.msk.msra.mxu0 %vm597_vm2, %v2537_v60 }
 0xcbd   : > { %8163 = vmatprep.subr.msk.mxu0 %vm597_vm2, %v2567_v34  ;;  %v2529_v1 = vpop.permute.xlu0 %2528  ;;  %v2769_v34 = vpop.permute.xlu1 %2768 }
 0xcc0   : > { %8164 = vmatpush3.xpose.msk.msra.mxu0 %vm597_vm2, %v2535_v4 }
 0xcc1   : > { %8165 = vmatprep.subr.msk.mxu0 %vm597_vm2, %v2565_v13  ;;  %v2527_v37 = vpop.permute.xlu0 %2526 }
 0xcc4   : > { %8166 = vmatpush3.xpose.msk.msra.mxu0 %vm597_vm2, %v2533_v0 }
 0xcc5   : > { %8167 = vmatprep.subr.msk.mxu0 %vm597_vm2, %v2563_v33  ;;  %v2525_v6 = vpop.permute.xlu0 %2524  ;;  %v2799_v33 = vpop.permute.xlu1 %2798 }
 0xcc8   : > { %8168 = vmatpush3.xpose.msk.msra.mxu0 %vm597_vm2, %v2531_v42 }
 0xcc9   : > { %8169 = vmatprep.subr.msk.mxu0 %vm597_vm2, %v2561_v32  ;;  %v2523_v13 = vpop.permute.xlu0 %2522  ;;  %v2767_v32 = vpop.permute.xlu1 %2766 }
 0xccc   : > { %8170 = vmatpush3.xpose.msk.msra.mxu0 %vm597_vm2, %v2529_v1 }
 0xccd   : > { %8171 = vmatprep.subr.msk.mxu0 %vm597_vm2, %v2559_v54 }
 0xcd0   : > { %8172 = vmatpush3.xpose.msk.msra.mxu0 %vm597_vm2, %v2527_v37 }
 0xcd1   : > { %8173 = vmatprep.subr.msk.mxu0 %vm597_vm2, %v2557_v21 }
 0xcd4   : > { %8174 = vmatpush3.xpose.msk.msra.mxu0 %vm597_vm2, %v2525_v6 }
 0xcd5   : > { %8175 = vmatprep.subr.msk.mxu0 %vm597_vm2, %v2555_v43 }
 0xcd8   : > { %8176 = vmatpush3.xpose.msk.msra.mxu0 %vm597_vm2, %v2523_v13 }
 0xcd9   : > { %8179 = vmatprep.subr.mxu0 %v2801_v59 }
 0xcdb   : > { %8178 = vmatmul.mubr.msk.f32.vlgmr.msra.gmra.mxu0 %vm597_vm2, %v2521_v23  ;;  %v2765_v23 = vpop.permute.xlu1 %2764 }
 0xcdc   : > { %8180 = vmatpush3.msra.mxu0 %v2769_v34 }
 0xcdd   : > { %8181 = vmatprep.subr.mxu0 %v2799_v33 }
 0xcde   : > { %8182 = vmatpush3.msra.mxu0 %v2767_v32  ;;  %v13506_v32 = vld [vmem:[#allocation35_spill] sm:$0xff] }
 0xcdf   : > { %v2759_v30 = vpop.permute.xlu1 %2758 }
 0xce3   : > { %v2757_v4 = vpop.permute.xlu1 %2756 }
 0xce7   : > { %v2755_v1 = vpop.permute.xlu1 %2754 }
 0xceb   : > { %v2753_v33 = vpop.permute.xlu1 %2752 }
 0xd5b   : > { %v10946_v54 = vpop.f32.mrf.mxu0 }
 0xd5c   : > { %13504 = vst [vmem:[#allocation66_spill] sm:$0xff] %v10946_v54 }
 0xd5d   : > { %v10948_v28 = vpop.f32.mrf.mxu0 }
 0xd5e   : > { %13505 = vst [vmem:[#allocation67_spill] sm:$0xff] %v10948_v28 }
 0xd9b   : > { %v2718_v18 = vpop.f32.mrf.mxu0 }
 0xd9c   : > { %v2719_v15 = vadd.f32 %v2718_v18, %v10700_v50  ;;  %v2751_v18 = vpop.permute.xlu1 %2750 }
 0xd9d   : > { %v2720_v63 = vpop.f32.mrf.mxu0 }
 0xd9e   : > { %v2721_v46 = vadd.f32 %v2720_v63, %v10702_v2  ;;  %v13507_v63 = vld [vmem:[#allocation36_spill] sm:$0xff] }
 0xda0   : > { %v2723_v12 = vmax.f32 %v2719_v15, %v2721_v46 }
 0xda2   : > { %2724 = vmax.xlane.f32.xlu0 %v2723_v12 }
 0xdb8   : > { %2796 = vrot.lane.b32.xlu0 %v10708_v53, %s13333_s17 }
 0xdbc   : > { %2794 = vrot.lane.b32.xlu0 %v10712_v8, %s13333_s17 }
 0xdc0   : > { %2762 = vrot.lane.b32.xlu0 %v10720_v31, %s13333_s17 }
 0xdc4   : > { %2792 = vrot.lane.b32.xlu0 %v10724_v20, %s13333_s17 }
 0xdc8   : > { %2760 = vrot.lane.b32.xlu0 %v10732_v40, %s13333_s17 }
 0xdcc   : > { %2790 = vrot.lane.b32.xlu0 %v10736_v44, %s13333_s17 }
 0xdd0   : > { %2788 = vrot.lane.b32.xlu0 %v10742_v5, %s13333_s17 }
 0xdd4   : > { %2786 = vrot.lane.b32.xlu0 %v10750_v26, %s13333_s17 }
 0xdd8   : > { %2784 = vrot.lane.b32.xlu0 %v10756_v25, %s13333_s17 }
 0xddc   : > { %2782 = vrot.lane.b32.xlu0 %v10762_v61, %s13333_s17 }
 0xde0   : > { %2780 = vrot.lane.b32.xlu0 %v10768_v38, %s13333_s17 }
 0xde4   : > { %2778 = vrot.lane.b32.xlu0 %v10774_v22, %s13333_s17 }
 0xde8   : > { %2776 = vrot.lane.b32.xlu0 %v10780_v45, %s13333_s17 }
 0xdec   : > { %2774 = vrot.lane.b32.xlu0 %v10786_v49, %s13333_s17 }
 0xdf0   : > { %2772 = vrot.lane.b32.xlu0 %v10792_v52, %s13333_s17 }
 0xdf4   : > { %2770 = vrot.lane.b32.xlu0 %v10798_v57, %s13333_s17  ;;  %s13555_s17 = smov 72  }
 0xdf8   : > { %2968 = vrot.lane.b32.xlu0 %v10346_v47, %s13341_s11 }
 0xdfc   : > { %2966 = vrot.lane.b32.xlu0 %v10338_v48, %s13341_s11 }
 0xe00   : > { %2964 = vrot.lane.b32.xlu0 %v10343_v3, %s13341_s11 }
 0xe04   : > { %2962 = vrot.lane.b32.xlu0 %v10356_v27, %s13341_s11 }
 0xe08   : > { %2960 = vrot.lane.b32.xlu0 %v10366_v39, %s13341_s11 }
 0xe0c   : > { %2958 = vrot.lane.b32.xlu0 %v10379_v17, %s13341_s11 }
 0xe10   : > { %2956 = vrot.lane.b32.xlu0 %v10392_v62, %s13341_s11 }
 0xe14   : > { %2954 = vrot.lane.b32.xlu0 %v10405_v14, %s13341_s11 }
 0xe18   : > { %2952 = vrot.lane.b32.xlu0 %v10418_v11, %s13341_s11 }
 0xe1c   : > { %2950 = vrot.lane.b32.xlu0 %v10431_v36, %s13341_s11 }
 0xe20   : > { %2948 = vrot.lane.b32.xlu0 %v10445_v51, %s13341_s11 }
 0xe24   : > { %2946 = vrot.lane.b32.xlu0 %v10459_v41, %s13341_s11 }
 0xe28   : > { %2944 = vrot.lane.b32.xlu0 %v10473_v35, %s13341_s11 }
 0xe2b   : > { %v2725_v43 = vpop.xlane.xlu0 %2724 }
 0xe2c   : > { %v2726_v10 = vsub.f32 %v2719_v15, %v2725_v43  ;;  %v2727_v21 = vsub.f32 %v2721_v46, %v2725_v43  ;;  %2942 = vrot.lane.b32.xlu0 %v10487_v29, %s13341_s11  ;;  %v13508_v46 = vld [vmem:[#allocation37_spill] sm:$0xff] }
 0xe2e   : > { %v2728_v7 = vmul.f32 1.442695, %v2726_v10  ;;  %v2730_v9 = vmul.f32 1.442695, %v2727_v21  ;;  %v13510_v21 = vld [vmem:[#allocation39_spill] sm:$0xff] }
 0xe2f   : > { %v2797_v55 = vpop.permute.xlu0 %2796 }
 0xe30   : > { %9423 = vpow2.f32 %v2728_v7  ;;  %2940 = vrot.lane.b32.xlu0 %v10501_v24, %s13341_s11  ;;  %8183 = vmatprep.subr.mxu0 %v2797_v55 }
 0xe31   : > { %9425 = vpow2.f32 %v2730_v9  ;;  %8184 = vmatpush3.msra.mxu0 %v2765_v23  ;;  %v13509_v23 = vld [vmem:[#allocation38_spill] sm:$0xff]  ;;  %v13511_v9 = vld [vmem:[#allocation40_spill] sm:$0xff] }
 0xe33   : > { %v2795_v60 = vpop.permute.xlu0 %2794 }
 0xe34   : > { %2938 = vrot.lane.b32.xlu0 %v10515_v19, %s13341_s11  ;;  %8185 = vmatprep.subr.mxu0 %v2795_v60  ;;  %v13512_v60 = vld [vmem:[#allocation41_spill] sm:$0xff] }
 0xe37   : > { %v2763_v0 = vpop.permute.xlu0 %2762 }
 0xe38   : > { %2904 = vrot.lane.b32.xlu0 %v10228_v58, %s13335_s15  ;;  %8186 = vmatpush3.msra.mxu0 %v2763_v0  ;;  %s13554_s15 = smov 120  }
 0xe3b   : > { %v2793_v42 = vpop.permute.xlu0 %2792 }
 0xe3c   : > { %3320 = vrot.lane.b32.xlu0 %v10321_v16, %s13337_s12  ;;  %8187 = vmatprep.subr.mxu0 %v2793_v42  ;;  %v13513_v42 = vld [vmem:[#allocation42_spill] sm:$0xff] }
 0xe3d   : > { %v11020_v59 = vpop.eup %9423 }
 0xe3e   : > { %v11022_v37 = vpop.eup %9425 }
 0xe3f   : > { %v2761_v34 = vpop.permute.xlu0 %2760  ;;  %v2732_v6 = vadd.f32 %v11022_v37, %v11020_v59 }
 0xe40   : > { %3318 = vrot.lane.b32.xlu0 %v10353_v56, %s13337_s12  ;;  %8188 = vmatpush3.msra.mxu0 %v2761_v34  ;;  %v2749_v56 = vpop.permute.xlu1 %2748  ;;  %v13514_v34 = vld [vmem:[#allocation43_spill] sm:$0xff] }
 0xe41   : > { %2733 = vadd.xlane.f32.xlu1 %v2732_v6 }
 0xe43   : > { %v2791_v13 = vpop.permute.xlu0 %2790 }
 0xe44   : > { %3316 = vrot.lane.b32.xlu0 %v13506_v32, %s13337_s12  ;;  %8189 = vmatprep.subr.mxu0 %v2791_v13  ;;  %v2747_v10 = vpop.permute.xlu1 %2746  ;;  %v13515_v13 = vld [vmem:[#allocation44_spill] sm:$0xff] }
 0xe45   : > { %8190 = vmatpush3.msra.mxu0 %v2759_v30 }
 0xe47   : > { %v2789_v16 = vpop.permute.xlu0 %2788 }
 0xe48   : > { %3314 = vrot.lane.b32.xlu0 %v13507_v63, %s13337_s12  ;;  %8191 = vmatprep.subr.mxu0 %v2789_v16  ;;  %v2745_v55 = vpop.permute.xlu1 %2744 }
 0xe49   : > { %8192 = vmatpush3.msra.mxu0 %v2757_v4 }
 0xe4b   : > { %v2787_v15 = vpop.permute.xlu0 %2786 }
 0xe4c   : > { %3312 = vrot.lane.b32.xlu0 %v13508_v46, %s13337_s12  ;;  %8193 = vmatprep.subr.mxu0 %v2787_v15  ;;  %v2743_v0 = vpop.permute.xlu1 %2742  ;;  %v13517_v15 = vld [vmem:[#allocation46_spill] sm:$0xff] }
 0xe4d   : > { %8194 = vmatpush3.msra.mxu0 %v2755_v1 }
 0xe4f   : > { %v2785_v12 = vpop.permute.xlu0 %2784 }
 0xe50   : > { %3310 = vrot.lane.b32.xlu0 %v13509_v23, %s13337_s12  ;;  %8195 = vmatprep.subr.mxu0 %v2785_v12  ;;  %v2741_v6 = vpop.permute.xlu1 %2740 }
 0xe51   : > { %8196 = vmatpush3.msra.mxu0 %v2753_v33 }
 0xe52   : > { %2932 = vrot.lane.b32.xlu1 %v13506_v32, %s13341_s11 }
 0xe53   : > { %v2783_v43 = vpop.permute.xlu0 %2782 }
 0xe54   : > { %3308 = vrot.lane.b32.xlu0 %v13510_v21, %s13337_s12  ;;  %8197 = vmatprep.subr.mxu0 %v2783_v43  ;;  %v2739_v16 = vpop.permute.xlu1 %2738 }
 0xe55   : > { %8198 = vmatpush3.msra.mxu0 %v2751_v18  ;;  %v13516_v18 = vld [vmem:[#allocation45_spill] sm:$0xff] }
 0xe56   : > { %2930 = vrot.lane.b32.xlu1 %v13507_v63, %s13341_s11 }
 0xe57   : > { %v2781_v7 = vpop.permute.xlu0 %2780 }
 0xe58   : > { %3306 = vrot.lane.b32.xlu0 %v13511_v9, %s13337_s12  ;;  %8199 = vmatprep.subr.mxu0 %v2781_v7  ;;  %v13522_v7 = vld [vmem:[#allocation51_spill] sm:$0xff] }
 0xe59   : > { %8200 = vmatpush3.msra.mxu0 %v2749_v56  ;;  %v13518_v56 = vld [vmem:[#allocation47_spill] sm:$0xff] }
 0xe5a   : > { %2928 = vrot.lane.b32.xlu1 %v13508_v46, %s13341_s11 }
 0xe5b   : > { %v2779_v30 = vpop.permute.xlu0 %2778 }
 0xe5c   : > { %3304 = vrot.lane.b32.xlu0 %v13512_v60, %s13337_s12  ;;  %8201 = vmatprep.subr.mxu0 %v2779_v30  ;;  %v13523_v30 = vld [vmem:[#allocation58_spill] sm:$0xff] }
 0xe5d   : > { %8202 = vmatpush3.msra.mxu0 %v2747_v10  ;;  %v13521_v10 = vld [vmem:[#allocation49_spill] sm:$0xff] }
 0xe5e   : > { %2926 = vrot.lane.b32.xlu1 %v13509_v23, %s13341_s11  ;;  %v13519_v23 = vld [vmem:[#allocation48_spill] sm:$0xff] }
 0xe5f   : > { %v2777_v4 = vpop.permute.xlu0 %2776 }
 0xe60   : > { %3302 = vrot.lane.b32.xlu0 %v13513_v42, %s13337_s12  ;;  %8203 = vmatprep.subr.mxu0 %v2777_v4  ;;  %v13524_v4 = vld [vmem:[#allocation59_spill] sm:$0xff] }
 0xe61   : > { %8204 = vmatpush3.msra.mxu0 %v2745_v55 }
 0xe62   : > { %2924 = vrot.lane.b32.xlu1 %v13510_v21, %s13341_s11 }
 0xe63   : > { %v2775_v1 = vpop.permute.xlu0 %2774 }
 0xe64   : > { %3300 = vrot.lane.b32.xlu0 %v13514_v34, %s13337_s12  ;;  %8205 = vmatprep.subr.mxu0 %v2775_v1 }
 0xe65   : > { %8206 = vmatpush3.msra.mxu0 %v2743_v0 }
 0xe66   : > { %2922 = vrot.lane.b32.xlu1 %v13511_v9, %s13341_s11 }
 0xe67   : > { %v2773_v33 = vpop.permute.xlu0 %2772 }
 0xe68   : > { %3298 = vrot.lane.b32.xlu0 %v13515_v13, %s13337_s12  ;;  %8207 = vmatprep.subr.mxu0 %v2773_v33 }
 0xe69   : > { %8208 = vmatpush3.msra.mxu0 %v2741_v6 }
 0xe6a   : > { %2920 = vrot.lane.b32.xlu1 %v13512_v60, %s13341_s11 }
 0xe6b   : > { %v2771_v32 = vpop.permute.xlu0 %2770 }
 0xe6c   : > { %3296 = vrot.lane.b32.xlu0 %v13516_v18, %s13337_s12  ;;  %8209 = vmatprep.subr.mxu0 %v2771_v32 }
 0xe6d   : > { %8210 = vmatpush3.msra.mxu0 %v2739_v16  ;;  %v2937_v16 = vpop.permute.xlu1 %2936 }
 0xe6e   : > { %2918 = vrot.lane.b32.xlu1 %v13513_v42, %s13341_s11  ;;  %v13525_v42 = vld [vmem:[#allocation60_spill] sm:$0xff] }
 0xe6f   : > { %v2969_v63 = vpop.permute.xlu0 %2968 }
 0xe70   : > { %3294 = vrot.lane.b32.xlu0 %v13517_v15, %s13337_s12  ;;  %8214 = vmatprep.subr.msk.mxu0 %vm597_vm2, %v2969_v63  ;;  %v13531_v63 = vld [vmem:[#allocation50_spill] sm:$0xff] }
 0xe72   : > { %2916 = vrot.lane.b32.xlu1 %v13514_v34, %s13341_s11 }
 0xe73   : > { %v11071_v46 = vpop.permute.xlu0 %2966 }
 0xe74   : > { %3292 = vrot.lane.b32.xlu0 %v13518_v56, %s13337_s12 }
 0xe76   : > { %2914 = vrot.lane.b32.xlu1 %v13515_v13, %s13341_s11 }
 0xe77   : > { %v11077_v12 = vpop.permute.xlu0 %2964 }
 0xe78   : > { %3290 = vrot.lane.b32.xlu0 %v13519_v23, %s13337_s12 }
 0xe7a   : > { %2912 = vrot.lane.b32.xlu1 %v13516_v18, %s13341_s11  ;;  %v2935_v18 = vpop.permute.xlu1 %2934 }
 0xe7b   : > { %v11083_v43 = vpop.permute.xlu0 %2962 }
 0xe7c   : > { %3184 = vrot.lane.b32.xlu0 %v13521_v10, %s13520_s24 }
 0xe7e   : > { %2910 = vrot.lane.b32.xlu1 %v13517_v15, %s13341_s11 }
 0xe7f   : > { %v11089_v21 = vpop.permute.xlu0 %2960 }
 0xe80   : > { %3182 = vrot.lane.b32.xlu0 %v13522_v7, %s13520_s24 }
 0xe82   : > { %2908 = vrot.lane.b32.xlu1 %v13518_v56, %s13341_s11  ;;  %v13532_v56 = vld [vmem:[#allocation52_spill] sm:$0xff] }
 0xe83   : > { %v11095_v9 = vpop.permute.xlu0 %2958 }
 0xe84   : > { %3172 = vrot.lane.b32.xlu0 %v10742_v5, %s13520_s24 }
 0xe86   : > { %2906 = vrot.lane.b32.xlu1 %v13519_v23, %s13341_s11 }
 0xe87   : > { %v11101_v55 = vpop.permute.xlu0 %2956 }
 0xe88   : > { %3134 = vrot.lane.b32.xlu0 %v13523_v30, %s13520_s24 }
 0xe8a   : > { %3352 = vrot.lane.b32.xlu1 %v10346_v47, %s13337_s12  ;;  %v13526_v47 = vld [vmem:[#allocation61_spill] sm:$0xff] }
 0xe8b   : > { %v11107_v60 = vpop.permute.xlu0 %2954 }
 0xe8c   : > { %3132 = vrot.lane.b32.xlu0 %v13524_v4, %s13520_s24 }
 0xe8e   : > { %3350 = vrot.lane.b32.xlu1 %v10338_v48, %s13337_s12  ;;  %v13527_v48 = vld [vmem:[#allocation62_spill] sm:$0xff] }
 0xe8f   : > { %v11113_v0 = vpop.permute.xlu0 %2952 }
 0xe90   : > { %3130 = vrot.lane.b32.xlu0 %v13525_v42, %s13520_s24 }
 0xe92   : > { %3348 = vrot.lane.b32.xlu1 %v10343_v3, %s13337_s12  ;;  %v13528_v3 = vld [vmem:[#allocation63_spill] sm:$0xff] }
 0xe93   : > { %v11119_v1 = vpop.permute.xlu0 %2950 }
 0xe94   : > { %3128 = vrot.lane.b32.xlu0 %v13526_v47, %s13520_s24 }
 0xe96   : > { %3346 = vrot.lane.b32.xlu1 %v10356_v27, %s13337_s12  ;;  %v13529_v27 = vld [vmem:[#allocation64_spill] sm:$0xff] }
 0xe97   : > { %v11125_v34 = vpop.permute.xlu0 %2948 }
 0xe98   : > { %3126 = vrot.lane.b32.xlu0 %v13527_v48, %s13520_s24 }
 0xe9a   : > { %3344 = vrot.lane.b32.xlu1 %v10366_v39, %s13337_s12 }
 0xe9b   : > { %v11131_v6 = vpop.permute.xlu0 %2946 }
 0xe9c   : > { %3124 = vrot.lane.b32.xlu0 %v13528_v3, %s13520_s24  ;;  %v13533_v3 = vld [vmem:[#allocation53_spill] sm:$0xff] }
 0xe9e   : > { %3342 = vrot.lane.b32.xlu1 %v10379_v17, %s13337_s12 }
 0xe9f   : > { %v11137_v33 = vpop.permute.xlu0 %2944 }
 0xea0   : > { %3122 = vrot.lane.b32.xlu0 %v13529_v27, %s13520_s24 }
 0xea2   : > { %3340 = vrot.lane.b32.xlu1 %v10392_v62, %s13337_s12 }
 0xea3   : > { %v11143_v13 = vpop.permute.xlu0 %2942 }
 0xea6   : > { %3338 = vrot.lane.b32.xlu1 %v10405_v14, %s13337_s12 }
 0xea7   : > { %v11147_v39 = vpop.permute.xlu0 %2940 }
 0xeaa   : > { %3336 = vrot.lane.b32.xlu1 %v10418_v11, %s13337_s12 }
 0xeab   : > { %v11151_v32 = vpop.permute.xlu0 %2938 }
 0xeae   : > { %3334 = vrot.lane.b32.xlu1 %v10431_v36, %s13337_s12 }
 0xeaf   : > { %v11155_v17 = vpop.permute.xlu0 %2904 }
 0xeb2   : > { %3332 = vrot.lane.b32.xlu1 %v10445_v51, %s13337_s12 }
 0xeb3   : > { %v11159_v62 = vpop.permute.xlu0 %3320 }
 0xeb6   : > { %3330 = vrot.lane.b32.xlu1 %v10459_v41, %s13337_s12 }
 0xeb7   : > { %v11163_v14 = vpop.permute.xlu0 %3318 }
 0xeba   : > { %3328 = vrot.lane.b32.xlu1 %v10473_v35, %s13337_s12 }
 0xebb   : > { %v11167_v11 = vpop.permute.xlu0 %3316 }
 0xebe   : > { %3326 = vrot.lane.b32.xlu1 %v10487_v29, %s13337_s12 }
 0xebf   : > { %v11171_v36 = vpop.permute.xlu0 %3314 }
 0xec2   : > { %3324 = vrot.lane.b32.xlu1 %v10501_v24, %s13337_s12 }
 0xec3   : > { %v11175_v51 = vpop.permute.xlu0 %3312 }
 0xec6   : > { %3322 = vrot.lane.b32.xlu1 %v10515_v19, %s13337_s12 }
 0xec7   : > { %v11179_v41 = vpop.permute.xlu0 %3310 }
 0xeca   : > { %3288 = vrot.lane.b32.xlu1 %v10228_v58, %s13530_s25  ;;  %v2734_v35 = vpop.xlane.xlu1 %2733 }
 0xecb   : > { %9427 = vrcp.f32 %v2734_v35  ;;  %v11183_v29 = vpop.permute.xlu0 %3308 }
 0xece   : > { %3152 = vrot.lane.b32.xlu1 %v13531_v63, %s13520_s24  ;;  %v2933_v15 = vpop.permute.xlu1 %2932 }
 0xecf   : > { %v11187_v24 = vpop.permute.xlu0 %3306 }
 0xed2   : > { %3150 = vrot.lane.b32.xlu1 %v13532_v56, %s13520_s24  ;;  %v2931_v23 = vpop.permute.xlu1 %2930 }
 0xed3   : > { %v11191_v19 = vpop.permute.xlu0 %3304 }
 0xed6   : > { %3180 = vrot.lane.b32.xlu1 %v10708_v53, %s13520_s24  ;;  %v2929_v58 = vpop.permute.xlu1 %2928 }
 0xed7   : > { %v11195_v28 = vpop.permute.xlu0 %3302 }
 0xed8   : > { %v9428_v35 = vpop.eup %9427 }
 0xed9   : > { %v2737_v54 = vmul.f32 %v9428_v35, %v11022_v37  ;;  %v2736_v27 = vmul.f32 %v9428_v35, %v11020_v59 }
 0xeda   : > { %3148 = vrot.lane.b32.xlu1 %v13533_v3, %s13520_s24  ;;  %v2927_v5 = vpop.permute.xlu1 %2926 }
 0xedb   : > { %2898 = vmatprep.mubr.f32.mxu0 %v2737_v54  ;;  %v11201_v56 = vpop.permute.xlu0 %3300 }
 0xedc   : > { %2899 = vmatmul.mubr.f32.vlgmr.msra.gmra.mxu0 %v2736_v27 }
 0xedd   : > { %8215 = vmatpush3.xpose.msk.msra.mxu0 %vm597_vm2, %v2937_v16  ;;  %8246 = vmatprep.mubr.msk.f32.mxu0 %vm597_vm2, %v11155_v17 }
 0xede   : > { %8216 = vmatprep.subr.msk.mxu0 %vm597_vm2, %v11071_v46  ;;  %3178 = vrot.lane.b32.xlu1 %v10712_v8, %s13520_s24  ;;  %v2925_v59 = vpop.permute.xlu1 %2924 }
 0xedf   : > { %v11210_v37 = vpop.permute.xlu0 %3298 }
 0xee1   : > { %8217 = vmatpush3.xpose.msk.msra.mxu0 %vm597_vm2, %v2935_v18 }
 0xee2   : > { %8218 = vmatprep.subr.msk.mxu0 %vm597_vm2, %v11077_v12  ;;  %3146 = vrot.lane.b32.xlu1 %v10720_v31, %s13520_s24  ;;  %v2923_v54 = vpop.permute.xlu1 %2922 }
 0xee3   : > { %v11217_v27 = vpop.permute.xlu0 %3296 }
 0xee5   : > { %8219 = vmatpush3.xpose.msk.msra.mxu0 %vm597_vm2, %v2933_v15 }
 0xee6   : > { %8220 = vmatprep.subr.msk.mxu0 %vm597_vm2, %v11083_v43  ;;  %3176 = vrot.lane.b32.xlu1 %v10724_v20, %s13520_s24  ;;  %v2921_v46 = vpop.permute.xlu1 %2920 }
 0xee7   : > { %v11224_v16 = vpop.permute.xlu0 %3294 }
 0xee9   : > { %8221 = vmatpush3.xpose.msk.msra.mxu0 %vm597_vm2, %v2931_v23 }
 0xeea   : > { %8222 = vmatprep.subr.msk.mxu0 %vm597_vm2, %v11089_v21  ;;  %3144 = vrot.lane.b32.xlu1 %v10732_v40, %s13520_s24  ;;  %v2919_v12 = vpop.permute.xlu1 %2918  ;;  %v13534_v21 = vld [vmem:[#allocation54_spill] sm:$0xff] }
 0xeeb   : > { %v11231_v18 = vpop.permute.xlu0 %3292 }
 0xeed   : > { %8223 = vmatpush3.xpose.msk.msra.mxu0 %vm597_vm2, %v2929_v58 }
 0xeee   : > { %8224 = vmatprep.subr.msk.mxu0 %vm597_vm2, %v11095_v9  ;;  %3174 = vrot.lane.b32.xlu1 %v10736_v44, %s13520_s24  ;;  %v2917_v43 = vpop.permute.xlu1 %2916  ;;  %v13535_v9 = vld [vmem:[#allocation55_spill] sm:$0xff] }
 0xeef   : > { %v11238_v15 = vpop.permute.xlu0 %3290 }
 0xef1   : > { %8225 = vmatpush3.xpose.msk.msra.mxu0 %vm597_vm2, %v2927_v5 }
 0xef2   : > { %8226 = vmatprep.subr.msk.mxu0 %vm597_vm2, %v11101_v55  ;;  %3142 = vrot.lane.b32.xlu1 %v13534_v21, %s13520_s24  ;;  %v2915_v23 = vpop.permute.xlu1 %2914  ;;  %v13536_v55 = vld [vmem:[#allocation56_spill] sm:$0xff] }
 0xef3   : > { %v3185_v35 = vpop.permute.xlu0 %3184 }
 0xef4   : > { %8248 = vmatprep.subr.mxu1 %v3185_v35 }
 0xef5   : > { %8227 = vmatpush3.xpose.msk.msra.mxu0 %vm597_vm2, %v2925_v59 }
 0xef6   : > { %8228 = vmatprep.subr.msk.mxu0 %vm597_vm2, %v11107_v60  ;;  %3140 = vrot.lane.b32.xlu1 %v13535_v9, %s13520_s24  ;;  %v2913_v58 = vpop.permute.xlu1 %2912 }
 0xef9   : > { %8229 = vmatpush3.xpose.msk.msra.mxu0 %vm597_vm2, %v2923_v54 }
 0xefa   : > { %8230 = vmatprep.subr.msk.mxu0 %vm597_vm2, %v11113_v0  ;;  %3170 = vrot.lane.b32.xlu1 %v10750_v26, %s13520_s24  ;;  %v2911_v5 = vpop.permute.xlu1 %2910 }
 0xefd   : > { %8231 = vmatpush3.xpose.msk.msra.mxu0 %vm597_vm2, %v2921_v46  ;;  %v3183_v46 = vpop.permute.xlu0 %3182 }
 0xefe   : > { %8232 = vmatprep.subr.msk.mxu0 %vm597_vm2, %v11119_v1  ;;  %3138 = vrot.lane.b32.xlu1 %v13536_v55, %s13520_s24  ;;  %v2909_v60 = vpop.permute.xlu1 %2908  ;;  %v13537_v1 = vld [vmem:[#allocation57_spill] sm:$0xff] }
 0xf01   : > { %8233 = vmatpush3.xpose.msk.msra.mxu0 %vm597_vm2, %v2919_v12  ;;  %v3173_v35 = vpop.permute.xlu0 %3172 }
 0xf02   : > { %8234 = vmatprep.subr.msk.mxu0 %vm597_vm2, %v11125_v34  ;;  %3168 = vrot.lane.b32.xlu1 %v10756_v25, %s13520_s24  ;;  %v2907_v0 = vpop.permute.xlu1 %2906 }
 0xf05   : > { %8235 = vmatpush3.xpose.msk.msra.mxu0 %vm597_vm2, %v2917_v43 }
 0xf06   : > { %8236 = vmatprep.subr.msk.mxu0 %vm597_vm2, %v11131_v6  ;;  %3136 = vrot.lane.b32.xlu1 %v13537_v1, %s13520_s24  ;;  %v3353_v59 = vpop.permute.xlu1 %3352 }
 0xf09   : > { %8237 = vmatpush3.xpose.msk.msra.mxu0 %vm597_vm2, %v2915_v23 }
 0xf0a   : > { %8238 = vmatprep.subr.msk.mxu0 %vm597_vm2, %v11137_v33  ;;  %3166 = vrot.lane.b32.xlu1 %v10762_v61, %s13520_s24  ;;  %v3351_v34 = vpop.permute.xlu1 %3350 }
 0xf0d   : > { %8239 = vmatpush3.xpose.msk.msra.mxu0 %vm597_vm2, %v2913_v58 }
 0xf0e   : > { %8240 = vmatprep.subr.msk.mxu0 %vm597_vm2, %v11143_v13  ;;  %3164 = vrot.lane.b32.xlu1 %v10768_v38, %s13520_s24  ;;  %v3349_v6 = vpop.permute.xlu1 %3348 }
 0xf11   : > { %8241 = vmatpush3.xpose.msk.msra.mxu0 %vm597_vm2, %v2911_v5 }
 0xf12   : > { %8242 = vmatprep.subr.msk.mxu0 %vm597_vm2, %v11147_v39  ;;  %3162 = vrot.lane.b32.xlu1 %v10774_v22, %s13520_s24  ;;  %v3347_v33 = vpop.permute.xlu1 %3346 }
 0xf15   : > { %8243 = vmatpush3.xpose.msk.msra.mxu0 %vm597_vm2, %v2909_v60  ;;  %v3135_v60 = vpop.permute.xlu0 %3134 }
 0xf16   : > { %8244 = vmatprep.subr.msk.mxu0 %vm597_vm2, %v11151_v32  ;;  %3160 = vrot.lane.b32.xlu1 %v10780_v45, %s13520_s24  ;;  %v3345_v13 = vpop.permute.xlu1 %3344 }
 0xf19   : > { %8245 = vmatpush3.xpose.msk.msra.mxu0 %vm597_vm2, %v2907_v0 }
 0xf1a   : > { %8283 = vmatprep.subr.msk.mxu0 %vm597_vm2, %v3353_v59  ;;  %3158 = vrot.lane.b32.xlu1 %v10786_v49, %s13520_s24  ;;  %v3343_v39 = vpop.permute.xlu1 %3342  ;;  %v3133_v59 = vpop.permute.xlu0 %3132 }
 0xf1c   : > { %8247 = vmatmul.mubr.msk.f32.vlgmr.msra.gmra.mxu0 %vm597_vm2, %v11155_v17 }
 0xf1d   : > { %8284 = vmatpush3.xpose.msk.msra.mxu0 %vm597_vm2, %v11159_v62 }
 0xf1e   : > { %8285 = vmatprep.subr.msk.mxu0 %vm597_vm2, %v3351_v34  ;;  %3156 = vrot.lane.b32.xlu1 %v10792_v52, %s13520_s24  ;;  %v3341_v32 = vpop.permute.xlu1 %3340 }
 0xf21   : > { %8286 = vmatpush3.xpose.msk.msra.mxu0 %vm597_vm2, %v11163_v14 }
 0xf22   : > { %8287 = vmatprep.subr.msk.mxu0 %vm597_vm2, %v3349_v6  ;;  %3154 = vrot.lane.b32.xlu1 %v10798_v57, %s13520_s24  ;;  %v3339_v54 = vpop.permute.xlu1 %3338 }
 0xf25   : > { %8288 = vmatpush3.xpose.msk.msra.mxu0 %vm597_vm2, %v11167_v11 }
 0xf26   : > { %8289 = vmatprep.subr.msk.mxu0 %vm597_vm2, %v3347_v33  ;;  %v3337_v17 = vpop.permute.xlu1 %3336  ;;  %v3131_v33 = vpop.permute.xlu0 %3130 }
 0xf29   : > { %8290 = vmatpush3.xpose.msk.msra.mxu0 %vm597_vm2, %v11171_v36 }
 0xf2a   : > { %8291 = vmatprep.subr.msk.mxu0 %vm597_vm2, %v3345_v13  ;;  %v3335_v62 = vpop.permute.xlu1 %3334 }
 0xf2d   : > { %8292 = vmatpush3.xpose.msk.msra.mxu0 %vm597_vm2, %v11175_v51 }
 0xf2e   : > { %8293 = vmatprep.subr.msk.mxu0 %vm597_vm2, %v3343_v39  ;;  %v3333_v14 = vpop.permute.xlu1 %3332  ;;  %v3129_v39 = vpop.permute.xlu0 %3128 }
 0xf31   : > { %8294 = vmatpush3.xpose.msk.msra.mxu0 %vm597_vm2, %v11179_v41 }
 0xf32   : > { %8295 = vmatprep.subr.msk.mxu0 %vm597_vm2, %v3341_v32  ;;  %v3331_v11 = vpop.permute.xlu1 %3330 }
 0xf35   : > { %8296 = vmatpush3.xpose.msk.msra.mxu0 %vm597_vm2, %v11183_v29 }
 0xf36   : > { %8297 = vmatprep.subr.msk.mxu0 %vm597_vm2, %v3339_v54  ;;  %v3329_v36 = vpop.permute.xlu1 %3328 }
 0xf39   : > { %8298 = vmatpush3.xpose.msk.msra.mxu0 %vm597_vm2, %v11187_v24 }
 0xf3a   : > { %8299 = vmatprep.subr.msk.mxu0 %vm597_vm2, %v3337_v17  ;;  %v3327_v51 = vpop.permute.xlu1 %3326  ;;  %v3127_v17 = vpop.permute.xlu0 %3126 }
 0xf3d   : > { %8300 = vmatpush3.xpose.msk.msra.mxu0 %vm597_vm2, %v11191_v19 }
 0xf3e   : > { %8301 = vmatprep.subr.msk.mxu0 %vm597_vm2, %v3335_v62  ;;  %v3325_v41 = vpop.permute.xlu1 %3324 }
 0xf41   : > { %8302 = vmatpush3.xpose.msk.msra.mxu0 %vm597_vm2, %v11195_v28 }
 0xf42   : > { %8303 = vmatprep.subr.msk.mxu0 %vm597_vm2, %v3333_v14  ;;  %v3323_v29 = vpop.permute.xlu1 %3322  ;;  %v3125_v14 = vpop.permute.xlu0 %3124 }
 0xf45   : > { %8304 = vmatpush3.xpose.msk.msra.mxu0 %vm597_vm2, %v11201_v56 }
 0xf46   : > { %8305 = vmatprep.subr.msk.mxu0 %vm597_vm2, %v3331_v11  ;;  %v3289_v24 = vpop.permute.xlu1 %3288 }
 0xf47   : > { %8315 = vmatprep.mubr.msk.f32.mxu0 %vm597_vm2, %v3289_v24 }
 0xf49   : > { %8306 = vmatpush3.xpose.msk.msra.mxu0 %vm597_vm2, %v11210_v37 }
 0xf4a   : > { %8307 = vmatprep.subr.msk.mxu0 %vm597_vm2, %v3329_v36  ;;  %v3153_v19 = vpop.permute.xlu1 %3152 }
 0xf4b   : > { %8249 = vmatpush3.msra.mxu1 %v3153_v19 }
 0xf4c   : > { %8250 = vmatprep.subr.mxu1 %v3183_v46 }
 0xf4d   : > { %8308 = vmatpush3.xpose.msk.msra.mxu0 %vm597_vm2, %v11217_v27 }
 0xf4e   : > { %8309 = vmatprep.subr.msk.mxu0 %vm597_vm2, %v3327_v51  ;;  %v3151_v28 = vpop.permute.xlu1 %3150  ;;  %v3123_v51 = vpop.permute.xlu0 %3122 }
 0xf4f   : > { %8251 = vmatpush3.msra.mxu1 %v3151_v28 }
 0xf51   : > { %8310 = vmatpush3.xpose.msk.msra.mxu0 %vm597_vm2, %v11224_v16 }
 0xf52   : > { %8311 = vmatprep.subr.msk.mxu0 %vm597_vm2, %v3325_v41  ;;  %v3181_v56 = vpop.permute.xlu1 %3180 }
 0xf53   : > { %8252 = vmatprep.subr.mxu1 %v3181_v56 }
 0xf55   : > { %8312 = vmatpush3.xpose.msk.msra.mxu0 %vm597_vm2, %v11231_v18 }
 0xf56   : > { %8313 = vmatprep.subr.msk.mxu0 %vm597_vm2, %v3323_v29  ;;  %v3149_v37 = vpop.permute.xlu1 %3148 }
 0xf57   : > { %8253 = vmatpush3.msra.mxu1 %v3149_v37 }
 0xf59   : > { %8314 = vmatpush3.xpose.msk.msra.mxu0 %vm597_vm2, %v11238_v15 }
 0xf5a   : > { %v3179_v27 = vpop.permute.xlu1 %3178 }
 0xf5b   : > { %8254 = vmatprep.subr.mxu1 %v3179_v27 }
 0xf5c   : > { %8316 = vmatmul.mubr.msk.f32.vlgmr.msra.gmra.mxu0 %vm597_vm2, %v3289_v24 }
 0xf5e   : > { %v3147_v12 = vpop.permute.xlu1 %3146 }
 0xf5f   : > { %8255 = vmatpush3.msra.mxu1 %v3147_v12 }
 0xf62   : > { %v3177_v16 = vpop.permute.xlu1 %3176 }
 0xf63   : > { %8256 = vmatprep.subr.mxu1 %v3177_v16  ;;  %v13544_v16 = vld [vmem:[#allocation64_spill] sm:$0xff] }
 0xf66   : > { %v3145_v43 = vpop.permute.xlu1 %3144 }
 0xf67   : > { %8257 = vmatpush3.msra.mxu1 %v3145_v43 }
 0xf6a   : > { %v3175_v23 = vpop.permute.xlu1 %3174 }
 0xf6b   : > { %8258 = vmatprep.subr.mxu1 %v3175_v23  ;;  %v9496_v23 = vld [vmem:[%s13216_s4 + $0x30] sm:$0xff] }
 0xf6e   : > { %v3143_v18 = vpop.permute.xlu1 %3142 }
 0xf6f   : > { %8259 = vmatpush3.msra.mxu1 %v3143_v18 }
 0xf70   : > { %8260 = vmatprep.subr.mxu1 %v3173_v35 }
 0xf72   : > { %v3141_v58 = vpop.permute.xlu1 %3140 }
 0xf73   : > { %8261 = vmatpush3.msra.mxu1 %v3141_v58  ;;  %v9497_v58 = vld [vmem:[%s13216_s4 + $0x28] sm:$0xff] }
 0xf76   : > { %v3171_v5 = vpop.permute.xlu1 %3170 }
 0xf77   : > { %8262 = vmatprep.subr.mxu1 %v3171_v5 }
 0xf7a   : > { %v3139_v15 = vpop.permute.xlu1 %3138 }
 0xf7b   : > { %8263 = vmatpush3.msra.mxu1 %v3139_v15 }
 0xf7e   : > { %v3169_v0 = vpop.permute.xlu1 %3168 }
 0xf7f   : > { %8264 = vmatprep.subr.mxu1 %v3169_v0 }
 0xf82   : > { %v3137_v34 = vpop.permute.xlu1 %3136 }
 0xf83   : > { %8265 = vmatpush3.msra.mxu1 %v3137_v34 }
 0xf86   : > { %v3167_v6 = vpop.permute.xlu1 %3166 }
 0xf87   : > { %8266 = vmatprep.subr.mxu1 %v3167_v6 }
 0xf88   : > { %8267 = vmatpush3.msra.mxu1 %v3135_v60 }
 0xf8a   : > { %v3165_v13 = vpop.permute.xlu1 %3164 }
 0xf8b   : > { %8268 = vmatprep.subr.mxu1 %v3165_v13 }
 0xf8c   : > { %8269 = vmatpush3.msra.mxu1 %v3133_v59 }
 0xf8e   : > { %v3163_v32 = vpop.permute.xlu1 %3162 }
 0xf8f   : > { %8270 = vmatprep.subr.mxu1 %v3163_v32 }
 0xf90   : > { %8271 = vmatpush3.msra.mxu1 %v3131_v33 }
 0xf92   : > { %v3161_v54 = vpop.permute.xlu1 %3160 }
 0xf93   : > { %8272 = vmatprep.subr.mxu1 %v3161_v54 }
 0xf94   : > { %8273 = vmatpush3.msra.mxu1 %v3129_v39 }
 0xf96   : > { %v3159_v62 = vpop.permute.xlu1 %3158 }
 0xf97   : > { %8274 = vmatprep.subr.mxu1 %v3159_v62 }
 0xf98   : > { %8275 = vmatpush3.msra.mxu1 %v3127_v17 }
 0xf9a   : > { %v3157_v11 = vpop.permute.xlu1 %3156 }
 0xf9b   : > { %8276 = vmatprep.subr.mxu1 %v3157_v11 }
 0xf9c   : > { %8277 = vmatpush3.msra.mxu1 %v3125_v14  ;;  %v8211_v41 = vpop.f32.mrf.mxu0 }
 0xf9e   : > { %v3155_v36 = vpop.permute.xlu1 %3154  ;;  %v8212_v29 = vpop.f32.mrf.mxu0 }
 0xf9f   : > { %8278 = vmatprep.subr.mxu1 %v3155_v36 }
 0xfa0   : > { %8279 = vmatpush3.msra.mxu1 %v3123_v51 }
 0xfdc   : > { %v3102_v24 = vpop.f32.mrf.mxu0 }
 0xfdd   : > { %v3103_v46 = vadd.f32 %v3102_v24, %v10700_v50 }
 0xfde   : > { %v3104_v19 = vpop.f32.mrf.mxu0 }
 0xfdf   : > { %v3105_v28 = vadd.f32 %v3104_v19, %v10702_v2 }
 0xfe1   : > { %v3107_v56 = vmax.f32 %v3103_v46, %v3105_v28 }
 0xfe3   : > { %3108 = vmax.xlane.f32.xlu0 %v3107_v56 }
 0xff9   : > { %3536 = vrot.lane.b32.xlu0 %v13531_v63, %s13538_s21 }
 0xffd   : > { %3558 = vrot.lane.b32.xlu0 %v10736_v44, %s13538_s21 }
0x1001   : > { %3520 = vrot.lane.b32.xlu0 %v13537_v1, %s13538_s21 }
0x1005   : > { %3518 = vrot.lane.b32.xlu0 %v13523_v30, %s13538_s21  ;;  %v13539_v30 = vld [vmem:[#allocation52_spill] sm:$0xff] }
0x1009   : > { %3516 = vrot.lane.b32.xlu0 %v13524_v4, %s13538_s21 }
0x100d   : > { %3514 = vrot.lane.b32.xlu0 %v13525_v42, %s13538_s21 }
0x1011   : > { %3512 = vrot.lane.b32.xlu0 %v13526_v47, %s13538_s21 }
0x1015   : > { %3510 = vrot.lane.b32.xlu0 %v13527_v48, %s13538_s21 }
0x101c   : > { %v3486_v63 = vpop.f32.mrf.mxu0 }
0x101d   : > { %v3487_v37 = vadd.f32 %v3486_v63, %v10700_v50 }
0x101e   : > { %v3488_v44 = vpop.f32.mrf.mxu0 }
0x101f   : > { %v3489_v1 = vadd.f32 %v3488_v44, %v10702_v2 }
0x1021   : > { %v3491_v27 = vmax.f32 %v3487_v37, %v3489_v1 }
0x1023   : > { %3492 = vmax.xlane.f32.xlu1 %v3491_v27  ;;  %v13545_v27 = vmov 0.0  }
0x1034   : > { %3568 = vrot.lane.b32.xlu1 %v13521_v10, %s13538_s21 }
0x1038   : > { %3566 = vrot.lane.b32.xlu1 %v13522_v7, %s13538_s21 }
0x103c   : > { %3534 = vrot.lane.b32.xlu1 %v13539_v30, %s13538_s21 }
0x1040   : > { %3564 = vrot.lane.b32.xlu1 %v10708_v53, %s13538_s21  ;;  %v13540_v53 = vld [vmem:[#allocation65_spill] sm:$0xff] }
0x1044   : > { %3532 = vrot.lane.b32.xlu1 %v13533_v3, %s13538_s21 }
0x1048   : > { %3562 = vrot.lane.b32.xlu1 %v10712_v8, %s13538_s21 }
0x104c   : > { %3530 = vrot.lane.b32.xlu1 %v10720_v31, %s13538_s21 }
0x1050   : > { %3560 = vrot.lane.b32.xlu1 %v10724_v20, %s13538_s21 }
0x1054   : > { %3528 = vrot.lane.b32.xlu1 %v10732_v40, %s13538_s21 }
0x1058   : > { %3526 = vrot.lane.b32.xlu1 %v13534_v21, %s13538_s21 }
0x105c   : > { %3556 = vrot.lane.b32.xlu1 %v13540_v53, %s13538_s21 }
0x1060   : > { %3524 = vrot.lane.b32.xlu1 %v13535_v9, %s13538_s21 }
0x1064   : > { %3554 = vrot.lane.b32.xlu1 %v10750_v26, %s13538_s21 }
0x1068   : > { %3522 = vrot.lane.b32.xlu1 %v13536_v55, %s13538_s21 }
0x106c   : > { %3552 = vrot.lane.b32.xlu1 %v10756_v25, %s13538_s21  ;;  %v3109_v8 = vpop.xlane.xlu0 %3108 }
0x106d   : > { %v3110_v31 = vsub.f32 %v3103_v46, %v3109_v8  ;;  %v3111_v20 = vsub.f32 %v3105_v28, %v3109_v8 }
0x106f   : > { %v3112_v40 = vmul.f32 1.442695, %v3110_v31  ;;  %v3114_v10 = vmul.f32 1.442695, %v3111_v20 }
0x1070   : > { %3550 = vrot.lane.b32.xlu1 %v10762_v61, %s13538_s21  ;;  %v9495_v61 = vld [vmem:[%s13216_s4 + $0x38] sm:$0xff]  ;;  %v3537_v18 = vpop.permute.xlu0 %3536 }
0x1071   : > { %9429 = vpow2.f32 %v3112_v40 }
0x1072   : > { %9431 = vpow2.f32 %v3114_v10 }
0x1074   : > { %3548 = vrot.lane.b32.xlu1 %v10768_v38, %s13538_s21  ;;  %v8213_v38 = vadd.f32 %v8212_v29, %v8211_v41  ;;  %v3559_v5 = vpop.permute.xlu0 %3558 }
0x1078   : > { %3546 = vrot.lane.b32.xlu1 %v10774_v22, %s13538_s21  ;;  %v13543_v22 = vld [vmem:[#allocation63_spill] sm:$0xff]  ;;  %v3521_v60 = vpop.permute.xlu0 %3520 }
0x107c   : > { %3544 = vrot.lane.b32.xlu1 %v10780_v45, %s13538_s21  ;;  %v3519_v59 = vpop.permute.xlu0 %3518 }
0x107e   : > { %v9430_v26 = vpop.eup %9429 }
0x107f   : > { %v9432_v25 = vpop.eup %9431 }
0x1080   : > { %3542 = vrot.lane.b32.xlu1 %v10786_v49, %s13538_s21  ;;  %v3116_v7 = vadd.f32 %v9432_v25, %v9430_v26  ;;  %v3517_v6 = vpop.permute.xlu0 %3516 }
0x1082   : > { %3117 = vadd.xlane.f32.xlu0 %v3116_v7  ;;  %v9498_v7 = vld [vmem:[%s13216_s4 + $0x20] sm:$0xff] }
0x1084   : > { %3540 = vrot.lane.b32.xlu1 %v10792_v52, %s13538_s21  ;;  %v3515_v13 = vpop.permute.xlu0 %3514 }
0x1088   : > { %3538 = vrot.lane.b32.xlu1 %v10798_v57, %s13538_s21  ;;  %v3513_v32 = vpop.permute.xlu0 %3512 }
0x108c   : > { %3697 = vrot.lane.b32.xlu1 %v9495_v61, %s13541_s22  ;;  %v3511_v17 = vpop.permute.xlu0 %3510 }
0x1090   : > { %3673 = vrot.lane.b32.xlu1 %v8213_v38, %s13542_s19 }
0x1098   : > { %3508 = vrot.lane.b32.xlu0 %v13543_v22, %s13538_s21 }
0x10ac   : > { %v3493_v45 = vpop.xlane.xlu1 %3492 }
0x10ad   : > { %v3494_v49 = vsub.f32 %v3487_v37, %v3493_v45  ;;  %v3495_v4 = vsub.f32 %v3489_v1, %v3493_v45  ;;  %v9499_v45 = vld [vmem:[%s13217_s5 + $0x1] ss:$0 sm:$0xff] }
0x10af   : > { %v3496_v42 = vmul.f32 1.442695, %v3494_v49  ;;  %v3498_v52 = vmul.f32 1.442695, %v3495_v4 }
0x10b0   : > { %v3569_v47 = vpop.permute.xlu1 %3568 }
0x10b1   : > { %9433 = vpow2.f32 %v3496_v42  ;;  %8317 = vmatprep.subr.mxu1 %v3569_v47  ;;  %v13549_v47 = vld [vmem:[#allocation67_spill] sm:$0xff] }
0x10b2   : > { %9435 = vpow2.f32 %v3498_v52  ;;  %v13548_v52 = vld [vmem:[#allocation66_spill] sm:$0xff] }
0x10b4   : > { %v3567_v21 = vpop.permute.xlu1 %3566 }
0x10b8   : > { %v3535_v9 = vpop.permute.xlu1 %3534 }
0x10bc   : > { %v3565_v55 = vpop.permute.xlu1 %3564 }
0x10be   : > { %v11420_v57 = vpop.eup %9433 }
0x10bf   : > { %v11422_v48 = vpop.eup %9435 }
0x10c0   : > { %v3500_v3 = vadd.f32 %v11422_v48, %v11420_v57  ;;  %v3533_v12 = vpop.permute.xlu1 %3532 }
0x10c2   : > { %3501 = vadd.xlane.f32.xlu0 %v3500_v3 }
0x10c4   : > { %v3563_v43 = vpop.permute.xlu1 %3562 }
0x10c8   : > { %v3531_v35 = vpop.permute.xlu1 %3530 }
0x10cc   : > { %v3561_v15 = vpop.permute.xlu1 %3560 }
0x10d0   : > { %v3529_v0 = vpop.permute.xlu1 %3528 }
0x10d4   : > { %v3527_v34 = vpop.permute.xlu1 %3526 }
0x10d8   : > { %3506 = vrot.lane.b32.xlu0 %v13544_v16, %s13538_s21  ;;  %v3557_v33 = vpop.permute.xlu1 %3556 }
0x10dc   : > { %3695 = vrot.lane.b32.xlu0 %v9496_v23, %s13541_s22  ;;  %v3525_v39 = vpop.permute.xlu1 %3524  ;;  %v13550_v23 = vld [vmem:[#allocation2_spill] sm:$0xff] }
0x10e0   : > { %3693 = vrot.lane.b32.xlu0 %v9497_v58, %s13541_s22  ;;  %v3555_v54 = vpop.permute.xlu1 %3554 }
0x10e4   : > { %v3523_v62 = vpop.permute.xlu1 %3522 }
0x10e8   : > { %v3553_v11 = vpop.permute.xlu1 %3552 }
0x10ec   : > { %v3551_v36 = vpop.permute.xlu1 %3550 }
0x10f0   : > { %v3549_v24 = vpop.permute.xlu1 %3548 }
0x10f4   : > { %v3547_v19 = vpop.permute.xlu1 %3546 }
0x10f8   : > { %v3545_v46 = vpop.permute.xlu1 %3544 }
0x10fc   : > { %v3543_v28 = vpop.permute.xlu1 %3542 }
0x1100   : > { %v3541_v56 = vpop.permute.xlu1 %3540 }
0x1104   : > { %v3539_v44 = vpop.permute.xlu1 %3538 }
0x1108   : > { %v3698_v31 = vpop.permute.xlu1 %3697 }
0x110b   : > { %v3118_v14 = vpop.xlane.xlu0 %3117 }
0x110c   : > { %9437 = vrcp.f32 %v3118_v14  ;;  %v3674_v49 = vpop.permute.xlu1 %3673 }
0x110f   : > { %v3509_v63 = vpop.permute.xlu0 %3508 }
0x1119   : > { %v9438_v51 = vpop.eup %9437 }
0x111a   : > { %v3120_v41 = vmul.f32 %v9438_v51, %v9430_v26  ;;  %v3121_v29 = vmul.f32 %v9438_v51, %v9432_v25 }
0x111c   : > { %3282 = vmatprep.mubr.f32.mxu1 %v3121_v29  ;;  %v3902_v29 = vld [vmem:[%s13219_s7 + $0x30] sm:$0xff] }
0x111d   : > { %3283 = vmatmul.mubr.f32.vlgmr.msra.gmra.mxu1 %v3120_v41  ;;  %v3903_v41 = vld [vmem:[%s13219_s7 + $0x38] sm:$0xff] }
0x111e   : > { %8318 = vmatpush3.msra.mxu1 %v3537_v18 }
0x111f   : > { %8319 = vmatprep.subr.mxu1 %v3567_v21 }
0x1120   : > { %8320 = vmatpush3.msra.mxu1 %v3535_v9 }
0x1121   : > { %8321 = vmatprep.subr.mxu1 %v3565_v55 }
0x1122   : > { %8322 = vmatpush3.msra.mxu1 %v3533_v12 }
0x1123   : > { %8323 = vmatprep.subr.mxu1 %v3563_v43 }
0x1124   : > { %8324 = vmatpush3.msra.mxu1 %v3531_v35 }
0x1125   : > { %8325 = vmatprep.subr.mxu1 %v3561_v15 }
0x1126   : > { %8326 = vmatpush3.msra.mxu1 %v3529_v0 }
0x1127   : > { %8327 = vmatprep.subr.mxu1 %v3559_v5 }
0x1128   : > { %8328 = vmatpush3.msra.mxu1 %v3527_v34  ;;  %v3813_v34 = vld [vmem:[%s13218_s6 + $0x10] sm:$0xff] }
0x1129   : > { %8329 = vmatprep.subr.mxu1 %v3557_v33  ;;  %v3811_v33 = vld [vmem:[%s13218_s6] sm:$0xff] }
0x112a   : > { %8330 = vmatpush3.msra.mxu1 %v3525_v39 }
0x112b   : > { %8331 = vmatprep.subr.mxu1 %v3555_v54 }
0x112c   : > { %8332 = vmatpush3.msra.mxu1 %v3523_v62  ;;  %v7704_v62 = vld [vmem:[%s13221_s9 + $0x2] ss:$0 sm:$0xff] }
0x112d   : > { %8333 = vmatprep.subr.mxu1 %v3553_v11  ;;  %v7705_v11 = vld [vmem:[%s13221_s9 + $0x3] ss:$0 sm:$0xff] }
0x112e   : > { %8334 = vmatpush3.msra.mxu1 %v3521_v60 }
0x112f   : > { %8335 = vmatprep.subr.mxu1 %v3551_v36 }
0x1130   : > { %8336 = vmatpush3.msra.mxu1 %v3519_v59  ;;  %v3814_v59 = vld [vmem:[%s13218_s6 + $0x18] sm:$0xff] }
0x1131   : > { %8337 = vmatprep.subr.mxu1 %v3549_v24  ;;  %v3901_v24 = vld [vmem:[%s13219_s7 + $0x28] sm:$0xff] }
0x1132   : > { %8338 = vmatpush3.msra.mxu1 %v3517_v6  ;;  %v3812_v6 = vld [vmem:[%s13218_s6 + $0x8] sm:$0xff] }
0x1133   : > { %8339 = vmatprep.subr.mxu1 %v3547_v19  ;;  %v3900_v19 = vld [vmem:[%s13219_s7 + $0x20] sm:$0xff] }
0x1134   : > { %8340 = vmatpush3.msra.mxu1 %v3515_v13  ;;  %v7706_v13 = vld [vmem:[%s13220_s8] ss:$0 sm:$0xff] }
0x1135   : > { %8341 = vmatprep.subr.mxu1 %v3545_v46  ;;  %v3899_v46 = vld [vmem:[%s13219_s7 + $0x18] sm:$0xff] }
0x1136   : > { %8342 = vmatpush3.msra.mxu1 %v3513_v32 }
0x1137   : > { %8343 = vmatprep.subr.mxu1 %v3543_v28  ;;  %v3898_v28 = vld [vmem:[%s13219_s7 + $0x10] sm:$0xff] }
0x1138   : > { %8344 = vmatpush3.msra.mxu1 %v3511_v17 }
0x1139   : > { %8345 = vmatprep.subr.mxu1 %v3541_v56  ;;  %v3897_v56 = vld [vmem:[%s13219_s7 + $0x8] sm:$0xff] }
0x113a   : > { %8346 = vmatpush3.msra.mxu1 %v3509_v63  ;;  %v3896_v63 = vld [vmem:[%s13219_s7] sm:$0xff] }
0x113b   : > { %8347 = vmatprep.subr.mxu1 %v3539_v44 }
0x114b   : > { %v3502_v37 = vpop.xlane.xlu0 %3501 }
0x114c   : > { %9439 = vrcp.f32 %v3502_v37 }
0x114f   : > { %v3507_v1 = vpop.permute.xlu0 %3506 }
0x1150   : > { %8348 = vmatpush3.msra.mxu1 %v3507_v1 }
0x1151   : > { %9027 = vmatprep.subr.mxu1 %v13545_v27 }
0x1153   : > { %v3696_v20 = vpop.permute.xlu0 %3695 }
0x1157   : > { %v3694_v40 = vpop.permute.xlu0 %3693 }
0x1159   : > { %v9440_v30 = vpop.eup %9439 }
0x115a   : > { %v3505_v53 = vmul.f32 %v9440_v30, %v11422_v48  ;;  %v3504_v8 = vmul.f32 %v9440_v30, %v11420_v57  ;;  %v8144_v57 = vadd.f32 %v13549_v47, %v13548_v52 }
0x115c   : > { %3666 = vmatprep.mubr.f32.mxu1 %v3505_v53  ;;  %v3684_v48 = vsel %vm597_vm2, %v8144_v57, %v3674_v49  ;;  %v11547_v49 = vld [vmem:[%s13216_s4 + $0x48] sm:$0xff] }
0x115d   : > { %3667 = vmatmul.mubr.f32.vlgmr.msra.gmra.mxu1 %v3504_v8 }
0x115e   : > { %9028 = vmatpush3.msra.mxu1 %v3698_v31  ;;  %9035 = vmatprep.mubr.msk.f32.mxu1 %vm9547_vm1, %v13545_v27 }
0x115f   : > { %9029 = vmatprep.subr.mxu1 %v13545_v27 }
0x1160   : > { %9030 = vmatpush3.msra.mxu1 %v3696_v20 }
0x1161   : > { %9031 = vmatprep.subr.mxu1 %v13545_v27 }
0x1162   : > { %9032 = vmatpush3.msra.mxu1 %v3694_v40 }
0x1163   : > { %9033 = vmatprep.subr.mxu1 %v13545_v27 }
0x11dd   : > { %v8280_v10 = vpop.f32.mrf.mxu1 }
0x11df   : > { %v8281_v26 = vpop.f32.mrf.mxu1 }
0x11e0   : > { %v8282_v25 = vadd.f32 %v8281_v26, %v8280_v10 }
0x11e2   : > { %3677 = vrot.lane.b32.xlu1 %v8282_v25, %s13546_s20 }
0x11e6   : > { %3691 = vrot.lane.b32.xlu1 %v9498_v7, %s13541_s22 }
0x121d   : > { %v8349_v61 = vpop.f32.mrf.mxu1 }
0x121f   : > { %v8350_v38 = vpop.f32.mrf.mxu1 }
0x1220   : > { %v8351_v22 = vadd.f32 %v8350_v38, %v8349_v61 }
0x1222   : > { %3681 = vrot.lane.b32.xlu0 %v8351_v22, %s13547_s18  ;;  %v11535_v22 = vld [vmem:[%s13216_s4 + $0x58] sm:$0xff] }
0x1223   : > { %9068 = vmatprep.subr.mxu0 %v11535_v22 }
0x1224   : > { %9069 = vmatpush3.msra.mxu0 %v11535_v22 }
0x1226   : > { %3703 = vrot.lane.b32.xlu0 %v9499_v45, %s13541_s22  ;;  %v11541_v45 = vld [vmem:[%s13216_s4 + $0x50] sm:$0xff] }
0x1227   : > { %9070 = vmatprep.subr.mxu0 %v11541_v45 }
0x1228   : > { %9071 = vmatpush3.msra.mxu0 %v11541_v45 }
0x1229   : > { %9072 = vmatprep.subr.mxu0 %v11547_v49 }
0x122a   : > { %9073 = vmatpush3.msra.mxu0 %v11547_v49 }
0x1254   : > { %v3678_v4 = vpop.permute.xlu1 %3677 }
0x1255   : > { %v3685_v3 = vsel %vm1269_vm3, %v3684_v48, %v3678_v4  ;;  %v11554_v4 = vld [vmem:[%s13216_s4 + $0x40] sm:$0xff] }
0x1256   : > { %9074 = vmatprep.subr.mxu0 %v11554_v4  ;;  %v7711_v48 = vld [vmem:[%s13221_s9 + $0x4] ss:$0 sm:$0xff] }
0x1257   : > { %9075 = vmatpush3.msra.mxu0 %v11554_v4 }
0x1258   : > { %v3692_v42 = vpop.permute.xlu1 %3691  ;;  %9084 = vmatprep.subr.mxu0 %v13545_v27 }
0x1259   : > { %9034 = vmatpush3.msra.mxu1 %v3692_v42 }
0x125a   : > { %9038 = vmatprep.subr.mxu1 %v13545_v27 }
0x1294   : > { %v3682_v21 = vpop.permute.xlu0 %3681 }
0x1295   : > { %v3686_v9 = vsel %vm1271_vm4, %v3685_v3, %v3682_v21  ;;  %v7712_v21 = vld [vmem:[%s13221_s9 + $0x5] ss:$0 sm:$0xff] }
0x1296   : > { %9036 = vmatmul.mubr.msk.f32.vlgmr.msra.gmra.mxu1 %vm503_vm0, %v3686_v9 }
0x1297   : > { %9046 = vmatprep.mubr.msk.f32.mxu1 %vm9547_vm1, %v13545_v27  ;;  %9039 = vmatpush3.msra.mxu1 %v3814_v59 }
0x1298   : > { %v3704_v55 = vpop.permute.xlu0 %3703  ;;  %9040 = vmatprep.subr.mxu1 %v13545_v27 }
0x1299   : > { %9041 = vmatpush3.msra.mxu1 %v3813_v34 }
0x129a   : > { %9042 = vmatprep.subr.mxu1 %v13545_v27 }
0x129b   : > { %9043 = vmatpush3.msra.mxu1 %v3812_v6 }
0x129c   : > { %9044 = vmatprep.subr.mxu1 %v13545_v27 }
0x129d   : > { %9045 = vmatpush3.msra.mxu1 %v3811_v33 }
0x129e   : > { %9049 = vmatprep.subr.mxu1 %v13545_v27 }
0x1356   : > { %v3775_v12 = vpop.f32.mrf.mxu1 }
0x1357   : > { %v3776_v16 = vadd.f32 %v3775_v12, %v3704_v55  ;;  %v11572_v12 = vld [vmem:[%s13419_s3] sm:$0xff] }
0x1358   : > { %v9037_v43 = vpop.f32.mrf.mxu1 }
0x1359   : > { %v3779_v18 = vadd.f32 %v3776_v16, %v13550_v23  ;;  %v11584_v23 = vld [vmem:[%s13217_s5 + $0x2] ss:$0 sm:$0xff] }
0x135b   : > { %v3784_v35 = vsel %vm503_vm0, %v3779_v18, 0.0 }
0x135c   : > { %3785 = vadd.xlane.f32.xlu1 %v3784_v35 }
0x13e5   : > { %v3786_v58 = vpop.xlane.xlu1 %3785 }
0x13e6   : > { %v3787_v5 = vmul.f32 0.03125, %v3786_v58 }
0x13e8   : > { %v3788_v15 = vsub.f32 %v3779_v18, %v3787_v5 }
0x13ea   : > { %v3789_v60 = vmul.f32 %v3788_v15, %v3788_v15 }
0x13ec   : > { %v3790_v0 = vsel %vm503_vm0, %v3789_v60, 0.0 }
0x13ed   : > { %3791 = vadd.xlane.f32.xlu0 %v3790_v0 }
0x1403   : > { %3904 = vrot.lane.b32.xlu0 %v7706_v13, %s13347_s27 }
0x1476   : > { %v3792_v39 = vpop.xlane.xlu0 %3791 }
0x1477   : > { %v3793_v32 = vmul.f32 0.03125, %v3792_v39 }
0x1479   : > { %v3794_v54 = vadd.f32 1e-05, %v3793_v32 }
0x147a   : > { %v3905_v53 = vpop.permute.xlu0 %3904 }
0x147b   : > { %9441 = vrsqrt.f32 %v3794_v54 }
0x1488   : > { %v9442_v17 = vpop.eup %9441 }
0x1489   : > { %v3796_v14 = vmul.f32 %v9442_v17, %v3788_v15 }
0x148b   : > { %v3803_v36 = vmul.f32 %v7704_v62, %v3796_v14 }
0x148d   : > { %v3810_v51 = vadd.f32 %v7705_v11, %v3803_v36 }
0x148f   : > { %9047 = vmatmul.mubr.msk.f32.vlgmr.msra.gmra.mxu1 %vm503_vm0, %v3810_v51 }
0x1490   : > { %9050 = vmatpush3.msra.mxu1 %v3903_v41  ;;  %9065 = vmatprep.mubr.msk.f32.mxu1 %vm9547_vm1, %v13545_v27 }
0x1491   : > { %9051 = vmatprep.subr.mxu1 %v13545_v27 }
0x1492   : > { %9052 = vmatpush3.msra.mxu1 %v3902_v29 }
0x1493   : > { %9053 = vmatprep.subr.mxu1 %v13545_v27 }
0x1494   : > { %9054 = vmatpush3.msra.mxu1 %v3901_v24 }
0x1495   : > { %9055 = vmatprep.subr.mxu1 %v13545_v27 }
0x1496   : > { %9056 = vmatpush3.msra.mxu1 %v3900_v19 }
0x1497   : > { %9057 = vmatprep.subr.mxu1 %v13545_v27 }
0x1498   : > { %9058 = vmatpush3.msra.mxu1 %v3899_v46 }
0x1499   : > { %9059 = vmatprep.subr.mxu1 %v13545_v27 }
0x149a   : > { %9060 = vmatpush3.msra.mxu1 %v3898_v28 }
0x149b   : > { %9061 = vmatprep.subr.mxu1 %v13545_v27 }
0x149c   : > { %9062 = vmatpush3.msra.mxu1 %v3897_v56 }
0x149d   : > { %9063 = vmatprep.subr.mxu1 %v13545_v27 }
0x149e   : > { %9064 = vmatpush3.msra.mxu1 %v3896_v63 }
0x149f   : > { %9079 = vmatprep.subr.mxu1 %v13545_v27 }
0x154f   : > { %v3891_v44 = vpop.f32.mrf.mxu1 }
0x1550   : > { %v3892_v37 = vadd.f32 %v7706_v13, %v3891_v44 }
0x1551   : > { %v9048_v1 = vpop.f32.mrf.mxu1 }
0x1552   : > { %v3895_v30 = vmax.f32 %v3892_v37, 0.0 }
0x1554   : > { %9066 = vmatmul.mubr.msk.f32.vlgmr.msra.gmra.mxu1 %vm3907_vm5, %v3895_v30 }
0x1555   : > { %9081 = vmatprep.mubr.msk.f32.mxu1 %vm9547_vm1, %v13545_v27 }
0x1614   : > { %v3977_v8 = vpop.f32.mrf.mxu1 }
0x1615   : > { %v3978_v31 = vadd.f32 %v3977_v8, %v3905_v53 }
0x1616   : > { %v9067_v20 = vpop.f32.mrf.mxu1 }
0x1617   : > { %v3981_v40 = vadd.f32 %v3978_v31, %v3810_v51 }
0x1619   : > { %v3986_v10 = vsel %vm503_vm0, %v3981_v40, 0.0 }
0x161a   : > { %3987 = vadd.xlane.f32.xlu1 %v3986_v10 }
0x16a3   : > { %v3988_v26 = vpop.xlane.xlu1 %3987 }
0x16a4   : > { %v3989_v25 = vmul.f32 0.03125, %v3988_v26 }
0x16a6   : > { %v3990_v7 = vsub.f32 %v3981_v40, %v3989_v25 }
0x16a8   : > { %v3991_v61 = vmul.f32 %v3990_v7, %v3990_v7 }
0x16aa   : > { %v3992_v38 = vsel %vm503_vm0, %v3991_v61, 0.0 }
0x16ab   : > { %3993 = vadd.xlane.f32.xlu1 %v3992_v38 }
0x1734   : > { %v3994_v42 = vpop.xlane.xlu1 %3993 }
0x1735   : > { %v3995_v52 = vmul.f32 0.03125, %v3994_v42 }
0x1737   : > { %v3996_v47 = vadd.f32 1e-05, %v3995_v52 }
0x1739   : > { %9443 = vrsqrt.f32 %v3996_v47 }
0x1746   : > { %v9444_v57 = vpop.eup %9443 }
0x1747   : > { %v3998_v3 = vmul.f32 %v9444_v57, %v3990_v7 }
0x1749   : > { %v4005_v9 = vmul.f32 %v7711_v48, %v3998_v3 }
0x174b   : > { %v11567_v55 = vadd.f32 %v7712_v21, %v4005_v9 }
0x174d   : > { %13551 = vst [vmem:[#allocation35_spill] sm:$0xff] %v11567_v55  ;;  %v4045_v16 = vadd.f32 %v11572_v12, %v11567_v55 }
0x174f   : > { %9076 = vmatprep.mubr.msk.f32.mxu0 %vm503_vm0, %v4045_v16 }
0x1750   : > { %9077 = vmatmul.mubr.msk.f32.vlgmr.msra.gmra.mxu0 %vm503_vm0, %v11567_v55 }
0x1751   : > { %9086 = vmatprep.mubr.msk.f32.mxu0 %vm9547_vm1, %v13545_v27 }
0x1810   : > { %v9078_v43 = vpop.f32.mrf.mxu0 }
0x1811   : > { %v4141_v29 = vadd.f32 %v9078_v43, %v11584_v23 }
0x1812   : > { %v4125_v18 = vpop.f32.mrf.mxu0 }
0x1813   : > { %v4140_v35 = vadd.f32 %v11584_v23, %v4125_v18 }
0x1815   : > { %4311 = vrot.lane.b32.xlu0 %v4140_v35, %s13345_s29  ;;  %4144 = vrot.lane.b32.xlu1 %v4140_v35, %s13552_s23  ;;  %v4142_v58 = vmul.f32 0.35355338, %v4140_v35 }
0x1819   : > { %4476 = vrot.lane.b32.xlu1 %v4140_v35, %s13553_s16  ;;  %4309 = vrot.lane.b32.xlu0 %v4142_v58, %s13554_s15 }
0x181d   : > { %4641 = vrot.lane.b32.xlu1 %v4140_v35, %s13555_s17  ;;  %4474 = vrot.lane.b32.xlu0 %v4142_v58, %s13556_s30 }
0x1821   : > { %4639 = vrot.lane.b32.xlu0 %v4142_v58, %s13530_s25 }
0x1887   : > { %v4312_v5 = vpop.permute.xlu0 %4311  ;;  %v4145_v15 = vpop.permute.xlu1 %4144 }
0x1888   : > { %9080 = vmatpush3.xpose.msk.msra.mxu1 %vm597_vm2, %v4145_v15 }
0x1889   : > { %9089 = vmatprep.subr.mxu1 %v13545_v27 }
0x188b   : > { %v4310_v60 = vpop.permute.xlu0 %4309  ;;  %9082 = vmatmul.mubr.msk.f32.vlgmr.msra.gmra.mxu1 %vm597_vm2, %v4142_v58  ;;  %v4477_v0 = vpop.permute.xlu1 %4476 }
0x188c   : > { %9090 = vmatpush3.xpose.msk.msra.mxu1 %vm597_vm2, %v4312_v5  ;;  %9091 = vmatprep.mubr.msk.f32.mxu1 %vm9547_vm1, %v13545_v27 }
0x188d   : > { %9099 = vmatprep.subr.mxu1 %v13545_v27 }
0x188f   : > { %9092 = vmatmul.mubr.msk.f32.vlgmr.msra.gmra.mxu1 %vm597_vm2, %v4310_v60  ;;  %v4475_v59 = vpop.permute.xlu0 %4474  ;;  %v4642_v34 = vpop.permute.xlu1 %4641 }
0x1890   : > { %9100 = vmatpush3.xpose.msk.msra.mxu1 %vm597_vm2, %v4477_v0  ;;  %9101 = vmatprep.mubr.msk.f32.mxu1 %vm9547_vm1, %v13545_v27 }
0x1891   : > { %9109 = vmatprep.subr.mxu1 %v13545_v27 }
0x1893   : > { %9102 = vmatmul.mubr.msk.f32.vlgmr.msra.gmra.mxu1 %vm597_vm2, %v4475_v59  ;;  %v4640_v6 = vpop.permute.xlu0 %4639 }
0x1894   : > { %9110 = vmatpush3.xpose.msk.msra.mxu1 %vm597_vm2, %v4642_v34  ;;  %9111 = vmatprep.mubr.msk.f32.mxu1 %vm9547_vm1, %v13545_v27 }
0x1895   : > { %9119 = vmatprep.subr.mxu1 %v13545_v27 }
0x1897   : > { %9112 = vmatmul.mubr.msk.f32.vlgmr.msra.gmra.mxu1 %vm597_vm2, %v4640_v6 }
0x1898   : > { %9127 = vmatprep.mubr.msk.f32.mxu1 %vm9547_vm1, %v13545_v27 }
0x194b   : > { %v4217_v33 = vpop.f32.mrf.mxu1 }
0x194c   : > { %v4221_v13 = vsel %vm597_vm2, %v4217_v33, -inf }
0x194d   : > { %4222 = vmax.xlane.f32.xlu1 %v4221_v13  ;;  %v9083_v39 = vpop.f32.mrf.mxu1 }
0x194f   : > { %v4383_v32 = vpop.f32.mrf.mxu1 }
0x1950   : > { %v4387_v54 = vsel %vm597_vm2, %v4383_v32, -inf }
0x1951   : > { %4388 = vmax.xlane.f32.xlu0 %v4387_v54  ;;  %v9093_v17 = vpop.f32.mrf.mxu1 }
0x1953   : > { %v4548_v62 = vpop.f32.mrf.mxu1 }
0x1954   : > { %v4552_v14 = vsel %vm597_vm2, %v4548_v62, -inf }
0x1955   : > { %4553 = vmax.xlane.f32.xlu0 %v4552_v14  ;;  %v9103_v11 = vpop.f32.mrf.mxu1 }
0x1957   : > { %v4713_v36 = vpop.f32.mrf.mxu1 }
0x1958   : > { %v4717_v51 = vsel %vm597_vm2, %v4713_v36, -inf }
0x1959   : > { %4718 = vmax.xlane.f32.xlu1 %v4717_v51  ;;  %v9113_v41 = vpop.f32.mrf.mxu1 }
0x196a   : > { %4398 = vrot.lane.b32.xlu1 %v4141_v29, %s13557_s28 }
0x19d6   : > { %v4223_v24 = vpop.xlane.xlu1 %4222 }
0x19d7   : > { %v4224_v19 = vsub.f32 %v4217_v33, %v4223_v24 }
0x19d9   : > { %v4225_v46 = vmul.f32 1.442695, %v4224_v19 }
0x19da   : > { %v4389_v28 = vpop.xlane.xlu0 %4388 }
0x19db   : > { %9445 = vpow2.f32 %v4225_v46  ;;  %v4390_v56 = vsub.f32 %v4383_v32, %v4389_v28 }
0x19dd   : > { %v4391_v63 = vmul.f32 1.442695, %v4390_v56 }
0x19de   : > { %v4554_v10 = vpop.xlane.xlu0 %4553 }
0x19df   : > { %9447 = vpow2.f32 %v4391_v63  ;;  %v4555_v26 = vsub.f32 %v4548_v62, %v4554_v10 }
0x19e1   : > { %v4556_v25 = vmul.f32 1.442695, %v4555_v26  ;;  %v7741_v26 = vld [vmem:[%s13221_s9 + $0x7] ss:$0 sm:$0xff] }
0x19e2   : > { %v4719_v44 = vpop.xlane.xlu1 %4718 }
0x19e3   : > { %v4720_v37 = vsub.f32 %v4713_v36, %v4719_v44  ;;  %v7745_v44 = vld [vmem:[%s13216_s4 + $0x78] sm:$0xff] }
0x19e5   : > { %v4721_v1 = vmul.f32 1.442695, %v4720_v37  ;;  %v7744_v37 = vld [vmem:[%s13216_s4 + $0x70] sm:$0xff] }
0x19e6   : > { %v4399_v38 = vpop.permute.xlu1 %4398 }
0x19e7   : > { %9449 = vpow2.f32 %v4721_v1  ;;  %v7743_v1 = vld [vmem:[%s13216_s4 + $0x68] sm:$0xff] }
0x19e8   : > { %v9446_v30 = vpop.eup %9445  ;;  %9451 = vpow2.f32 %v4556_v25 }
0x19e9   : > { %v4227_v53 = vsel %vm597_vm2, %v9446_v30, 0.0 }
0x19ea   : > { %4228 = vadd.xlane.f32.xlu0 %v4227_v53 }
0x19ec   : > { %v9448_v8 = vpop.eup %9447 }
0x19ed   : > { %v4393_v31 = vsel %vm597_vm2, %v9448_v8, 0.0 }
0x19ee   : > { %4394 = vadd.xlane.f32.xlu1 %v4393_v31 }
0x19f4   : > { %v9450_v20 = vpop.eup %9449 }
0x19f5   : > { %v4723_v40 = vsel %vm597_vm2, %v9450_v20, 0.0  ;;  %v9452_v7 = vpop.eup %9451 }
0x19f6   : > { %4724 = vadd.xlane.f32.xlu1 %v4723_v40  ;;  %v4558_v61 = vsel %vm597_vm2, %v9452_v7, 0.0  ;;  %v7740_v40 = vld [vmem:[%s13221_s9 + $0x6] ss:$0 sm:$0xff] }
0x1a00   : > { %4233 = vrot.lane.b32.xlu0 %v4141_v29, %s13347_s27 }
0x1a07   : > { %4563 = vrot.lane.b32.xlu1 %v4141_v29, %s13520_s24 }
0x1a0b   : > { %4829 = vrot.lane.b32.xlu1 %v11535_v22, %s13541_s22 }
0x1a1f   : > { %4559 = vadd.xlane.f32.xlu0 %v4558_v61 }
0x1a35   : > { %4728 = vrot.lane.b32.xlu0 %v4141_v29, %s13538_s21 }
0x1a39   : > { %4827 = vrot.lane.b32.xlu0 %v11541_v45, %s13541_s22 }
0x1a3d   : > { %4825 = vrot.lane.b32.xlu0 %v11547_v49, %s13541_s22 }
0x1a73   : > { %v4229_v42 = vpop.xlane.xlu0 %4228 }
0x1a74   : > { %9453 = vrcp.f32 %v4229_v42  ;;  %v13560_v42 = vld [vmem:[#allocation4_spill] sm:$0xff] }
0x1a77   : > { %v4234_v52 = vpop.permute.xlu0 %4233  ;;  %v4395_v47 = vpop.xlane.xlu1 %4394 }
0x1a78   : > { %9455 = vrcp.f32 %v4395_v47  ;;  %9085 = vmatpush3.msra.mxu0 %v4234_v52  ;;  %v13561_v52 = vld [vmem:[#allocation5_spill] sm:$0xff]  ;;  %v13563_v47 = vld [vmem:[#allocation7_spill] sm:$0xff] }
0x1a79   : > { %9094 = vmatprep.subr.mxu0 %v13545_v27 }
0x1a7f   : > { %v4725_v57 = vpop.xlane.xlu1 %4724 }
0x1a81   : > { %v9454_v22 = vpop.eup %9453 }
0x1a82   : > { %v4231_v48 = vmul.f32 %v9454_v22, %v9446_v30  ;;  %v7742_v30 = vld [vmem:[%s13216_s4 + $0x60] sm:$0xff]  ;;  %v13564_v22 = vld [vmem:[#allocation8_spill] sm:$0xff] }
0x1a83   : > { %v4564_v49 = vpop.permute.xlu1 %4563 }
0x1a84   : > { %9087 = vmatmul.mubr.msk.f32.vlgmr.msra.gmra.mxu0 %vm597_vm2, %v4231_v48  ;;  %v13566_v48 = vld [vmem:[#allocation10_spill] sm:$0xff] }
0x1a85   : > { %v9456_v3 = vpop.eup %9455  ;;  %9095 = vmatpush3.msra.mxu0 %v4399_v38  ;;  %9096 = vmatprep.mubr.msk.f32.mxu0 %vm9547_vm1, %v13545_v27  ;;  %v13559_v38 = vld [vmem:[#allocation3_spill] sm:$0xff] }
0x1a86   : > { %9104 = vmatprep.subr.mxu0 %v13545_v27  ;;  %v4397_v45 = vmul.f32 %v9456_v3, %v9448_v8  ;;  %v13567_v3 = vld [vmem:[#allocation11_spill] sm:$0xff] }
0x1a87   : > { %v4830_v58 = vpop.permute.xlu1 %4829 }
0x1a88   : > { %9097 = vmatmul.mubr.msk.f32.vlgmr.msra.gmra.mxu0 %vm597_vm2, %v4397_v45  ;;  %9120 = vmatpush3.msra.mxu1 %v4830_v58  ;;  %v13568_v45 = vld [vmem:[#allocation12_spill] sm:$0xff] }
0x1a89   : > { %9105 = vmatpush3.msra.mxu0 %v4564_v49  ;;  %9106 = vmatprep.mubr.msk.f32.mxu0 %vm9547_vm1, %v13545_v27  ;;  %v13569_v49 = vld [vmem:[#allocation13_spill] sm:$0xff]  ;;  %v13576_v58 = vld [vmem:[#allocation20_spill] sm:$0xff] }
0x1a8a   : > { %9114 = vmatprep.subr.mxu0 %v13545_v27  ;;  %9121 = vmatprep.subr.mxu1 %v13545_v27 }
0x1aa8   : > { %v4560_v21 = vpop.xlane.xlu0 %4559 }
0x1aa9   : > { %9457 = vrcp.f32 %v4560_v21  ;;  %v13570_v21 = vld [vmem:[#allocation14_spill] sm:$0xff] }
0x1aaa   : > { %9459 = vrcp.f32 %v4725_v57  ;;  %v13565_v57 = vld [vmem:[#allocation9_spill] sm:$0xff] }
0x1aac   : > { %v4729_v18 = vpop.permute.xlu0 %4728 }
0x1ab0   : > { %v4828_v5 = vpop.permute.xlu0 %4827 }
0x1ab1   : > { %9122 = vmatpush3.msra.mxu1 %v4828_v5  ;;  %v13577_v5 = vld [vmem:[#allocation21_spill] sm:$0xff] }
0x1ab2   : > { %9123 = vmatprep.subr.mxu1 %v13545_v27 }
0x1ab4   : > { %v4826_v15 = vpop.permute.xlu0 %4825 }
0x1ab5   : > { %9124 = vmatpush3.msra.mxu1 %v4826_v15  ;;  %v13578_v15 = vld [vmem:[#allocation22_spill] sm:$0xff] }
0x1ab6   : > { %v9458_v9 = vpop.eup %9457  ;;  %9125 = vmatprep.subr.mxu1 %v13545_v27 }
0x1ab7   : > { %v4562_v16 = vmul.f32 %v9458_v9, %v9452_v7  ;;  %v9460_v43 = vpop.eup %9459  ;;  %v13571_v9 = vld [vmem:[#allocation15_spill] sm:$0xff] }
0x1ab8   : > { %v4727_v35 = vmul.f32 %v9460_v43, %v9450_v20  ;;  %v13573_v43 = vld [vmem:[#allocation17_spill] sm:$0xff] }
0x1ab9   : > { %9107 = vmatmul.mubr.msk.f32.vlgmr.msra.gmra.mxu0 %vm597_vm2, %v4562_v16  ;;  %v13572_v16 = vld [vmem:[#allocation16_spill] sm:$0xff] }
0x1aba   : > { %9115 = vmatpush3.msra.mxu0 %v4729_v18  ;;  %9116 = vmatprep.mubr.msk.f32.mxu0 %vm9547_vm1, %v13545_v27  ;;  %v13574_v18 = vld [vmem:[#allocation18_spill] sm:$0xff] }
0x1abb   : > { %9130 = vmatprep.subr.mxu0 %v13545_v27 }
0x1abd   : > { %9117 = vmatmul.mubr.msk.f32.vlgmr.msra.gmra.mxu0 %vm597_vm2, %v4727_v35  ;;  %v13575_v35 = vld [vmem:[#allocation19_spill] sm:$0xff] }
0x1abe   : > { %9138 = vmatprep.mubr.msk.f32.mxu0 %vm9547_vm1, %v13545_v27  ;;  %9131 = vmatpush3.msra.mxu0 %v7745_v44  ;;  %v9515_v44 = vld [vmem:[%s9792_s26 + $0x70] sm:$0xff] }
0x1abf   : > { %9132 = vmatprep.subr.mxu0 %v13545_v27 }
0x1ac0   : > { %9133 = vmatpush3.msra.mxu0 %v7744_v37  ;;  %v11885_v37 = vld [vmem:[%s13217_s5 + $0x3] ss:$0 sm:$0xff] }
0x1ac1   : > { %9134 = vmatprep.subr.mxu0 %v13545_v27 }
0x1ac2   : > { %9135 = vmatpush3.msra.mxu0 %v7743_v1 }
0x1ac3   : > { %9136 = vmatprep.subr.mxu0 %v13545_v27 }
0x1ac4   : > { %9137 = vmatpush3.msra.mxu0 %v7742_v30  ;;  %v9516_v30 = vld [vmem:[%s9792_s26 + $0x78] sm:$0xff] }
0x1b44   : > { %v4305_v60 = vpop.f32.mrf.mxu0 }
0x1b46   : > { %v9088_v0 = vpop.f32.mrf.mxu0 }
0x1b47   : > { %v13580_v0 = vld [vmem:[#allocation24_spill] sm:$0xff] }
0x1b48   : > { %v4470_v59 = vpop.f32.mrf.mxu0 }
0x1b49   : > { %4805 = vrot.lane.b32.xlu1 %v4470_v59, %s13542_s19  ;;  %v13581_v59 = vld [vmem:[#allocation25_spill] sm:$0xff] }
0x1b4a   : > { %v9098_v34 = vpop.f32.mrf.mxu0 }
0x1b4b   : > { %v13582_v34 = vld [vmem:[#allocation26_spill] sm:$0xff] }
0x1b79   : > { %v4635_v6 = vpop.f32.mrf.mxu0 }
0x1b7a   : > { %4809 = vrot.lane.b32.xlu1 %v4635_v6, %s13546_s20  ;;  %v13583_v6 = vld [vmem:[#allocation27_spill] sm:$0xff] }
0x1b7b   : > { %v9108_v33 = vpop.f32.mrf.mxu0 }
0x1b7c   : > { %v13584_v33 = vld [vmem:[#allocation28_spill] sm:$0xff] }
0x1b7d   : > { %v4800_v13 = vpop.f32.mrf.mxu0 }
0x1b7e   : > { %4823 = vrot.lane.b32.xlu1 %v11554_v4, %s13541_s22  ;;  %4813 = vrot.lane.b32.xlu0 %v4800_v13, %s13547_s18  ;;  %v13585_v13 = vld [vmem:[#allocation29_spill] sm:$0xff] }
0x1b7f   : > { %v9118_v39 = vpop.f32.mrf.mxu0 }
0x1b80   : > { %v13586_v39 = vld [vmem:[#allocation30_spill] sm:$0xff] }
0x1b82   : > { %4835 = vrot.lane.b32.xlu0 %v11584_v23, %s13541_s22 }
0x1bbb   : > { %v4806_v32 = vpop.permute.xlu1 %4805 }
0x1bbc   : > { %v4816_v17 = vsel %vm597_vm2, %v4305_v60, %v4806_v32  ;;  %v13579_v60 = vld [vmem:[#allocation23_spill] sm:$0xff] }
0x1bbd   : > { %v13587_v32 = vld [vmem:[#allocation31_spill] sm:$0xff] }
0x1bec   : > { %v4810_v54 = vpop.permute.xlu1 %4809 }
0x1bed   : > { %v4817_v62 = vsel %vm1269_vm3, %v4816_v17, %v4810_v54  ;;  %v13588_v54 = vld [vmem:[#allocation32_spill] sm:$0xff]  ;;  %v13589_v17 = vld [vmem:[#allocation33_spill] sm:$0xff] }
0x1bf0   : > { %v4814_v14 = vpop.permute.xlu0 %4813  ;;  %v4824_v11 = vpop.permute.xlu1 %4823 }
0x1bf1   : > { %v4818_v36 = vsel %vm1271_vm4, %v4817_v62, %v4814_v14  ;;  %9126 = vmatpush3.msra.mxu1 %v4824_v11  ;;  %v13590_v62 = vld [vmem:[#allocation34_spill] sm:$0xff]  ;;  %v9502_v11 = vld [vmem:[%s9792_s26 + $0x8] sm:$0xff] }
0x1bf2   : > { %9128 = vmatmul.mubr.msk.f32.vlgmr.msra.gmra.mxu1 %vm503_vm0, %v4818_v36  ;;  %v9501_v14 = vld [vmem:[%s9792_s26] sm:$0xff]  ;;  %v9503_v36 = vld [vmem:[%s9792_s26 + $0x10] sm:$0xff] }
0x1bf4   : > { %v4836_v4 = vpop.permute.xlu0 %4835 }
0x1cb2   : > { %v4907_v51 = vpop.f32.mrf.mxu1 }
0x1cb3   : > { %v4908_v41 = vadd.f32 %v4907_v51, %v4836_v4  ;;  %v9504_v4 = vld [vmem:[%s9792_s26 + $0x18] sm:$0xff]  ;;  %v9505_v51 = vld [vmem:[%s9792_s26 + $0x20] sm:$0xff] }
0x1cb4   : > { %v9129_v29 = vpop.f32.mrf.mxu1 }
0x1cb5   : > { %v4911_v24 = vadd.f32 %v4908_v41, %v11567_v55  ;;  %v9506_v41 = vld [vmem:[%s9792_s26 + $0x28] sm:$0xff]  ;;  %v9507_v29 = vld [vmem:[%s9792_s26 + $0x30] sm:$0xff] }
0x1cb7   : > { %v4916_v23 = vsel %vm503_vm0, %v4911_v24, 0.0 }
0x1cb8   : > { %4917 = vadd.xlane.f32.xlu1 %v4916_v23  ;;  %v9509_v23 = vld [vmem:[%s9792_s26 + $0x40] sm:$0xff] }
0x1d41   : > { %v4918_v19 = vpop.xlane.xlu1 %4917 }
0x1d42   : > { %v4919_v46 = vmul.f32 0.03125, %v4918_v19  ;;  %v9510_v19 = vld [vmem:[%s9792_s26 + $0x48] sm:$0xff] }
0x1d44   : > { %v4920_v28 = vsub.f32 %v4911_v24, %v4919_v46  ;;  %v9508_v24 = vld [vmem:[%s9792_s26 + $0x38] sm:$0xff]  ;;  %v9511_v46 = vld [vmem:[%s9792_s26 + $0x50] sm:$0xff] }
0x1d46   : > { %v4921_v56 = vmul.f32 %v4920_v28, %v4920_v28 }
0x1d48   : > { %v4922_v63 = vsel %vm503_vm0, %v4921_v56, 0.0  ;;  %v9513_v56 = vld [vmem:[%s9792_s26 + $0x60] sm:$0xff] }
0x1d49   : > { %4923 = vadd.xlane.f32.xlu0 %v4922_v63  ;;  %v9514_v63 = vld [vmem:[%s9792_s26 + $0x68] sm:$0xff] }
0x1dd2   : > { %v4924_v53 = vpop.xlane.xlu0 %4923 }
0x1dd3   : > { %v4925_v8 = vmul.f32 0.03125, %v4924_v53 }
0x1dd5   : > { %v4926_v31 = vadd.f32 1e-05, %v4925_v8 }
0x1dd7   : > { %9461 = vrsqrt.f32 %v4926_v31 }
0x1de4   : > { %v9462_v20 = vpop.eup %9461 }
0x1de5   : > { %v4928_v10 = vmul.f32 %v9462_v20, %v4920_v28  ;;  %v9512_v28 = vld [vmem:[%s9792_s26 + $0x58] sm:$0xff] }
0x1de7   : > { %v4935_v25 = vmul.f32 %v7740_v40, %v4928_v10  ;;  %v9517_v40 = vld [vmem:[%s9792_s26 + $0x80] sm:$0xff] }
0x1de9   : > { %v11687_v7 = vadd.f32 %v7741_v26, %v4935_v25  ;;  %v9518_v25 = vld [vmem:[%s9792_s26 + $0x88] sm:$0xff] }
0x1deb   : > { %13558 = vst [vmem:[#allocation36_spill] sm:$0xff] %v11687_v7  ;;  %v4943_v61 = vadd.f32 %v11572_v12, %v11687_v7  ;;  %v13562_v12 = vld [vmem:[#allocation6_spill] sm:$0xff] }
0x1ded   : > { %9139 = vmatmul.mubr.msk.f32.vlgmr.msra.gmra.mxu0 %vm503_vm0, %v4943_v61 }
0x1dee   : > { %9141 = vmatprep.mubr.msk.f32.mxu0 %vm9547_vm1, %v13545_v27 }
0x1df1   : > { %9142 = vmatmul.mubr.msk.f32.gmra.mxu0 %vm503_vm0, %v13559_v38 }
0x1df2   : > { %9144 = vmatprep.mubr.msk.f32.mxu0 %vm9547_vm1, %v13545_v27 }
0x1df5   : > { %9145 = vmatmul.mubr.msk.f32.gmra.mxu0 %vm503_vm0, %v13560_v42  ;;  %v9519_v42 = vld [vmem:[%s9792_s26 + $0x90] sm:$0xff] }
0x1df6   : > { %9147 = vmatprep.mubr.msk.f32.mxu0 %vm9547_vm1, %v13545_v27 }
0x1df9   : > { %9148 = vmatmul.mubr.msk.f32.gmra.mxu0 %vm503_vm0, %v13561_v52 }
0x1dfa   : > { %9150 = vmatprep.mubr.msk.f32.mxu0 %vm9547_vm1, %v13545_v27 }
0x1dfd   : > { %9151 = vmatmul.mubr.msk.f32.gmra.mxu0 %vm503_vm0, %v13562_v12 }
0x1dfe   : > { %9153 = vmatprep.mubr.msk.f32.mxu0 %vm9547_vm1, %v13545_v27 }
0x1e01   : > { %9154 = vmatmul.mubr.msk.f32.gmra.mxu0 %vm503_vm0, %v13563_v47  ;;  %v9520_v47 = vld [vmem:[%s9792_s26 + $0x98] sm:$0xff] }
0x1e02   : > { %9156 = vmatprep.mubr.msk.f32.mxu0 %vm9547_vm1, %v13545_v27 }
0x1e05   : > { %9157 = vmatmul.mubr.msk.f32.gmra.mxu0 %vm503_vm0, %v13564_v22 }
0x1e06   : > { %9159 = vmatprep.mubr.msk.f32.mxu0 %vm9547_vm1, %v13545_v27 }
0x1e09   : > { %9160 = vmatmul.mubr.msk.f32.gmra.mxu0 %vm503_vm0, %v13565_v57 }
0x1e0a   : > { %9162 = vmatprep.mubr.msk.f32.mxu0 %vm9547_vm1, %v13545_v27 }
0x1e0d   : > { %9163 = vmatmul.mubr.msk.f32.gmra.mxu0 %vm503_vm0, %v13566_v48  ;;  %v9521_v48 = vld [vmem:[%s9792_s26 + $0xa0] sm:$0xff] }
0x1e0e   : > { %9165 = vmatprep.mubr.msk.f32.mxu0 %vm9547_vm1, %v13545_v27 }
0x1e11   : > { %9166 = vmatmul.mubr.msk.f32.gmra.mxu0 %vm503_vm0, %v13567_v3 }
0x1e12   : > { %9168 = vmatprep.mubr.msk.f32.mxu0 %vm9547_vm1, %v13545_v27 }
0x1e15   : > { %9169 = vmatmul.mubr.msk.f32.gmra.mxu0 %vm503_vm0, %v13568_v45 }
0x1e16   : > { %9171 = vmatprep.mubr.msk.f32.mxu0 %vm9547_vm1, %v13545_v27 }
0x1e19   : > { %9172 = vmatmul.mubr.msk.f32.gmra.mxu0 %vm503_vm0, %v13569_v49  ;;  %v9522_v49 = vld [vmem:[%s9792_s26 + $0xa8] sm:$0xff] }
0x1e1a   : > { %9174 = vmatprep.mubr.msk.f32.mxu0 %vm9547_vm1, %v13545_v27 }
0x1e1d   : > { %9175 = vmatmul.mubr.msk.f32.gmra.mxu0 %vm503_vm0, %v13570_v21 }
0x1e1e   : > { %9177 = vmatprep.mubr.msk.f32.mxu0 %vm9547_vm1, %v13545_v27 }
0x1e21   : > { %9178 = vmatmul.mubr.msk.f32.gmra.mxu0 %vm503_vm0, %v13571_v9 }
0x1e22   : > { %9180 = vmatprep.mubr.msk.f32.mxu0 %vm9547_vm1, %v13545_v27 }
0x1e25   : > { %9181 = vmatmul.mubr.msk.f32.gmra.mxu0 %vm503_vm0, %v13572_v16  ;;  %v9523_v16 = vld [vmem:[%s9792_s26 + $0xb0] sm:$0xff] }
0x1e26   : > { %9183 = vmatprep.mubr.msk.f32.mxu0 %vm9547_vm1, %v13545_v27 }
0x1e29   : > { %9184 = vmatmul.mubr.msk.f32.gmra.mxu0 %vm503_vm0, %v13573_v43 }
0x1e2a   : > { %9186 = vmatprep.mubr.msk.f32.mxu0 %vm9547_vm1, %v13545_v27 }
0x1e2d   : > { %9187 = vmatmul.mubr.msk.f32.gmra.mxu0 %vm503_vm0, %v13574_v18 }
0x1e2e   : > { %9189 = vmatprep.mubr.msk.f32.mxu0 %vm9547_vm1, %v13545_v27 }
0x1e31   : > { %9190 = vmatmul.mubr.msk.f32.gmra.mxu0 %vm503_vm0, %v13575_v35  ;;  %v9524_v35 = vld [vmem:[%s9792_s26 + $0xb8] sm:$0xff] }
0x1e32   : > { %9192 = vmatprep.mubr.msk.f32.mxu0 %vm9547_vm1, %v13545_v27 }
0x1e35   : > { %9193 = vmatmul.mubr.msk.f32.gmra.mxu0 %vm503_vm0, %v13576_v58 }
0x1e36   : > { %9195 = vmatprep.mubr.msk.f32.mxu0 %vm9547_vm1, %v13545_v27 }
0x1e39   : > { %9196 = vmatmul.mubr.msk.f32.gmra.mxu0 %vm503_vm0, %v13577_v5 }
0x1e3a   : > { %9198 = vmatprep.mubr.msk.f32.mxu0 %vm9547_vm1, %v13545_v27 }
0x1e3d   : > { %9199 = vmatmul.mubr.msk.f32.gmra.mxu0 %vm503_vm0, %v13578_v15  ;;  %v9525_v15 = vld [vmem:[%s9792_s26 + $0xc0] sm:$0xff] }
0x1e3e   : > { %9201 = vmatprep.mubr.msk.f32.mxu0 %vm9547_vm1, %v13545_v27 }
0x1e41   : > { %9202 = vmatmul.mubr.msk.f32.gmra.mxu0 %vm503_vm0, %v13579_v60 }
0x1e42   : > { %9204 = vmatprep.mubr.msk.f32.mxu0 %vm9547_vm1, %v13545_v27 }
0x1e45   : > { %9205 = vmatmul.mubr.msk.f32.gmra.mxu0 %vm503_vm0, %v13580_v0 }
0x1e46   : > { %9207 = vmatprep.mubr.msk.f32.mxu0 %vm9547_vm1, %v13545_v27 }
0x1e49   : > { %9208 = vmatmul.mubr.msk.f32.gmra.mxu0 %vm503_vm0, %v13581_v59  ;;  %v9526_v59 = vld [vmem:[%s9792_s26 + $0xc8] sm:$0xff] }
0x1e4a   : > { %9210 = vmatprep.mubr.msk.f32.mxu0 %vm9547_vm1, %v13545_v27 }
0x1e4d   : > { %9211 = vmatmul.mubr.msk.f32.gmra.mxu0 %vm503_vm0, %v13582_v34 }
0x1e4e   : > { %9213 = vmatprep.mubr.msk.f32.mxu0 %vm9547_vm1, %v13545_v27 }
0x1e51   : > { %9214 = vmatmul.mubr.msk.f32.gmra.mxu0 %vm503_vm0, %v13583_v6 }
0x1e52   : > { %9216 = vmatprep.mubr.msk.f32.mxu0 %vm9547_vm1, %v13545_v27 }
0x1e55   : > { %9217 = vmatmul.mubr.msk.f32.gmra.mxu0 %vm503_vm0, %v13584_v33  ;;  %v9527_v33 = vld [vmem:[%s9792_s26 + $0xd0] sm:$0xff] }
0x1e56   : > { %9219 = vmatprep.mubr.msk.f32.mxu0 %vm9547_vm1, %v13545_v27 }
0x1e59   : > { %9220 = vmatmul.mubr.msk.f32.gmra.mxu0 %vm503_vm0, %v13585_v13 }
0x1e5a   : > { %9222 = vmatprep.mubr.msk.f32.mxu0 %vm9547_vm1, %v13545_v27 }
0x1e5d   : > { %9223 = vmatmul.mubr.msk.f32.gmra.mxu0 %vm503_vm0, %v13586_v39 }
0x1e5e   : > { %9225 = vmatprep.mubr.msk.f32.mxu0 %vm9547_vm1, %v13545_v27 }
0x1e61   : > { %9226 = vmatmul.mubr.msk.f32.gmra.mxu0 %vm503_vm0, %v13587_v32  ;;  %v9528_v32 = vld [vmem:[%s9792_s26 + $0xd8] sm:$0xff] }
0x1e62   : > { %9228 = vmatprep.mubr.msk.f32.mxu0 %vm9547_vm1, %v13545_v27 }
0x1e65   : > { %9229 = vmatmul.mubr.msk.f32.gmra.mxu0 %vm503_vm0, %v13588_v54 }
0x1e66   : > { %9231 = vmatprep.mubr.msk.f32.mxu0 %vm9547_vm1, %v13545_v27 }
0x1e69   : > { %9232 = vmatmul.mubr.msk.f32.gmra.mxu0 %vm503_vm0, %v13589_v17 }
0x1e6a   : > { %9234 = vmatprep.mubr.msk.f32.mxu0 %vm9547_vm1, %v13545_v27 }
0x1e6d   : > { %9235 = vmatmul.mubr.msk.f32.gmra.mxu0 %vm503_vm0, %v13590_v62  ;;  %v9529_v62 = vld [vmem:[%s9792_s26 + $0xe0] sm:$0xff] }
0x1e6e   : > { %9237 = vmatprep.mubr.msk.f32.mxu0 %vm9547_vm1, %v13545_v27 }
0x1e71   : > { %9238 = vmatmul.mubr.msk.f32.gmra.mxu0 %vm503_vm0, %v9501_v14 }
0x1e72   : > { %9240 = vmatprep.mubr.msk.f32.mxu0 %vm9547_vm1, %v13545_v27 }
0x1e75   : > { %9241 = vmatmul.mubr.msk.f32.gmra.mxu0 %vm503_vm0, %v9502_v11 }
0x1e76   : > { %9243 = vmatprep.mubr.msk.f32.mxu0 %vm9547_vm1, %v13545_v27 }
0x1e79   : > { %9244 = vmatmul.mubr.msk.f32.gmra.mxu0 %vm503_vm0, %v9503_v36  ;;  %v9530_v36 = vld [vmem:[%s9792_s26 + $0xe8] sm:$0xff] }
0x1e7a   : > { %9246 = vmatprep.mubr.msk.f32.mxu0 %vm9547_vm1, %v13545_v27 }
0x1e7d   : > { %9247 = vmatmul.mubr.msk.f32.gmra.mxu0 %vm503_vm0, %v9504_v4 }
0x1e7e   : > { %9249 = vmatprep.mubr.msk.f32.mxu0 %vm9547_vm1, %v13545_v27 }
0x1e81   : > { %9250 = vmatmul.mubr.msk.f32.gmra.mxu0 %vm503_vm0, %v9505_v51 }
0x1e82   : > { %9252 = vmatprep.mubr.msk.f32.mxu0 %vm9547_vm1, %v13545_v27 }
0x1e85   : > { %9253 = vmatmul.mubr.msk.f32.gmra.mxu0 %vm503_vm0, %v9506_v41  ;;  %v9531_v41 = vld [vmem:[%s9792_s26 + $0xf0] sm:$0xff] }
0x1e86   : > { %9255 = vmatprep.mubr.msk.f32.mxu0 %vm9547_vm1, %v13545_v27 }
0x1e89   : > { %9256 = vmatmul.mubr.msk.f32.gmra.mxu0 %vm503_vm0, %v9507_v29 }
0x1e8a   : > { %9258 = vmatprep.mubr.msk.f32.mxu0 %vm9547_vm1, %v13545_v27 }
0x1e8d   : > { %9259 = vmatmul.mubr.msk.f32.gmra.mxu0 %vm503_vm0, %v9508_v24 }
0x1e8e   : > { %9261 = vmatprep.mubr.msk.f32.mxu0 %vm9547_vm1, %v13545_v27 }
0x1e91   : > { %9262 = vmatmul.mubr.msk.f32.gmra.mxu0 %vm503_vm0, %v9509_v23  ;;  %v9532_v23 = vld [vmem:[%s9792_s26 + $0xf8] sm:$0xff]  ;;  %s13608_s26 = smov 64  }
0x1e92   : > { %9264 = vmatprep.mubr.msk.f32.mxu0 %vm9547_vm1, %v13545_v27 }
0x1e95   : > { %9265 = vmatmul.mubr.msk.f32.gmra.mxu0 %vm503_vm0, %v9510_v19 }
0x1e96   : > { %9267 = vmatprep.mubr.msk.f32.mxu0 %vm9547_vm1, %v13545_v27 }
0x1e99   : > { %9268 = vmatmul.mubr.msk.f32.gmra.mxu0 %vm503_vm0, %v9511_v46 }
0x1e9a   : > { %9270 = vmatprep.mubr.msk.f32.mxu0 %vm9547_vm1, %v13545_v27 }
0x1e9d   : > { %9271 = vmatmul.mubr.msk.f32.gmra.mxu0 %vm503_vm0, %v9512_v28 }
0x1e9e   : > { %9273 = vmatprep.mubr.msk.f32.mxu0 %vm9547_vm1, %v13545_v27 }
0x1ea1   : > { %9274 = vmatmul.mubr.msk.f32.gmra.mxu0 %vm503_vm0, %v9513_v56 }
0x1ea2   : > { %9276 = vmatprep.mubr.msk.f32.mxu0 %vm9547_vm1, %v13545_v27 }
0x1ea5   : > { %9277 = vmatmul.mubr.msk.f32.gmra.mxu0 %vm503_vm0, %v9514_v63 }
0x1ea6   : > { %9279 = vmatprep.mubr.msk.f32.mxu0 %vm9547_vm1, %v13545_v27 }
0x1ea9   : > { %9280 = vmatmul.mubr.msk.f32.gmra.mxu0 %vm503_vm0, %v9515_v44 }
0x1eaa   : > { %9282 = vmatprep.mubr.msk.f32.mxu0 %vm9547_vm1, %v13545_v27 }
0x1ead   : > { %v5020_v1 = vpop.f32.mrf.mxu0  ;;  %9283 = vmatmul.mubr.msk.f32.gmra.mxu0 %vm503_vm0, %v9516_v30 }
0x1eae   : > { %v5350_v53 = vadd.f32 %v11885_v37, %v5020_v1  ;;  %9285 = vmatprep.mubr.msk.f32.mxu0 %vm9547_vm1, %v13545_v27 }
0x1eaf   : > { %v9140_v8 = vpop.f32.mrf.mxu0 }
0x1eb0   : > { %v11892_v31 = vmul.f32 0.35355338, %v5350_v53 }
0x1eb1   : > { %v11894_v20 = vpop.f32.mrf.mxu0  ;;  %9286 = vmatmul.mubr.msk.f32.gmra.mxu0 %vm503_vm0, %v9517_v40 }
0x1eb2   : > { %8499 = vmatprep.mubr.msk.f32.mxu1 %vm597_vm2, %v11892_v31  ;;  %9288 = vmatprep.mubr.msk.f32.mxu0 %vm9547_vm1, %v13545_v27 }
0x1eb3   : > { %v9143_v10 = vpop.f32.mrf.mxu0 }
0x1eb5   : > { %v11902_v26 = vpop.f32.mrf.mxu0  ;;  %9289 = vmatmul.mubr.msk.f32.gmra.mxu0 %vm503_vm0, %v9518_v25 }
0x1eb6   : > { %9291 = vmatprep.mubr.msk.f32.mxu0 %vm9547_vm1, %v13545_v27 }
0x1eb7   : > { %v9146_v61 = vpop.f32.mrf.mxu0 }
0x1eb9   : > { %v11908_v38 = vpop.f32.mrf.mxu0  ;;  %9292 = vmatmul.mubr.msk.f32.gmra.mxu0 %vm503_vm0, %v9519_v42 }
0x1eba   : > { %9294 = vmatprep.mubr.msk.f32.mxu0 %vm9547_vm1, %v13545_v27 }
0x1ebb   : > { %v9149_v52 = vpop.f32.mrf.mxu0 }
0x1ebd   : > { %v11914_v12 = vpop.f32.mrf.mxu0  ;;  %9295 = vmatmul.mubr.msk.f32.gmra.mxu0 %vm503_vm0, %v9520_v47 }
0x1ebe   : > { %9297 = vmatprep.mubr.msk.f32.mxu0 %vm9547_vm1, %v13545_v27 }
0x1ebf   : > { %v9152_v22 = vpop.f32.mrf.mxu0 }
0x1ec1   : > { %v11920_v57 = vpop.f32.mrf.mxu0  ;;  %9298 = vmatmul.mubr.msk.f32.gmra.mxu0 %vm503_vm0, %v9521_v48 }
0x1ec2   : > { %9300 = vmatprep.mubr.msk.f32.mxu0 %vm9547_vm1, %v13545_v27 }
0x1ec3   : > { %v9155_v3 = vpop.f32.mrf.mxu0 }
0x1ec5   : > { %v11926_v45 = vpop.f32.mrf.mxu0  ;;  %9301 = vmatmul.mubr.msk.f32.gmra.mxu0 %vm503_vm0, %v9522_v49 }
0x1ec6   : > { %9303 = vmatprep.mubr.msk.f32.mxu0 %vm9547_vm1, %v13545_v27 }
0x1ec7   : > { %v9158_v21 = vpop.f32.mrf.mxu0 }
0x1ec9   : > { %v11932_v9 = vpop.f32.mrf.mxu0  ;;  %9304 = vmatmul.mubr.msk.f32.gmra.mxu0 %vm503_vm0, %v9523_v16 }
0x1eca   : > { %9306 = vmatprep.mubr.msk.f32.mxu0 %vm9547_vm1, %v13545_v27 }
0x1ecb   : > { %v9161_v43 = vpop.f32.mrf.mxu0 }
0x1ecd   : > { %v11938_v18 = vpop.f32.mrf.mxu0  ;;  %9307 = vmatmul.mubr.msk.f32.gmra.mxu0 %vm503_vm0, %v9524_v35 }
0x1ece   : > { %9309 = vmatprep.mubr.msk.f32.mxu0 %vm9547_vm1, %v13545_v27 }
0x1ecf   : > { %v9164_v58 = vpop.f32.mrf.mxu0 }
0x1ed1   : > { %v11944_v5 = vpop.f32.mrf.mxu0  ;;  %9310 = vmatmul.mubr.msk.f32.gmra.mxu0 %vm503_vm0, %v9525_v15 }
0x1ed2   : > { %9312 = vmatprep.mubr.msk.f32.mxu0 %vm9547_vm1, %v13545_v27 }
0x1ed3   : > { %v9167_v60 = vpop.f32.mrf.mxu0 }
0x1ed5   : > { %v11950_v0 = vpop.f32.mrf.mxu0  ;;  %9313 = vmatmul.mubr.msk.f32.gmra.mxu0 %vm503_vm0, %v9526_v59 }
0x1ed6   : > { %9315 = vmatprep.mubr.msk.f32.mxu0 %vm9547_vm1, %v13545_v27 }
0x1ed7   : > { %v9170_v34 = vpop.f32.mrf.mxu0 }
0x1ed9   : > { %v11956_v6 = vpop.f32.mrf.mxu0  ;;  %9316 = vmatmul.mubr.msk.f32.gmra.mxu0 %vm503_vm0, %v9527_v33 }
0x1eda   : > { %9318 = vmatprep.mubr.msk.f32.mxu0 %vm9547_vm1, %v13545_v27 }
0x1edb   : > { %v9173_v13 = vpop.f32.mrf.mxu0 }
0x1edd   : > { %v11962_v39 = vpop.f32.mrf.mxu0  ;;  %9319 = vmatmul.mubr.msk.f32.gmra.mxu0 %vm503_vm0, %v9528_v32 }
0x1ede   : > { %9321 = vmatprep.mubr.msk.f32.mxu0 %vm9547_vm1, %v13545_v27 }
0x1edf   : > { %v9176_v54 = vpop.f32.mrf.mxu0 }
0x1ee1   : > { %v11968_v17 = vpop.f32.mrf.mxu0  ;;  %9322 = vmatmul.mubr.msk.f32.gmra.mxu0 %vm503_vm0, %v9529_v62 }
0x1ee2   : > { %9324 = vmatprep.mubr.msk.f32.mxu0 %vm9547_vm1, %v13545_v27 }
0x1ee3   : > { %v9179_v14 = vpop.f32.mrf.mxu0 }
0x1ee5   : > { %v5090_v11 = vpop.f32.mrf.mxu0  ;;  %9325 = vmatmul.mubr.msk.f32.gmra.mxu0 %vm503_vm0, %v9530_v36 }
0x1ee6   : > { %9327 = vmatprep.mubr.msk.f32.mxu0 %vm9547_vm1, %v13545_v27 }
0x1ee7   : > { %v9182_v4 = vpop.f32.mrf.mxu0 }
0x1ee9   : > { %v5095_v51 = vpop.f32.mrf.mxu0  ;;  %9328 = vmatmul.mubr.msk.f32.gmra.mxu0 %vm503_vm0, %v9531_v41 }
0x1eea   : > { %9330 = vmatprep.mubr.msk.f32.mxu0 %vm9547_vm1, %v13545_v27  ;;  %v12017_v4 = vadd.f32 %v11885_v37, %v5095_v51 }
0x1eeb   : > { %v9185_v29 = vpop.f32.mrf.mxu0 }
0x1eec   : > { %13591 = vst [vmem:[#allocation37_spill] sm:$0xff] %v12017_v4  ;;  %v12027_v29 = vadd.f32 %v11885_v37, %v5090_v11 }
0x1eed   : > { %v5100_v24 = vpop.f32.mrf.mxu0  ;;  %9331 = vmatmul.mubr.msk.f32.gmra.mxu0 %vm503_vm0, %v9532_v23 }
0x1eee   : > { %v11985_v19 = vadd.f32 %v11885_v37, %v5100_v24  ;;  %13592 = vst [vmem:[#allocation38_spill] sm:$0xff] %v12027_v29 }
0x1eef   : > { %v9188_v46 = vpop.f32.mrf.mxu0 }
0x1ef0   : > { %5478 = vrot.lane.b32.xlu1 %v11985_v19, %s13552_s23  ;;  %v12040_v46 = vadd.f32 %v11885_v37, %v11968_v17 }
0x1ef1   : > { %v11989_v28 = vpop.f32.mrf.mxu0 }
0x1ef2   : > { %13593 = vst [vmem:[#allocation39_spill] sm:$0xff] %v12040_v46 }
0x1ef3   : > { %v9191_v56 = vpop.f32.mrf.mxu0 }
0x1ef5   : > { %v11991_v63 = vpop.f32.mrf.mxu0 }
0x1ef7   : > { %v9194_v44 = vpop.f32.mrf.mxu0 }
0x1ef9   : > { %v11993_v1 = vpop.f32.mrf.mxu0 }
0x1efb   : > { %v9197_v30 = vpop.f32.mrf.mxu0 }
0x1efc   : > { %v12053_v30 = vadd.f32 %v11885_v37, %v11962_v39 }
0x1efd   : > { %v11995_v53 = vpop.f32.mrf.mxu0 }
0x1efe   : > { %13594 = vst [vmem:[#allocation40_spill] sm:$0xff] %v12053_v30 }
0x1eff   : > { %v9200_v8 = vpop.f32.mrf.mxu0 }
0x1f01   : > { %v11997_v40 = vpop.f32.mrf.mxu0 }
0x1f03   : > { %v9203_v10 = vpop.f32.mrf.mxu0 }
0x1f05   : > { %v11999_v25 = vpop.f32.mrf.mxu0 }
0x1f07   : > { %v9206_v61 = vpop.f32.mrf.mxu0 }
0x1f08   : > { %v12066_v61 = vadd.f32 %v11885_v37, %v11956_v6 }
0x1f09   : > { %v5135_v42 = vpop.f32.mrf.mxu0 }
0x1f0a   : > { %13595 = vst [vmem:[#allocation41_spill] sm:$0xff] %v12066_v61 }
0x1f0b   : > { %v9209_v52 = vpop.f32.mrf.mxu0 }
0x1f0d   : > { %v5140_v47 = vpop.f32.mrf.mxu0 }
0x1f0f   : > { %v9212_v22 = vpop.f32.mrf.mxu0 }
0x1f11   : > { %v5145_v48 = vpop.f32.mrf.mxu0 }
0x1f12   : > { %v12069_v52 = vadd.f32 %v11885_v37, %v5145_v48 }
0x1f13   : > { %v9215_v3 = vpop.f32.mrf.mxu0 }
0x1f14   : > { %v12079_v3 = vadd.f32 %v11885_v37, %v11950_v0 }
0x1f15   : > { %v5150_v49 = vpop.f32.mrf.mxu0 }
0x1f16   : > { %v12056_v8 = vadd.f32 %v11885_v37, %v5150_v49  ;;  %13596 = vst [vmem:[#allocation42_spill] sm:$0xff] %v12079_v3  ;;  %v12082_v49 = vadd.f32 %v11885_v37, %v5140_v47 }
0x1f17   : > { %v9218_v21 = vpop.f32.mrf.mxu0 }
0x1f18   : > { %v12092_v21 = vadd.f32 %v11885_v37, %v11944_v5  ;;  %v12109_v5 = vadd.f32 %v11885_v37, %v11999_v25 }
0x1f19   : > { %v5155_v16 = vpop.f32.mrf.mxu0 }
0x1f1a   : > { %v12043_v56 = vadd.f32 %v11885_v37, %v5155_v16  ;;  %13597 = vst [vmem:[#allocation43_spill] sm:$0xff] %v12092_v21  ;;  %v12095_v16 = vadd.f32 %v11885_v37, %v5135_v42 }
0x1f1b   : > { %v9221_v43 = vpop.f32.mrf.mxu0 }
0x1f1c   : > { %v12105_v43 = vadd.f32 %v11885_v37, %v11938_v18  ;;  %v12123_v18 = vadd.f32 %v11885_v37, %v11997_v40 }
0x1f1d   : > { %v5160_v35 = vpop.f32.mrf.mxu0 }
0x1f1e   : > { %v12030_v24 = vadd.f32 %v11885_v37, %v5160_v35  ;;  %13598 = vst [vmem:[#allocation44_spill] sm:$0xff] %v12105_v43 }
0x1f1f   : > { %v9224_v58 = vpop.f32.mrf.mxu0 }
0x1f20   : > { %v12119_v58 = vadd.f32 %v11885_v37, %v11932_v9  ;;  %v12137_v9 = vadd.f32 %v11885_v37, %v11995_v53 }
0x1f21   : > { %v5165_v15 = vpop.f32.mrf.mxu0 }
0x1f22   : > { %v12020_v41 = vadd.f32 %v11885_v37, %v5165_v15  ;;  %13599 = vst [vmem:[#allocation45_spill] sm:$0xff] %v12119_v58 }
0x1f23   : > { %v9227_v60 = vpop.f32.mrf.mxu0 }
0x1f24   : > { %v12133_v60 = vadd.f32 %v11885_v37, %v11926_v45  ;;  %v12151_v45 = vadd.f32 %v11885_v37, %v11993_v1 }
0x1f25   : > { %v5170_v59 = vpop.f32.mrf.mxu0 }
0x1f26   : > { %v12007_v62 = vadd.f32 %v11885_v37, %v5170_v59  ;;  %13600 = vst [vmem:[#allocation46_spill] sm:$0xff] %v12133_v60 }
0x1f27   : > { %v9230_v34 = vpop.f32.mrf.mxu0 }
0x1f28   : > { %v12147_v34 = vadd.f32 %v11885_v37, %v11920_v57  ;;  %v12165_v57 = vadd.f32 %v11885_v37, %v11991_v63 }
0x1f29   : > { %v5175_v33 = vpop.f32.mrf.mxu0 }
0x1f2a   : > { %v12002_v13 = vadd.f32 %v11885_v37, %v5175_v33  ;;  %13601 = vst [vmem:[#allocation47_spill] sm:$0xff] %v12147_v34 }
0x1f2b   : > { %v9233_v32 = vpop.f32.mrf.mxu0 }
0x1f2c   : > { %5508 = vrot.lane.b32.xlu1 %v12002_v13, %s13552_s23  ;;  %v12161_v32 = vadd.f32 %v11885_v37, %v11914_v12  ;;  %v12179_v12 = vadd.f32 %v11885_v37, %v11989_v28  ;;  %v12197_v28 = vadd.f32 %v11885_v37, %v11894_v20 }
0x1f2d   : > { %v5180_v54 = vpop.f32.mrf.mxu0 }
0x1f2e   : > { %v12010_v14 = vadd.f32 %v11885_v37, %v5180_v54  ;;  %13602 = vst [vmem:[#allocation48_spill] sm:$0xff] %v12161_v32  ;;  %13605 = vst [vmem:[#allocation58_spill] sm:$0xff] %v12197_v28 }
0x1f2f   : > { %v9236_v36 = vpop.f32.mrf.mxu0 }
0x1f30   : > { %5506 = vrot.lane.b32.xlu1 %v12007_v62, %s13552_s23  ;;  %5510 = vrot.lane.b32.xlu0 %v12010_v14, %s13552_s23  ;;  %v12175_v36 = vadd.f32 %v11885_v37, %v11908_v38 }
0x1f31   : > { %v12032_v23 = vpop.f32.mrf.mxu0 }
0x1f32   : > { %13603 = vst [vmem:[#allocation49_spill] sm:$0xff] %v12175_v36 }
0x1f33   : > { %v9239_v51 = vpop.f32.mrf.mxu0 }
0x1f34   : > { %5504 = vrot.lane.b32.xlu1 %v12020_v41, %s13552_s23  ;;  %5476 = vrot.lane.b32.xlu0 %v12017_v4, %s13552_s23 }
0x1f35   : > { %v12045_v11 = vpop.f32.mrf.mxu0 }
0x1f37   : > { %v9242_v44 = vpop.f32.mrf.mxu0 }
0x1f38   : > { %5502 = vrot.lane.b32.xlu1 %v12030_v24, %s13552_s23  ;;  %5474 = vrot.lane.b32.xlu0 %v12027_v29, %s13552_s23  ;;  %v12189_v44 = vadd.f32 %v11885_v37, %v11902_v26 }
0x1f39   : > { %v12058_v17 = vpop.f32.mrf.mxu0 }
0x1f3a   : > { %13604 = vst [vmem:[#allocation51_spill] sm:$0xff] %v12189_v44 }
0x1f3b   : > { %v9245_v10 = vpop.f32.mrf.mxu0 }
0x1f3c   : > { %5500 = vrot.lane.b32.xlu1 %v12043_v56, %s13552_s23  ;;  %5472 = vrot.lane.b32.xlu0 %v12040_v46, %s13552_s23 }
0x1f3d   : > { %v12071_v39 = vpop.f32.mrf.mxu0 }
0x1f3f   : > { %v9248_v22 = vpop.f32.mrf.mxu0 }
0x1f40   : > { %5498 = vrot.lane.b32.xlu1 %v12056_v8, %s13552_s23  ;;  %5470 = vrot.lane.b32.xlu0 %v12053_v30, %s13552_s23 }
0x1f41   : > { %v12084_v6 = vpop.f32.mrf.mxu0 }
0x1f43   : > { %v9251_v48 = vpop.f32.mrf.mxu0 }
0x1f44   : > { %5496 = vrot.lane.b32.xlu1 %v12069_v52, %s13552_s23  ;;  %5468 = vrot.lane.b32.xlu0 %v12066_v61, %s13552_s23 }
0x1f45   : > { %v12097_v0 = vpop.f32.mrf.mxu0 }
0x1f47   : > { %v9254_v47 = vpop.f32.mrf.mxu0 }
0x1f48   : > { %5494 = vrot.lane.b32.xlu1 %v12082_v49, %s13552_s23  ;;  %5466 = vrot.lane.b32.xlu0 %v12079_v3, %s13552_s23 }
0x1f49   : > { %v12111_v35 = vpop.f32.mrf.mxu0 }
0x1f4b   : > { %v9257_v42 = vpop.f32.mrf.mxu0 }
0x1f4c   : > { %5492 = vrot.lane.b32.xlu1 %v12095_v16, %s13552_s23  ;;  %5464 = vrot.lane.b32.xlu0 %v12092_v21, %s13552_s23 }
0x1f4d   : > { %v12125_v15 = vpop.f32.mrf.mxu0 }
0x1f4f   : > { %v9260_v25 = vpop.f32.mrf.mxu0 }
0x1f50   : > { %5490 = vrot.lane.b32.xlu1 %v12109_v5, %s13552_s23  ;;  %5462 = vrot.lane.b32.xlu0 %v12105_v43, %s13552_s23 }
0x1f51   : > { %v12139_v59 = vpop.f32.mrf.mxu0 }
0x1f53   : > { %v9263_v40 = vpop.f32.mrf.mxu0 }
0x1f54   : > { %5488 = vrot.lane.b32.xlu1 %v12123_v18, %s13552_s23  ;;  %5460 = vrot.lane.b32.xlu0 %v12119_v58, %s13552_s23 }
0x1f55   : > { %v12153_v33 = vpop.f32.mrf.mxu0 }
0x1f57   : > { %v9266_v53 = vpop.f32.mrf.mxu0 }
0x1f58   : > { %5486 = vrot.lane.b32.xlu1 %v12137_v9, %s13552_s23  ;;  %5458 = vrot.lane.b32.xlu0 %v12133_v60, %s13552_s23 }
0x1f59   : > { %v12167_v54 = vpop.f32.mrf.mxu0 }
0x1f5b   : > { %v9269_v1 = vpop.f32.mrf.mxu0 }
0x1f5c   : > { %5484 = vrot.lane.b32.xlu1 %v12151_v45, %s13552_s23  ;;  %5456 = vrot.lane.b32.xlu0 %v12147_v34, %s13552_s23 }
0x1f5d   : > { %v12181_v51 = vpop.f32.mrf.mxu0 }
0x1f5f   : > { %v9272_v63 = vpop.f32.mrf.mxu0 }
0x1f60   : > { %5482 = vrot.lane.b32.xlu1 %v12165_v57, %s13552_s23  ;;  %5454 = vrot.lane.b32.xlu0 %v12161_v32, %s13552_s23 }
0x1f61   : > { %v12191_v10 = vpop.f32.mrf.mxu0 }
0x1f62   : > { %v5479_v34 = vpop.permute.xlu1 %5478 }
0x1f63   : > { %v9275_v38 = vpop.f32.mrf.mxu0 }
0x1f64   : > { %5480 = vrot.lane.b32.xlu1 %v12179_v12, %s13552_s23  ;;  %5452 = vrot.lane.b32.xlu0 %v12175_v36, %s13552_s23 }
0x1f65   : > { %v12199_v22 = vpop.f32.mrf.mxu0 }
0x1f67   : > { %v9278_v48 = vpop.f32.mrf.mxu0 }
0x1f68   : > { %5450 = vrot.lane.b32.xlu0 %v12189_v44, %s13552_s23 }
0x1f69   : > { %v12203_v47 = vpop.f32.mrf.mxu0 }
0x1f6b   : > { %v9281_v26 = vpop.f32.mrf.mxu0 }
0x1f6c   : > { %5448 = vrot.lane.b32.xlu0 %v12197_v28, %s13552_s23  ;;  %s13623_s23 = smov 88  }
0x1f6d   : > { %v5260_v42 = vpop.f32.mrf.mxu0 }
0x1f6e   : > { %v12248_v4 = vadd.f32 %v11885_v37, %v5260_v42 }
0x1f6f   : > { %v9284_v25 = vpop.f32.mrf.mxu0 }
0x1f70   : > { %13607 = vst [vmem:[#allocation60_spill] sm:$0xff] %v12248_v4 }
0x1f71   : > { %v12205_v40 = vpop.f32.mrf.mxu0 }
0x1f73   : > { %v9287_v53 = vpop.f32.mrf.mxu0 }
0x1f75   : > { %v12207_v1 = vpop.f32.mrf.mxu0 }
0x1f77   : > { %v9290_v63 = vpop.f32.mrf.mxu0 }
0x1f79   : > { %v12209_v38 = vpop.f32.mrf.mxu0 }
0x1f7b   : > { %v9293_v20 = vpop.f32.mrf.mxu0 }
0x1f7d   : > { %v12211_v55 = vpop.f32.mrf.mxu0 }
0x1f7f   : > { %v9296_v7 = vpop.f32.mrf.mxu0 }
0x1f81   : > { %v12213_v27 = vpop.f32.mrf.mxu0 }
0x1f83   : > { %v9299_v48 = vpop.f32.mrf.mxu0 }
0x1f85   : > { %v12215_v28 = vpop.f32.mrf.mxu0 }
0x1f87   : > { %v9302_v26 = vpop.f32.mrf.mxu0 }
0x1f89   : > { %v12217_v44 = vpop.f32.mrf.mxu0 }
0x1f8b   : > { %v9305_v25 = vpop.f32.mrf.mxu0 }
0x1f8d   : > { %v12219_v36 = vpop.f32.mrf.mxu0 }
0x1f8f   : > { %v9308_v53 = vpop.f32.mrf.mxu0 }
0x1f91   : > { %v12221_v32 = vpop.f32.mrf.mxu0 }
0x1f93   : > { %v9311_v63 = vpop.f32.mrf.mxu0 }
0x1f95   : > { %v12223_v20 = vpop.f32.mrf.mxu0 }
0x1f97   : > { %v9314_v60 = vpop.f32.mrf.mxu0 }
0x1f99   : > { %v12225_v58 = vpop.f32.mrf.mxu0 }
0x1f9b   : > { %v9317_v48 = vpop.f32.mrf.mxu0 }
0x1f9d   : > { %v12228_v26 = vpop.f32.mrf.mxu0 }
0x1f9e   : > { %v5509_v7 = vpop.permute.xlu1 %5508 }
0x1f9f   : > { %v9320_v25 = vpop.f32.mrf.mxu0 }
0x1fa1   : > { %v12232_v3 = vpop.f32.mrf.mxu0 }
0x1fa2   : > { %v5507_v43 = vpop.permute.xlu1 %5506  ;;  %v5511_v21 = vpop.permute.xlu0 %5510 }
0x1fa3   : > { %8467 = vmatprep.subr.msk.mxu1 %vm597_vm2, %v5511_v21  ;;  %v9323_v60 = vpop.f32.mrf.mxu0 }
0x1fa4   : > { %8468 = vmatpush3.xpose.msk.msra.mxu1 %vm597_vm2, %v5479_v34 }
0x1fa5   : > { %8469 = vmatprep.subr.msk.mxu1 %vm597_vm2, %v5509_v7  ;;  %v12236_v30 = vpop.f32.mrf.mxu0 }
0x1fa6   : > { %v5505_v53 = vpop.permute.xlu1 %5504  ;;  %v5477_v63 = vpop.permute.xlu0 %5476 }
0x1fa7   : > { %v9326_v21 = vpop.f32.mrf.mxu0 }
0x1fa8   : > { %8470 = vmatpush3.xpose.msk.msra.mxu1 %vm597_vm2, %v5477_v63 }
0x1fa9   : > { %8471 = vmatprep.subr.msk.mxu1 %vm597_vm2, %v5507_v43  ;;  %v5335_v25 = vpop.f32.mrf.mxu0 }
0x1faa   : > { %v5503_v48 = vpop.permute.xlu1 %5502  ;;  %v5475_v61 = vpop.permute.xlu0 %5474 }
0x1fab   : > { %v9329_v63 = vpop.f32.mrf.mxu0 }
0x1fac   : > { %8472 = vmatpush3.xpose.msk.msra.mxu1 %vm597_vm2, %v5475_v61  ;;  %v12255_v63 = vadd.f32 %v11885_v37, %v5335_v25 }
0x1fad   : > { %8473 = vmatprep.subr.msk.mxu1 %vm597_vm2, %v5505_v53  ;;  %v5340_v60 = vpop.f32.mrf.mxu0 }
0x1fae   : > { %v5501_v34 = vpop.permute.xlu1 %5500  ;;  %v5473_v7 = vpop.permute.xlu0 %5472  ;;  %v12244_v29 = vadd.f32 %v11885_v37, %v5340_v60  ;;  %13609 = vst [vmem:[#allocation61_spill] sm:$0xff] %v12255_v63  ;;  %v12271_v60 = vadd.f32 %v11885_v37, %v12199_v22 }
0x1faf   : > { %v9332_v61 = vpop.f32.mrf.mxu0 }
0x1fb0   : > { %8474 = vmatpush3.xpose.msk.msra.mxu1 %vm597_vm2, %v5473_v7  ;;  %13606 = vst [vmem:[#allocation59_spill] sm:$0xff] %v12244_v29  ;;  %5759 = vrot.lane.b32.xlu0 %v12244_v29, %s13608_s26 }
0x1fb1   : > { %8475 = vmatprep.subr.msk.mxu1 %vm597_vm2, %v5503_v48 }
0x1fb2   : > { %v5499_v46 = vpop.permute.xlu1 %5498  ;;  %v5471_v43 = vpop.permute.xlu0 %5470 }
0x1fb4   : > { %8476 = vmatpush3.xpose.msk.msra.mxu1 %vm597_vm2, %v5471_v43  ;;  %5727 = vrot.lane.b32.xlu0 %v12248_v4, %s13608_s26  ;;  %v12263_v43 = vadd.f32 %v11885_v37, %v12203_v47 }
0x1fb5   : > { %8477 = vmatprep.subr.msk.mxu1 %vm597_vm2, %v5501_v34 }
0x1fb6   : > { %v5497_v53 = vpop.permute.xlu1 %5496  ;;  %v5469_v21 = vpop.permute.xlu0 %5468  ;;  %13610 = vst [vmem:[#allocation62_spill] sm:$0xff] %v12263_v43 }
0x1fb8   : > { %8478 = vmatpush3.xpose.msk.msra.mxu1 %vm597_vm2, %v5469_v21  ;;  %5757 = vrot.lane.b32.xlu0 %v12255_v63, %s13608_s26 }
0x1fb9   : > { %8479 = vmatprep.subr.msk.mxu1 %vm597_vm2, %v5499_v46 }
0x1fba   : > { %v5495_v48 = vpop.permute.xlu1 %5494  ;;  %v5467_v7 = vpop.permute.xlu0 %5466 }
0x1fbc   : > { %8480 = vmatpush3.xpose.msk.msra.mxu1 %vm597_vm2, %v5467_v7  ;;  %5725 = vrot.lane.b32.xlu0 %v12263_v43, %s13608_s26  ;;  %v12295_v7 = vadd.f32 %v11885_v37, %v12139_v59  ;;  %v12311_v59 = vadd.f32 %v11885_v37, %v12111_v35  ;;  %v12327_v35 = vadd.f32 %v11885_v37, %v12084_v6 }
0x1fbd   : > { %8481 = vmatprep.subr.msk.mxu1 %vm597_vm2, %v5497_v53  ;;  %v12279_v53 = vadd.f32 %v11885_v37, %v12167_v54  ;;  %v12342_v6 = vadd.f32 %v11885_v37, %v12058_v17 }
0x1fbe   : > { %v5493_v42 = vpop.permute.xlu1 %5492  ;;  %v5465_v34 = vpop.permute.xlu0 %5464  ;;  %13613 = vst [vmem:[#allocation54_spill] sm:$0xff] %v12295_v7  ;;  %13615 = vst [vmem:[#allocation56_spill] sm:$0xff] %v12311_v59 }
0x1fbf   : > { %13611 = vst [vmem:[#allocation50_spill] sm:$0xff] %v12279_v53  ;;  %13617 = vst [vmem:[#allocation52_spill] sm:$0xff] %v12327_v35 }
0x1fc0   : > { %8482 = vmatpush3.xpose.msk.msra.mxu1 %vm597_vm2, %v5465_v34  ;;  %5723 = vrot.lane.b32.xlu0 %v12271_v60, %s13608_s26  ;;  %v12303_v34 = vadd.f32 %v11885_v37, %v12125_v15  ;;  %v12319_v15 = vadd.f32 %v11885_v37, %v12097_v0  ;;  %v12334_v0 = vadd.f32 %v11885_v37, %v12071_v39 }
0x1fc1   : > { %8483 = vmatprep.subr.msk.mxu1 %vm597_vm2, %v5495_v48  ;;  %v12287_v48 = vadd.f32 %v11885_v37, %v12153_v33  ;;  %13619 = vst [vmem:[#allocation63_spill] sm:$0xff] %v12342_v6  ;;  %v12354_v39 = vadd.f32 %v11885_v37, %v12032_v23 }
0x1fc2   : > { %v5491_v46 = vpop.permute.xlu1 %5490  ;;  %v5463_v25 = vpop.permute.xlu0 %5462  ;;  %13614 = vst [vmem:[#allocation55_spill] sm:$0xff] %v12303_v34  ;;  %13616 = vst [vmem:[#allocation57_spill] sm:$0xff] %v12319_v15 }
0x1fc3   : > { %13612 = vst [vmem:[#allocation53_spill] sm:$0xff] %v12287_v48  ;;  %13618 = vst [vmem:[#allocation65_spill] sm:$0xff] %v12334_v0 }
0x1fc4   : > { %8484 = vmatpush3.xpose.msk.msra.mxu1 %vm597_vm2, %v5463_v25  ;;  %5717 = vrot.lane.b32.xlu0 %v12279_v53, %s13608_s26  ;;  %13621 = vst [vmem:[#allocation66_spill] sm:$0xff] %v12354_v39 }
0x1fc5   : > { %8485 = vmatprep.subr.msk.mxu1 %vm597_vm2, %v5493_v42 }
0x1fc6   : > { %v5489_v47 = vpop.permute.xlu1 %5488  ;;  %v5461_v61 = vpop.permute.xlu0 %5460 }
0x1fc8   : > { %8486 = vmatpush3.xpose.msk.msra.mxu1 %vm597_vm2, %v5461_v61  ;;  %5715 = vrot.lane.b32.xlu0 %v12287_v48, %s13608_s26 }
0x1fc9   : > { %8487 = vmatprep.subr.msk.mxu1 %vm597_vm2, %v5491_v46 }
0x1fca   : > { %v5487_v22 = vpop.permute.xlu1 %5486  ;;  %v5459_v21 = vpop.permute.xlu0 %5458 }
0x1fcc   : > { %8488 = vmatpush3.xpose.msk.msra.mxu1 %vm597_vm2, %v5459_v21  ;;  %5713 = vrot.lane.b32.xlu0 %v12295_v7, %s13608_s26  ;;  %v12348_v21 = vadd.f32 %v11885_v37, %v12045_v11 }
0x1fcd   : > { %8489 = vmatprep.subr.msk.mxu1 %vm597_vm2, %v5489_v47 }
0x1fce   : > { %v5457_v54 = vpop.permute.xlu0 %5456  ;;  %v5485_v42 = vpop.permute.xlu1 %5484  ;;  %13620 = vst [vmem:[#allocation64_spill] sm:$0xff] %v12348_v21 }
0x1fd0   : > { %8490 = vmatpush3.xpose.msk.msra.mxu1 %vm597_vm2, %v5457_v54  ;;  %5711 = vrot.lane.b32.xlu0 %v12303_v34, %s13608_s26 }
0x1fd1   : > { %8491 = vmatprep.subr.msk.mxu1 %vm597_vm2, %v5487_v22 }
0x1fd2   : > { %v5455_v33 = vpop.permute.xlu0 %5454  ;;  %v5483_v46 = vpop.permute.xlu1 %5482 }
0x1fd4   : > { %8492 = vmatpush3.xpose.msk.msra.mxu1 %vm597_vm2, %v5455_v33  ;;  %5709 = vrot.lane.b32.xlu0 %v12311_v59, %s13608_s26 }
0x1fd5   : > { %8493 = vmatprep.subr.msk.mxu1 %vm597_vm2, %v5485_v42 }
0x1fd6   : > { %v5453_v25 = vpop.permute.xlu0 %5452  ;;  %v5481_v61 = vpop.permute.xlu1 %5480 }
0x1fd8   : > { %8494 = vmatpush3.xpose.msk.msra.mxu1 %vm597_vm2, %v5453_v25  ;;  %5707 = vrot.lane.b32.xlu0 %v12319_v15, %s13608_s26 }
0x1fd9   : > { %8495 = vmatprep.subr.msk.mxu1 %vm597_vm2, %v5483_v46 }
0x1fda   : > { %v5451_v47 = vpop.permute.xlu0 %5450 }
0x1fdc   : > { %8496 = vmatpush3.xpose.msk.msra.mxu1 %vm597_vm2, %v5451_v47  ;;  %5705 = vrot.lane.b32.xlu0 %v12327_v35, %s13608_s26 }
0x1fdd   : > { %8497 = vmatprep.subr.msk.mxu1 %vm597_vm2, %v5481_v61  ;;  %v12364_v61 = vadd.f32 %v11885_v37, %v12236_v30  ;;  %v12388_v30 = vadd.f32 %v11885_v37, %v12181_v51  ;;  %v12406_v51 = vadd.f32 %v11885_v37, %v12221_v32  ;;  %v12424_v32 = vadd.f32 %v11885_v37, %v12215_v28 }
0x1fde   : > { %v5449_v22 = vpop.permute.xlu0 %5448  ;;  %v12442_v28 = vadd.f32 %v11885_v37, %v12209_v38 }
0x1fe0   : > { %8498 = vmatpush3.xpose.msk.msra.mxu1 %vm597_vm2, %v5449_v22  ;;  %5703 = vrot.lane.b32.xlu0 %v12334_v0, %s13608_s26  ;;  %v12368_v22 = vadd.f32 %v11885_v37, %v12232_v3  ;;  %v12392_v3 = vadd.f32 %v11885_v37, %v12225_v58  ;;  %v12412_v58 = vadd.f32 %v11885_v37, %v12219_v36 }
0x1fe1   : > { %v12430_v36 = vadd.f32 %v11885_v37, %v12213_v27  ;;  %v12448_v27 = vadd.f32 %v11885_v37, %v12207_v1 }
0x1fe2   : > { %13622 = vst [vmem:[#allocation67_spill] sm:$0xff] %v12368_v22 }
0x1fe3   : > { %8500 = vmatmul.mubr.msk.f32.vlgmr.msra.gmra.mxu1 %vm597_vm2, %v11892_v31 }
0x1fe4   : > { %5701 = vrot.lane.b32.xlu0 %v12342_v6, %s13608_s26 }
0x1fe8   : > { %5699 = vrot.lane.b32.xlu0 %v12348_v21, %s13608_s26 }
0x1fec   : > { %5697 = vrot.lane.b32.xlu0 %v12354_v39, %s13608_s26 }
0x2022   : > { %v5760_v17 = vpop.permute.xlu0 %5759 }
0x2023   : > { %8501 = vmatprep.subr.mxu1 %v5760_v17  ;;  %v12376_v17 = vadd.f32 %v11885_v37, %v12191_v10  ;;  %v12398_v10 = vadd.f32 %v11885_v37, %v12223_v20  ;;  %v12418_v20 = vadd.f32 %v11885_v37, %v12217_v44  ;;  %v12436_v44 = vadd.f32 %v11885_v37, %v12211_v55 }
0x2024   : > { %v12454_v55 = vadd.f32 %v11885_v37, %v12205_v40 }
0x2026   : > { %v5728_v54 = vpop.permute.xlu0 %5727 }
0x2027   : > { %8502 = vmatpush3.msra.mxu1 %v5728_v54  ;;  %v12380_v54 = vadd.f32 %v11885_v37, %v12228_v26 }
0x202a   : > { %v5758_v42 = vpop.permute.xlu0 %5757 }
0x202b   : > { %8503 = vmatprep.subr.mxu1 %v5758_v42 }
0x202e   : > { %v5726_v11 = vpop.permute.xlu0 %5725 }
0x202f   : > { %8504 = vmatpush3.msra.mxu1 %v5726_v11 }
0x2032   : > { %v5724_v37 = vpop.permute.xlu0 %5723 }
0x20a3   : > { %v5645_v33 = vpop.f32.mrf.mxu1 }
0x20a4   : > { %v5646_v25 = vadd.f32 %v5645_v33, %v10700_v50  ;;  %v5718_v33 = vpop.permute.xlu0 %5717 }
0x20a5   : > { %v5647_v46 = vpop.f32.mrf.mxu1 }
0x20a6   : > { %v5648_v23 = vadd.f32 %v5647_v46, %v10702_v2 }
0x20a8   : > { %v5650_v47 = vmax.f32 %v5646_v25, %v5648_v23 }
0x20aa   : > { %5651 = vmax.xlane.f32.xlu1 %v5650_v47  ;;  %v5716_v47 = vpop.permute.xlu0 %5715 }
0x20bb   : > { %5755 = vrot.lane.b32.xlu1 %v12364_v61, %s13608_s26 }
0x20bf   : > { %5753 = vrot.lane.b32.xlu1 %v12368_v22, %s13608_s26 }
0x20c3   : > { %5721 = vrot.lane.b32.xlu1 %v12376_v17, %s13608_s26 }
0x20c7   : > { %5751 = vrot.lane.b32.xlu1 %v12380_v54, %s13608_s26 }
0x20cb   : > { %5719 = vrot.lane.b32.xlu1 %v12388_v30, %s13608_s26 }
0x20cf   : > { %5749 = vrot.lane.b32.xlu1 %v12392_v3, %s13608_s26 }
0x20d3   : > { %5747 = vrot.lane.b32.xlu1 %v12398_v10, %s13608_s26 }
0x20d7   : > { %5745 = vrot.lane.b32.xlu1 %v12406_v51, %s13608_s26 }
0x20db   : > { %5743 = vrot.lane.b32.xlu1 %v12412_v58, %s13608_s26 }
0x20df   : > { %5741 = vrot.lane.b32.xlu1 %v12418_v20, %s13608_s26 }
0x20e3   : > { %5739 = vrot.lane.b32.xlu1 %v12424_v32, %s13608_s26 }
0x20e7   : > { %5737 = vrot.lane.b32.xlu1 %v12430_v36, %s13608_s26 }
0x20eb   : > { %5735 = vrot.lane.b32.xlu1 %v12436_v44, %s13608_s26 }
0x20ef   : > { %5733 = vrot.lane.b32.xlu1 %v12442_v28, %s13608_s26 }
0x20f3   : > { %5731 = vrot.lane.b32.xlu1 %v12448_v27, %s13608_s26 }
0x20f7   : > { %5729 = vrot.lane.b32.xlu1 %v12454_v55, %s13608_s26 }
0x20fb   : > { %5927 = vrot.lane.b32.xlu1 %v12010_v14, %s13623_s23 }
0x20ff   : > { %5925 = vrot.lane.b32.xlu1 %v12002_v13, %s13623_s23 }
0x2103   : > { %5923 = vrot.lane.b32.xlu1 %v12007_v62, %s13623_s23 }
0x2107   : > { %5921 = vrot.lane.b32.xlu1 %v12020_v41, %s13623_s23 }
0x210b   : > { %5919 = vrot.lane.b32.xlu1 %v12030_v24, %s13623_s23 }
0x210f   : > { %5917 = vrot.lane.b32.xlu1 %v12043_v56, %s13623_s23 }
0x2113   : > { %5915 = vrot.lane.b32.xlu1 %v12056_v8, %s13623_s23 }
0x2117   : > { %5913 = vrot.lane.b32.xlu1 %v12069_v52, %s13623_s23 }
0x211b   : > { %5911 = vrot.lane.b32.xlu1 %v12082_v49, %s13623_s23 }
0x211f   : > { %5909 = vrot.lane.b32.xlu1 %v12095_v16, %s13623_s23 }
0x2123   : > { %5907 = vrot.lane.b32.xlu1 %v12109_v5, %s13623_s23 }
0x2127   : > { %5905 = vrot.lane.b32.xlu1 %v12123_v18, %s13623_s23 }
0x212b   : > { %5903 = vrot.lane.b32.xlu1 %v12137_v9, %s13623_s23 }
0x212f   : > { %5901 = vrot.lane.b32.xlu1 %v12151_v45, %s13623_s23 }
0x2133   : > { %5899 = vrot.lane.b32.xlu1 %v12165_v57, %s13623_s23  ;;  %v5652_v40 = vpop.xlane.xlu1 %5651 }
0x2134   : > { %v5653_v1 = vsub.f32 %v5646_v25, %v5652_v40  ;;  %v5654_v38 = vsub.f32 %v5648_v23, %v5652_v40  ;;  %v5714_v40 = vpop.permute.xlu0 %5713 }
0x2136   : > { %v5655_v26 = vmul.f32 1.442695, %v5653_v1  ;;  %v5657_v42 = vmul.f32 1.442695, %v5654_v38 }
0x2137   : > { %5897 = vrot.lane.b32.xlu1 %v12179_v12, %s13623_s23  ;;  %v5756_v11 = vpop.permute.xlu1 %5755 }
0x2138   : > { %9463 = vpow2.f32 %v5655_v26  ;;  %8505 = vmatprep.subr.mxu1 %v5756_v11 }
0x2139   : > { %9465 = vpow2.f32 %v5657_v42  ;;  %8506 = vmatpush3.msra.mxu1 %v5724_v37  ;;  %v5712_v42 = vpop.permute.xlu0 %5711 }
0x213b   : > { %5863 = vrot.lane.b32.xlu1 %v11892_v31, %s13554_s15  ;;  %v5754_v46 = vpop.permute.xlu1 %5753  ;;  %s7979_s15 = sshll.u32 %s13673_s14, 4 }
0x213c   : > { %8507 = vmatprep.subr.mxu1 %v5754_v46 }
0x213f   : > { %6143 = vrot.lane.b32.xlu1 %v12244_v29, %s13557_s28  ;;  %v5722_v25 = vpop.permute.xlu1 %5721 }
0x2140   : > { %8508 = vmatpush3.msra.mxu1 %v5722_v25  ;;  %v5710_v25 = vpop.permute.xlu0 %5709 }
0x2143   : > { %6111 = vrot.lane.b32.xlu1 %v12248_v4, %s13557_s28  ;;  %v5752_v23 = vpop.permute.xlu1 %5751 }
0x2144   : > { %8509 = vmatprep.subr.mxu1 %v5752_v23 }
0x2145   : > { %v12496_v1 = vpop.eup %9463 }
0x2146   : > { %v12498_v37 = vpop.eup %9465 }
0x2147   : > { %6141 = vrot.lane.b32.xlu1 %v12255_v63, %s13557_s28  ;;  %v5720_v38 = vpop.permute.xlu1 %5719  ;;  %v5659_v26 = vadd.f32 %v12498_v37, %v12496_v1 }
0x2148   : > { %8510 = vmatpush3.msra.mxu1 %v5720_v38  ;;  %v5708_v38 = vpop.permute.xlu0 %5707 }
0x2149   : > { %5660 = vadd.xlane.f32.xlu0 %v5659_v26 }
0x214b   : > { %6109 = vrot.lane.b32.xlu1 %v12263_v43, %s13557_s28  ;;  %v5750_v11 = vpop.permute.xlu1 %5749 }
0x214c   : > { %8511 = vmatprep.subr.mxu1 %v5750_v11  ;;  %v5706_v11 = vpop.permute.xlu0 %5705 }
0x214d   : > { %8512 = vmatpush3.msra.mxu1 %v5718_v33 }
0x214f   : > { %6137 = vrot.lane.b32.xlu1 %v12368_v22, %s13557_s28  ;;  %v5748_v46 = vpop.permute.xlu1 %5747 }
0x2150   : > { %8513 = vmatprep.subr.mxu1 %v5748_v46  ;;  %v13624_v46 = vld [vmem:[#allocation37_spill] sm:$0xff] }
0x2151   : > { %8514 = vmatpush3.msra.mxu1 %v5716_v47 }
0x2153   : > { %6101 = vrot.lane.b32.xlu1 %v12279_v53, %s13557_s28  ;;  %v5746_v23 = vpop.permute.xlu1 %5745 }
0x2154   : > { %8515 = vmatprep.subr.mxu1 %v5746_v23 }
0x2155   : > { %8516 = vmatpush3.msra.mxu1 %v5714_v40  ;;  %v5704_v40 = vpop.permute.xlu0 %5703 }
0x2157   : > { %6099 = vrot.lane.b32.xlu1 %v12287_v48, %s13557_s28  ;;  %v5744_v26 = vpop.permute.xlu1 %5743 }
0x2158   : > { %8517 = vmatprep.subr.mxu1 %v5744_v26 }
0x2159   : > { %8518 = vmatpush3.msra.mxu1 %v5712_v42  ;;  %v5702_v26 = vpop.permute.xlu0 %5701 }
0x215b   : > { %6097 = vrot.lane.b32.xlu1 %v12295_v7, %s13557_s28  ;;  %v5742_v33 = vpop.permute.xlu1 %5741 }
0x215c   : > { %8519 = vmatprep.subr.mxu1 %v5742_v33 }
0x215d   : > { %8520 = vmatpush3.msra.mxu1 %v5710_v25  ;;  %v13625_v25 = vld [vmem:[#allocation38_spill] sm:$0xff] }
0x215f   : > { %5895 = vrot.lane.b32.xlu0 %v11985_v19, %s13623_s23  ;;  %6095 = vrot.lane.b32.xlu1 %v12303_v34, %s13557_s28  ;;  %v5740_v47 = vpop.permute.xlu1 %5739  ;;  %v13638_v34 = vld [vmem:[#allocation58_spill] sm:$0xff] }
0x2160   : > { %8521 = vmatprep.subr.mxu1 %v5740_v47  ;;  %v13627_v47 = vld [vmem:[#allocation40_spill] sm:$0xff] }
0x2161   : > { %8522 = vmatpush3.msra.mxu1 %v5708_v38  ;;  %v13626_v38 = vld [vmem:[#allocation39_spill] sm:$0xff] }
0x2163   : > { %5893 = vrot.lane.b32.xlu0 %v13624_v46, %s13623_s23  ;;  %6093 = vrot.lane.b32.xlu1 %v12311_v59, %s13557_s28  ;;  %v5738_v42 = vpop.permute.xlu1 %5737  ;;  %v13637_v59 = vld [vmem:[#allocation51_spill] sm:$0xff] }
0x2164   : > { %8523 = vmatprep.subr.mxu1 %v5738_v42 }
0x2165   : > { %8524 = vmatpush3.msra.mxu1 %v5706_v11  ;;  %v5700_v11 = vpop.permute.xlu0 %5699 }
0x2167   : > { %5891 = vrot.lane.b32.xlu0 %v13625_v25, %s13623_s23  ;;  %6091 = vrot.lane.b32.xlu1 %v12319_v15, %s13557_s28  ;;  %v5736_v23 = vpop.permute.xlu1 %5735 }
0x2168   : > { %8525 = vmatprep.subr.mxu1 %v5736_v23 }
0x2169   : > { %8526 = vmatpush3.msra.mxu1 %v5704_v40  ;;  %v13628_v40 = vld [vmem:[#allocation41_spill] sm:$0xff] }
0x216b   : > { %5889 = vrot.lane.b32.xlu0 %v13626_v38, %s13623_s23  ;;  %6089 = vrot.lane.b32.xlu1 %v12327_v35, %s13557_s28  ;;  %v5734_v33 = vpop.permute.xlu1 %5733  ;;  %v5698_v35 = vpop.permute.xlu0 %5697 }
0x216c   : > { %8527 = vmatprep.subr.mxu1 %v5734_v33 }
0x216d   : > { %8528 = vmatpush3.msra.mxu1 %v5702_v26  ;;  %v13629_v26 = vld [vmem:[#allocation42_spill] sm:$0xff] }
0x216f   : > { %5887 = vrot.lane.b32.xlu0 %v13627_v47, %s13623_s23  ;;  %6087 = vrot.lane.b32.xlu1 %v12334_v0, %s13557_s28  ;;  %v5732_v42 = vpop.permute.xlu1 %5731  ;;  %v13636_v0 = vld [vmem:[#allocation49_spill] sm:$0xff] }
0x2170   : > { %8529 = vmatprep.subr.mxu1 %v5732_v42  ;;  %v13631_v42 = vld [vmem:[#allocation44_spill] sm:$0xff] }
0x2171   : > { %8530 = vmatpush3.msra.mxu1 %v5700_v11  ;;  %v13630_v11 = vld [vmem:[#allocation43_spill] sm:$0xff] }
0x2173   : > { %5885 = vrot.lane.b32.xlu0 %v13628_v40, %s13623_s23  ;;  %6085 = vrot.lane.b32.xlu1 %v12342_v6, %s13557_s28  ;;  %v5730_v23 = vpop.permute.xlu1 %5729 }
0x2174   : > { %8531 = vmatprep.subr.mxu1 %v5730_v23  ;;  %v13633_v23 = vld [vmem:[#allocation46_spill] sm:$0xff] }
0x2175   : > { %8532 = vmatpush3.msra.mxu1 %v5698_v35  ;;  %v13632_v35 = vld [vmem:[#allocation45_spill] sm:$0xff] }
0x2177   : > { %5883 = vrot.lane.b32.xlu0 %v13629_v26, %s13623_s23  ;;  %6083 = vrot.lane.b32.xlu1 %v12348_v21, %s13557_s28  ;;  %v5928_v33 = vpop.permute.xlu1 %5927  ;;  %v13634_v21 = vld [vmem:[#allocation47_spill] sm:$0xff] }
0x2178   : > { %8536 = vmatprep.subr.msk.mxu1 %vm597_vm2, %v5928_v33 }
0x217b   : > { %5881 = vrot.lane.b32.xlu0 %v13630_v11, %s13623_s23  ;;  %6081 = vrot.lane.b32.xlu1 %v12354_v39, %s13557_s28  ;;  %v5926_v33 = vpop.permute.xlu1 %5925  ;;  %v13635_v39 = vld [vmem:[#allocation48_spill] sm:$0xff] }
0x217f   : > { %5879 = vrot.lane.b32.xlu0 %v13631_v42, %s13623_s23  ;;  %6279 = vrot.lane.b32.xlu1 %v11985_v19, %s13553_s16  ;;  %v5924_v6 = vpop.permute.xlu1 %5923 }
0x2183   : > { %5877 = vrot.lane.b32.xlu0 %v13632_v35, %s13623_s23  ;;  %6277 = vrot.lane.b32.xlu1 %v13624_v46, %s13553_s16  ;;  %v5922_v15 = vpop.permute.xlu1 %5921 }
0x2187   : > { %5875 = vrot.lane.b32.xlu0 %v13633_v23, %s13623_s23  ;;  %v5920_v7 = vpop.permute.xlu1 %5919 }
0x218b   : > { %5873 = vrot.lane.b32.xlu0 %v13634_v21, %s13623_s23  ;;  %v5918_v48 = vpop.permute.xlu1 %5917 }
0x218f   : > { %5871 = vrot.lane.b32.xlu0 %v13635_v39, %s13623_s23  ;;  %v5916_v53 = vpop.permute.xlu1 %5915 }
0x2193   : > { %5869 = vrot.lane.b32.xlu0 %v13636_v0, %s13623_s23  ;;  %v5914_v22 = vpop.permute.xlu1 %5913 }
0x2197   : > { %5867 = vrot.lane.b32.xlu0 %v13637_v59, %s13623_s23  ;;  %v5912_v43 = vpop.permute.xlu1 %5911 }
0x219b   : > { %5865 = vrot.lane.b32.xlu0 %v13638_v34, %s13623_s23  ;;  %v5910_v4 = vpop.permute.xlu1 %5909 }
0x219f   : > { %v5908_v63 = vpop.permute.xlu1 %5907 }
0x21a3   : > { %v5906_v29 = vpop.permute.xlu1 %5905 }
0x21a7   : > { %v5904_v39 = vpop.permute.xlu1 %5903 }
0x21ab   : > { %v5902_v21 = vpop.permute.xlu1 %5901 }
0x21af   : > { %v5900_v35 = vpop.permute.xlu1 %5899 }
0x21b3   : > { %v5898_v11 = vpop.permute.xlu1 %5897 }
0x21b7   : > { %v5864_v38 = vpop.permute.xlu1 %5863 }
0x21d2   : > { %v5661_v23 = vpop.xlane.xlu0 %5660 }
0x21d3   : > { %9467 = vrcp.f32 %v5661_v23 }
0x21d6   : > { %v5896_v0 = vpop.permute.xlu0 %5895 }
0x21da   : > { %v5894_v42 = vpop.permute.xlu0 %5893 }
0x21de   : > { %v5892_v59 = vpop.permute.xlu0 %5891 }
0x21e0   : > { %v9468_v26 = vpop.eup %9467 }
0x21e1   : > { %v5664_v34 = vmul.f32 %v9468_v26, %v12498_v37  ;;  %v5663_v40 = vmul.f32 %v9468_v26, %v12496_v1 }
0x21e2   : > { %v5890_v47 = vpop.permute.xlu0 %5889 }
0x21e3   : > { %5857 = vmatprep.mubr.f32.mxu1 %v5664_v34 }
0x21e4   : > { %5858 = vmatmul.mubr.f32.vlgmr.msra.gmra.mxu1 %v5663_v40 }
0x21e5   : > { %8537 = vmatpush3.xpose.msk.msra.mxu1 %vm597_vm2, %v5896_v0  ;;  %8568 = vmatprep.mubr.msk.f32.mxu1 %vm597_vm2, %v5864_v38 }
0x21e6   : > { %8538 = vmatprep.subr.msk.mxu1 %vm597_vm2, %v5926_v33  ;;  %v5888_v23 = vpop.permute.xlu0 %5887 }
0x21e9   : > { %8539 = vmatpush3.xpose.msk.msra.mxu1 %vm597_vm2, %v5894_v42 }
0x21ea   : > { %8540 = vmatprep.subr.msk.mxu1 %vm597_vm2, %v5924_v6  ;;  %v5886_v25 = vpop.permute.xlu0 %5885 }
0x21ed   : > { %8541 = vmatpush3.xpose.msk.msra.mxu1 %vm597_vm2, %v5892_v59 }
0x21ee   : > { %8542 = vmatprep.subr.msk.mxu1 %vm597_vm2, %v5922_v15  ;;  %v5884_v1 = vpop.permute.xlu0 %5883 }
0x21f1   : > { %8543 = vmatpush3.xpose.msk.msra.mxu1 %vm597_vm2, %v5890_v47 }
0x21f2   : > { %8544 = vmatprep.subr.msk.mxu1 %vm597_vm2, %v5920_v7  ;;  %v5882_v34 = vpop.permute.xlu0 %5881  ;;  %v6144_v7 = vpop.permute.xlu1 %6143 }
0x21f5   : > { %8545 = vmatpush3.xpose.msk.msra.mxu1 %vm597_vm2, %v5888_v23 }
0x21f6   : > { %8546 = vmatprep.subr.msk.mxu1 %vm597_vm2, %v5918_v48  ;;  %v5880_v0 = vpop.permute.xlu0 %5879 }
0x21f9   : > { %8547 = vmatpush3.xpose.msk.msra.mxu1 %vm597_vm2, %v5886_v25 }
0x21fa   : > { %8548 = vmatprep.subr.msk.mxu1 %vm597_vm2, %v5916_v53  ;;  %v5878_v6 = vpop.permute.xlu0 %5877 }
0x21fd   : > { %8549 = vmatpush3.xpose.msk.msra.mxu1 %vm597_vm2, %v5884_v1 }
0x21fe   : > { %8550 = vmatprep.subr.msk.mxu1 %vm597_vm2, %v5914_v22  ;;  %v5876_v59 = vpop.permute.xlu0 %5875 }
0x2201   : > { %8551 = vmatpush3.xpose.msk.msra.mxu1 %vm597_vm2, %v5882_v34 }
0x2202   : > { %8552 = vmatprep.subr.msk.mxu1 %vm597_vm2, %v5912_v43  ;;  %v5874_v48 = vpop.permute.xlu0 %5873 }
0x2205   : > { %8553 = vmatpush3.xpose.msk.msra.mxu1 %vm597_vm2, %v5880_v0 }
0x2206   : > { %8554 = vmatprep.subr.msk.mxu1 %vm597_vm2, %v5910_v4  ;;  %v5872_v53 = vpop.permute.xlu0 %5871  ;;  %v6112_v4 = vpop.permute.xlu1 %6111 }
0x2209   : > { %8555 = vmatpush3.xpose.msk.msra.mxu1 %vm597_vm2, %v5878_v6 }
0x220a   : > { %8556 = vmatprep.subr.msk.mxu1 %vm597_vm2, %v5908_v63  ;;  %v5870_v43 = vpop.permute.xlu0 %5869 }
0x220d   : > { %8557 = vmatpush3.xpose.msk.msra.mxu1 %vm597_vm2, %v5876_v59 }
0x220e   : > { %8558 = vmatprep.subr.msk.mxu1 %vm597_vm2, %v5906_v29  ;;  %v5868_v15 = vpop.permute.xlu0 %5867  ;;  %v6142_v29 = vpop.permute.xlu1 %6141 }
0x2211   : > { %8559 = vmatpush3.xpose.msk.msra.mxu1 %vm597_vm2, %v5874_v48 }
0x2212   : > { %8560 = vmatprep.subr.msk.mxu1 %vm597_vm2, %v5904_v39  ;;  %v5866_v63 = vpop.permute.xlu0 %5865  ;;  %v6110_v39 = vpop.permute.xlu1 %6109 }
0x2215   : > { %8561 = vmatpush3.xpose.msk.msra.mxu1 %vm597_vm2, %v5872_v53 }
0x2216   : > { %8562 = vmatprep.subr.msk.mxu1 %vm597_vm2, %v5902_v21 }
0x2219   : > { %8563 = vmatpush3.xpose.msk.msra.mxu1 %vm597_vm2, %v5870_v43 }
0x221a   : > { %8564 = vmatprep.subr.msk.mxu1 %vm597_vm2, %v5900_v35 }
0x221d   : > { %8565 = vmatpush3.xpose.msk.msra.mxu1 %vm597_vm2, %v5868_v15 }
0x221e   : > { %8566 = vmatprep.subr.msk.mxu1 %vm597_vm2, %v5898_v11 }
0x2221   : > { %8567 = vmatpush3.xpose.msk.msra.mxu1 %vm597_vm2, %v5866_v63 }
0x2222   : > { %8570 = vmatprep.subr.mxu1 %v6144_v7 }
0x2224   : > { %8569 = vmatmul.mubr.msk.f32.vlgmr.msra.gmra.mxu1 %vm597_vm2, %v5864_v38  ;;  %v6138_v38 = vpop.permute.xlu1 %6137 }
0x2225   : > { %8571 = vmatpush3.msra.mxu1 %v6112_v4 }
0x2226   : > { %8572 = vmatprep.subr.mxu1 %v6142_v29 }
0x2227   : > { %8573 = vmatpush3.msra.mxu1 %v6110_v39 }
0x2228   : > { %v6102_v0 = vpop.permute.xlu1 %6101 }
0x222c   : > { %v6100_v59 = vpop.permute.xlu1 %6099 }
0x2230   : > { %v6098_v7 = vpop.permute.xlu1 %6097 }
0x2234   : > { %v6096_v63 = vpop.permute.xlu1 %6095 }
0x22a4   : > { %v8533_v21 = vpop.f32.mrf.mxu1 }
0x22a6   : > { %v8534_v22 = vpop.f32.mrf.mxu1 }
0x22a7   : > { %v12602_v37 = vadd.f32 %v8534_v22, %v8533_v21  ;;  %v13639_v21 = vld [vmem:[#allocation38_spill] sm:$0xff]  ;;  %v6094_v22 = vpop.permute.xlu1 %6093 }
0x22e4   : > { %v6061_v25 = vpop.f32.mrf.mxu1 }
0x22e5   : > { %v6062_v40 = vadd.f32 %v6061_v25, %v10700_v50  ;;  %v13640_v25 = vld [vmem:[#allocation39_spill] sm:$0xff] }
0x22e6   : > { %v6063_v47 = vpop.f32.mrf.mxu1 }
0x22e7   : > { %v6064_v26 = vadd.f32 %v6063_v47, %v10702_v2 }
0x22e9   : > { %v6066_v11 = vmax.f32 %v6062_v40, %v6064_v26 }
0x22eb   : > { %6067 = vmax.xlane.f32.xlu0 %v6066_v11  ;;  %v13642_v11 = vld [vmem:[#allocation41_spill] sm:$0xff] }
0x2301   : > { %6139 = vrot.lane.b32.xlu0 %v12364_v61, %s13557_s28 }
0x2305   : > { %6107 = vrot.lane.b32.xlu0 %v12271_v60, %s13557_s28 }
0x2309   : > { %6105 = vrot.lane.b32.xlu0 %v12376_v17, %s13557_s28 }
0x230d   : > { %6135 = vrot.lane.b32.xlu0 %v12380_v54, %s13557_s28 }
0x2311   : > { %6103 = vrot.lane.b32.xlu0 %v12388_v30, %s13557_s28 }
0x2315   : > { %6133 = vrot.lane.b32.xlu0 %v12392_v3, %s13557_s28 }
0x2319   : > { %6131 = vrot.lane.b32.xlu0 %v12398_v10, %s13557_s28 }
0x231d   : > { %6129 = vrot.lane.b32.xlu0 %v12406_v51, %s13557_s28 }
0x2321   : > { %6127 = vrot.lane.b32.xlu0 %v12412_v58, %s13557_s28 }
0x2325   : > { %6125 = vrot.lane.b32.xlu0 %v12418_v20, %s13557_s28 }
0x2329   : > { %6123 = vrot.lane.b32.xlu0 %v12424_v32, %s13557_s28 }
0x232d   : > { %6121 = vrot.lane.b32.xlu0 %v12430_v36, %s13557_s28 }
0x2331   : > { %6119 = vrot.lane.b32.xlu0 %v12436_v44, %s13557_s28 }
0x2335   : > { %6117 = vrot.lane.b32.xlu0 %v12442_v28, %s13557_s28 }
0x2339   : > { %6115 = vrot.lane.b32.xlu0 %v12448_v27, %s13557_s28 }
0x233d   : > { %6113 = vrot.lane.b32.xlu0 %v12454_v55, %s13557_s28 }
0x2341   : > { %6311 = vrot.lane.b32.xlu0 %v12010_v14, %s13553_s16 }
0x2345   : > { %6309 = vrot.lane.b32.xlu0 %v12002_v13, %s13553_s16 }
0x2349   : > { %6307 = vrot.lane.b32.xlu0 %v12007_v62, %s13553_s16 }
0x234d   : > { %6305 = vrot.lane.b32.xlu0 %v12020_v41, %s13553_s16 }
0x2351   : > { %6303 = vrot.lane.b32.xlu0 %v12030_v24, %s13553_s16 }
0x2355   : > { %6301 = vrot.lane.b32.xlu0 %v12043_v56, %s13553_s16 }
0x2359   : > { %6299 = vrot.lane.b32.xlu0 %v12056_v8, %s13553_s16 }
0x235d   : > { %6297 = vrot.lane.b32.xlu0 %v12069_v52, %s13553_s16 }
0x2361   : > { %6295 = vrot.lane.b32.xlu0 %v12082_v49, %s13553_s16 }
0x2365   : > { %6293 = vrot.lane.b32.xlu0 %v12095_v16, %s13553_s16 }
0x2369   : > { %6291 = vrot.lane.b32.xlu0 %v12109_v5, %s13553_s16 }
0x236d   : > { %6289 = vrot.lane.b32.xlu0 %v12123_v18, %s13553_s16 }
0x2371   : > { %6287 = vrot.lane.b32.xlu0 %v12137_v9, %s13553_s16 }
0x2374   : > { %v6068_v42 = vpop.xlane.xlu0 %6067 }
0x2375   : > { %v6069_v35 = vsub.f32 %v6062_v40, %v6068_v42  ;;  %v6070_v33 = vsub.f32 %v6064_v26, %v6068_v42  ;;  %6285 = vrot.lane.b32.xlu0 %v12151_v45, %s13553_s16  ;;  %v13641_v40 = vld [vmem:[#allocation40_spill] sm:$0xff] }
0x2377   : > { %v6071_v23 = vmul.f32 1.442695, %v6069_v35  ;;  %v6073_v1 = vmul.f32 1.442695, %v6070_v33  ;;  %v13643_v35 = vld [vmem:[#allocation42_spill] sm:$0xff] }
0x2378   : > { %v6140_v34 = vpop.permute.xlu0 %6139 }
0x2379   : > { %9469 = vpow2.f32 %v6071_v23  ;;  %6283 = vrot.lane.b32.xlu0 %v12165_v57, %s13553_s16  ;;  %8574 = vmatprep.subr.mxu1 %v6140_v34  ;;  %v13644_v23 = vld [vmem:[#allocation43_spill] sm:$0xff] }
0x237a   : > { %9471 = vpow2.f32 %v6073_v1 }
0x237c   : > { %v6108_v6 = vpop.permute.xlu0 %6107 }
0x237d   : > { %6281 = vrot.lane.b32.xlu0 %v12179_v12, %s13553_s16  ;;  %8575 = vmatpush3.msra.mxu1 %v6108_v6 }
0x237e   : > { %8576 = vmatprep.subr.mxu1 %v6138_v38 }
0x2380   : > { %v6106_v48 = vpop.permute.xlu0 %6105 }
0x2381   : > { %6247 = vrot.lane.b32.xlu0 %v11892_v31, %s13556_s30  ;;  %8577 = vmatpush3.msra.mxu1 %v6106_v48  ;;  %v13646_v48 = vld [vmem:[#allocation45_spill] sm:$0xff]  ;;  %s396_s30 = scalar_lea.vmem %s13222_s10, %s7979_s15 }
0x2384   : > { %v6136_v53 = vpop.permute.xlu0 %6135 }
0x2385   : > { %6663 = vrot.lane.b32.xlu0 %v11985_v19, %s13555_s17  ;;  %8578 = vmatprep.subr.mxu1 %v6136_v53 }
0x2386   : > { %v12674_v43 = vpop.eup %9469 }
0x2387   : > { %v12676_v4 = vpop.eup %9471 }
0x2388   : > { %v6104_v15 = vpop.permute.xlu0 %6103  ;;  %v6075_v29 = vadd.f32 %v12676_v4, %v12674_v43 }
0x2389   : > { %6661 = vrot.lane.b32.xlu0 %v13624_v46, %s13555_s17  ;;  %8579 = vmatpush3.msra.mxu1 %v6104_v15  ;;  %v6092_v46 = vpop.permute.xlu1 %6091 }
0x238a   : > { %6076 = vadd.xlane.f32.xlu1 %v6075_v29 }
0x238c   : > { %v6134_v39 = vpop.permute.xlu0 %6133 }
0x238d   : > { %6659 = vrot.lane.b32.xlu0 %v13639_v21, %s13555_s17  ;;  %8580 = vmatprep.subr.mxu1 %v6134_v39  ;;  %v6090_v42 = vpop.permute.xlu1 %6089 }
0x238e   : > { %8581 = vmatpush3.msra.mxu1 %v6102_v0  ;;  %v13645_v0 = vld [vmem:[#allocation44_spill] sm:$0xff] }
0x2390   : > { %v6132_v19 = vpop.permute.xlu0 %6131 }
0x2391   : > { %6657 = vrot.lane.b32.xlu0 %v13640_v25, %s13555_s17  ;;  %8582 = vmatprep.subr.mxu1 %v6132_v19  ;;  %v6088_v1 = vpop.permute.xlu1 %6087  ;;  %v13649_v19 = vld [vmem:[#allocation48_spill] sm:$0xff] }
0x2392   : > { %8583 = vmatpush3.msra.mxu1 %v6100_v59 }
0x2394   : > { %v6130_v47 = vpop.permute.xlu0 %6129 }
0x2395   : > { %6655 = vrot.lane.b32.xlu0 %v13641_v40, %s13555_s17  ;;  %8584 = vmatprep.subr.mxu1 %v6130_v47  ;;  %v6086_v59 = vpop.permute.xlu1 %6085 }
0x2396   : > { %8585 = vmatpush3.msra.mxu1 %v6098_v7  ;;  %v13647_v7 = vld [vmem:[#allocation46_spill] sm:$0xff] }
0x2398   : > { %v6128_v26 = vpop.permute.xlu0 %6127 }
0x2399   : > { %6653 = vrot.lane.b32.xlu0 %v13642_v11, %s13555_s17  ;;  %8586 = vmatprep.subr.mxu1 %v6128_v26  ;;  %v6084_v15 = vpop.permute.xlu1 %6083  ;;  %v13652_v26 = vld [vmem:[#allocation58_spill] sm:$0xff] }
0x239a   : > { %8587 = vmatpush3.msra.mxu1 %v6096_v63  ;;  %v13648_v63 = vld [vmem:[#allocation47_spill] sm:$0xff] }
0x239b   : > { %6275 = vrot.lane.b32.xlu1 %v13639_v21, %s13553_s16 }
0x239c   : > { %v6126_v38 = vpop.permute.xlu0 %6125 }
0x239d   : > { %6651 = vrot.lane.b32.xlu0 %v13643_v35, %s13555_s17  ;;  %8588 = vmatprep.subr.mxu1 %v6126_v38  ;;  %v6082_v21 = vpop.permute.xlu1 %6081  ;;  %v13653_v38 = vld [vmem:[#allocation59_spill] sm:$0xff] }
0x239e   : > { %8589 = vmatpush3.msra.mxu1 %v6094_v22 }
0x239f   : > { %6273 = vrot.lane.b32.xlu1 %v13640_v25, %s13553_s16  ;;  %v13650_v25 = vld [vmem:[#allocation49_spill] sm:$0xff] }
0x23a0   : > { %v6124_v33 = vpop.permute.xlu0 %6123 }
0x23a1   : > { %6649 = vrot.lane.b32.xlu0 %v13644_v23, %s13555_s17  ;;  %8590 = vmatprep.subr.mxu1 %v6124_v33 }
0x23a2   : > { %8591 = vmatpush3.msra.mxu1 %v6092_v46 }
0x23a3   : > { %6271 = vrot.lane.b32.xlu1 %v13641_v40, %s13553_s16  ;;  %v13651_v40 = vld [vmem:[#allocation51_spill] sm:$0xff] }
0x23a4   : > { %v6122_v34 = vpop.permute.xlu0 %6121 }
0x23a5   : > { %6647 = vrot.lane.b32.xlu0 %v13645_v0, %s13555_s17  ;;  %8592 = vmatprep.subr.mxu1 %v6122_v34 }
0x23a6   : > { %8593 = vmatpush3.msra.mxu1 %v6090_v42 }
0x23a7   : > { %6269 = vrot.lane.b32.xlu1 %v13642_v11, %s13553_s16 }
0x23a8   : > { %v6120_v6 = vpop.permute.xlu0 %6119 }
0x23a9   : > { %6645 = vrot.lane.b32.xlu0 %v13646_v48, %s13555_s17  ;;  %8594 = vmatprep.subr.mxu1 %v6120_v6 }
0x23aa   : > { %8595 = vmatpush3.msra.mxu1 %v6088_v1 }
0x23ab   : > { %6267 = vrot.lane.b32.xlu1 %v13643_v35, %s13553_s16  ;;  %v13654_v35 = vld [vmem:[#allocation61_spill] sm:$0xff] }
0x23ac   : > { %v6118_v53 = vpop.permute.xlu0 %6117 }
0x23ad   : > { %6643 = vrot.lane.b32.xlu0 %v13647_v7, %s13555_s17  ;;  %8596 = vmatprep.subr.mxu1 %v6118_v53  ;;  %v13655_v53 = vld [vmem:[#allocation60_spill] sm:$0xff] }
0x23ae   : > { %8597 = vmatpush3.msra.mxu1 %v6086_v59  ;;  %v6280_v59 = vpop.permute.xlu1 %6279 }
0x23af   : > { %6265 = vrot.lane.b32.xlu1 %v13644_v23, %s13553_s16 }
0x23b0   : > { %v6116_v29 = vpop.permute.xlu0 %6115 }
0x23b1   : > { %6641 = vrot.lane.b32.xlu0 %v13648_v63, %s13555_s17  ;;  %8598 = vmatprep.subr.mxu1 %v6116_v29 }
0x23b2   : > { %8599 = vmatpush3.msra.mxu1 %v6084_v15  ;;  %v13656_v15 = vld [vmem:[#allocation62_spill] sm:$0xff] }
0x23b3   : > { %6263 = vrot.lane.b32.xlu1 %v13645_v0, %s13553_s16 }
0x23b4   : > { %v6114_v39 = vpop.permute.xlu0 %6113 }
0x23b5   : > { %6639 = vrot.lane.b32.xlu0 %v13649_v19, %s13555_s17  ;;  %8600 = vmatprep.subr.mxu1 %v6114_v39 }
0x23b6   : > { %8601 = vmatpush3.msra.mxu1 %v6082_v21 }
0x23b7   : > { %6261 = vrot.lane.b32.xlu1 %v13646_v48, %s13553_s16  ;;  %v6278_v48 = vpop.permute.xlu1 %6277 }
0x23b8   : > { %v6312_v22 = vpop.permute.xlu0 %6311 }
0x23b9   : > { %6637 = vrot.lane.b32.xlu0 %v13650_v25, %s13555_s17  ;;  %8605 = vmatprep.subr.msk.mxu1 %vm597_vm2, %v6312_v22 }
0x23bb   : > { %6259 = vrot.lane.b32.xlu1 %v13647_v7, %s13553_s16 }
0x23bc   : > { %v12725_v47 = vpop.permute.xlu0 %6309 }
0x23bd   : > { %6635 = vrot.lane.b32.xlu0 %v13651_v40, %s13555_s17 }
0x23bf   : > { %6257 = vrot.lane.b32.xlu1 %v13648_v63, %s13553_s16 }
0x23c0   : > { %v12731_v46 = vpop.permute.xlu0 %6307 }
0x23c1   : > { %6633 = vrot.lane.b32.xlu0 %v13652_v26, %s13555_s17 }
0x23c3   : > { %6255 = vrot.lane.b32.xlu1 %v13649_v19, %s13553_s16 }
0x23c4   : > { %v12737_v11 = vpop.permute.xlu0 %6305 }
0x23c5   : > { %6527 = vrot.lane.b32.xlu0 %v13653_v38, %s13520_s24 }
0x23c7   : > { %6253 = vrot.lane.b32.xlu1 %v13650_v25, %s13553_s16 }
0x23c8   : > { %v12743_v42 = vpop.permute.xlu0 %6303 }
0x23c9   : > { %6525 = vrot.lane.b32.xlu0 %v13654_v35, %s13520_s24 }
0x23cb   : > { %6251 = vrot.lane.b32.xlu1 %v13651_v40, %s13553_s16 }
0x23cc   : > { %v12749_v33 = vpop.permute.xlu0 %6301 }
0x23cd   : > { %6515 = vrot.lane.b32.xlu0 %v12398_v10, %s13520_s24 }
0x23cf   : > { %6249 = vrot.lane.b32.xlu1 %v13652_v26, %s13553_s16 }
0x23d0   : > { %v12755_v23 = vpop.permute.xlu0 %6299 }
0x23d1   : > { %6509 = vrot.lane.b32.xlu0 %v12418_v20, %s13520_s24 }
0x23d3   : > { %6695 = vrot.lane.b32.xlu1 %v12010_v14, %s13555_s17 }
0x23d4   : > { %v12761_v1 = vpop.permute.xlu0 %6297 }
0x23d5   : > { %6507 = vrot.lane.b32.xlu0 %v12424_v32, %s13520_s24 }
0x23d7   : > { %6693 = vrot.lane.b32.xlu1 %v12002_v13, %s13555_s17 }
0x23d8   : > { %v12767_v34 = vpop.permute.xlu0 %6295 }
0x23d9   : > { %6505 = vrot.lane.b32.xlu0 %v12430_v36, %s13520_s24 }
0x23db   : > { %6691 = vrot.lane.b32.xlu1 %v12007_v62, %s13555_s17 }
0x23dc   : > { %v12773_v0 = vpop.permute.xlu0 %6293 }
0x23dd   : > { %6503 = vrot.lane.b32.xlu0 %v12436_v44, %s13520_s24 }
0x23df   : > { %6689 = vrot.lane.b32.xlu1 %v12020_v41, %s13555_s17 }
0x23e0   : > { %v12779_v14 = vpop.permute.xlu0 %6291 }
0x23e1   : > { %6501 = vrot.lane.b32.xlu0 %v12442_v28, %s13520_s24 }
0x23e3   : > { %6687 = vrot.lane.b32.xlu1 %v12030_v24, %s13555_s17 }
0x23e4   : > { %v12785_v13 = vpop.permute.xlu0 %6289 }
0x23e5   : > { %6499 = vrot.lane.b32.xlu0 %v12448_v27, %s13520_s24 }
0x23e7   : > { %6685 = vrot.lane.b32.xlu1 %v12043_v56, %s13555_s17 }
0x23e8   : > { %v12791_v62 = vpop.permute.xlu0 %6287 }
0x23e9   : > { %6497 = vrot.lane.b32.xlu0 %v12454_v55, %s13520_s24 }
0x23eb   : > { %6683 = vrot.lane.b32.xlu1 %v12056_v8, %s13555_s17 }
0x23ec   : > { %v12797_v41 = vpop.permute.xlu0 %6285 }
0x23ed   : > { %6911 = vrot.lane.b32.xlu0 %v13653_v38, %s13538_s21 }
0x23ef   : > { %6681 = vrot.lane.b32.xlu1 %v12069_v52, %s13555_s17 }
0x23f0   : > { %v12803_v24 = vpop.permute.xlu0 %6283 }
0x23f3   : > { %6679 = vrot.lane.b32.xlu1 %v12082_v49, %s13555_s17 }
0x23f4   : > { %v12807_v56 = vpop.permute.xlu0 %6281 }
0x23f7   : > { %6677 = vrot.lane.b32.xlu1 %v12095_v16, %s13555_s17 }
0x23f8   : > { %v12811_v6 = vpop.permute.xlu0 %6247 }
0x23fb   : > { %6675 = vrot.lane.b32.xlu1 %v12109_v5, %s13555_s17 }
0x23fc   : > { %v12815_v8 = vpop.permute.xlu0 %6663 }
0x23ff   : > { %6673 = vrot.lane.b32.xlu1 %v12123_v18, %s13555_s17 }
0x2400   : > { %v12819_v52 = vpop.permute.xlu0 %6661 }
0x2403   : > { %6671 = vrot.lane.b32.xlu1 %v12137_v9, %s13555_s17 }
0x2404   : > { %v12823_v49 = vpop.permute.xlu0 %6659 }
0x2407   : > { %6669 = vrot.lane.b32.xlu1 %v12151_v45, %s13555_s17 }
0x2408   : > { %v12827_v16 = vpop.permute.xlu0 %6657 }
0x240b   : > { %6667 = vrot.lane.b32.xlu1 %v12165_v57, %s13555_s17 }
0x240c   : > { %v12831_v5 = vpop.permute.xlu0 %6655 }
0x240f   : > { %6665 = vrot.lane.b32.xlu1 %v12179_v12, %s13555_s17 }
0x2410   : > { %v12835_v18 = vpop.permute.xlu0 %6653 }
0x2413   : > { %6631 = vrot.lane.b32.xlu1 %v11892_v31, %s13530_s25  ;;  %v6077_v9 = vpop.xlane.xlu1 %6076 }
0x2414   : > { %9473 = vrcp.f32 %v6077_v9  ;;  %v12839_v45 = vpop.permute.xlu0 %6651 }
0x2417   : > { %6495 = vrot.lane.b32.xlu1 %v13655_v53, %s13520_s24  ;;  %v6276_v7 = vpop.permute.xlu1 %6275 }
0x2418   : > { %v12843_v57 = vpop.permute.xlu0 %6649 }
0x241b   : > { %6493 = vrot.lane.b32.xlu1 %v13656_v15, %s13520_s24  ;;  %v6274_v29 = vpop.permute.xlu1 %6273 }
0x241c   : > { %v12847_v12 = vpop.permute.xlu0 %6647 }
0x241f   : > { %6523 = vrot.lane.b32.xlu1 %v12364_v61, %s13520_s24  ;;  %v6272_v31 = vpop.permute.xlu1 %6271 }
0x2420   : > { %v12851_v63 = vpop.permute.xlu0 %6645 }
0x2421   : > { %v9474_v39 = vpop.eup %9473 }
0x2422   : > { %v6080_v21 = vmul.f32 %v9474_v39, %v12676_v4  ;;  %v6079_v19 = vmul.f32 %v9474_v39, %v12674_v43  ;;  %v13657_v4 = vld [vmem:[#allocation67_spill] sm:$0xff] }
0x2423   : > { %6491 = vrot.lane.b32.xlu1 %v12271_v60, %s13520_s24  ;;  %v6270_v22 = vpop.permute.xlu1 %6269 }
0x2424   : > { %6241 = vmatprep.mubr.f32.mxu1 %v6080_v21  ;;  %v12857_v25 = vpop.permute.xlu0 %6643 }
0x2425   : > { %6242 = vmatmul.mubr.f32.vlgmr.msra.gmra.mxu1 %v6079_v19 }
0x2426   : > { %8606 = vmatpush3.xpose.msk.msra.mxu1 %vm597_vm2, %v6280_v59  ;;  %8637 = vmatprep.mubr.msk.f32.mxu1 %vm597_vm2, %v12811_v6 }
0x2427   : > { %8607 = vmatprep.subr.msk.mxu1 %vm597_vm2, %v12725_v47  ;;  %6521 = vrot.lane.b32.xlu1 %v13657_v4, %s13520_s24  ;;  %v6268_v43 = vpop.permute.xlu1 %6267 }
0x2428   : > { %v12866_v40 = vpop.permute.xlu0 %6641 }
0x242a   : > { %8608 = vmatpush3.xpose.msk.msra.mxu1 %vm597_vm2, %v6278_v48 }
0x242b   : > { %8609 = vmatprep.subr.msk.mxu1 %vm597_vm2, %v12731_v46  ;;  %6489 = vrot.lane.b32.xlu1 %v12376_v17, %s13520_s24  ;;  %v6266_v26 = vpop.permute.xlu1 %6265 }
0x242c   : > { %v12873_v38 = vpop.permute.xlu0 %6639 }
0x242e   : > { %8610 = vmatpush3.xpose.msk.msra.mxu1 %vm597_vm2, %v6276_v7 }
0x242f   : > { %8611 = vmatprep.subr.msk.mxu1 %vm597_vm2, %v12737_v11  ;;  %6519 = vrot.lane.b32.xlu1 %v12380_v54, %s13520_s24  ;;  %v6264_v47 = vpop.permute.xlu1 %6263 }
0x2430   : > { %v12880_v59 = vpop.permute.xlu0 %6637 }
0x2432   : > { %8612 = vmatpush3.xpose.msk.msra.mxu1 %vm597_vm2, %v6274_v29 }
0x2433   : > { %8613 = vmatprep.subr.msk.mxu1 %vm597_vm2, %v12743_v42  ;;  %6487 = vrot.lane.b32.xlu1 %v12388_v30, %s13520_s24  ;;  %v6262_v46 = vpop.permute.xlu1 %6261  ;;  %v13658_v42 = vld [vmem:[#allocation50_spill] sm:$0xff] }
0x2434   : > { %v12887_v48 = vpop.permute.xlu0 %6635 }
0x2436   : > { %8614 = vmatpush3.xpose.msk.msra.mxu1 %vm597_vm2, %v6272_v31 }
0x2437   : > { %8615 = vmatprep.subr.msk.mxu1 %vm597_vm2, %v12749_v33  ;;  %6517 = vrot.lane.b32.xlu1 %v12392_v3, %s13520_s24  ;;  %v6260_v11 = vpop.permute.xlu1 %6259  ;;  %v13659_v33 = vld [vmem:[#allocation53_spill] sm:$0xff] }
0x2438   : > { %v12894_v9 = vpop.permute.xlu0 %6633 }
0x243a   : > { %8616 = vmatpush3.xpose.msk.msra.mxu1 %vm597_vm2, %v6270_v22 }
0x243b   : > { %8617 = vmatprep.subr.msk.mxu1 %vm597_vm2, %v12755_v23  ;;  %6485 = vrot.lane.b32.xlu1 %v13658_v42, %s13520_s24  ;;  %v6258_v7 = vpop.permute.xlu1 %6257 }
0x243c   : > { %v6528_v29 = vpop.permute.xlu0 %6527 }
0x243d   : > { %8639 = vmatprep.subr.mxu0 %v6528_v29 }
0x243e   : > { %8618 = vmatpush3.xpose.msk.msra.mxu1 %vm597_vm2, %v6268_v43 }
0x243f   : > { %8619 = vmatprep.subr.msk.mxu1 %vm597_vm2, %v12761_v1  ;;  %6483 = vrot.lane.b32.xlu1 %v13659_v33, %s13520_s24  ;;  %v6256_v31 = vpop.permute.xlu1 %6255  ;;  %v13660_v1 = vld [vmem:[#allocation54_spill] sm:$0xff] }
0x2440   : > { %v6526_v29 = vpop.permute.xlu0 %6525 }
0x2442   : > { %8620 = vmatpush3.xpose.msk.msra.mxu1 %vm597_vm2, %v6266_v26 }
0x2443   : > { %8621 = vmatprep.subr.msk.mxu1 %vm597_vm2, %v12767_v34  ;;  %6513 = vrot.lane.b32.xlu1 %v12406_v51, %s13520_s24  ;;  %v6254_v23 = vpop.permute.xlu1 %6253 }
0x2446   : > { %8622 = vmatpush3.xpose.msk.msra.mxu1 %vm597_vm2, %v6264_v47  ;;  %v13666_v47 = vld [vmem:[#allocation63_spill] sm:$0xff] }
0x2447   : > { %8623 = vmatprep.subr.msk.mxu1 %vm597_vm2, %v12773_v0  ;;  %6481 = vrot.lane.b32.xlu1 %v13660_v1, %s13520_s24  ;;  %v6252_v39 = vpop.permute.xlu1 %6251  ;;  %v13661_v0 = vld [vmem:[#allocation55_spill] sm:$0xff] }
0x244a   : > { %8624 = vmatpush3.xpose.msk.msra.mxu1 %vm597_vm2, %v6262_v46 }
0x244b   : > { %8625 = vmatprep.subr.msk.mxu1 %vm597_vm2, %v12779_v14  ;;  %6511 = vrot.lane.b32.xlu1 %v12412_v58, %s13520_s24  ;;  %v6250_v34 = vpop.permute.xlu1 %6249  ;;  %v13662_v14 = vld [vmem:[#allocation56_spill] sm:$0xff] }
0x244e   : > { %8626 = vmatpush3.xpose.msk.msra.mxu1 %vm597_vm2, %v6260_v11  ;;  %v13668_v11 = vld [vmem:[#allocation66_spill] sm:$0xff] }
0x244f   : > { %8627 = vmatprep.subr.msk.mxu1 %vm597_vm2, %v12785_v13  ;;  %6479 = vrot.lane.b32.xlu1 %v13661_v0, %s13520_s24  ;;  %v6696_v21 = vpop.permute.xlu1 %6695  ;;  %v13663_v13 = vld [vmem:[#allocation57_spill] sm:$0xff] }
0x2452   : > { %8628 = vmatpush3.xpose.msk.msra.mxu1 %vm597_vm2, %v6258_v7 }
0x2453   : > { %8629 = vmatprep.subr.msk.mxu1 %vm597_vm2, %v12791_v62  ;;  %6477 = vrot.lane.b32.xlu1 %v13662_v14, %s13520_s24  ;;  %v6694_v19 = vpop.permute.xlu1 %6693  ;;  %v13664_v62 = vld [vmem:[#allocation52_spill] sm:$0xff] }
0x2456   : > { %8630 = vmatpush3.xpose.msk.msra.mxu1 %vm597_vm2, %v6256_v31 }
0x2457   : > { %8631 = vmatprep.subr.msk.mxu1 %vm597_vm2, %v12797_v41  ;;  %6475 = vrot.lane.b32.xlu1 %v13663_v13, %s13520_s24  ;;  %v6692_v22 = vpop.permute.xlu1 %6691  ;;  %v13665_v41 = vld [vmem:[#allocation65_spill] sm:$0xff] }
0x245a   : > { %8632 = vmatpush3.xpose.msk.msra.mxu1 %vm597_vm2, %v6254_v23 }
0x245b   : > { %8633 = vmatprep.subr.msk.mxu1 %vm597_vm2, %v12803_v24  ;;  %6473 = vrot.lane.b32.xlu1 %v13664_v62, %s13520_s24  ;;  %v6690_v43 = vpop.permute.xlu1 %6689 }
0x245e   : > { %8634 = vmatpush3.xpose.msk.msra.mxu1 %vm597_vm2, %v6252_v39 }
0x245f   : > { %8635 = vmatprep.subr.msk.mxu1 %vm597_vm2, %v12807_v56  ;;  %6471 = vrot.lane.b32.xlu1 %v13665_v41, %s13520_s24  ;;  %v6688_v26 = vpop.permute.xlu1 %6687  ;;  %v13667_v56 = vld [vmem:[#allocation64_spill] sm:$0xff] }
0x2462   : > { %8636 = vmatpush3.xpose.msk.msra.mxu1 %vm597_vm2, %v6250_v34  ;;  %v6516_v34 = vpop.permute.xlu0 %6515 }
0x2463   : > { %8674 = vmatprep.subr.msk.mxu1 %vm597_vm2, %v6696_v21  ;;  %6469 = vrot.lane.b32.xlu1 %v13666_v47, %s13520_s24  ;;  %v6686_v24 = vpop.permute.xlu1 %6685 }
0x2465   : > { %8638 = vmatmul.mubr.msk.f32.vlgmr.msra.gmra.mxu1 %vm597_vm2, %v12811_v6 }
0x2466   : > { %8675 = vmatpush3.xpose.msk.msra.mxu1 %vm597_vm2, %v12815_v8 }
0x2467   : > { %8676 = vmatprep.subr.msk.mxu1 %vm597_vm2, %v6694_v19  ;;  %6467 = vrot.lane.b32.xlu1 %v13667_v56, %s13520_s24  ;;  %v6684_v46 = vpop.permute.xlu1 %6683  ;;  %v6510_v19 = vpop.permute.xlu0 %6509 }
0x246a   : > { %8677 = vmatpush3.xpose.msk.msra.mxu1 %vm597_vm2, %v12819_v52 }
0x246b   : > { %8678 = vmatprep.subr.msk.mxu1 %vm597_vm2, %v6692_v22  ;;  %6465 = vrot.lane.b32.xlu1 %v13668_v11, %s13520_s24  ;;  %v6682_v7 = vpop.permute.xlu1 %6681 }
0x246e   : > { %8679 = vmatpush3.xpose.msk.msra.mxu1 %vm597_vm2, %v12823_v49 }
0x246f   : > { %8680 = vmatprep.subr.msk.mxu1 %vm597_vm2, %v6690_v43  ;;  %v6680_v6 = vpop.permute.xlu1 %6679  ;;  %v6508_v43 = vpop.permute.xlu0 %6507 }
0x2472   : > { %8681 = vmatpush3.xpose.msk.msra.mxu1 %vm597_vm2, %v12827_v16 }
0x2473   : > { %8682 = vmatprep.subr.msk.mxu1 %vm597_vm2, %v6688_v26  ;;  %v6678_v8 = vpop.permute.xlu1 %6677 }
0x2476   : > { %8683 = vmatpush3.xpose.msk.msra.mxu1 %vm597_vm2, %v12831_v5 }
0x2477   : > { %8684 = vmatprep.subr.msk.mxu1 %vm597_vm2, %v6686_v24  ;;  %v6676_v52 = vpop.permute.xlu1 %6675  ;;  %v6506_v24 = vpop.permute.xlu0 %6505 }
0x247a   : > { %8685 = vmatpush3.xpose.msk.msra.mxu1 %vm597_vm2, %v12835_v18 }
0x247b   : > { %8686 = vmatprep.subr.msk.mxu1 %vm597_vm2, %v6684_v46  ;;  %v6674_v49 = vpop.permute.xlu1 %6673 }
0x247e   : > { %8687 = vmatpush3.xpose.msk.msra.mxu1 %vm597_vm2, %v12839_v45 }
0x247f   : > { %8688 = vmatprep.subr.msk.mxu1 %vm597_vm2, %v6682_v7  ;;  %v6672_v16 = vpop.permute.xlu1 %6671 }
0x2482   : > { %8689 = vmatpush3.xpose.msk.msra.mxu1 %vm597_vm2, %v12843_v57 }
0x2483   : > { %8690 = vmatprep.subr.msk.mxu1 %vm597_vm2, %v6680_v6  ;;  %v6670_v5 = vpop.permute.xlu1 %6669  ;;  %v6504_v6 = vpop.permute.xlu0 %6503 }
0x2486   : > { %8691 = vmatpush3.xpose.msk.msra.mxu1 %vm597_vm2, %v12847_v12 }
0x2487   : > { %8692 = vmatprep.subr.msk.mxu1 %vm597_vm2, %v6678_v8  ;;  %v6668_v18 = vpop.permute.xlu1 %6667 }
0x248a   : > { %8693 = vmatpush3.xpose.msk.msra.mxu1 %vm597_vm2, %v12851_v63 }
0x248b   : > { %8694 = vmatprep.subr.msk.mxu1 %vm597_vm2, %v6676_v52  ;;  %v6666_v45 = vpop.permute.xlu1 %6665  ;;  %v6502_v52 = vpop.permute.xlu0 %6501 }
0x248e   : > { %8695 = vmatpush3.xpose.msk.msra.mxu1 %vm597_vm2, %v12857_v25 }
0x248f   : > { %8696 = vmatprep.subr.msk.mxu1 %vm597_vm2, %v6674_v49  ;;  %v6632_v57 = vpop.permute.xlu1 %6631 }
0x2490   : > { %8706 = vmatprep.mubr.msk.f32.mxu1 %vm597_vm2, %v6632_v57 }
0x2492   : > { %8697 = vmatpush3.xpose.msk.msra.mxu1 %vm597_vm2, %v12866_v40 }
0x2493   : > { %8698 = vmatprep.subr.msk.mxu1 %vm597_vm2, %v6672_v16  ;;  %v6496_v12 = vpop.permute.xlu1 %6495 }
0x2494   : > { %8640 = vmatpush3.msra.mxu0 %v6496_v12 }
0x2495   : > { %8641 = vmatprep.subr.mxu0 %v6526_v29 }
0x2496   : > { %8699 = vmatpush3.xpose.msk.msra.mxu1 %vm597_vm2, %v12873_v38 }
0x2497   : > { %8700 = vmatprep.subr.msk.mxu1 %vm597_vm2, %v6670_v5  ;;  %v6494_v63 = vpop.permute.xlu1 %6493  ;;  %v6500_v5 = vpop.permute.xlu0 %6499 }
0x2498   : > { %8642 = vmatpush3.msra.mxu0 %v6494_v63 }
0x249a   : > { %8701 = vmatpush3.xpose.msk.msra.mxu1 %vm597_vm2, %v12880_v59 }
0x249b   : > { %8702 = vmatprep.subr.msk.mxu1 %vm597_vm2, %v6668_v18  ;;  %v6524_v25 = vpop.permute.xlu1 %6523 }
0x249c   : > { %8643 = vmatprep.subr.mxu0 %v6524_v25 }
0x249e   : > { %8703 = vmatpush3.xpose.msk.msra.mxu1 %vm597_vm2, %v12887_v48 }
0x249f   : > { %8704 = vmatprep.subr.msk.mxu1 %vm597_vm2, %v6666_v45  ;;  %v6492_v40 = vpop.permute.xlu1 %6491  ;;  %v6498_v45 = vpop.permute.xlu0 %6497 }
0x24a0   : > { %8644 = vmatpush3.msra.mxu0 %v6492_v40 }
0x24a2   : > { %8705 = vmatpush3.xpose.msk.msra.mxu1 %vm597_vm2, %v12894_v9 }
0x24a3   : > { %v6522_v38 = vpop.permute.xlu1 %6521  ;;  %v6912_v25 = vpop.permute.xlu0 %6911 }
0x24a4   : > { %8645 = vmatprep.subr.mxu0 %v6522_v38 }
0x24a5   : > { %8707 = vmatmul.mubr.msk.f32.vlgmr.msra.gmra.mxu1 %vm597_vm2, %v6632_v57 }
0x24a7   : > { %v6490_v31 = vpop.permute.xlu1 %6489 }
0x24a8   : > { %8646 = vmatpush3.msra.mxu0 %v6490_v31 }
0x24ab   : > { %v6520_v59 = vpop.permute.xlu1 %6519 }
0x24ac   : > { %8647 = vmatprep.subr.mxu0 %v6520_v59 }
0x24af   : > { %v6488_v23 = vpop.permute.xlu1 %6487 }
0x24b0   : > { %8648 = vmatpush3.msra.mxu0 %v6488_v23 }
0x24b3   : > { %v6518_v39 = vpop.permute.xlu1 %6517 }
0x24b4   : > { %8649 = vmatprep.subr.mxu0 %v6518_v39 }
0x24b7   : > { %v6486_v48 = vpop.permute.xlu1 %6485 }
0x24b8   : > { %8650 = vmatpush3.msra.mxu0 %v6486_v48 }
0x24b9   : > { %8651 = vmatprep.subr.mxu0 %v6516_v34 }
0x24bb   : > { %v6484_v21 = vpop.permute.xlu1 %6483 }
0x24bc   : > { %8652 = vmatpush3.msra.mxu0 %v6484_v21 }
0x24bf   : > { %v6514_v9 = vpop.permute.xlu1 %6513 }
0x24c0   : > { %8653 = vmatprep.subr.mxu0 %v6514_v9 }
0x24c3   : > { %v6482_v22 = vpop.permute.xlu1 %6481 }
0x24c4   : > { %8654 = vmatpush3.msra.mxu0 %v6482_v22 }
0x24c7   : > { %v6512_v26 = vpop.permute.xlu1 %6511 }
0x24c8   : > { %8655 = vmatprep.subr.mxu0 %v6512_v26 }
0x24cb   : > { %v6480_v46 = vpop.permute.xlu1 %6479 }
0x24cc   : > { %8656 = vmatpush3.msra.mxu0 %v6480_v46 }
0x24cd   : > { %8657 = vmatprep.subr.mxu0 %v6510_v19 }
0x24cf   : > { %v6478_v7 = vpop.permute.xlu1 %6477 }
0x24d0   : > { %8658 = vmatpush3.msra.mxu0 %v6478_v7 }
0x24d1   : > { %8659 = vmatprep.subr.mxu0 %v6508_v43 }
0x24d3   : > { %v6476_v8 = vpop.permute.xlu1 %6475 }
0x24d4   : > { %8660 = vmatpush3.msra.mxu0 %v6476_v8 }
0x24d5   : > { %8661 = vmatprep.subr.mxu0 %v6506_v24 }
0x24d7   : > { %v6474_v49 = vpop.permute.xlu1 %6473 }
0x24d8   : > { %8662 = vmatpush3.msra.mxu0 %v6474_v49 }
0x24d9   : > { %8663 = vmatprep.subr.mxu0 %v6504_v6 }
0x24db   : > { %v6472_v16 = vpop.permute.xlu1 %6471 }
0x24dc   : > { %8664 = vmatpush3.msra.mxu0 %v6472_v16 }
0x24dd   : > { %8665 = vmatprep.subr.mxu0 %v6502_v52 }
0x24df   : > { %v6470_v18 = vpop.permute.xlu1 %6469 }
0x24e0   : > { %8666 = vmatpush3.msra.mxu0 %v6470_v18 }
0x24e1   : > { %8667 = vmatprep.subr.mxu0 %v6500_v5 }
0x24e3   : > { %v6468_v57 = vpop.permute.xlu1 %6467 }
0x24e4   : > { %8668 = vmatpush3.msra.mxu0 %v6468_v57 }
0x24e5   : > { %v8602_v12 = vpop.f32.mrf.mxu1  ;;  %8669 = vmatprep.subr.mxu0 %v6498_v45 }
0x24e7   : > { %v8603_v29 = vpop.f32.mrf.mxu1  ;;  %v6466_v63 = vpop.permute.xlu1 %6465 }
0x24e8   : > { %v13005_v40 = vadd.f32 %v8603_v29, %v8602_v12  ;;  %8670 = vmatpush3.msra.mxu0 %v6466_v63 }
0x24e9   : > { %8708 = vmatprep.subr.mxu0 %v6912_v25 }
0x2525   : > { %v6445_v38 = vpop.f32.mrf.mxu1 }
0x2526   : > { %v6446_v59 = vadd.f32 %v6445_v38, %v10700_v50 }
0x2527   : > { %v6447_v31 = vpop.f32.mrf.mxu1 }
0x2528   : > { %v6448_v23 = vadd.f32 %v6447_v31, %v10702_v2 }
0x252a   : > { %v6450_v39 = vmax.f32 %v6446_v59, %v6448_v23 }
0x252c   : > { %6451 = vmax.xlane.f32.xlu0 %v6450_v39 }
0x2542   : > { %6909 = vrot.lane.b32.xlu0 %v13654_v35, %s13538_s21 }
0x2546   : > { %6877 = vrot.lane.b32.xlu0 %v13656_v15, %s13538_s21 }
0x254a   : > { %6907 = vrot.lane.b32.xlu0 %v12364_v61, %s13538_s21 }
0x254e   : > { %6875 = vrot.lane.b32.xlu0 %v12271_v60, %s13538_s21 }
0x2552   : > { %6905 = vrot.lane.b32.xlu0 %v13657_v4, %s13538_s21 }
0x2556   : > { %6873 = vrot.lane.b32.xlu0 %v12376_v17, %s13538_s21 }
0x255a   : > { %6903 = vrot.lane.b32.xlu0 %v12380_v54, %s13538_s21 }
0x255e   : > { %6871 = vrot.lane.b32.xlu0 %v12388_v30, %s13538_s21 }
0x2562   : > { %6901 = vrot.lane.b32.xlu0 %v12392_v3, %s13538_s21 }
0x2565   : > { %v6829_v35 = vpop.f32.mrf.mxu1 }
0x2566   : > { %6869 = vrot.lane.b32.xlu0 %v13658_v42, %s13538_s21  ;;  %v6830_v61 = vadd.f32 %v6829_v35, %v10700_v50  ;;  %v13669_v35 = vmov 0.0  }
0x2567   : > { %v6831_v60 = vpop.f32.mrf.mxu1 }
0x2568   : > { %v6832_v15 = vadd.f32 %v6831_v60, %v10702_v2 }
0x256a   : > { %v6834_v4 = vmax.f32 %v6830_v61, %v6832_v15  ;;  %6867 = vrot.lane.b32.xlu0 %v13659_v33, %s13538_s21 }
0x256c   : > { %6835 = vmax.xlane.f32.xlu1 %v6834_v4 }
0x256e   : > { %6897 = vrot.lane.b32.xlu0 %v12406_v51, %s13538_s21 }
0x2572   : > { %6865 = vrot.lane.b32.xlu0 %v13660_v1, %s13538_s21 }
0x257d   : > { %6879 = vrot.lane.b32.xlu1 %v13655_v53, %s13538_s21 }
0x2581   : > { %6899 = vrot.lane.b32.xlu1 %v12398_v10, %s13538_s21 }
0x2585   : > { %6863 = vrot.lane.b32.xlu1 %v13661_v0, %s13538_s21 }
0x2589   : > { %6861 = vrot.lane.b32.xlu1 %v13662_v14, %s13538_s21 }
0x258d   : > { %6859 = vrot.lane.b32.xlu1 %v13663_v13, %s13538_s21  ;;  %v9534_v13 = vld [vmem:[%s13216_s4 + $0x70] sm:$0xff] }
0x2591   : > { %6857 = vrot.lane.b32.xlu1 %v13664_v62, %s13538_s21  ;;  %v9535_v62 = vld [vmem:[%s13216_s4 + $0x68] sm:$0xff] }
0x2595   : > { %6855 = vrot.lane.b32.xlu1 %v13665_v41, %s13538_s21 }
0x2599   : > { %6853 = vrot.lane.b32.xlu1 %v13666_v47, %s13538_s21 }
0x259d   : > { %6851 = vrot.lane.b32.xlu1 %v13667_v56, %s13538_s21 }
0x25b5   : > { %v6452_v50 = vpop.xlane.xlu0 %6451 }
0x25b6   : > { %v6453_v2 = vsub.f32 %v6446_v59, %v6452_v50  ;;  %v6454_v17 = vsub.f32 %v6448_v23, %v6452_v50 }
0x25b8   : > { %v6455_v54 = vmul.f32 1.442695, %v6453_v2  ;;  %v6457_v30 = vmul.f32 1.442695, %v6454_v17 }
0x25ba   : > { %9475 = vpow2.f32 %v6455_v54  ;;  %v9536_v54 = vld [vmem:[%s13216_s4 + $0x60] sm:$0xff] }
0x25bb   : > { %9477 = vpow2.f32 %v6457_v30 }
0x25c7   : > { %v9476_v3 = vpop.eup %9475 }
0x25c8   : > { %v9478_v10 = vpop.eup %9477 }
0x25c9   : > { %v6459_v51 = vadd.f32 %v9478_v10, %v9476_v3 }
0x25cb   : > { %6460 = vadd.xlane.f32.xlu0 %v6459_v51  ;;  %v9537_v51 = vld [vmem:[%s13217_s5 + $0x3] ss:$0 sm:$0xff] }
0x25e1   : > { %6895 = vrot.lane.b32.xlu0 %v12412_v58, %s13538_s21 }
0x25e5   : > { %6893 = vrot.lane.b32.xlu0 %v12418_v20, %s13538_s21  ;;  %v9533_v20 = vld [vmem:[%s13216_s4 + $0x78] sm:$0xff] }
0x25e9   : > { %6891 = vrot.lane.b32.xlu0 %v12424_v32, %s13538_s21 }
0x25ed   : > { %6889 = vrot.lane.b32.xlu0 %v12430_v36, %s13538_s21 }
0x25f1   : > { %6887 = vrot.lane.b32.xlu0 %v12436_v44, %s13538_s21  ;;  %v6910_v44 = vpop.permute.xlu0 %6909 }
0x25f5   : > { %6885 = vrot.lane.b32.xlu0 %v12442_v28, %s13538_s21  ;;  %v6836_v53 = vpop.xlane.xlu1 %6835 }
0x25f6   : > { %v6837_v42 = vsub.f32 %v6830_v61, %v6836_v53  ;;  %v6838_v33 = vsub.f32 %v6832_v15, %v6836_v53 }
0x25f8   : > { %v6839_v1 = vmul.f32 1.442695, %v6837_v42  ;;  %v6841_v58 = vmul.f32 1.442695, %v6838_v33 }
0x25f9   : > { %6883 = vrot.lane.b32.xlu0 %v12448_v27, %s13538_s21  ;;  %v6878_v27 = vpop.permute.xlu0 %6877  ;;  %v6880_v9 = vpop.permute.xlu1 %6879 }
0x25fa   : > { %9479 = vpow2.f32 %v6839_v1 }
0x25fb   : > { %9481 = vpow2.f32 %v6841_v58 }
0x25fd   : > { %6881 = vrot.lane.b32.xlu0 %v12454_v55, %s13538_s21  ;;  %v6908_v55 = vpop.permute.xlu0 %6907  ;;  %v6900_v43 = vpop.permute.xlu1 %6899 }
0x2601   : > { %7040 = vrot.lane.b32.xlu0 %v9533_v20, %s13541_s22  ;;  %v6876_v0 = vpop.permute.xlu0 %6875  ;;  %v6864_v46 = vpop.permute.xlu1 %6863 }
0x2605   : > { %7016 = vrot.lane.b32.xlu0 %v13005_v40, %s13542_s19  ;;  %v6906_v14 = vpop.permute.xlu0 %6905  ;;  %v6862_v49 = vpop.permute.xlu1 %6861 }
0x2607   : > { %v13077_v32 = vpop.eup %9479 }
0x2608   : > { %v13079_v36 = vpop.eup %9481 }
0x2609   : > { %v6843_v28 = vadd.f32 %v13079_v36, %v13077_v32  ;;  %v6874_v41 = vpop.permute.xlu0 %6873  ;;  %v6860_v18 = vpop.permute.xlu1 %6859 }
0x260b   : > { %6844 = vadd.xlane.f32.xlu1 %v6843_v28  ;;  %v13670_v28 = vld [vmem:[#allocation36_spill] sm:$0xff] }
0x260d   : > { %v6904_v47 = vpop.permute.xlu0 %6903  ;;  %v6858_v57 = vpop.permute.xlu1 %6857 }
0x2611   : > { %v6872_v56 = vpop.permute.xlu0 %6871  ;;  %v6856_v63 = vpop.permute.xlu1 %6855 }
0x2615   : > { %v6902_v48 = vpop.permute.xlu0 %6901  ;;  %v6854_v40 = vpop.permute.xlu1 %6853 }
0x2619   : > { %v6870_v34 = vpop.permute.xlu0 %6869  ;;  %v6852_v59 = vpop.permute.xlu1 %6851 }
0x261c   : > { %6849 = vrot.lane.b32.xlu1 %v13668_v11, %s13538_s21 }
0x261d   : > { %v6868_v21 = vpop.permute.xlu0 %6867 }
0x2620   : > { %7038 = vrot.lane.b32.xlu1 %v9534_v13, %s13541_s22 }
0x2621   : > { %v6898_v11 = vpop.permute.xlu0 %6897 }
0x2624   : > { %7036 = vrot.lane.b32.xlu1 %v9535_v62, %s13541_s22 }
0x2625   : > { %v6866_v19 = vpop.permute.xlu0 %6865 }
0x2654   : > { %v6461_v22 = vpop.xlane.xlu0 %6460 }
0x2655   : > { %9483 = vrcp.f32 %v6461_v22 }
0x2658   : > { %v6896_v26 = vpop.permute.xlu0 %6895 }
0x265c   : > { %v6894_v24 = vpop.permute.xlu0 %6893 }
0x2660   : > { %v6892_v7 = vpop.permute.xlu0 %6891 }
0x2662   : > { %v9484_v6 = vpop.eup %9483 }
0x2663   : > { %v6463_v8 = vmul.f32 %v9484_v6, %v9476_v3  ;;  %v6464_v52 = vmul.f32 %v9484_v6, %v9478_v10  ;;  %v7964_v6 = vld [vmem:[%s13219_s7 + $0x78] sm:$0xff] }
0x2664   : > { %v6890_v16 = vpop.permute.xlu0 %6889 }
0x2665   : > { %6625 = vmatprep.mubr.f32.mxu0 %v6464_v52  ;;  %v7962_v52 = vld [vmem:[%s13219_s7 + $0x68] sm:$0xff] }
0x2666   : > { %6626 = vmatmul.mubr.f32.vlgmr.msra.gmra.mxu0 %v6463_v8  ;;  %v7963_v8 = vld [vmem:[%s13219_s7 + $0x70] sm:$0xff] }
0x2667   : > { %8709 = vmatpush3.msra.mxu0 %v6880_v9 }
0x2668   : > { %8710 = vmatprep.subr.mxu0 %v6910_v44  ;;  %v6888_v5 = vpop.permute.xlu0 %6887 }
0x2669   : > { %8711 = vmatpush3.msra.mxu0 %v6878_v27 }
0x266a   : > { %8712 = vmatprep.subr.mxu0 %v6908_v55 }
0x266b   : > { %8713 = vmatpush3.msra.mxu0 %v6876_v0 }
0x266c   : > { %8714 = vmatprep.subr.mxu0 %v6906_v14  ;;  %v6886_v45 = vpop.permute.xlu0 %6885 }
0x266d   : > { %8715 = vmatpush3.msra.mxu0 %v6874_v41 }
0x266e   : > { %8716 = vmatprep.subr.mxu0 %v6904_v47  ;;  %v7953_v47 = vld [vmem:[%s13218_s6 + $0x38] sm:$0xff] }
0x266f   : > { %8717 = vmatpush3.msra.mxu0 %v6872_v56  ;;  %v7952_v56 = vld [vmem:[%s13218_s6 + $0x30] sm:$0xff] }
0x2670   : > { %8718 = vmatprep.subr.mxu0 %v6902_v48  ;;  %v6884_v12 = vpop.permute.xlu0 %6883  ;;  %v7951_v48 = vld [vmem:[%s13218_s6 + $0x28] sm:$0xff] }
0x2671   : > { %8719 = vmatpush3.msra.mxu0 %v6870_v34  ;;  %v7950_v34 = vld [vmem:[%s13218_s6 + $0x20] sm:$0xff] }
0x2672   : > { %8720 = vmatprep.subr.mxu0 %v6900_v43  ;;  %v7948_v43 = vld [vmem:[%s13221_s9 + $0x8] ss:$0 sm:$0xff] }
0x2673   : > { %8721 = vmatpush3.msra.mxu0 %v6868_v21  ;;  %v7955_v21 = vld [vmem:[%s13220_s8 + $0x1] ss:$0 sm:$0xff] }
0x2674   : > { %8722 = vmatprep.subr.mxu0 %v6898_v11  ;;  %v6882_v29 = vpop.permute.xlu0 %6881 }
0x2675   : > { %8723 = vmatpush3.msra.mxu0 %v6866_v19 }
0x2676   : > { %8724 = vmatprep.subr.mxu0 %v6896_v26 }
0x2677   : > { %8725 = vmatpush3.msra.mxu0 %v6864_v46 }
0x2678   : > { %8726 = vmatprep.subr.mxu0 %v6894_v24  ;;  %v7041_v25 = vpop.permute.xlu0 %7040  ;;  %v7949_v24 = vld [vmem:[%s13221_s9 + $0x9] ss:$0 sm:$0xff] }
0x2679   : > { %8727 = vmatpush3.msra.mxu0 %v6862_v49  ;;  %v7961_v49 = vld [vmem:[%s13219_s7 + $0x60] sm:$0xff] }
0x267a   : > { %8728 = vmatprep.subr.mxu0 %v6892_v7 }
0x267b   : > { %8729 = vmatpush3.msra.mxu0 %v6860_v18  ;;  %v7958_v18 = vld [vmem:[%s13219_s7 + $0x48] sm:$0xff] }
0x267c   : > { %8730 = vmatprep.subr.mxu0 %v6890_v16  ;;  %v7017_v38 = vpop.permute.xlu0 %7016  ;;  %v7960_v16 = vld [vmem:[%s13219_s7 + $0x58] sm:$0xff] }
0x267d   : > { %v7027_v31 = vsel %vm597_vm2, %v12602_v37, %v7017_v38  ;;  %8731 = vmatpush3.msra.mxu0 %v6858_v57 }
0x267e   : > { %8732 = vmatprep.subr.mxu0 %v6888_v5  ;;  %v7959_v5 = vld [vmem:[%s13219_s7 + $0x50] sm:$0xff] }
0x267f   : > { %8733 = vmatpush3.msra.mxu0 %v6856_v63 }
0x2680   : > { %8734 = vmatprep.subr.mxu0 %v6886_v45  ;;  %v7957_v45 = vld [vmem:[%s13219_s7 + $0x40] sm:$0xff] }
0x2681   : > { %8735 = vmatpush3.msra.mxu0 %v6854_v40 }
0x2682   : > { %8736 = vmatprep.subr.mxu0 %v6884_v12 }
0x2683   : > { %8737 = vmatpush3.msra.mxu0 %v6852_v59 }
0x2684   : > { %8738 = vmatprep.subr.mxu0 %v6882_v29 }
0x2694   : > { %v6845_v23 = vpop.xlane.xlu1 %6844 }
0x2695   : > { %9485 = vrcp.f32 %v6845_v23 }
0x2698   : > { %v6850_v39 = vpop.permute.xlu1 %6849 }
0x2699   : > { %8739 = vmatpush3.msra.mxu0 %v6850_v39 }
0x269a   : > { %9333 = vmatprep.subr.mxu0 %v13669_v35 }
0x269c   : > { %v7039_v15 = vpop.permute.xlu1 %7038 }
0x26a0   : > { %v7037_v4 = vpop.permute.xlu1 %7036 }
0x26a2   : > { %v9486_v60 = vpop.eup %9485 }
0x26a3   : > { %v6848_v61 = vmul.f32 %v9486_v60, %v13079_v36  ;;  %v6847_v37 = vmul.f32 %v9486_v60, %v13077_v32 }
0x26a5   : > { %7009 = vmatprep.mubr.f32.mxu0 %v6848_v61 }
0x26a6   : > { %7010 = vmatmul.mubr.f32.vlgmr.msra.gmra.mxu0 %v6847_v37 }
0x26a7   : > { %9334 = vmatpush3.msra.mxu0 %v7041_v25  ;;  %9341 = vmatprep.mubr.msk.f32.mxu0 %vm9547_vm1, %v13669_v35 }
0x26a8   : > { %9335 = vmatprep.subr.mxu0 %v13669_v35 }
0x26a9   : > { %9336 = vmatpush3.msra.mxu0 %v7039_v15  ;;  %v13671_v15 = vld [vmem:[#allocation35_spill] sm:$0xff] }
0x26aa   : > { %9337 = vmatprep.subr.mxu0 %v13669_v35 }
0x26ab   : > { %9338 = vmatpush3.msra.mxu0 %v7037_v4  ;;  %v4017_v4 = vsel %vm503_vm0, %v13671_v15, 0.0 }
0x26ac   : > { %9339 = vmatprep.subr.mxu0 %v13669_v35 }
0x2726   : > { %v8671_v50 = vpop.f32.mrf.mxu0 }
0x2728   : > { %v8672_v2 = vpop.f32.mrf.mxu0 }
0x2729   : > { %v8673_v17 = vadd.f32 %v8672_v2, %v8671_v50 }
0x272b   : > { %7020 = vrot.lane.b32.xlu0 %v8673_v17, %s13546_s20 }
0x272f   : > { %7034 = vrot.lane.b32.xlu0 %v9536_v54, %s13541_s22 }
0x2766   : > { %v8740_v30 = vpop.f32.mrf.mxu0 }
0x2768   : > { %v8741_v3 = vpop.f32.mrf.mxu0 }
0x2769   : > { %v8742_v10 = vadd.f32 %v8741_v3, %v8740_v30 }
0x276b   : > { %7024 = vrot.lane.b32.xlu1 %v8742_v10, %s13547_s18 }
0x276f   : > { %7046 = vrot.lane.b32.xlu1 %v9537_v51, %s13541_s22 }
0x279d   : > { %v7021_v53 = vpop.permute.xlu0 %7020 }
0x279e   : > { %v7028_v33 = vsel %vm1269_vm3, %v7027_v31, %v7021_v53 }
0x27a1   : > { %v7035_v42 = vpop.permute.xlu0 %7034 }
0x27a2   : > { %9340 = vmatpush3.msra.mxu0 %v7035_v42  ;;  %v7968_v42 = vld [vmem:[%s13221_s9 + $0xa] ss:$0 sm:$0xff] }
0x27a3   : > { %9344 = vmatprep.subr.mxu0 %v13669_v35 }
0x27dd   : > { %v7025_v1 = vpop.permute.xlu1 %7024 }
0x27de   : > { %v7029_v58 = vsel %vm1271_vm4, %v7028_v33, %v7025_v1  ;;  %v7969_v1 = vld [vmem:[%s13221_s9 + $0xb] ss:$0 sm:$0xff] }
0x27df   : > { %9342 = vmatmul.mubr.msk.f32.vlgmr.msra.gmra.mxu0 %vm503_vm0, %v7029_v58 }
0x27e0   : > { %9352 = vmatprep.mubr.msk.f32.mxu0 %vm9547_vm1, %v13669_v35  ;;  %9345 = vmatpush3.msra.mxu0 %v7953_v47  ;;  %v7716_v47 = vld [vmem:[%s13221_s9 + $0xd] ss:$0 sm:$0xff] }
0x27e1   : > { %v7047_v20 = vpop.permute.xlu1 %7046  ;;  %9346 = vmatprep.subr.mxu0 %v13669_v35 }
0x27e2   : > { %9347 = vmatpush3.msra.mxu0 %v7952_v56 }
0x27e3   : > { %9348 = vmatprep.subr.mxu0 %v13669_v35 }
0x27e4   : > { %9349 = vmatpush3.msra.mxu0 %v7951_v48 }
0x27e5   : > { %9350 = vmatprep.subr.mxu0 %v13669_v35 }
0x27e6   : > { %9351 = vmatpush3.msra.mxu0 %v7950_v34 }
0x27e7   : > { %9355 = vmatprep.subr.mxu0 %v13669_v35 }
0x289f   : > { %v7118_v32 = vpop.f32.mrf.mxu0 }
0x28a0   : > { %v7119_v36 = vadd.f32 %v7118_v32, %v7047_v20 }
0x28a1   : > { %v9343_v44 = vpop.f32.mrf.mxu0 }
0x28a2   : > { %v7122_v27 = vadd.f32 %v7119_v36, %v13670_v28 }
0x28a4   : > { %v7127_v55 = vsel %vm503_vm0, %v7122_v27, 0.0 }
0x28a5   : > { %7128 = vadd.xlane.f32.xlu0 %v7127_v55 }
0x28bb   : > { %7250 = vrot.lane.b32.xlu0 %v7955_v21, %s13608_s26 }
0x292e   : > { %v7129_v0 = vpop.xlane.xlu0 %7128 }
0x292f   : > { %v7130_v14 = vmul.f32 0.03125, %v7129_v0 }
0x2931   : > { %v7131_v13 = vsub.f32 %v7122_v27, %v7130_v14 }
0x2932   : > { %v7251_v25 = vpop.permute.xlu0 %7250 }
0x2933   : > { %v7132_v62 = vmul.f32 %v7131_v13, %v7131_v13 }
0x2935   : > { %v7133_v41 = vsel %vm503_vm0, %v7132_v62, 0.0 }
0x2936   : > { %7134 = vadd.xlane.f32.xlu1 %v7133_v41 }
0x29bf   : > { %v7135_v11 = vpop.xlane.xlu1 %7134 }
0x29c0   : > { %v7136_v19 = vmul.f32 0.03125, %v7135_v11 }
0x29c2   : > { %v7137_v9 = vadd.f32 1e-05, %v7136_v19 }
0x29c4   : > { %9487 = vrsqrt.f32 %v7137_v9 }
0x29d1   : > { %v9488_v22 = vpop.eup %9487 }
0x29d2   : > { %v7139_v26 = vmul.f32 %v9488_v22, %v7131_v13  ;;  %v7715_v13 = vld [vmem:[%s13221_s9 + $0xc] ss:$0 sm:$0xff] }
0x29d4   : > { %v7146_v46 = vmul.f32 %v7948_v43, %v7139_v26 }
0x29d6   : > { %v7153_v7 = vadd.f32 %v7949_v24, %v7146_v46 }
0x29d8   : > { %9353 = vmatmul.mubr.msk.f32.vlgmr.msra.gmra.mxu0 %vm503_vm0, %v7153_v7 }
0x29d9   : > { %9356 = vmatpush3.msra.mxu0 %v7964_v6  ;;  %9371 = vmatprep.mubr.msk.f32.mxu0 %vm9547_vm1, %v13669_v35 }
0x29da   : > { %9357 = vmatprep.subr.mxu0 %v13669_v35 }
0x29db   : > { %9358 = vmatpush3.msra.mxu0 %v7963_v8 }
0x29dc   : > { %9359 = vmatprep.subr.mxu0 %v13669_v35 }
0x29dd   : > { %9360 = vmatpush3.msra.mxu0 %v7962_v52 }
0x29de   : > { %9361 = vmatprep.subr.mxu0 %v13669_v35 }
0x29df   : > { %9362 = vmatpush3.msra.mxu0 %v7961_v49 }
0x29e0   : > { %9363 = vmatprep.subr.mxu0 %v13669_v35 }
0x29e1   : > { %9364 = vmatpush3.msra.mxu0 %v7960_v16 }
0x29e2   : > { %9365 = vmatprep.subr.mxu0 %v13669_v35 }
0x29e3   : > { %9366 = vmatpush3.msra.mxu0 %v7959_v5 }
0x29e4   : > { %9367 = vmatprep.subr.mxu0 %v13669_v35 }
0x29e5   : > { %9368 = vmatpush3.msra.mxu0 %v7958_v18 }
0x29e6   : > { %9369 = vmatprep.subr.mxu0 %v13669_v35 }
0x29e7   : > { %9370 = vmatpush3.msra.mxu0 %v7957_v45 }
0x2a98   : > { %v7236_v57 = vpop.f32.mrf.mxu0 }
0x2a99   : > { %v7237_v12 = vadd.f32 %v7955_v21, %v7236_v57 }
0x2a9a   : > { %v9354_v29 = vpop.f32.mrf.mxu0 }
0x2a9b   : > { %v7240_v63 = vmax.f32 %v7237_v12, 0.0 }
0x2a9d   : > { %9372 = vmatmul.mubr.msk.f32.vlgmr.msra.gmra.mxu0 %vm3907_vm5, %v7240_v63 }
0x2b5d   : > { %v7322_v40 = vpop.f32.mrf.mxu0 }
0x2b5e   : > { %v7323_v38 = vadd.f32 %v7322_v40, %v7251_v25 }
0x2b5f   : > { %v9373_v31 = vpop.f32.mrf.mxu0 }
0x2b60   : > { %v7326_v59 = vadd.f32 %v7323_v38, %v7153_v7 }
0x2b62   : > { %v7331_v23 = vsel %vm503_vm0, %v7326_v59, 0.0 }
0x2b63   : > { %7332 = vadd.xlane.f32.xlu1 %v7331_v23 }
0x2bec   : > { %v7333_v39 = vpop.xlane.xlu1 %7332 }
0x2bed   : > { %v7334_v60 = vmul.f32 0.03125, %v7333_v39 }
0x2bef   : > { %v7335_v61 = vsub.f32 %v7326_v59, %v7334_v60 }
0x2bf1   : > { %v7336_v37 = vmul.f32 %v7335_v61, %v7335_v61 }
0x2bf3   : > { %v7337_v35 = vsel %vm503_vm0, %v7336_v37, 0.0 }
0x2bf4   : > { %7338 = vadd.xlane.f32.xlu1 %v7337_v35 }
0x2bf8   : > { %4018 = vadd.xlane.f32.xlu1 %v4017_v4 }
0x2c7d   : > { %v7339_v50 = vpop.xlane.xlu1 %7338 }
0x2c7e   : > { %v7340_v2 = vmul.f32 0.03125, %v7339_v50 }
0x2c80   : > { %v7341_v17 = vadd.f32 1e-05, %v7340_v2 }
0x2c81   : > { %v4019_v54 = vpop.xlane.xlu1 %4018 }
0x2c82   : > { %9489 = vrsqrt.f32 %v7341_v17  ;;  %v4020_v30 = vmul.f32 0.03125, %v4019_v54 }
0x2c84   : > { %v4021_v3 = vsub.f32 %v13671_v15, %v4020_v30 }
0x2c86   : > { %v4022_v10 = vmul.f32 %v4021_v3, %v4021_v3 }
0x2c88   : > { %v4023_v51 = vsel %vm503_vm0, %v4022_v10, 0.0 }
0x2c89   : > { %4024 = vadd.xlane.f32.xlu0 %v4023_v51 }
0x2c8f   : > { %v9490_v53 = vpop.eup %9489 }
0x2c90   : > { %v7343_v33 = vmul.f32 %v9490_v53, %v7335_v61 }
0x2c92   : > { %v7350_v58 = vmul.f32 %v7968_v42, %v7343_v33 }
0x2c94   : > { %v7357_v20 = vadd.f32 %v7969_v1, %v7350_v58 }
0x2c96   : > { %v7360_v32 = vsel %vm503_vm0, %v7357_v20, 0.0 }
0x2c97   : > { %7361 = vadd.xlane.f32.xlu1 %v7360_v32 }
0x2d12   : > { %v4025_v36 = vpop.xlane.xlu0 %4024 }
0x2d13   : > { %v4026_v44 = vmul.f32 0.03125, %v4025_v36 }
0x2d15   : > { %v4027_v28 = vadd.f32 1e-05, %v4026_v44 }
0x2d17   : > { %9491 = vrsqrt.f32 %v4027_v28 }
0x2d20   : > { %v7362_v27 = vpop.xlane.xlu1 %7361 }
0x2d21   : > { %v7363_v55 = vmul.f32 0.03125, %v7362_v27 }
0x2d23   : > { %v7364_v0 = vsub.f32 %v7357_v20, %v7363_v55 }
0x2d24   : > { %v9492_v14 = vpop.eup %9491 }
0x2d25   : > { %v4029_v62 = vmul.f32 %v9492_v14, %v4021_v3  ;;  %v7365_v41 = vmul.f32 %v7364_v0, %v7364_v0 }
0x2d27   : > { %v4036_v56 = vmul.f32 %v7715_v13, %v4029_v62  ;;  %v7366_v48 = vsel %vm503_vm0, %v7365_v41, 0.0 }
0x2d28   : > { %7367 = vadd.xlane.f32.xlu1 %v7366_v48 }
0x2d29   : > { %v4043_v34 = vadd.f32 %v7716_v47, %v4036_v56 }
0x2d2b   : > { %4044 = vst.msk [vmem:[%s396_s30] sm:$0xff] %vm503_vm0, %v4043_v34 }
0x2db1   : > { %v7368_v21 = vpop.xlane.xlu1 %7367 }
0x2db2   : > { %v7369_v11 = vmul.f32 0.03125, %v7368_v21 }
0x2db4   : > { %v7370_v19 = vadd.f32 1e-05, %v7369_v11 }
0x2db6   : > { %9493 = vrsqrt.f32 %v7370_v19 }
0x2dc3   : > { %v9494_v9 = vpop.eup %9493 }
0x2dc4   : > { %v7372_v22 = vmul.f32 %v9494_v9, %v7364_v0 }
0x2dc6   : > { %v7379_v43 = vmul.f32 %v7715_v13, %v7372_v22 }
0x2dc8   : > { %v7386_v26 = vadd.f32 %v7716_v47, %v7379_v43 }
0x2dca   : > { %7974 = vst.msk [vmem:[%s396_s30 + $0x8] sm:$0xff] %vm503_vm0, %v7386_v26 }
0x2dcb PF: > { %s20_s13 = sadd.s32 1, %s9544_s13  }
0x2dcc   : > { %p17_p4 = scmp.ge.s32.totalorder %s20_s13, 4  }
0x2dce   :  { %19 = sbr.rel (!%p17_p4) target bundleno = 5 (0x5), region = 119 }

</bundles_post_ra>
